<compile_context>
chip_gen: v5e
topology: v5e:2x2
jax: 0.10.0
libtpu: 0.0.40
codegen_flags: <defaults>
</compile_context>

<pallas_src>
import numpy as np
import jax
import jax.numpy as jnp
from jax.experimental import pallas as pl
from jax.experimental.pallas import tpu as pltpu

_BN_EPS = 1e-5
_VMEM_LIMIT = 32 * 1024 * 1024  # explicit scoped-VMEM budget (safe on v5e/v6e/v7x)


# ---------------------------------------------------------------------------
# Kernel bodies
# ---------------------------------------------------------------------------

def _bn_relu_res(z, g_ref, b_ref, r_ref):
    """Training-mode BatchNorm (batch stats over rows, biased var) + ReLU (+ residual)."""
    mean = jnp.mean(z, axis=0, keepdims=True)
    ctr = z - mean
    var = jnp.mean(ctr * ctr, axis=0, keepdims=True)
    scale = g_ref[...] * jax.lax.rsqrt(var + _BN_EPS)   # fold gamma into one scale
    y = jnp.maximum(ctr * scale + b_ref[...], 0.0)
    if r_ref is not None:
        y = y + r_ref[...]                              # x = relu(bn(conv(x))) + residual
    return y


def _make_conv_kernel_pad(k, Ho, Wo, fuse_residual):
    """Stride-1 KxK conv: taps sliced in-kernel from the padded NHWC input (no HBM im2col)."""
    def kernel(x_ref, w_ref, g_ref, b_ref, *rest):
        if fuse_residual:
            r_ref, o_ref = rest
        else:
            r_ref, o_ref = None, rest[0]
        N, _, _, Cin = x_ref.shape
        M = N * Ho * Wo
        ct = o_ref.shape[1]
        acc = jnp.zeros((M, ct), jnp.float32)
        for i in range(k):
            for j in range(k):
                win = x_ref[:, i:i + Ho, j:j + Wo, :]           # (N, Ho, Wo, Cin)
                acc = acc + jnp.dot(win.reshape(M, Cin), w_ref[i * k + j],
                                    preferred_element_type=jnp.float32)
        o_ref[...] = _bn_relu_res(acc, g_ref, b_ref, r_ref)
    return kernel


def _make_conv_kernel_taps(fuse_residual):
    """Strided conv: taps pre-gathered as (T, M, Cin); matmul-accumulate over taps."""
    def kernel(t_ref, w_ref, g_ref, b_ref, *rest):
        if fuse_residual:
            r_ref, o_ref = rest
        else:
            r_ref, o_ref = None, rest[0]
        T, M, _ = t_ref.shape
        ct = o_ref.shape[1]
        acc = jnp.zeros((M, ct), jnp.float32)
        for t in range(T):
            acc = acc + jnp.dot(t_ref[t], w_ref[t], preferred_element_type=jnp.float32)
        o_ref[...] = _bn_relu_res(acc, g_ref, b_ref, r_ref)
    return kernel


def _maxpool4_kernel(a_ref, b_ref, c_ref, d_ref, o_ref):
    # 2x2 / stride-2 max pool as an elementwise max of 4 shifted lane-dense slabs.
    o_ref[...] = jnp.maximum(jnp.maximum(a_ref[...], b_ref[...]),
                             jnp.maximum(c_ref[...], d_ref[...]))


# ---------------------------------------------------------------------------
# Pallas wrappers
# ---------------------------------------------------------------------------

def _channel_tile(cout):
    # Lane-dense Cout tiles; <=256 wide per block (MXU-friendly on v6e/v7x).
    if cout <= 256:
        return cout
    for t in (256, 128):
        if cout % t == 0:
            return t
    return cout


def _conv_pallas(kernel, x_arr, w_taps, gamma, beta, res2d, M, Cout):
    T, Cin, _ = w_taps.shape
    ct = _channel_tile(Cout)
    x_block = x_arr.shape                       # whole (small) input per program
    in_specs = [
        pl.BlockSpec(x_block, lambda c: (0,) * len(x_block)),
        pl.BlockSpec((T, Cin, ct), lambda c: (0, 0, c)),
        pl.BlockSpec((1, ct), lambda c: (0, c)),
        pl.BlockSpec((1, ct), lambda c: (0, c)),
    ]
    args = [x_arr, w_taps, gamma, beta]
    if res2d is not None:
        in_specs.append(pl.BlockSpec((M, ct), lambda c: (0, c)))
        args.append(res2d)
    return pl.pallas_call(
        kernel,
        out_shape=jax.ShapeDtypeStruct((M, Cout), jnp.float32),
        grid=(Cout // ct,),
        in_specs=in_specs,
        out_specs=pl.BlockSpec((M, ct), lambda c: (0, c)),
        compiler_params=pltpu.CompilerParams(
            dimension_semantics=("parallel",),   # Cout tiles independent (per-channel BN)
            vmem_limit_bytes=_VMEM_LIMIT),
    )(*args)


def conv_bn_relu(x, p, stride, padding, residual=None):
    """Fused Conv2d(k) + BatchNorm2d(train) + ReLU (+ residual). x, residual: NHWC f32."""
    N, H, W, Cin = x.shape
    w_taps = p["w_taps"]                        # (k*k, Cin, Cout)
    T, _, Cout = w_taps.shape
    k = int(round(T ** 0.5))
    Ho = (H + 2 * padding - k) // stride + 1
    Wo = (W + 2 * padding - k) // stride + 1
    M = N * Ho * Wo
    res2d = None if residual is None else residual.reshape(M, Cout)
    if padding:
        x = jnp.pad(x, ((0, 0), (padding, padding), (padding, padding), (0, 0)))
    if stride == 1:
        kern = _make_conv_kernel_pad(k, Ho, Wo, res2d is not None)
        y = _conv_pallas(kern, x, w_taps, p["gamma"], p["beta"], res2d, M, Cout)
    else:
        # Only the single downsampling conv takes this path: gather k*k strided slabs
        # with XLA slices (output is at 1/stride^2 resolution -> ~k*k/4 x input bytes).
        taps = [x[:, i:i + stride * Ho:stride, j:j + stride * Wo:stride, :].reshape(M, Cin)
                for i in range(k) for j in range(k)]
        taps = jnp.stack(taps, axis=0)          # (T, M, Cin)
        kern = _make_conv_kernel_taps(res2d is not None)
        y = _conv_pallas(kern, taps, w_taps, p["gamma"], p["beta"], res2d, M, Cout)
    return y.reshape(N, Ho, Wo, Cout)


def maxpool2x2(x):
    """nn.MaxPool2d(kernel_size=2) on NHWC input (stride 2, no padding)."""
    N, H, W, C = x.shape
    Ho, Wo = H // 2, W // 2
    M = N * Ho * Wo
    slabs = [x[:, i:i + 2 * Ho:2, j:j + 2 * Wo:2, :].reshape(M, C)
             for i in range(2) for j in range(2)]
    out = pl.pallas_call(
        _maxpool4_kernel,
        out_shape=jax.ShapeDtypeStruct((M, C), jnp.float32),
        in_specs=[pl.BlockSpec(memory_space=pltpu.MemorySpace.VMEM)] * 4,
        out_specs=pl.BlockSpec(memory_space=pltpu.MemorySpace.VMEM),
        compiler_params=pltpu.CompilerParams(vmem_limit_bytes=_VMEM_LIMIT),
    )(*slabs)
    return out.reshape(N, Ho, Wo, C)


# ---------------------------------------------------------------------------
# Stage forward (matches the PyTorch module's control flow)
# ---------------------------------------------------------------------------

def stage_forward(x_nchw, params, in_channels, out_channels, stride):
    x = jnp.transpose(x_nchw, (0, 2, 3, 1))             # single NCHW->NHWC at the boundary
    if stride == 2:
        residual = conv_bn_relu(x, params["conv1_1"], stride=1, padding=0)
        residual = maxpool2x2(residual)
    elif in_channels == out_channels:
        residual = x
    else:
        residual = conv_bn_relu(x, params["conv1_1"], stride=1, padding=0)
    y = conv_bn_relu(x, params["conv1"], stride=stride, padding=1)
    y = conv_bn_relu(y, params["conv2"], stride=1, padding=1, residual=residual)  # fused add
    residual = y
    y = conv_bn_relu(y, params["conv3"], stride=1, padding=1)
    y = conv_bn_relu(y, params["conv4"], stride=1, padding=1, residual=residual)  # fused add
    return jnp.transpose(y, (0, 3, 1, 2))               # back to NCHW


# ---------------------------------------------------------------------------
# Deterministic parameter init (PyTorch-shaped) + one-time repack outside jit
# ---------------------------------------------------------------------------

def init_cbr(key, cin, cout, k):
    kw_, kb_ = jax.random.split(key)
    fan_in = cin * k * k
    return {
        "w": jax.random.normal(kw_, (cout, cin, k, k), jnp.float32) / np.sqrt(fan_in),
        # Conv bias kept for shape fidelity, but it cancels exactly under
        # training-mode BatchNorm (absorbed by the batch mean) -> not applied.
        "b": 0.1 * jax.random.normal(kb_, (cout,), jnp.float32),
        "gamma": jnp.ones((cout,), jnp.float32),         # BatchNorm2d default affine init
        "beta": jnp.zeros((cout,), jnp.float32),
    }


def init_stage_params(key, cin, cout):
    ks = jax.random.split(key, 5)
    return {
        "conv1_1": init_cbr(ks[0], cin, cout, 1),
        "conv1": init_cbr(ks[1], cin, cout, 3),
        "conv2": init_cbr(ks[2], cout, cout, 3),
        "conv3": init_cbr(ks[3], cout, cout, 3),
        "conv4": init_cbr(ks[4], cout, cout, 3),
    }


def prepare_cbr(p):
    """One-time (outside jit) repack into per-tap (Cin, Cout) weight matrices."""
    cout, cin, kh, kw = p["w"].shape
    return {
        "w_taps": jnp.transpose(p["w"], (2, 3, 1, 0)).reshape(kh * kw, cin, cout),
        "gamma": p["gamma"].reshape(1, cout),
        "beta": p["beta"].reshape(1, cout),
    }


def prepare_stage_params(params):
    return {name: prepare_cbr(p) for name, p in params.items()}


# ---------------------------------------------------------------------------

if __name__ == "__main__":
    N, H, W = 2, 16, 16
    IN_CH, OUT_CH, STRIDE = 64, 128, 2          # exercises conv1_1 + pool + all convs

    key = jax.random.PRNGKey(0)
    kx, kp = jax.random.split(key)
    x = jax.random.normal(kx, (N, IN_CH, H, W), dtype=jnp.float32)
    raw_params = init_stage_params(kp, IN_CH, OUT_CH)
    params = prepare_stage_params(raw_params)   # weight repack hoisted out of the jit

    fwd = jax.jit(lambda xx, pp: stage_forward(xx, pp, IN_CH, OUT_CH, STRIDE))
    out = fwd(x, params)
    jax.block_until_ready(out)

    assert out.shape == (N, OUT_CH, H // 2, W // 2), out.shape
    assert bool(jnp.all(jnp.isfinite(out)))
    print("KERNEL_OK")
</pallas_src>

<mosaic_0001>
module attributes {stable_mosaic.version = 11 : i64} {
  func.func @kernel(%arg0: i32, %arg1: memref<2x16x16x64xf32, #tpu.memory_space<vmem>>, %arg2: memref<1x64x128xf32, #tpu.memory_space<vmem>>, %arg3: memref<1x128xf32, #tpu.memory_space<vmem>>, %arg4: memref<1x128xf32, #tpu.memory_space<vmem>>, %arg5: memref<512x128xf32, #tpu.memory_space<vmem>>) attributes {dimension_semantics = [#tpu.dimension_semantics<parallel>], iteration_bounds = array<i64: 1>, scalar_prefetch = 0 : i64, scratch_operands = 0 : i64, tpu.core_type = #tpu.core_type<tc>, window_params = [{pipeline_mode = #tpu.pipeline_mode<synchronous>, transform_indices = @transform_0, window_bounds = array<i64: 2, 16, 16, 64>}, {transform_indices = @transform_1, window_bounds = array<i64: 1, 64, 128>}, {transform_indices = @transform_2, window_bounds = array<i64: 1, 128>}, {transform_indices = @transform_3, window_bounds = array<i64: 1, 128>}, {transform_indices = @transform_4, window_bounds = array<i64: 512, 128>}]} {
    %cst = arith.constant 0.000000e+00 : f32
    %0 = vector.broadcast %cst : f32 to vector<512x128xf32>
    %c0 = arith.constant 0 : index
    %c0_0 = arith.constant 0 : index
    %c0_1 = arith.constant 0 : index
    %c0_2 = arith.constant 0 : index
    %1 = vector.load %arg1[%c0, %c0_0, %c0_1, %c0_2] : memref<2x16x16x64xf32, #tpu.memory_space<vmem>>, vector<2x16x16x64xf32>
    %2 = vector.shape_cast %1 : vector<2x16x16x64xf32> to vector<512x64xf32>
    %c0_3 = arith.constant 0 : index
    %c0_4 = arith.constant 0 : index
    %c0_5 = arith.constant 0 : index
    %3 = vector.load %arg2[%c0_3, %c0_4, %c0_5] : memref<1x64x128xf32, #tpu.memory_space<vmem>>, vector<1x64x128xf32>
    %4 = vector.shape_cast %3 : vector<1x64x128xf32> to vector<64x128xf32>
    %cst_6 = arith.constant dense<0.000000e+00> : vector<512x128xf32>
    %5 = tpu.matmul %2, %4, %cst_6 {dimension_numbers = #tpu.dot_dimension_numbers<[1], [0], [0], [1], [0, 0, 1, 1], [], []>} : vector<512x64xf32>, vector<64x128xf32>, vector<512x128xf32> -> vector<512x128xf32>
    %6 = arith.addf %0, %5 : vector<512x128xf32>
    %cst_7 = arith.constant dense<0.000000e+00> : vector<128xf32>
    %7 = vector.multi_reduction <add>, %6, %cst_7 [0] : vector<512x128xf32> to vector<128xf32>
    %8 = vector.shape_cast %7 : vector<128xf32> to vector<1x128xf32>
    %cst_8 = arith.constant 5.120000e+02 : f32
    %9 = vector.broadcast %cst_8 : f32 to vector<1x128xf32>
    %10 = arith.divf %8, %9 : vector<1x128xf32>
    %11 = vector.broadcast %10 : vector<1x128xf32> to vector<512x128xf32>
    %12 = arith.subf %6, %11 : vector<512x128xf32>
    %13 = arith.mulf %12, %12 : vector<512x128xf32>
    %cst_9 = arith.constant dense<0.000000e+00> : vector<128xf32>
    %14 = vector.multi_reduction <add>, %13, %cst_9 [0] : vector<512x128xf32> to vector<128xf32>
    %15 = vector.shape_cast %14 : vector<128xf32> to vector<1x128xf32>
    %cst_10 = arith.constant 5.120000e+02 : f32
    %16 = vector.broadcast %cst_10 : f32 to vector<1x128xf32>
    %17 = arith.divf %15, %16 : vector<1x128xf32>
    %c0_11 = arith.constant 0 : index
    %c0_12 = arith.constant 0 : index
    %18 = vector.load %arg3[%c0_11, %c0_12] : memref<1x128xf32, #tpu.memory_space<vmem>>, vector<1x128xf32>
    %cst_13 = arith.constant 9.99999974E-6 : f32
    %19 = vector.broadcast %cst_13 : f32 to vector<1x128xf32>
    %20 = arith.addf %17, %19 : vector<1x128xf32>
    %21 = math.rsqrt %20 : vector<1x128xf32>
    %22 = arith.mulf %18, %21 : vector<1x128xf32>
    %23 = vector.broadcast %22 : vector<1x128xf32> to vector<512x128xf32>
    %24 = arith.mulf %12, %23 : vector<512x128xf32>
    %c0_14 = arith.constant 0 : index
    %c0_15 = arith.constant 0 : index
    %25 = vector.load %arg4[%c0_14, %c0_15] : memref<1x128xf32, #tpu.memory_space<vmem>>, vector<1x128xf32>
    %26 = vector.broadcast %25 : vector<1x128xf32> to vector<512x128xf32>
    %27 = arith.addf %24, %26 : vector<512x128xf32>
    %cst_16 = arith.constant 0.000000e+00 : f32
    %28 = vector.broadcast %cst_16 : f32 to vector<512x128xf32>
    %29 = arith.maximumf %27, %28 : vector<512x128xf32>
    %c0_17 = arith.constant 0 : index
    %c0_18 = arith.constant 0 : index
    %30 = vector.load %arg5[%c0_17, %c0_18] : memref<512x128xf32, #tpu.memory_space<vmem>>, vector<512x128xf32>
    tpu.vector_store %arg5[%c0_17, %c0_18], %29 {strides = array<i32>} : memref<512x128xf32, #tpu.memory_space<vmem>>, vector<512x128xf32>,
    return
  }
  func.func @transform_0(%arg0: i32) -> (i32, i32, i32, i32) {
    %c0_i32 = arith.constant 0 : i32
    %c0_i32_0 = arith.constant 0 : i32
    %c0_i32_1 = arith.constant 0 : i32
    %c0_i32_2 = arith.constant 0 : i32
    %c0_i32_3 = arith.constant 0 : i32
    return %c0_i32, %c0_i32_0, %c0_i32_1, %c0_i32_2 : i32, i32, i32, i32
  }
  func.func @transform_1(%arg0: i32) -> (i32, i32, i32) {
    %c0_i32 = arith.constant 0 : i32
    %c0_i32_0 = arith.constant 0 : i32
    %c0_i32_1 = arith.constant 0 : i32
    return %c0_i32, %c0_i32_0, %arg0 : i32, i32, i32
  }
  func.func @transform_2(%arg0: i32) -> (i32, i32) {
    %c0_i32 = arith.constant 0 : i32
    %c0_i32_0 = arith.constant 0 : i32
    return %c0_i32, %arg0 : i32, i32
  }
  func.func @transform_3(%arg0: i32) -> (i32, i32) {
    %c0_i32 = arith.constant 0 : i32
    %c0_i32_0 = arith.constant 0 : i32
    return %c0_i32, %arg0 : i32, i32
  }
  func.func @transform_4(%arg0: i32) -> (i32, i32) {
    %c0_i32 = arith.constant 0 : i32
    %c0_i32_0 = arith.constant 0 : i32
    return %c0_i32, %arg0 : i32, i32
  }
}

module attributes {stable_mosaic.version = 11 : i64} {
  func.func @kernel(%arg0: i32, %arg1: memref<9x128x64xf32, #tpu.memory_space<vmem>>, %arg2: memref<9x64x128xf32, #tpu.memory_space<vmem>>, %arg3: memref<1x128xf32, #tpu.memory_space<vmem>>, %arg4: memref<1x128xf32, #tpu.memory_space<vmem>>, %arg5: memref<128x128xf32, #tpu.memory_space<vmem>>) attributes {dimension_semantics = [#tpu.dimension_semantics<parallel>], iteration_bounds = array<i64: 1>, scalar_prefetch = 0 : i64, scratch_operands = 0 : i64, tpu.core_type = #tpu.core_type<tc>, window_params = [{pipeline_mode = #tpu.pipeline_mode<synchronous>, transform_indices = @transform_0, window_bounds = array<i64: 9, 128, 64>}, {transform_indices = @transform_1, window_bounds = array<i64: 9, 64, 128>}, {transform_indices = @transform_2, window_bounds = array<i64: 1, 128>}, {transform_indices = @transform_3, window_bounds = array<i64: 1, 128>}, {transform_indices = @transform_4, window_bounds = array<i64: 128, 128>}]} {
    %cst = arith.constant 0.000000e+00 : f32
    %0 = vector.broadcast %cst : f32 to vector<128x128xf32>
    %c0 = arith.constant 0 : index
    %c0_0 = arith.constant 0 : index
    %c0_1 = arith.constant 0 : index
    %1 = vector.load %arg1[%c0, %c0_0, %c0_1] : memref<9x128x64xf32, #tpu.memory_space<vmem>>, vector<1x128x64xf32>
    %2 = vector.shape_cast %1 : vector<1x128x64xf32> to vector<128x64xf32>
    %c0_2 = arith.constant 0 : index
    %c0_3 = arith.constant 0 : index
    %c0_4 = arith.constant 0 : index
    %3 = vector.load %arg2[%c0_2, %c0_3, %c0_4] : memref<9x64x128xf32, #tpu.memory_space<vmem>>, vector<1x64x128xf32>
    %4 = vector.shape_cast %3 : vector<1x64x128xf32> to vector<64x128xf32>
    %cst_5 = arith.constant dense<0.000000e+00> : vector<128x128xf32>
    %5 = tpu.matmul %2, %4, %cst_5 {dimension_numbers = #tpu.dot_dimension_numbers<[1], [0], [0], [1], [0, 0, 1, 1], [], []>} : vector<128x64xf32>, vector<64x128xf32>, vector<128x128xf32> -> vector<128x128xf32>
    %6 = arith.addf %0, %5 : vector<128x128xf32>
    %c1 = arith.constant 1 : index
    %c0_6 = arith.constant 0 : index
    %c0_7 = arith.constant 0 : index
    %7 = vector.load %arg1[%c1, %c0_6, %c0_7] : memref<9x128x64xf32, #tpu.memory_space<vmem>>, vector<1x128x64xf32>
    %8 = vector.shape_cast %7 : vector<1x128x64xf32> to vector<128x64xf32>
    %c1_8 = arith.constant 1 : index
    %c0_9 = arith.constant 0 : index
    %c0_10 = arith.constant 0 : index
    %9 = vector.load %arg2[%c1_8, %c0_9, %c0_10] : memref<9x64x128xf32, #tpu.memory_space<vmem>>, vector<1x64x128xf32>
    %10 = vector.shape_cast %9 : vector<1x64x128xf32> to vector<64x128xf32>
    %cst_11 = arith.constant dense<0.000000e+00> : vector<128x128xf32>
    %11 = tpu.matmul %8, %10, %cst_11 {dimension_numbers = #tpu.dot_dimension_numbers<[1], [0], [0], [1], [0, 0, 1, 1], [], []>} : vector<128x64xf32>, vector<64x128xf32>, vector<128x128xf32> -> vector<128x128xf32>
    %12 = arith.addf %6, %11 : vector<128x128xf32>
    %c2 = arith.constant 2 : index
    %c0_12 = arith.constant 0 : index
    %c0_13 = arith.constant 0 : index
    %13 = vector.load %arg1[%c2, %c0_12, %c0_13] : memref<9x128x64xf32, #tpu.memory_space<vmem>>, vector<1x128x64xf32>
    %14 = vector.shape_cast %13 : vector<1x128x64xf32> to vector<128x64xf32>
    %c2_14 = arith.constant 2 : index
    %c0_15 = arith.constant 0 : index
    %c0_16 = arith.constant 0 : index
    %15 = vector.load %arg2[%c2_14, %c0_15, %c0_16] : memref<9x64x128xf32, #tpu.memory_space<vmem>>, vector<1x64x128xf32>
    %16 = vector.shape_cast %15 : vector<1x64x128xf32> to vector<64x128xf32>
    %cst_17 = arith.constant dense<0.000000e+00> : vector<128x128xf32>
    %17 = tpu.matmul %14, %16, %cst_17 {dimension_numbers = #tpu.dot_dimension_numbers<[1], [0], [0], [1], [0, 0, 1, 1], [], []>} : vector<128x64xf32>, vector<64x128xf32>, vector<128x128xf32> -> vector<128x128xf32>
    %18 = arith.addf %12, %17 : vector<128x128xf32>
    %c3 = arith.constant 3 : index
    %c0_18 = arith.constant 0 : index
    %c0_19 = arith.constant 0 : index
    %19 = vector.load %arg1[%c3, %c0_18, %c0_19] : memref<9x128x64xf32, #tpu.memory_space<vmem>>, vector<1x128x64xf32>
    %20 = vector.shape_cast %19 : vector<1x128x64xf32> to vector<128x64xf32>
    %c3_20 = arith.constant 3 : index
    %c0_21 = arith.constant 0 : index
    %c0_22 = arith.constant 0 : index
    %21 = vector.load %arg2[%c3_20, %c0_21, %c0_22] : memref<9x64x128xf32, #tpu.memory_space<vmem>>, vector<1x64x128xf32>
    %22 = vector.shape_cast %21 : vector<1x64x128xf32> to vector<64x128xf32>
    %cst_23 = arith.constant dense<0.000000e+00> : vector<128x128xf32>
    %23 = tpu.matmul %20, %22, %cst_23 {dimension_numbers = #tpu.dot_dimension_numbers<[1], [0], [0], [1], [0, 0, 1, 1], [], []>} : vector<128x64xf32>, vector<64x128xf32>, vector<128x128xf32> -> vector<128x128xf32>
    %24 = arith.addf %18, %23 : vector<128x128xf32>
    %c4 = arith.constant 4 : index
    %c0_24 = arith.constant 0 : index
    %c0_25 = arith.constant 0 : index
    %25 = vector.load %arg1[%c4, %c0_24, %c0_25] : memref<9x128x64xf32, #tpu.memory_space<vmem>>, vector<1x128x64xf32>
    %26 = vector.shape_cast %25 : vector<1x128x64xf32> to vector<128x64xf32>
    %c4_26 = arith.constant 4 : index
    %c0_27 = arith.constant 0 : index
    %c0_28 = arith.constant 0 : index
    %27 = vector.load %arg2[%c4_26, %c0_27, %c0_28] : memref<9x64x128xf32, #tpu.memory_space<vmem>>, vector<1x64x128xf32>
    %28 = vector.shape_cast %27 : vector<1x64x128xf32> to vector<64x128xf32>
    %cst_29 = arith.constant dense<0.000000e+00> : vector<128x128xf32>
    %29 = tpu.matmul %26, %28, %cst_29 {dimension_numbers = #tpu.dot_dimension_numbers<[1], [0], [0], [1], [0, 0, 1, 1], [], []>} : vector<128x64xf32>, vector<64x128xf32>, vector<128x128xf32> -> vector<128x128xf32>
    %30 = arith.addf %24, %29 : vector<128x128xf32>
    %c5 = arith.constant 5 : index
    %c0_30 = arith.constant 0 : index
    %c0_31 = arith.constant 0 : index
    %31 = vector.load %arg1[%c5, %c0_30, %c0_31] : memref<9x128x64xf32, #tpu.memory_space<vmem>>, vector<1x128x64xf32>
    %32 = vector.shape_cast %31 : vector<1x128x64xf32> to vector<128x64xf32>
    %c5_32 = arith.constant 5 : index
    %c0_33 = arith.constant 0 : index
    %c0_34 = arith.constant 0 : index
    %33 = vector.load %arg2[%c5_32, %c0_33, %c0_34] : memref<9x64x128xf32, #tpu.memory_space<vmem>>, vector<1x64x128xf32>
    %34 = vector.shape_cast %33 : vector<1x64x128xf32> to vector<64x128xf32>
    %cst_35 = arith.constant dense<0.000000e+00> : vector<128x128xf32>
    %35 = tpu.matmul %32, %34, %cst_35 {dimension_numbers = #tpu.dot_dimension_numbers<[1], [0], [0], [1], [0, 0, 1, 1], [], []>} : vector<128x64xf32>, vector<64x128xf32>, vector<128x128xf32> -> vector<128x128xf32>
    %36 = arith.addf %30, %35 : vector<128x128xf32>
    %c6 = arith.constant 6 : index
    %c0_36 = arith.constant 0 : index
    %c0_37 = arith.constant 0 : index
    %37 = vector.load %arg1[%c6, %c0_36, %c0_37] : memref<9x128x64xf32, #tpu.memory_space<vmem>>, vector<1x128x64xf32>
    %38 = vector.shape_cast %37 : vector<1x128x64xf32> to vector<128x64xf32>
    %c6_38 = arith.constant 6 : index
    %c0_39 = arith.constant 0 : index
    %c0_40 = arith.constant 0 : index
    %39 = vector.load %arg2[%c6_38, %c0_39, %c0_40] : memref<9x64x128xf32, #tpu.memory_space<vmem>>, vector<1x64x128xf32>
    %40 = vector.shape_cast %39 : vector<1x64x128xf32> to vector<64x128xf32>
    %cst_41 = arith.constant dense<0.000000e+00> : vector<128x128xf32>
    %41 = tpu.matmul %38, %40, %cst_41 {dimension_numbers = #tpu.dot_dimension_numbers<[1], [0], [0], [1], [0, 0, 1, 1], [], []>} : vector<128x64xf32>, vector<64x128xf32>, vector<128x128xf32> -> vector<128x128xf32>
    %42 = arith.addf %36, %41 : vector<128x128xf32>
    %c7 = arith.constant 7 : index
    %c0_42 = arith.constant 0 : index
    %c0_43 = arith.constant 0 : index
    %43 = vector.load %arg1[%c7, %c0_42, %c0_43] : memref<9x128x64xf32, #tpu.memory_space<vmem>>, vector<1x128x64xf32>
    %44 = vector.shape_cast %43 : vector<1x128x64xf32> to vector<128x64xf32>
    %c7_44 = arith.constant 7 : index
    %c0_45 = arith.constant 0 : index
    %c0_46 = arith.constant 0 : index
    %45 = vector.load %arg2[%c7_44, %c0_45, %c0_46] : memref<9x64x128xf32, #tpu.memory_space<vmem>>, vector<1x64x128xf32>
    %46 = vector.shape_cast %45 : vector<1x64x128xf32> to vector<64x128xf32>
    %cst_47 = arith.constant dense<0.000000e+00> : vector<128x128xf32>
    %47 = tpu.matmul %44, %46, %cst_47 {dimension_numbers = #tpu.dot_dimension_numbers<[1], [0], [0], [1], [0, 0, 1, 1], [], []>} : vector<128x64xf32>, vector<64x128xf32>, vector<128x128xf32> -> vector<128x128xf32>
    %48 = arith.addf %42, %47 : vector<128x128xf32>
    %c8 = arith.constant 8 : index
    %c0_48 = arith.constant 0 : index
    %c0_49 = arith.constant 0 : index
    %49 = vector.load %arg1[%c8, %c0_48, %c0_49] : memref<9x128x64xf32, #tpu.memory_space<vmem>>, vector<1x128x64xf32>
    %50 = vector.shape_cast %49 : vector<1x128x64xf32> to vector<128x64xf32>
    %c8_50 = arith.constant 8 : index
    %c0_51 = arith.constant 0 : index
    %c0_52 = arith.constant 0 : index
    %51 = vector.load %arg2[%c8_50, %c0_51, %c0_52] : memref<9x64x128xf32, #tpu.memory_space<vmem>>, vector<1x64x128xf32>
    %52 = vector.shape_cast %51 : vector<1x64x128xf32> to vector<64x128xf32>
    %cst_53 = arith.constant dense<0.000000e+00> : vector<128x128xf32>
    %53 = tpu.matmul %50, %52, %cst_53 {dimension_numbers = #tpu.dot_dimension_numbers<[1], [0], [0], [1], [0, 0, 1, 1], [], []>} : vector<128x64xf32>, vector<64x128xf32>, vector<128x128xf32> -> vector<128x128xf32>
    %54 = arith.addf %48, %53 : vector<128x128xf32>
    %cst_54 = arith.constant dense<0.000000e+00> : vector<128xf32>
    %55 = vector.multi_reduction <add>, %54, %cst_54 [0] : vector<128x128xf32> to vector<128xf32>
    %56 = vector.shape_cast %55 : vector<128xf32> to vector<1x128xf32>
    %cst_55 = arith.constant 1.280000e+02 : f32
    %57 = vector.broadcast %cst_55 : f32 to vector<1x128xf32>
    %58 = arith.divf %56, %57 : vector<1x128xf32>
    %59 = vector.broadcast %58 : vector<1x128xf32> to vector<128x128xf32>
    %60 = arith.subf %54, %59 : vector<128x128xf32>
    %61 = arith.mulf %60, %60 : vector<128x128xf32>
    %cst_56 = arith.constant dense<0.000000e+00> : vector<128xf32>
    %62 = vector.multi_reduction <add>, %61, %cst_56 [0] : vector<128x128xf32> to vector<128xf32>
    %63 = vector.shape_cast %62 : vector<128xf32> to vector<1x128xf32>
    %cst_57 = arith.constant 1.280000e+02 : f32
    %64 = vector.broadcast %cst_57 : f32 to vector<1x128xf32>
    %65 = arith.divf %63, %64 : vector<1x128xf32>
    %c0_58 = arith.constant 0 : index
    %c0_59 = arith.constant 0 : index
    %66 = vector.load %arg3[%c0_58, %c0_59] : memref<1x128xf32, #tpu.memory_space<vmem>>, vector<1x128xf32>
    %cst_60 = arith.constant 9.99999974E-6 : f32
    %67 = vector.broadcast %cst_60 : f32 to vector<1x128xf32>
    %68 = arith.addf %65, %67 : vector<1x128xf32>
    %69 = math.rsqrt %68 : vector<1x128xf32>
    %70 = arith.mulf %66, %69 : vector<1x128xf32>
    %71 = vector.broadcast %70 : vector<1x128xf32> to vector<128x128xf32>
    %72 = arith.mulf %60, %71 : vector<128x128xf32>
    %c0_61 = arith.constant 0 : index
    %c0_62 = arith.constant 0 : index
    %73 = vector.load %arg4[%c0_61, %c0_62] : memref<1x128xf32, #tpu.memory_space<vmem>>, vector<1x128xf32>
    %74 = vector.broadcast %73 : vector<1x128xf32> to vector<128x128xf32>
    %75 = arith.addf %72, %74 : vector<128x128xf32>
    %cst_63 = arith.constant 0.000000e+00 : f32
    %76 = vector.broadcast %cst_63 : f32 to vector<128x128xf32>
    %77 = arith.maximumf %75, %76 : vector<128x128xf32>
    %c0_64 = arith.constant 0 : index
    %c0_65 = arith.constant 0 : index
    %78 = vector.load %arg5[%c0_64, %c0_65] : memref<128x128xf32, #tpu.memory_space<vmem>>, vector<128x128xf32>
    tpu.vector_store %arg5[%c0_64, %c0_65], %77 {strides = array<i32>} : memref<128x128xf32, #tpu.memory_space<vmem>>, vector<128x128xf32>,
    return
  }
  func.func @transform_0(%arg0: i32) -> (i32, i32, i32) {
    %c0_i32 = arith.constant 0 : i32
    %c0_i32_0 = arith.constant 0 : i32
    %c0_i32_1 = arith.constant 0 : i32
    %c0_i32_2 = arith.constant 0 : i32
    return %c0_i32, %c0_i32_0, %c0_i32_1 : i32, i32, i32
  }
  func.func @transform_1(%arg0: i32) -> (i32, i32, i32) {
    %c0_i32 = arith.constant 0 : i32
    %c0_i32_0 = arith.constant 0 : i32
    %c0_i32_1 = arith.constant 0 : i32
    return %c0_i32, %c0_i32_0, %arg0 : i32, i32, i32
  }
  func.func @transform_2(%arg0: i32) -> (i32, i32) {
    %c0_i32 = arith.constant 0 : i32
    %c0_i32_0 = arith.constant 0 : i32
    return %c0_i32, %arg0 : i32, i32
  }
  func.func @transform_3(%arg0: i32) -> (i32, i32) {
    %c0_i32 = arith.constant 0 : i32
    %c0_i32_0 = arith.constant 0 : i32
    return %c0_i32, %arg0 : i32, i32
  }
  func.func @transform_4(%arg0: i32) -> (i32, i32) {
    %c0_i32 = arith.constant 0 : i32
    %c0_i32_0 = arith.constant 0 : i32
    return %c0_i32, %arg0 : i32, i32
  }
}

module attributes {stable_mosaic.version = 11 : i64} {
  func.func @_maxpool4_kernel(%arg0: memref<128x128xf32, #tpu.memory_space<vmem>>, %arg1: memref<128x128xf32, #tpu.memory_space<vmem>>, %arg2: memref<128x128xf32, #tpu.memory_space<vmem>>, %arg3: memref<128x128xf32, #tpu.memory_space<vmem>>, %arg4: memref<128x128xf32, #tpu.memory_space<vmem>>) attributes {dimension_semantics = [], scalar_prefetch = 0 : i64, scratch_operands = 0 : i64, tpu.core_type = #tpu.core_type<tc>} {
    %c0 = arith.constant 0 : index
    %c0_0 = arith.constant 0 : index
    %0 = vector.load %arg0[%c0, %c0_0] : memref<128x128xf32, #tpu.memory_space<vmem>>, vector<128x128xf32>
    %c0_1 = arith.constant 0 : index
    %c0_2 = arith.constant 0 : index
    %1 = vector.load %arg1[%c0_1, %c0_2] : memref<128x128xf32, #tpu.memory_space<vmem>>, vector<128x128xf32>
    %2 = arith.maximumf %0, %1 : vector<128x128xf32>
    %c0_3 = arith.constant 0 : index
    %c0_4 = arith.constant 0 : index
    %3 = vector.load %arg2[%c0_3, %c0_4] : memref<128x128xf32, #tpu.memory_space<vmem>>, vector<128x128xf32>
    %c0_5 = arith.constant 0 : index
    %c0_6 = arith.constant 0 : index
    %4 = vector.load %arg3[%c0_5, %c0_6] : memref<128x128xf32, #tpu.memory_space<vmem>>, vector<128x128xf32>
    %5 = arith.maximumf %3, %4 : vector<128x128xf32>
    %6 = arith.maximumf %2, %5 : vector<128x128xf32>
    %c0_7 = arith.constant 0 : index
    %c0_8 = arith.constant 0 : index
    %7 = vector.load %arg4[%c0_7, %c0_8] : memref<128x128xf32, #tpu.memory_space<vmem>>, vector<128x128xf32>
    tpu.vector_store %arg4[%c0_7, %c0_8], %6 {strides = array<i32>} : memref<128x128xf32, #tpu.memory_space<vmem>>, vector<128x128xf32>,
    return
  }
}

module attributes {stable_mosaic.version = 11 : i64} {
  func.func @kernel(%arg0: i32, %arg1: memref<2x10x10x128xf32, #tpu.memory_space<vmem>>, %arg2: memref<9x128x128xf32, #tpu.memory_space<vmem>>, %arg3: memref<1x128xf32, #tpu.memory_space<vmem>>, %arg4: memref<1x128xf32, #tpu.memory_space<vmem>>, %arg5: memref<128x128xf32, #tpu.memory_space<vmem>>, %arg6: memref<128x128xf32, #tpu.memory_space<vmem>>) attributes {dimension_semantics = [#tpu.dimension_semantics<parallel>], iteration_bounds = array<i64: 1>, scalar_prefetch = 0 : i64, scratch_operands = 0 : i64, tpu.core_type = #tpu.core_type<tc>, window_params = [{pipeline_mode = #tpu.pipeline_mode<synchronous>, transform_indices = @transform_0, window_bounds = array<i64: 2, 10, 10, 128>}, {transform_indices = @transform_1, window_bounds = array<i64: 9, 128, 128>}, {transform_indices = @transform_2, window_bounds = array<i64: 1, 128>}, {transform_indices = @transform_3, window_bounds = array<i64: 1, 128>}, {transform_indices = @transform_4, window_bounds = array<i64: 128, 128>}, {transform_indices = @transform_5, window_bounds = array<i64: 128, 128>}]} {
    %cst = arith.constant 0.000000e+00 : f32
    %0 = vector.broadcast %cst : f32 to vector<128x128xf32>
    %c0 = arith.constant 0 : index
    %c0_0 = arith.constant 0 : index
    %c0_1 = arith.constant 0 : index
    %c0_2 = arith.constant 0 : index
    %1 = vector.load %arg1[%c0, %c0_0, %c0_1, %c0_2] : memref<2x10x10x128xf32, #tpu.memory_space<vmem>>, vector<2x8x8x128xf32>
    %2 = vector.shape_cast %1 : vector<2x8x8x128xf32> to vector<128x128xf32>
    %c0_3 = arith.constant 0 : index
    %c0_4 = arith.constant 0 : index
    %c0_5 = arith.constant 0 : index
    %3 = vector.load %arg2[%c0_3, %c0_4, %c0_5] : memref<9x128x128xf32, #tpu.memory_space<vmem>>, vector<1x128x128xf32>
    %4 = vector.shape_cast %3 : vector<1x128x128xf32> to vector<128x128xf32>
    %cst_6 = arith.constant dense<0.000000e+00> : vector<128x128xf32>
    %5 = tpu.matmul %2, %4, %cst_6 {dimension_numbers = #tpu.dot_dimension_numbers<[1], [0], [0], [1], [0, 0, 1, 1], [], []>} : vector<128x128xf32>, vector<128x128xf32>, vector<128x128xf32> -> vector<128x128xf32>
    %6 = arith.addf %0, %5 : vector<128x128xf32>
    %c0_7 = arith.constant 0 : index
    %c0_8 = arith.constant 0 : index
    %c1 = arith.constant 1 : index
    %c0_9 = arith.constant 0 : index
    %7 = vector.load %arg1[%c0_7, %c0_8, %c1, %c0_9] : memref<2x10x10x128xf32, #tpu.memory_space<vmem>>, vector<2x8x8x128xf32>
    %8 = vector.shape_cast %7 : vector<2x8x8x128xf32> to vector<128x128xf32>
    %c1_10 = arith.constant 1 : index
    %c0_11 = arith.constant 0 : index
    %c0_12 = arith.constant 0 : index
    %9 = vector.load %arg2[%c1_10, %c0_11, %c0_12] : memref<9x128x128xf32, #tpu.memory_space<vmem>>, vector<1x128x128xf32>
    %10 = vector.shape_cast %9 : vector<1x128x128xf32> to vector<128x128xf32>
    %cst_13 = arith.constant dense<0.000000e+00> : vector<128x128xf32>
    %11 = tpu.matmul %8, %10, %cst_13 {dimension_numbers = #tpu.dot_dimension_numbers<[1], [0], [0], [1], [0, 0, 1, 1], [], []>} : vector<128x128xf32>, vector<128x128xf32>, vector<128x128xf32> -> vector<128x128xf32>
    %12 = arith.addf %6, %11 : vector<128x128xf32>
    %c0_14 = arith.constant 0 : index
    %c0_15 = arith.constant 0 : index
    %c2 = arith.constant 2 : index
    %c0_16 = arith.constant 0 : index
    %13 = vector.load %arg1[%c0_14, %c0_15, %c2, %c0_16] : memref<2x10x10x128xf32, #tpu.memory_space<vmem>>, vector<2x8x8x128xf32>
    %14 = vector.shape_cast %13 : vector<2x8x8x128xf32> to vector<128x128xf32>
    %c2_17 = arith.constant 2 : index
    %c0_18 = arith.constant 0 : index
    %c0_19 = arith.constant 0 : index
    %15 = vector.load %arg2[%c2_17, %c0_18, %c0_19] : memref<9x128x128xf32, #tpu.memory_space<vmem>>, vector<1x128x128xf32>
    %16 = vector.shape_cast %15 : vector<1x128x128xf32> to vector<128x128xf32>
    %cst_20 = arith.constant dense<0.000000e+00> : vector<128x128xf32>
    %17 = tpu.matmul %14, %16, %cst_20 {dimension_numbers = #tpu.dot_dimension_numbers<[1], [0], [0], [1], [0, 0, 1, 1], [], []>} : vector<128x128xf32>, vector<128x128xf32>, vector<128x128xf32> -> vector<128x128xf32>
    %18 = arith.addf %12, %17 : vector<128x128xf32>
    %c0_21 = arith.constant 0 : index
    %c1_22 = arith.constant 1 : index
    %c0_23 = arith.constant 0 : index
    %c0_24 = arith.constant 0 : index
    %19 = vector.load %arg1[%c0_21, %c1_22, %c0_23, %c0_24] : memref<2x10x10x128xf32, #tpu.memory_space<vmem>>, vector<2x8x8x128xf32>
    %20 = vector.shape_cast %19 : vector<2x8x8x128xf32> to vector<128x128xf32>
    %c3 = arith.constant 3 : index
    %c0_25 = arith.constant 0 : index
    %c0_26 = arith.constant 0 : index
    %21 = vector.load %arg2[%c3, %c0_25, %c0_26] : memref<9x128x128xf32, #tpu.memory_space<vmem>>, vector<1x128x128xf32>
    %22 = vector.shape_cast %21 : vector<1x128x128xf32> to vector<128x128xf32>
    %cst_27 = arith.constant dense<0.000000e+00> : vector<128x128xf32>
    %23 = tpu.matmul %20, %22, %cst_27 {dimension_numbers = #tpu.dot_dimension_numbers<[1], [0], [0], [1], [0, 0, 1, 1], [], []>} : vector<128x128xf32>, vector<128x128xf32>, vector<128x128xf32> -> vector<128x128xf32>
    %24 = arith.addf %18, %23 : vector<128x128xf32>
    %c0_28 = arith.constant 0 : index
    %c1_29 = arith.constant 1 : index
    %c1_30 = arith.constant 1 : index
    %c0_31 = arith.constant 0 : index
    %25 = vector.load %arg1[%c0_28, %c1_29, %c1_30, %c0_31] : memref<2x10x10x128xf32, #tpu.memory_space<vmem>>, vector<2x8x8x128xf32>
    %26 = vector.shape_cast %25 : vector<2x8x8x128xf32> to vector<128x128xf32>
    %c4 = arith.constant 4 : index
    %c0_32 = arith.constant 0 : index
    %c0_33 = arith.constant 0 : index
    %27 = vector.load %arg2[%c4, %c0_32, %c0_33] : memref<9x128x128xf32, #tpu.memory_space<vmem>>, vector<1x128x128xf32>
    %28 = vector.shape_cast %27 : vector<1x128x128xf32> to vector<128x128xf32>
    %cst_34 = arith.constant dense<0.000000e+00> : vector<128x128xf32>
    %29 = tpu.matmul %26, %28, %cst_34 {dimension_numbers = #tpu.dot_dimension_numbers<[1], [0], [0], [1], [0, 0, 1, 1], [], []>} : vector<128x128xf32>, vector<128x128xf32>, vector<128x128xf32> -> vector<128x128xf32>
    %30 = arith.addf %24, %29 : vector<128x128xf32>
    %c0_35 = arith.constant 0 : index
    %c1_36 = arith.constant 1 : index
    %c2_37 = arith.constant 2 : index
    %c0_38 = arith.constant 0 : index
    %31 = vector.load %arg1[%c0_35, %c1_36, %c2_37, %c0_38] : memref<2x10x10x128xf32, #tpu.memory_space<vmem>>, vector<2x8x8x128xf32>
    %32 = vector.shape_cast %31 : vector<2x8x8x128xf32> to vector<128x128xf32>
    %c5 = arith.constant 5 : index
    %c0_39 = arith.constant 0 : index
    %c0_40 = arith.constant 0 : index
    %33 = vector.load %arg2[%c5, %c0_39, %c0_40] : memref<9x128x128xf32, #tpu.memory_space<vmem>>, vector<1x128x128xf32>
    %34 = vector.shape_cast %33 : vector<1x128x128xf32> to vector<128x128xf32>
    %cst_41 = arith.constant dense<0.000000e+00> : vector<128x128xf32>
    %35 = tpu.matmul %32, %34, %cst_41 {dimension_numbers = #tpu.dot_dimension_numbers<[1], [0], [0], [1], [0, 0, 1, 1], [], []>} : vector<128x128xf32>, vector<128x128xf32>, vector<128x128xf32> -> vector<128x128xf32>
    %36 = arith.addf %30, %35 : vector<128x128xf32>
    %c0_42 = arith.constant 0 : index
    %c2_43 = arith.constant 2 : index
    %c0_44 = arith.constant 0 : index
    %c0_45 = arith.constant 0 : index
    %37 = vector.load %arg1[%c0_42, %c2_43, %c0_44, %c0_45] : memref<2x10x10x128xf32, #tpu.memory_space<vmem>>, vector<2x8x8x128xf32>
    %38 = vector.shape_cast %37 : vector<2x8x8x128xf32> to vector<128x128xf32>
    %c6 = arith.constant 6 : index
    %c0_46 = arith.constant 0 : index
    %c0_47 = arith.constant 0 : index
    %39 = vector.load %arg2[%c6, %c0_46, %c0_47] : memref<9x128x128xf32, #tpu.memory_space<vmem>>, vector<1x128x128xf32>
    %40 = vector.shape_cast %39 : vector<1x128x128xf32> to vector<128x128xf32>
    %cst_48 = arith.constant dense<0.000000e+00> : vector<128x128xf32>
    %41 = tpu.matmul %38, %40, %cst_48 {dimension_numbers = #tpu.dot_dimension_numbers<[1], [0], [0], [1], [0, 0, 1, 1], [], []>} : vector<128x128xf32>, vector<128x128xf32>, vector<128x128xf32> -> vector<128x128xf32>
    %42 = arith.addf %36, %41 : vector<128x128xf32>
    %c0_49 = arith.constant 0 : index
    %c2_50 = arith.constant 2 : index
    %c1_51 = arith.constant 1 : index
    %c0_52 = arith.constant 0 : index
    %43 = vector.load %arg1[%c0_49, %c2_50, %c1_51, %c0_52] : memref<2x10x10x128xf32, #tpu.memory_space<vmem>>, vector<2x8x8x128xf32>
    %44 = vector.shape_cast %43 : vector<2x8x8x128xf32> to vector<128x128xf32>
    %c7 = arith.constant 7 : index
    %c0_53 = arith.constant 0 : index
    %c0_54 = arith.constant 0 : index
    %45 = vector.load %arg2[%c7, %c0_53, %c0_54] : memref<9x128x128xf32, #tpu.memory_space<vmem>>, vector<1x128x128xf32>
    %46 = vector.shape_cast %45 : vector<1x128x128xf32> to vector<128x128xf32>
    %cst_55 = arith.constant dense<0.000000e+00> : vector<128x128xf32>
    %47 = tpu.matmul %44, %46, %cst_55 {dimension_numbers = #tpu.dot_dimension_numbers<[1], [0], [0], [1], [0, 0, 1, 1], [], []>} : vector<128x128xf32>, vector<128x128xf32>, vector<128x128xf32> -> vector<128x128xf32>
    %48 = arith.addf %42, %47 : vector<128x128xf32>
    %c0_56 = arith.constant 0 : index
    %c2_57 = arith.constant 2 : index
    %c2_58 = arith.constant 2 : index
    %c0_59 = arith.constant 0 : index
    %49 = vector.load %arg1[%c0_56, %c2_57, %c2_58, %c0_59] : memref<2x10x10x128xf32, #tpu.memory_space<vmem>>, vector<2x8x8x128xf32>
    %50 = vector.shape_cast %49 : vector<2x8x8x128xf32> to vector<128x128xf32>
    %c8 = arith.constant 8 : index
    %c0_60 = arith.constant 0 : index
    %c0_61 = arith.constant 0 : index
    %51 = vector.load %arg2[%c8, %c0_60, %c0_61] : memref<9x128x128xf32, #tpu.memory_space<vmem>>, vector<1x128x128xf32>
    %52 = vector.shape_cast %51 : vector<1x128x128xf32> to vector<128x128xf32>
    %cst_62 = arith.constant dense<0.000000e+00> : vector<128x128xf32>
    %53 = tpu.matmul %50, %52, %cst_62 {dimension_numbers = #tpu.dot_dimension_numbers<[1], [0], [0], [1], [0, 0, 1, 1], [], []>} : vector<128x128xf32>, vector<128x128xf32>, vector<128x128xf32> -> vector<128x128xf32>
    %54 = arith.addf %48, %53 : vector<128x128xf32>
    %cst_63 = arith.constant dense<0.000000e+00> : vector<128xf32>
    %55 = vector.multi_reduction <add>, %54, %cst_63 [0] : vector<128x128xf32> to vector<128xf32>
    %56 = vector.shape_cast %55 : vector<128xf32> to vector<1x128xf32>
    %cst_64 = arith.constant 1.280000e+02 : f32
    %57 = vector.broadcast %cst_64 : f32 to vector<1x128xf32>
    %58 = arith.divf %56, %57 : vector<1x128xf32>
    %59 = vector.broadcast %58 : vector<1x128xf32> to vector<128x128xf32>
    %60 = arith.subf %54, %59 : vector<128x128xf32>
    %61 = arith.mulf %60, %60 : vector<128x128xf32>
    %cst_65 = arith.constant dense<0.000000e+00> : vector<128xf32>
    %62 = vector.multi_reduction <add>, %61, %cst_65 [0] : vector<128x128xf32> to vector<128xf32>
    %63 = vector.shape_cast %62 : vector<128xf32> to vector<1x128xf32>
    %cst_66 = arith.constant 1.280000e+02 : f32
    %64 = vector.broadcast %cst_66 : f32 to vector<1x128xf32>
    %65 = arith.divf %63, %64 : vector<1x128xf32>
    %c0_67 = arith.constant 0 : index
    %c0_68 = arith.constant 0 : index
    %66 = vector.load %arg3[%c0_67, %c0_68] : memref<1x128xf32, #tpu.memory_space<vmem>>, vector<1x128xf32>
    %cst_69 = arith.constant 9.99999974E-6 : f32
    %67 = vector.broadcast %cst_69 : f32 to vector<1x128xf32>
    %68 = arith.addf %65, %67 : vector<1x128xf32>
    %69 = math.rsqrt %68 : vector<1x128xf32>
    %70 = arith.mulf %66, %69 : vector<1x128xf32>
    %71 = vector.broadcast %70 : vector<1x128xf32> to vector<128x128xf32>
    %72 = arith.mulf %60, %71 : vector<128x128xf32>
    %c0_70 = arith.constant 0 : index
    %c0_71 = arith.constant 0 : index
    %73 = vector.load %arg4[%c0_70, %c0_71] : memref<1x128xf32, #tpu.memory_space<vmem>>, vector<1x128xf32>
    %74 = vector.broadcast %73 : vector<1x128xf32> to vector<128x128xf32>
    %75 = arith.addf %72, %74 : vector<128x128xf32>
    %cst_72 = arith.constant 0.000000e+00 : f32
    %76 = vector.broadcast %cst_72 : f32 to vector<128x128xf32>
    %77 = arith.maximumf %75, %76 : vector<128x128xf32>
    %c0_73 = arith.constant 0 : index
    %c0_74 = arith.constant 0 : index
    %78 = vector.load %arg5[%c0_73, %c0_74] : memref<128x128xf32, #tpu.memory_space<vmem>>, vector<128x128xf32>
    %79 = arith.addf %77, %78 : vector<128x128xf32>
    %c0_75 = arith.constant 0 : index
    %c0_76 = arith.constant 0 : index
    %80 = vector.load %arg6[%c0_75, %c0_76] : memref<128x128xf32, #tpu.memory_space<vmem>>, vector<128x128xf32>
    tpu.vector_store %arg6[%c0_75, %c0_76], %79 {strides = array<i32>} : memref<128x128xf32, #tpu.memory_space<vmem>>, vector<128x128xf32>,
    return
  }
  func.func @transform_0(%arg0: i32) -> (i32, i32, i32, i32) {
    %c0_i32 = arith.constant 0 : i32
    %c0_i32_0 = arith.constant 0 : i32
    %c0_i32_1 = arith.constant 0 : i32
    %c0_i32_2 = arith.constant 0 : i32
    %c0_i32_3 = arith.constant 0 : i32
    return %c0_i32, %c0_i32_0, %c0_i32_1, %c0_i32_2 : i32, i32, i32, i32
  }
  func.func @transform_1(%arg0: i32) -> (i32, i32, i32) {
    %c0_i32 = arith.constant 0 : i32
    %c0_i32_0 = arith.constant 0 : i32
    %c0_i32_1 = arith.constant 0 : i32
    return %c0_i32, %c0_i32_0, %arg0 : i32, i32, i32
  }
  func.func @transform_2(%arg0: i32) -> (i32, i32) {
    %c0_i32 = arith.constant 0 : i32
    %c0_i32_0 = arith.constant 0 : i32
    return %c0_i32, %arg0 : i32, i32
  }
  func.func @transform_3(%arg0: i32) -> (i32, i32) {
    %c0_i32 = arith.constant 0 : i32
    %c0_i32_0 = arith.constant 0 : i32
    return %c0_i32, %arg0 : i32, i32
  }
  func.func @transform_4(%arg0: i32) -> (i32, i32) {
    %c0_i32 = arith.constant 0 : i32
    %c0_i32_0 = arith.constant 0 : i32
    return %c0_i32, %arg0 : i32, i32
  }
  func.func @transform_5(%arg0: i32) -> (i32, i32) {
    %c0_i32 = arith.constant 0 : i32
    %c0_i32_0 = arith.constant 0 : i32
    return %c0_i32, %arg0 : i32, i32
  }
}

module attributes {stable_mosaic.version = 11 : i64} {
  func.func @kernel(%arg0: i32, %arg1: memref<2x10x10x128xf32, #tpu.memory_space<vmem>>, %arg2: memref<9x128x128xf32, #tpu.memory_space<vmem>>, %arg3: memref<1x128xf32, #tpu.memory_space<vmem>>, %arg4: memref<1x128xf32, #tpu.memory_space<vmem>>, %arg5: memref<128x128xf32, #tpu.memory_space<vmem>>) attributes {dimension_semantics = [#tpu.dimension_semantics<parallel>], iteration_bounds = array<i64: 1>, scalar_prefetch = 0 : i64, scratch_operands = 0 : i64, tpu.core_type = #tpu.core_type<tc>, window_params = [{pipeline_mode = #tpu.pipeline_mode<synchronous>, transform_indices = @transform_0, window_bounds = array<i64: 2, 10, 10, 128>}, {transform_indices = @transform_1, window_bounds = array<i64: 9, 128, 128>}, {transform_indices = @transform_2, window_bounds = array<i64: 1, 128>}, {transform_indices = @transform_3, window_bounds = array<i64: 1, 128>}, {transform_indices = @transform_4, window_bounds = array<i64: 128, 128>}]} {
    %cst = arith.constant 0.000000e+00 : f32
    %0 = vector.broadcast %cst : f32 to vector<128x128xf32>
    %c0 = arith.constant 0 : index
    %c0_0 = arith.constant 0 : index
    %c0_1 = arith.constant 0 : index
    %c0_2 = arith.constant 0 : index
    %1 = vector.load %arg1[%c0, %c0_0, %c0_1, %c0_2] : memref<2x10x10x128xf32, #tpu.memory_space<vmem>>, vector<2x8x8x128xf32>
    %2 = vector.shape_cast %1 : vector<2x8x8x128xf32> to vector<128x128xf32>
    %c0_3 = arith.constant 0 : index
    %c0_4 = arith.constant 0 : index
    %c0_5 = arith.constant 0 : index
    %3 = vector.load %arg2[%c0_3, %c0_4, %c0_5] : memref<9x128x128xf32, #tpu.memory_space<vmem>>, vector<1x128x128xf32>
    %4 = vector.shape_cast %3 : vector<1x128x128xf32> to vector<128x128xf32>
    %cst_6 = arith.constant dense<0.000000e+00> : vector<128x128xf32>
    %5 = tpu.matmul %2, %4, %cst_6 {dimension_numbers = #tpu.dot_dimension_numbers<[1], [0], [0], [1], [0, 0, 1, 1], [], []>} : vector<128x128xf32>, vector<128x128xf32>, vector<128x128xf32> -> vector<128x128xf32>
    %6 = arith.addf %0, %5 : vector<128x128xf32>
    %c0_7 = arith.constant 0 : index
    %c0_8 = arith.constant 0 : index
    %c1 = arith.constant 1 : index
    %c0_9 = arith.constant 0 : index
    %7 = vector.load %arg1[%c0_7, %c0_8, %c1, %c0_9] : memref<2x10x10x128xf32, #tpu.memory_space<vmem>>, vector<2x8x8x128xf32>
    %8 = vector.shape_cast %7 : vector<2x8x8x128xf32> to vector<128x128xf32>
    %c1_10 = arith.constant 1 : index
    %c0_11 = arith.constant 0 : index
    %c0_12 = arith.constant 0 : index
    %9 = vector.load %arg2[%c1_10, %c0_11, %c0_12] : memref<9x128x128xf32, #tpu.memory_space<vmem>>, vector<1x128x128xf32>
    %10 = vector.shape_cast %9 : vector<1x128x128xf32> to vector<128x128xf32>
    %cst_13 = arith.constant dense<0.000000e+00> : vector<128x128xf32>
    %11 = tpu.matmul %8, %10, %cst_13 {dimension_numbers = #tpu.dot_dimension_numbers<[1], [0], [0], [1], [0, 0, 1, 1], [], []>} : vector<128x128xf32>, vector<128x128xf32>, vector<128x128xf32> -> vector<128x128xf32>
    %12 = arith.addf %6, %11 : vector<128x128xf32>
    %c0_14 = arith.constant 0 : index
    %c0_15 = arith.constant 0 : index
    %c2 = arith.constant 2 : index
    %c0_16 = arith.constant 0 : index
    %13 = vector.load %arg1[%c0_14, %c0_15, %c2, %c0_16] : memref<2x10x10x128xf32, #tpu.memory_space<vmem>>, vector<2x8x8x128xf32>
    %14 = vector.shape_cast %13 : vector<2x8x8x128xf32> to vector<128x128xf32>
    %c2_17 = arith.constant 2 : index
    %c0_18 = arith.constant 0 : index
    %c0_19 = arith.constant 0 : index
    %15 = vector.load %arg2[%c2_17, %c0_18, %c0_19] : memref<9x128x128xf32, #tpu.memory_space<vmem>>, vector<1x128x128xf32>
    %16 = vector.shape_cast %15 : vector<1x128x128xf32> to vector<128x128xf32>
    %cst_20 = arith.constant dense<0.000000e+00> : vector<128x128xf32>
    %17 = tpu.matmul %14, %16, %cst_20 {dimension_numbers = #tpu.dot_dimension_numbers<[1], [0], [0], [1], [0, 0, 1, 1], [], []>} : vector<128x128xf32>, vector<128x128xf32>, vector<128x128xf32> -> vector<128x128xf32>
    %18 = arith.addf %12, %17 : vector<128x128xf32>
    %c0_21 = arith.constant 0 : index
    %c1_22 = arith.constant 1 : index
    %c0_23 = arith.constant 0 : index
    %c0_24 = arith.constant 0 : index
    %19 = vector.load %arg1[%c0_21, %c1_22, %c0_23, %c0_24] : memref<2x10x10x128xf32, #tpu.memory_space<vmem>>, vector<2x8x8x128xf32>
    %20 = vector.shape_cast %19 : vector<2x8x8x128xf32> to vector<128x128xf32>
    %c3 = arith.constant 3 : index
    %c0_25 = arith.constant 0 : index
    %c0_26 = arith.constant 0 : index
    %21 = vector.load %arg2[%c3, %c0_25, %c0_26] : memref<9x128x128xf32, #tpu.memory_space<vmem>>, vector<1x128x128xf32>
    %22 = vector.shape_cast %21 : vector<1x128x128xf32> to vector<128x128xf32>
    %cst_27 = arith.constant dense<0.000000e+00> : vector<128x128xf32>
    %23 = tpu.matmul %20, %22, %cst_27 {dimension_numbers = #tpu.dot_dimension_numbers<[1], [0], [0], [1], [0, 0, 1, 1], [], []>} : vector<128x128xf32>, vector<128x128xf32>, vector<128x128xf32> -> vector<128x128xf32>
    %24 = arith.addf %18, %23 : vector<128x128xf32>
    %c0_28 = arith.constant 0 : index
    %c1_29 = arith.constant 1 : index
    %c1_30 = arith.constant 1 : index
    %c0_31 = arith.constant 0 : index
    %25 = vector.load %arg1[%c0_28, %c1_29, %c1_30, %c0_31] : memref<2x10x10x128xf32, #tpu.memory_space<vmem>>, vector<2x8x8x128xf32>
    %26 = vector.shape_cast %25 : vector<2x8x8x128xf32> to vector<128x128xf32>
    %c4 = arith.constant 4 : index
    %c0_32 = arith.constant 0 : index
    %c0_33 = arith.constant 0 : index
    %27 = vector.load %arg2[%c4, %c0_32, %c0_33] : memref<9x128x128xf32, #tpu.memory_space<vmem>>, vector<1x128x128xf32>
    %28 = vector.shape_cast %27 : vector<1x128x128xf32> to vector<128x128xf32>
    %cst_34 = arith.constant dense<0.000000e+00> : vector<128x128xf32>
    %29 = tpu.matmul %26, %28, %cst_34 {dimension_numbers = #tpu.dot_dimension_numbers<[1], [0], [0], [1], [0, 0, 1, 1], [], []>} : vector<128x128xf32>, vector<128x128xf32>, vector<128x128xf32> -> vector<128x128xf32>
    %30 = arith.addf %24, %29 : vector<128x128xf32>
    %c0_35 = arith.constant 0 : index
    %c1_36 = arith.constant 1 : index
    %c2_37 = arith.constant 2 : index
    %c0_38 = arith.constant 0 : index
    %31 = vector.load %arg1[%c0_35, %c1_36, %c2_37, %c0_38] : memref<2x10x10x128xf32, #tpu.memory_space<vmem>>, vector<2x8x8x128xf32>
    %32 = vector.shape_cast %31 : vector<2x8x8x128xf32> to vector<128x128xf32>
    %c5 = arith.constant 5 : index
    %c0_39 = arith.constant 0 : index
    %c0_40 = arith.constant 0 : index
    %33 = vector.load %arg2[%c5, %c0_39, %c0_40] : memref<9x128x128xf32, #tpu.memory_space<vmem>>, vector<1x128x128xf32>
    %34 = vector.shape_cast %33 : vector<1x128x128xf32> to vector<128x128xf32>
    %cst_41 = arith.constant dense<0.000000e+00> : vector<128x128xf32>
    %35 = tpu.matmul %32, %34, %cst_41 {dimension_numbers = #tpu.dot_dimension_numbers<[1], [0], [0], [1], [0, 0, 1, 1], [], []>} : vector<128x128xf32>, vector<128x128xf32>, vector<128x128xf32> -> vector<128x128xf32>
    %36 = arith.addf %30, %35 : vector<128x128xf32>
    %c0_42 = arith.constant 0 : index
    %c2_43 = arith.constant 2 : index
    %c0_44 = arith.constant 0 : index
    %c0_45 = arith.constant 0 : index
    %37 = vector.load %arg1[%c0_42, %c2_43, %c0_44, %c0_45] : memref<2x10x10x128xf32, #tpu.memory_space<vmem>>, vector<2x8x8x128xf32>
    %38 = vector.shape_cast %37 : vector<2x8x8x128xf32> to vector<128x128xf32>
    %c6 = arith.constant 6 : index
    %c0_46 = arith.constant 0 : index
    %c0_47 = arith.constant 0 : index
    %39 = vector.load %arg2[%c6, %c0_46, %c0_47] : memref<9x128x128xf32, #tpu.memory_space<vmem>>, vector<1x128x128xf32>
    %40 = vector.shape_cast %39 : vector<1x128x128xf32> to vector<128x128xf32>
    %cst_48 = arith.constant dense<0.000000e+00> : vector<128x128xf32>
    %41 = tpu.matmul %38, %40, %cst_48 {dimension_numbers = #tpu.dot_dimension_numbers<[1], [0], [0], [1], [0, 0, 1, 1], [], []>} : vector<128x128xf32>, vector<128x128xf32>, vector<128x128xf32> -> vector<128x128xf32>
    %42 = arith.addf %36, %41 : vector<128x128xf32>
    %c0_49 = arith.constant 0 : index
    %c2_50 = arith.constant 2 : index
    %c1_51 = arith.constant 1 : index
    %c0_52 = arith.constant 0 : index
    %43 = vector.load %arg1[%c0_49, %c2_50, %c1_51, %c0_52] : memref<2x10x10x128xf32, #tpu.memory_space<vmem>>, vector<2x8x8x128xf32>
    %44 = vector.shape_cast %43 : vector<2x8x8x128xf32> to vector<128x128xf32>
    %c7 = arith.constant 7 : index
    %c0_53 = arith.constant 0 : index
    %c0_54 = arith.constant 0 : index
    %45 = vector.load %arg2[%c7, %c0_53, %c0_54] : memref<9x128x128xf32, #tpu.memory_space<vmem>>, vector<1x128x128xf32>
    %46 = vector.shape_cast %45 : vector<1x128x128xf32> to vector<128x128xf32>
    %cst_55 = arith.constant dense<0.000000e+00> : vector<128x128xf32>
    %47 = tpu.matmul %44, %46, %cst_55 {dimension_numbers = #tpu.dot_dimension_numbers<[1], [0], [0], [1], [0, 0, 1, 1], [], []>} : vector<128x128xf32>, vector<128x128xf32>, vector<128x128xf32> -> vector<128x128xf32>
    %48 = arith.addf %42, %47 : vector<128x128xf32>
    %c0_56 = arith.constant 0 : index
    %c2_57 = arith.constant 2 : index
    %c2_58 = arith.constant 2 : index
    %c0_59 = arith.constant 0 : index
    %49 = vector.load %arg1[%c0_56, %c2_57, %c2_58, %c0_59] : memref<2x10x10x128xf32, #tpu.memory_space<vmem>>, vector<2x8x8x128xf32>
    %50 = vector.shape_cast %49 : vector<2x8x8x128xf32> to vector<128x128xf32>
    %c8 = arith.constant 8 : index
    %c0_60 = arith.constant 0 : index
    %c0_61 = arith.constant 0 : index
    %51 = vector.load %arg2[%c8, %c0_60, %c0_61] : memref<9x128x128xf32, #tpu.memory_space<vmem>>, vector<1x128x128xf32>
    %52 = vector.shape_cast %51 : vector<1x128x128xf32> to vector<128x128xf32>
    %cst_62 = arith.constant dense<0.000000e+00> : vector<128x128xf32>
    %53 = tpu.matmul %50, %52, %cst_62 {dimension_numbers = #tpu.dot_dimension_numbers<[1], [0], [0], [1], [0, 0, 1, 1], [], []>} : vector<128x128xf32>, vector<128x128xf32>, vector<128x128xf32> -> vector<128x128xf32>
    %54 = arith.addf %48, %53 : vector<128x128xf32>
    %cst_63 = arith.constant dense<0.000000e+00> : vector<128xf32>
    %55 = vector.multi_reduction <add>, %54, %cst_63 [0] : vector<128x128xf32> to vector<128xf32>
    %56 = vector.shape_cast %55 : vector<128xf32> to vector<1x128xf32>
    %cst_64 = arith.constant 1.280000e+02 : f32
    %57 = vector.broadcast %cst_64 : f32 to vector<1x128xf32>
    %58 = arith.divf %56, %57 : vector<1x128xf32>
    %59 = vector.broadcast %58 : vector<1x128xf32> to vector<128x128xf32>
    %60 = arith.subf %54, %59 : vector<128x128xf32>
    %61 = arith.mulf %60, %60 : vector<128x128xf32>
    %cst_65 = arith.constant dense<0.000000e+00> : vector<128xf32>
    %62 = vector.multi_reduction <add>, %61, %cst_65 [0] : vector<128x128xf32> to vector<128xf32>
    %63 = vector.shape_cast %62 : vector<128xf32> to vector<1x128xf32>
    %cst_66 = arith.constant 1.280000e+02 : f32
    %64 = vector.broadcast %cst_66 : f32 to vector<1x128xf32>
    %65 = arith.divf %63, %64 : vector<1x128xf32>
    %c0_67 = arith.constant 0 : index
    %c0_68 = arith.constant 0 : index
    %66 = vector.load %arg3[%c0_67, %c0_68] : memref<1x128xf32, #tpu.memory_space<vmem>>, vector<1x128xf32>
    %cst_69 = arith.constant 9.99999974E-6 : f32
    %67 = vector.broadcast %cst_69 : f32 to vector<1x128xf32>
    %68 = arith.addf %65, %67 : vector<1x128xf32>
    %69 = math.rsqrt %68 : vector<1x128xf32>
    %70 = arith.mulf %66, %69 : vector<1x128xf32>
    %71 = vector.broadcast %70 : vector<1x128xf32> to vector<128x128xf32>
    %72 = arith.mulf %60, %71 : vector<128x128xf32>
    %c0_70 = arith.constant 0 : index
    %c0_71 = arith.constant 0 : index
    %73 = vector.load %arg4[%c0_70, %c0_71] : memref<1x128xf32, #tpu.memory_space<vmem>>, vector<1x128xf32>
    %74 = vector.broadcast %73 : vector<1x128xf32> to vector<128x128xf32>
    %75 = arith.addf %72, %74 : vector<128x128xf32>
    %cst_72 = arith.constant 0.000000e+00 : f32
    %76 = vector.broadcast %cst_72 : f32 to vector<128x128xf32>
    %77 = arith.maximumf %75, %76 : vector<128x128xf32>
    %c0_73 = arith.constant 0 : index
    %c0_74 = arith.constant 0 : index
    %78 = vector.load %arg5[%c0_73, %c0_74] : memref<128x128xf32, #tpu.memory_space<vmem>>, vector<128x128xf32>
    tpu.vector_store %arg5[%c0_73, %c0_74], %77 {strides = array<i32>} : memref<128x128xf32, #tpu.memory_space<vmem>>, vector<128x128xf32>,
    return
  }
  func.func @transform_0(%arg0: i32) -> (i32, i32, i32, i32) {
    %c0_i32 = arith.constant 0 : i32
    %c0_i32_0 = arith.constant 0 : i32
    %c0_i32_1 = arith.constant 0 : i32
    %c0_i32_2 = arith.constant 0 : i32
    %c0_i32_3 = arith.constant 0 : i32
    return %c0_i32, %c0_i32_0, %c0_i32_1, %c0_i32_2 : i32, i32, i32, i32
  }
  func.func @transform_1(%arg0: i32) -> (i32, i32, i32) {
    %c0_i32 = arith.constant 0 : i32
    %c0_i32_0 = arith.constant 0 : i32
    %c0_i32_1 = arith.constant 0 : i32
    return %c0_i32, %c0_i32_0, %arg0 : i32, i32, i32
  }
  func.func @transform_2(%arg0: i32) -> (i32, i32) {
    %c0_i32 = arith.constant 0 : i32
    %c0_i32_0 = arith.constant 0 : i32
    return %c0_i32, %arg0 : i32, i32
  }
  func.func @transform_3(%arg0: i32) -> (i32, i32) {
    %c0_i32 = arith.constant 0 : i32
    %c0_i32_0 = arith.constant 0 : i32
    return %c0_i32, %arg0 : i32, i32
  }
  func.func @transform_4(%arg0: i32) -> (i32, i32) {
    %c0_i32 = arith.constant 0 : i32
    %c0_i32_0 = arith.constant 0 : i32
    return %c0_i32, %arg0 : i32, i32
  }
}

module attributes {stable_mosaic.version = 11 : i64} {
  func.func @kernel(%arg0: i32, %arg1: memref<2x10x10x128xf32, #tpu.memory_space<vmem>>, %arg2: memref<9x128x128xf32, #tpu.memory_space<vmem>>, %arg3: memref<1x128xf32, #tpu.memory_space<vmem>>, %arg4: memref<1x128xf32, #tpu.memory_space<vmem>>, %arg5: memref<128x128xf32, #tpu.memory_space<vmem>>, %arg6: memref<128x128xf32, #tpu.memory_space<vmem>>) attributes {dimension_semantics = [#tpu.dimension_semantics<parallel>], iteration_bounds = array<i64: 1>, scalar_prefetch = 0 : i64, scratch_operands = 0 : i64, tpu.core_type = #tpu.core_type<tc>, window_params = [{pipeline_mode = #tpu.pipeline_mode<synchronous>, transform_indices = @transform_0, window_bounds = array<i64: 2, 10, 10, 128>}, {transform_indices = @transform_1, window_bounds = array<i64: 9, 128, 128>}, {transform_indices = @transform_2, window_bounds = array<i64: 1, 128>}, {transform_indices = @transform_3, window_bounds = array<i64: 1, 128>}, {transform_indices = @transform_4, window_bounds = array<i64: 128, 128>}, {transform_indices = @transform_5, window_bounds = array<i64: 128, 128>}]} {
    %cst = arith.constant 0.000000e+00 : f32
    %0 = vector.broadcast %cst : f32 to vector<128x128xf32>
    %c0 = arith.constant 0 : index
    %c0_0 = arith.constant 0 : index
    %c0_1 = arith.constant 0 : index
    %c0_2 = arith.constant 0 : index
    %1 = vector.load %arg1[%c0, %c0_0, %c0_1, %c0_2] : memref<2x10x10x128xf32, #tpu.memory_space<vmem>>, vector<2x8x8x128xf32>
    %2 = vector.shape_cast %1 : vector<2x8x8x128xf32> to vector<128x128xf32>
    %c0_3 = arith.constant 0 : index
    %c0_4 = arith.constant 0 : index
    %c0_5 = arith.constant 0 : index
    %3 = vector.load %arg2[%c0_3, %c0_4, %c0_5] : memref<9x128x128xf32, #tpu.memory_space<vmem>>, vector<1x128x128xf32>
    %4 = vector.shape_cast %3 : vector<1x128x128xf32> to vector<128x128xf32>
    %cst_6 = arith.constant dense<0.000000e+00> : vector<128x128xf32>
    %5 = tpu.matmul %2, %4, %cst_6 {dimension_numbers = #tpu.dot_dimension_numbers<[1], [0], [0], [1], [0, 0, 1, 1], [], []>} : vector<128x128xf32>, vector<128x128xf32>, vector<128x128xf32> -> vector<128x128xf32>
    %6 = arith.addf %0, %5 : vector<128x128xf32>
    %c0_7 = arith.constant 0 : index
    %c0_8 = arith.constant 0 : index
    %c1 = arith.constant 1 : index
    %c0_9 = arith.constant 0 : index
    %7 = vector.load %arg1[%c0_7, %c0_8, %c1, %c0_9] : memref<2x10x10x128xf32, #tpu.memory_space<vmem>>, vector<2x8x8x128xf32>
    %8 = vector.shape_cast %7 : vector<2x8x8x128xf32> to vector<128x128xf32>
    %c1_10 = arith.constant 1 : index
    %c0_11 = arith.constant 0 : index
    %c0_12 = arith.constant 0 : index
    %9 = vector.load %arg2[%c1_10, %c0_11, %c0_12] : memref<9x128x128xf32, #tpu.memory_space<vmem>>, vector<1x128x128xf32>
    %10 = vector.shape_cast %9 : vector<1x128x128xf32> to vector<128x128xf32>
    %cst_13 = arith.constant dense<0.000000e+00> : vector<128x128xf32>
    %11 = tpu.matmul %8, %10, %cst_13 {dimension_numbers = #tpu.dot_dimension_numbers<[1], [0], [0], [1], [0, 0, 1, 1], [], []>} : vector<128x128xf32>, vector<128x128xf32>, vector<128x128xf32> -> vector<128x128xf32>
    %12 = arith.addf %6, %11 : vector<128x128xf32>
    %c0_14 = arith.constant 0 : index
    %c0_15 = arith.constant 0 : index
    %c2 = arith.constant 2 : index
    %c0_16 = arith.constant 0 : index
    %13 = vector.load %arg1[%c0_14, %c0_15, %c2, %c0_16] : memref<2x10x10x128xf32, #tpu.memory_space<vmem>>, vector<2x8x8x128xf32>
    %14 = vector.shape_cast %13 : vector<2x8x8x128xf32> to vector<128x128xf32>
    %c2_17 = arith.constant 2 : index
    %c0_18 = arith.constant 0 : index
    %c0_19 = arith.constant 0 : index
    %15 = vector.load %arg2[%c2_17, %c0_18, %c0_19] : memref<9x128x128xf32, #tpu.memory_space<vmem>>, vector<1x128x128xf32>
    %16 = vector.shape_cast %15 : vector<1x128x128xf32> to vector<128x128xf32>
    %cst_20 = arith.constant dense<0.000000e+00> : vector<128x128xf32>
    %17 = tpu.matmul %14, %16, %cst_20 {dimension_numbers = #tpu.dot_dimension_numbers<[1], [0], [0], [1], [0, 0, 1, 1], [], []>} : vector<128x128xf32>, vector<128x128xf32>, vector<128x128xf32> -> vector<128x128xf32>
    %18 = arith.addf %12, %17 : vector<128x128xf32>
    %c0_21 = arith.constant 0 : index
    %c1_22 = arith.constant 1 : index
    %c0_23 = arith.constant 0 : index
    %c0_24 = arith.constant 0 : index
    %19 = vector.load %arg1[%c0_21, %c1_22, %c0_23, %c0_24] : memref<2x10x10x128xf32, #tpu.memory_space<vmem>>, vector<2x8x8x128xf32>
    %20 = vector.shape_cast %19 : vector<2x8x8x128xf32> to vector<128x128xf32>
    %c3 = arith.constant 3 : index
    %c0_25 = arith.constant 0 : index
    %c0_26 = arith.constant 0 : index
    %21 = vector.load %arg2[%c3, %c0_25, %c0_26] : memref<9x128x128xf32, #tpu.memory_space<vmem>>, vector<1x128x128xf32>
    %22 = vector.shape_cast %21 : vector<1x128x128xf32> to vector<128x128xf32>
    %cst_27 = arith.constant dense<0.000000e+00> : vector<128x128xf32>
    %23 = tpu.matmul %20, %22, %cst_27 {dimension_numbers = #tpu.dot_dimension_numbers<[1], [0], [0], [1], [0, 0, 1, 1], [], []>} : vector<128x128xf32>, vector<128x128xf32>, vector<128x128xf32> -> vector<128x128xf32>
    %24 = arith.addf %18, %23 : vector<128x128xf32>
    %c0_28 = arith.constant 0 : index
    %c1_29 = arith.constant 1 : index
    %c1_30 = arith.constant 1 : index
    %c0_31 = arith.constant 0 : index
    %25 = vector.load %arg1[%c0_28, %c1_29, %c1_30, %c0_31] : memref<2x10x10x128xf32, #tpu.memory_space<vmem>>, vector<2x8x8x128xf32>
    %26 = vector.shape_cast %25 : vector<2x8x8x128xf32> to vector<128x128xf32>
    %c4 = arith.constant 4 : index
    %c0_32 = arith.constant 0 : index
    %c0_33 = arith.constant 0 : index
    %27 = vector.load %arg2[%c4, %c0_32, %c0_33] : memref<9x128x128xf32, #tpu.memory_space<vmem>>, vector<1x128x128xf32>
    %28 = vector.shape_cast %27 : vector<1x128x128xf32> to vector<128x128xf32>
    %cst_34 = arith.constant dense<0.000000e+00> : vector<128x128xf32>
    %29 = tpu.matmul %26, %28, %cst_34 {dimension_numbers = #tpu.dot_dimension_numbers<[1], [0], [0], [1], [0, 0, 1, 1], [], []>} : vector<128x128xf32>, vector<128x128xf32>, vector<128x128xf32> -> vector<128x128xf32>
    %30 = arith.addf %24, %29 : vector<128x128xf32>
    %c0_35 = arith.constant 0 : index
    %c1_36 = arith.constant 1 : index
    %c2_37 = arith.constant 2 : index
    %c0_38 = arith.constant 0 : index
    %31 = vector.load %arg1[%c0_35, %c1_36, %c2_37, %c0_38] : memref<2x10x10x128xf32, #tpu.memory_space<vmem>>, vector<2x8x8x128xf32>
    %32 = vector.shape_cast %31 : vector<2x8x8x128xf32> to vector<128x128xf32>
    %c5 = arith.constant 5 : index
    %c0_39 = arith.constant 0 : index
    %c0_40 = arith.constant 0 : index
    %33 = vector.load %arg2[%c5, %c0_39, %c0_40] : memref<9x128x128xf32, #tpu.memory_space<vmem>>, vector<1x128x128xf32>
    %34 = vector.shape_cast %33 : vector<1x128x128xf32> to vector<128x128xf32>
    %cst_41 = arith.constant dense<0.000000e+00> : vector<128x128xf32>
    %35 = tpu.matmul %32, %34, %cst_41 {dimension_numbers = #tpu.dot_dimension_numbers<[1], [0], [0], [1], [0, 0, 1, 1], [], []>} : vector<128x128xf32>, vector<128x128xf32>, vector<128x128xf32> -> vector<128x128xf32>
    %36 = arith.addf %30, %35 : vector<128x128xf32>
    %c0_42 = arith.constant 0 : index
    %c2_43 = arith.constant 2 : index
    %c0_44 = arith.constant 0 : index
    %c0_45 = arith.constant 0 : index
    %37 = vector.load %arg1[%c0_42, %c2_43, %c0_44, %c0_45] : memref<2x10x10x128xf32, #tpu.memory_space<vmem>>, vector<2x8x8x128xf32>
    %38 = vector.shape_cast %37 : vector<2x8x8x128xf32> to vector<128x128xf32>
    %c6 = arith.constant 6 : index
    %c0_46 = arith.constant 0 : index
    %c0_47 = arith.constant 0 : index
    %39 = vector.load %arg2[%c6, %c0_46, %c0_47] : memref<9x128x128xf32, #tpu.memory_space<vmem>>, vector<1x128x128xf32>
    %40 = vector.shape_cast %39 : vector<1x128x128xf32> to vector<128x128xf32>
    %cst_48 = arith.constant dense<0.000000e+00> : vector<128x128xf32>
    %41 = tpu.matmul %38, %40, %cst_48 {dimension_numbers = #tpu.dot_dimension_numbers<[1], [0], [0], [1], [0, 0, 1, 1], [], []>} : vector<128x128xf32>, vector<128x128xf32>, vector<128x128xf32> -> vector<128x128xf32>
    %42 = arith.addf %36, %41 : vector<128x128xf32>
    %c0_49 = arith.constant 0 : index
    %c2_50 = arith.constant 2 : index
    %c1_51 = arith.constant 1 : index
    %c0_52 = arith.constant 0 : index
    %43 = vector.load %arg1[%c0_49, %c2_50, %c1_51, %c0_52] : memref<2x10x10x128xf32, #tpu.memory_space<vmem>>, vector<2x8x8x128xf32>
    %44 = vector.shape_cast %43 : vector<2x8x8x128xf32> to vector<128x128xf32>
    %c7 = arith.constant 7 : index
    %c0_53 = arith.constant 0 : index
    %c0_54 = arith.constant 0 : index
    %45 = vector.load %arg2[%c7, %c0_53, %c0_54] : memref<9x128x128xf32, #tpu.memory_space<vmem>>, vector<1x128x128xf32>
    %46 = vector.shape_cast %45 : vector<1x128x128xf32> to vector<128x128xf32>
    %cst_55 = arith.constant dense<0.000000e+00> : vector<128x128xf32>
    %47 = tpu.matmul %44, %46, %cst_55 {dimension_numbers = #tpu.dot_dimension_numbers<[1], [0], [0], [1], [0, 0, 1, 1], [], []>} : vector<128x128xf32>, vector<128x128xf32>, vector<128x128xf32> -> vector<128x128xf32>
    %48 = arith.addf %42, %47 : vector<128x128xf32>
    %c0_56 = arith.constant 0 : index
    %c2_57 = arith.constant 2 : index
    %c2_58 = arith.constant 2 : index
    %c0_59 = arith.constant 0 : index
    %49 = vector.load %arg1[%c0_56, %c2_57, %c2_58, %c0_59] : memref<2x10x10x128xf32, #tpu.memory_space<vmem>>, vector<2x8x8x128xf32>
    %50 = vector.shape_cast %49 : vector<2x8x8x128xf32> to vector<128x128xf32>
    %c8 = arith.constant 8 : index
    %c0_60 = arith.constant 0 : index
    %c0_61 = arith.constant 0 : index
    %51 = vector.load %arg2[%c8, %c0_60, %c0_61] : memref<9x128x128xf32, #tpu.memory_space<vmem>>, vector<1x128x128xf32>
    %52 = vector.shape_cast %51 : vector<1x128x128xf32> to vector<128x128xf32>
    %cst_62 = arith.constant dense<0.000000e+00> : vector<128x128xf32>
    %53 = tpu.matmul %50, %52, %cst_62 {dimension_numbers = #tpu.dot_dimension_numbers<[1], [0], [0], [1], [0, 0, 1, 1], [], []>} : vector<128x128xf32>, vector<128x128xf32>, vector<128x128xf32> -> vector<128x128xf32>
    %54 = arith.addf %48, %53 : vector<128x128xf32>
    %cst_63 = arith.constant dense<0.000000e+00> : vector<128xf32>
    %55 = vector.multi_reduction <add>, %54, %cst_63 [0] : vector<128x128xf32> to vector<128xf32>
    %56 = vector.shape_cast %55 : vector<128xf32> to vector<1x128xf32>
    %cst_64 = arith.constant 1.280000e+02 : f32
    %57 = vector.broadcast %cst_64 : f32 to vector<1x128xf32>
    %58 = arith.divf %56, %57 : vector<1x128xf32>
    %59 = vector.broadcast %58 : vector<1x128xf32> to vector<128x128xf32>
    %60 = arith.subf %54, %59 : vector<128x128xf32>
    %61 = arith.mulf %60, %60 : vector<128x128xf32>
    %cst_65 = arith.constant dense<0.000000e+00> : vector<128xf32>
    %62 = vector.multi_reduction <add>, %61, %cst_65 [0] : vector<128x128xf32> to vector<128xf32>
    %63 = vector.shape_cast %62 : vector<128xf32> to vector<1x128xf32>
    %cst_66 = arith.constant 1.280000e+02 : f32
    %64 = vector.broadcast %cst_66 : f32 to vector<1x128xf32>
    %65 = arith.divf %63, %64 : vector<1x128xf32>
    %c0_67 = arith.constant 0 : index
    %c0_68 = arith.constant 0 : index
    %66 = vector.load %arg3[%c0_67, %c0_68] : memref<1x128xf32, #tpu.memory_space<vmem>>, vector<1x128xf32>
    %cst_69 = arith.constant 9.99999974E-6 : f32
    %67 = vector.broadcast %cst_69 : f32 to vector<1x128xf32>
    %68 = arith.addf %65, %67 : vector<1x128xf32>
    %69 = math.rsqrt %68 : vector<1x128xf32>
    %70 = arith.mulf %66, %69 : vector<1x128xf32>
    %71 = vector.broadcast %70 : vector<1x128xf32> to vector<128x128xf32>
    %72 = arith.mulf %60, %71 : vector<128x128xf32>
    %c0_70 = arith.constant 0 : index
    %c0_71 = arith.constant 0 : index
    %73 = vector.load %arg4[%c0_70, %c0_71] : memref<1x128xf32, #tpu.memory_space<vmem>>, vector<1x128xf32>
    %74 = vector.broadcast %73 : vector<1x128xf32> to vector<128x128xf32>
    %75 = arith.addf %72, %74 : vector<128x128xf32>
    %cst_72 = arith.constant 0.000000e+00 : f32
    %76 = vector.broadcast %cst_72 : f32 to vector<128x128xf32>
    %77 = arith.maximumf %75, %76 : vector<128x128xf32>
    %c0_73 = arith.constant 0 : index
    %c0_74 = arith.constant 0 : index
    %78 = vector.load %arg5[%c0_73, %c0_74] : memref<128x128xf32, #tpu.memory_space<vmem>>, vector<128x128xf32>
    %79 = arith.addf %77, %78 : vector<128x128xf32>
    %c0_75 = arith.constant 0 : index
    %c0_76 = arith.constant 0 : index
    %80 = vector.load %arg6[%c0_75, %c0_76] : memref<128x128xf32, #tpu.memory_space<vmem>>, vector<128x128xf32>
    tpu.vector_store %arg6[%c0_75, %c0_76], %79 {strides = array<i32>} : memref<128x128xf32, #tpu.memory_space<vmem>>, vector<128x128xf32>,
    return
  }
  func.func @transform_0(%arg0: i32) -> (i32, i32, i32, i32) {
    %c0_i32 = arith.constant 0 : i32
    %c0_i32_0 = arith.constant 0 : i32
    %c0_i32_1 = arith.constant 0 : i32
    %c0_i32_2 = arith.constant 0 : i32
    %c0_i32_3 = arith.constant 0 : i32
    return %c0_i32, %c0_i32_0, %c0_i32_1, %c0_i32_2 : i32, i32, i32, i32
  }
  func.func @transform_1(%arg0: i32) -> (i32, i32, i32) {
    %c0_i32 = arith.constant 0 : i32
    %c0_i32_0 = arith.constant 0 : i32
    %c0_i32_1 = arith.constant 0 : i32
    return %c0_i32, %c0_i32_0, %arg0 : i32, i32, i32
  }
  func.func @transform_2(%arg0: i32) -> (i32, i32) {
    %c0_i32 = arith.constant 0 : i32
    %c0_i32_0 = arith.constant 0 : i32
    return %c0_i32, %arg0 : i32, i32
  }
  func.func @transform_3(%arg0: i32) -> (i32, i32) {
    %c0_i32 = arith.constant 0 : i32
    %c0_i32_0 = arith.constant 0 : i32
    return %c0_i32, %arg0 : i32, i32
  }
  func.func @transform_4(%arg0: i32) -> (i32, i32) {
    %c0_i32 = arith.constant 0 : i32
    %c0_i32_0 = arith.constant 0 : i32
    return %c0_i32, %arg0 : i32, i32
  }
  func.func @transform_5(%arg0: i32) -> (i32, i32) {
    %c0_i32 = arith.constant 0 : i32
    %c0_i32_0 = arith.constant 0 : i32
    return %c0_i32, %arg0 : i32, i32
  }
}

</mosaic_0001>

<bundles_post_ra>
// kernel: _lambda_.6
= control target key start
LH: loop header
LB: loop body
LE: loop exit
PB: predicated region body
PF: predicated region fallthrough
CT: control target
= control target key end

     0   :  { %vm89_vm0 = vcmask 523264   ;;  %s2413_s1 = inlined_call_operand.vmem [shape: f32[1,64,128], index: 1, kind: input, shape index: {}]   ;;  %s2414_s0 = inlined_call_operand.vmem [shape: f32[2,16,16,64], index: 0, kind: input, shape index: {}]   ;;  %s2415_s3 = inlined_call_operand.vmem [shape: f32[1,128], index: 3, kind: input, shape index: {}]   ;;  %s2416_s2 = inlined_call_operand.vmem [shape: f32[1,128], index: 2, kind: input, shape index: {}]   ;;  %s2417_s4 = inlined_call_operand.vmem [shape: f32[512,128], index: 4, kind: output, shape index: {}]  }
   0x1   :  { %v88_v0 = vld [vmem:[%s2413_s1 + $0x38] sm:$0xff]  ;;  %v87_v1 = vld [vmem:[%s2413_s1 + $0x30] sm:$0xff]  ;;  %v86_v2 = vld [vmem:[%s2413_s1 + $0x28] sm:$0xff] }
   0x2   :  { %290 = vmatpush.msra.mxu0 %v88_v0  ;;  %1110 = vmatpush.msra.mxu1 %v88_v0  ;;  %v85_v3 = vld [vmem:[%s2413_s1 + $0x20] sm:$0xff]  ;;  %v84_v4 = vld [vmem:[%s2413_s1 + $0x18] sm:$0xff]  ;;  %v83_v5 = vld [vmem:[%s2413_s1 + $0x10] sm:$0xff] }
   0x3   :  { %1111 = vmatpush.msra.mxu2 %v88_v0  ;;  %1112 = vmatpush.msra.mxu3 %v88_v0  ;;  %v82_v6 = vld [vmem:[%s2413_s1 + $0x8] sm:$0xff]  ;;  %v81_v7 = vld [vmem:[%s2413_s1] sm:$0xff]  ;;  %v19_v12 = vld [vmem:[%s2414_s0 + $0x10] sm:$0xff] }
   0x4   :  { %291 = vmatpush.msra.mxu0 %v87_v1  ;;  %1113 = vmatpush.msra.mxu1 %v87_v1  ;;  %v17_v8 = vld [vmem:[%s2414_s0] sm:$0xff]  ;;  %v18_v10 = vld [vmem:[%s2414_s0 + $0x8] sm:$0xff]  ;;  %v35_v13 = vld [vmem:[%s2414_s0 + $0x90] sm:$0xff] }
   0x5   :  { %1114 = vmatpush.msra.mxu2 %v87_v1  ;;  %1115 = vmatpush.msra.mxu3 %v87_v1  ;;  %v33_v9 = vld [vmem:[%s2414_s0 + $0x80] sm:$0xff]  ;;  %v34_v11 = vld [vmem:[%s2414_s0 + $0x88] sm:$0xff]  ;;  %v20_v14 = vld [vmem:[%s2414_s0 + $0x18] sm:$0xff] }
   0x6   :  { %292 = vmatpush.msra.mxu0 %v86_v2  ;;  %1116 = vmatpush.msra.mxu1 %v86_v2  ;;  %v36_v15 = vld [vmem:[%s2414_s0 + $0x98] sm:$0xff]  ;;  %v49_v16 = vld [vmem:[%s2414_s0 + $0x100] sm:$0xff]  ;;  %v50_v19 = vld [vmem:[%s2414_s0 + $0x108] sm:$0xff] }
   0x7   :  { %1117 = vmatpush.msra.mxu2 %v86_v2  ;;  %1118 = vmatpush.msra.mxu3 %v86_v2  ;;  %v21_v17 = vld [vmem:[%s2414_s0 + $0x20] sm:$0xff]  ;;  %v22_v20 = vld [vmem:[%s2414_s0 + $0x28] sm:$0xff]  ;;  %v51_v22 = vld [vmem:[%s2414_s0 + $0x110] sm:$0xff] }
   0x8   :  { %293 = vmatpush.msra.mxu0 %v85_v3  ;;  %1119 = vmatpush.msra.mxu1 %v85_v3  ;;  %v37_v18 = vld [vmem:[%s2414_s0 + $0xa0] sm:$0xff]  ;;  %v38_v21 = vld [vmem:[%s2414_s0 + $0xa8] sm:$0xff]  ;;  %v23_v23 = vld [vmem:[%s2414_s0 + $0x30] sm:$0xff] }
   0x9   :  { %1120 = vmatpush.msra.mxu2 %v85_v3  ;;  %1121 = vmatpush.msra.mxu3 %v85_v3  ;;  %v39_v24 = vld [vmem:[%s2414_s0 + $0xb0] sm:$0xff]  ;;  %v52_v25 = vld [vmem:[%s2414_s0 + $0x118] sm:$0xff]  ;;  %v53_v28 = vld [vmem:[%s2414_s0 + $0x120] sm:$0xff] }
   0xa   :  { %294 = vmatpush.msra.mxu0 %v84_v4  ;;  %1122 = vmatpush.msra.mxu1 %v84_v4  ;;  %v24_v26 = vld [vmem:[%s2414_s0 + $0x38] sm:$0xff]  ;;  %v65_v29 = vld [vmem:[%s2414_s0 + $0x180] sm:$0xff]  ;;  %v54_v32 = vld [vmem:[%s2414_s0 + $0x128] sm:$0xff] }
   0xb   :  { %1123 = vmatpush.msra.mxu2 %v84_v4  ;;  %1124 = vmatpush.msra.mxu3 %v84_v4  ;;  %v40_v27 = vld [vmem:[%s2414_s0 + $0xb8] sm:$0xff]  ;;  %v25_v30 = vld [vmem:[%s2414_s0 + $0x40] sm:$0xff]  ;;  %v66_v33 = vld [vmem:[%s2414_s0 + $0x188] sm:$0xff] }
   0xc   :  { %295 = vmatpush.msra.mxu0 %v83_v5  ;;  %1125 = vmatpush.msra.mxu1 %v83_v5  ;;  %v41_v31 = vld [vmem:[%s2414_s0 + $0xc0] sm:$0xff]  ;;  %v26_v34 = vld [vmem:[%s2414_s0 + $0x48] sm:$0xff]  ;;  %v55_v36 = vld [vmem:[%s2414_s0 + $0x130] sm:$0xff] }
   0xd   :  { %1126 = vmatpush.msra.mxu2 %v83_v5  ;;  %1127 = vmatpush.msra.mxu3 %v83_v5  ;;  %v42_v35 = vld [vmem:[%s2414_s0 + $0xc8] sm:$0xff]  ;;  %v67_v37 = vld [vmem:[%s2414_s0 + $0x190] sm:$0xff]  ;;  %v56_v40 = vld [vmem:[%s2414_s0 + $0x138] sm:$0xff] }
   0xe   :  { %296 = vmatpush.msra.mxu0 %v82_v6  ;;  %1128 = vmatpush.msra.mxu1 %v82_v6  ;;  %v27_v38 = vld [vmem:[%s2414_s0 + $0x50] sm:$0xff]  ;;  %v68_v41 = vld [vmem:[%s2414_s0 + $0x198] sm:$0xff]  ;;  %v57_v44 = vld [vmem:[%s2414_s0 + $0x140] sm:$0xff] }
   0xf   :  { %1129 = vmatpush.msra.mxu2 %v82_v6  ;;  %1130 = vmatpush.msra.mxu3 %v82_v6  ;;  %v43_v39 = vld [vmem:[%s2414_s0 + $0xd0] sm:$0xff]  ;;  %v28_v42 = vld [vmem:[%s2414_s0 + $0x58] sm:$0xff]  ;;  %v69_v45 = vld [vmem:[%s2414_s0 + $0x1a0] sm:$0xff] }
  0x10   :  { %297 = vmatpush.msra.mxu0 %v81_v7  ;;  %1131 = vmatpush.msra.mxu1 %v81_v7  ;;  %v44_v43 = vld [vmem:[%s2414_s0 + $0xd8] sm:$0xff]  ;;  %v29_v46 = vld [vmem:[%s2414_s0 + $0x60] sm:$0xff]  ;;  %v58_v48 = vld [vmem:[%s2414_s0 + $0x148] sm:$0xff] }
  0x11   :  { %1046 = vmatmul.msk.f32.vlgmr.msra.gmra.mxu0 %vm89_vm0, %v17_v8  ;;  %1062 = vmatmul.msk.f32.vlgmr.msra.gmra.mxu1 %vm89_vm0, %v33_v9  ;;  %v45_v47 = vld [vmem:[%s2414_s0 + $0xe0] sm:$0xff]  ;;  %v70_v49 = vld [vmem:[%s2414_s0 + $0x1a8] sm:$0xff]  ;;  %v59_v52 = vld [vmem:[%s2414_s0 + $0x150] sm:$0xff] }
  0x12   :  { %1132 = vmatpush.msra.mxu2 %v81_v7  ;;  %1133 = vmatpush.msra.mxu3 %v81_v7  ;;  %v30_v50 = vld [vmem:[%s2414_s0 + $0x68] sm:$0xff]  ;;  %v71_v53 = vld [vmem:[%s2414_s0 + $0x1b0] sm:$0xff]  ;;  %v60_v56 = vld [vmem:[%s2414_s0 + $0x158] sm:$0xff] }
  0x13   :  { %1078 = vmatmul.msk.f32.vlgmr.msra.gmra.mxu2 %vm89_vm0, %v49_v16  ;;  %1094 = vmatmul.msk.f32.vlgmr.msra.gmra.mxu3 %vm89_vm0, %v65_v29  ;;  %v46_v51 = vld [vmem:[%s2414_s0 + $0xe8] sm:$0xff]  ;;  %v31_v54 = vld [vmem:[%s2414_s0 + $0x70] sm:$0xff]  ;;  %v72_v57 = vld [vmem:[%s2414_s0 + $0x1b8] sm:$0xff] }
  0x14   :  { %v47_v55 = vld [vmem:[%s2414_s0 + $0xf0] sm:$0xff]  ;;  %v32_v58 = vld [vmem:[%s2414_s0 + $0x78] sm:$0xff]  ;;  %v61_v60 = vld [vmem:[%s2414_s0 + $0x160] sm:$0xff] }
  0x15   :  { %v48_v59 = vld [vmem:[%s2414_s0 + $0xf8] sm:$0xff]  ;;  %v73_v61 = vld [vmem:[%s2414_s0 + $0x1c0] sm:$0xff]  ;;  %v62_v0 = vld [vmem:[%s2414_s0 + $0x168] sm:$0xff] }
  0x16   :  { %v74_v1 = vld [vmem:[%s2414_s0 + $0x1c8] sm:$0xff]  ;;  %v63_v3 = vld [vmem:[%s2414_s0 + $0x170] sm:$0xff]  ;;  %v64_v7 = vld [vmem:[%s2414_s0 + $0x178] sm:$0xff] }
  0x17   :  { %v75_v4 = vld [vmem:[%s2414_s0 + $0x1d0] sm:$0xff]  ;;  %v76_v8 = vld [vmem:[%s2414_s0 + $0x1d8] sm:$0xff] }
  0x19   :  { %1047 = vmatmul.msk.f32.gmra.mxu0 %vm89_vm0, %v18_v10  ;;  %1063 = vmatmul.msk.f32.gmra.mxu1 %vm89_vm0, %v34_v11  ;;  %v77_v11 = vld [vmem:[%s2414_s0 + $0x1e0] sm:$0xff] }
  0x1b   :  { %1079 = vmatmul.msk.f32.gmra.mxu2 %vm89_vm0, %v50_v19  ;;  %1095 = vmatmul.msk.f32.gmra.mxu3 %vm89_vm0, %v66_v33 }
  0x21   :  { %1048 = vmatmul.msk.f32.gmra.mxu0 %vm89_vm0, %v19_v12  ;;  %1064 = vmatmul.msk.f32.gmra.mxu1 %vm89_vm0, %v35_v13 }
  0x23   :  { %1080 = vmatmul.msk.f32.gmra.mxu2 %vm89_vm0, %v51_v22  ;;  %1096 = vmatmul.msk.f32.gmra.mxu3 %vm89_vm0, %v67_v37 }
  0x29   :  { %1049 = vmatmul.msk.f32.gmra.mxu0 %vm89_vm0, %v20_v14  ;;  %1065 = vmatmul.msk.f32.gmra.mxu1 %vm89_vm0, %v36_v15  ;;  %v78_v15 = vld [vmem:[%s2414_s0 + $0x1e8] sm:$0xff] }
  0x2b   :  { %1081 = vmatmul.msk.f32.gmra.mxu2 %vm89_vm0, %v52_v25  ;;  %1097 = vmatmul.msk.f32.gmra.mxu3 %vm89_vm0, %v68_v41 }
  0x31   :  { %1050 = vmatmul.msk.f32.gmra.mxu0 %vm89_vm0, %v21_v17  ;;  %1066 = vmatmul.msk.f32.gmra.mxu1 %vm89_vm0, %v37_v18  ;;  %v79_v18 = vld [vmem:[%s2414_s0 + $0x1f0] sm:$0xff] }
  0x33   :  { %1082 = vmatmul.msk.f32.gmra.mxu2 %vm89_vm0, %v53_v28  ;;  %1098 = vmatmul.msk.f32.gmra.mxu3 %vm89_vm0, %v69_v45 }
  0x39   :  { %1051 = vmatmul.msk.f32.gmra.mxu0 %vm89_vm0, %v22_v20  ;;  %1067 = vmatmul.msk.f32.gmra.mxu1 %vm89_vm0, %v38_v21  ;;  %v80_v21 = vld [vmem:[%s2414_s0 + $0x1f8] sm:$0xff] }
  0x3b   :  { %1083 = vmatmul.msk.f32.gmra.mxu2 %vm89_vm0, %v54_v32  ;;  %1099 = vmatmul.msk.f32.gmra.mxu3 %vm89_vm0, %v70_v49 }
  0x41   :  { %1052 = vmatmul.msk.f32.gmra.mxu0 %vm89_vm0, %v23_v23  ;;  %1068 = vmatmul.msk.f32.gmra.mxu1 %vm89_vm0, %v39_v24 }
  0x43   :  { %1084 = vmatmul.msk.f32.gmra.mxu2 %vm89_vm0, %v55_v36  ;;  %1100 = vmatmul.msk.f32.gmra.mxu3 %vm89_vm0, %v71_v53 }
  0x49   :  { %1053 = vmatmul.msk.f32.gmra.mxu0 %vm89_vm0, %v24_v26  ;;  %1069 = vmatmul.msk.f32.gmra.mxu1 %vm89_vm0, %v40_v27 }
  0x4b   :  { %1085 = vmatmul.msk.f32.gmra.mxu2 %vm89_vm0, %v56_v40  ;;  %1101 = vmatmul.msk.f32.gmra.mxu3 %vm89_vm0, %v72_v57 }
  0x51   :  { %1054 = vmatmul.msk.f32.gmra.mxu0 %vm89_vm0, %v25_v30  ;;  %1070 = vmatmul.msk.f32.gmra.mxu1 %vm89_vm0, %v41_v31 }
  0x53   :  { %1086 = vmatmul.msk.f32.gmra.mxu2 %vm89_vm0, %v57_v44  ;;  %1102 = vmatmul.msk.f32.gmra.mxu3 %vm89_vm0, %v73_v61 }
  0x59   :  { %1055 = vmatmul.msk.f32.gmra.mxu0 %vm89_vm0, %v26_v34  ;;  %1071 = vmatmul.msk.f32.gmra.mxu1 %vm89_vm0, %v42_v35 }
  0x5b   :  { %1087 = vmatmul.msk.f32.gmra.mxu2 %vm89_vm0, %v58_v48  ;;  %1103 = vmatmul.msk.f32.gmra.mxu3 %vm89_vm0, %v74_v1 }
  0x61   :  { %1056 = vmatmul.msk.f32.gmra.mxu0 %vm89_vm0, %v27_v38  ;;  %1072 = vmatmul.msk.f32.gmra.mxu1 %vm89_vm0, %v43_v39 }
  0x63   :  { %1088 = vmatmul.msk.f32.gmra.mxu2 %vm89_vm0, %v59_v52  ;;  %1104 = vmatmul.msk.f32.gmra.mxu3 %vm89_vm0, %v75_v4 }
  0x69   :  { %1057 = vmatmul.msk.f32.gmra.mxu0 %vm89_vm0, %v28_v42  ;;  %1073 = vmatmul.msk.f32.gmra.mxu1 %vm89_vm0, %v44_v43 }
  0x6b   :  { %1089 = vmatmul.msk.f32.gmra.mxu2 %vm89_vm0, %v60_v56  ;;  %1105 = vmatmul.msk.f32.gmra.mxu3 %vm89_vm0, %v76_v8 }
  0x71   :  { %1058 = vmatmul.msk.f32.gmra.mxu0 %vm89_vm0, %v29_v46  ;;  %1074 = vmatmul.msk.f32.gmra.mxu1 %vm89_vm0, %v45_v47 }
  0x73   :  { %1090 = vmatmul.msk.f32.gmra.mxu2 %vm89_vm0, %v61_v60  ;;  %1106 = vmatmul.msk.f32.gmra.mxu3 %vm89_vm0, %v77_v11 }
  0x79   :  { %1059 = vmatmul.msk.f32.gmra.mxu0 %vm89_vm0, %v30_v50  ;;  %1075 = vmatmul.msk.f32.gmra.mxu1 %vm89_vm0, %v46_v51 }
  0x7b   :  { %1091 = vmatmul.msk.f32.gmra.mxu2 %vm89_vm0, %v62_v0  ;;  %1107 = vmatmul.msk.f32.gmra.mxu3 %vm89_vm0, %v78_v15 }
  0x81   :  { %1060 = vmatmul.msk.f32.gmra.mxu0 %vm89_vm0, %v31_v54  ;;  %1076 = vmatmul.msk.f32.gmra.mxu1 %vm89_vm0, %v47_v55 }
  0x83   :  { %1092 = vmatmul.msk.f32.gmra.mxu2 %vm89_vm0, %v63_v3  ;;  %1108 = vmatmul.msk.f32.gmra.mxu3 %vm89_vm0, %v79_v18 }
  0x89   :  { %1061 = vmatmul.msk.f32.gmra.mxu0 %vm89_vm0, %v32_v58  ;;  %1077 = vmatmul.msk.f32.gmra.mxu1 %vm89_vm0, %v48_v59 }
  0x8b   :  { %1093 = vmatmul.msk.f32.gmra.mxu2 %vm89_vm0, %v64_v7  ;;  %1109 = vmatmul.msk.f32.gmra.mxu3 %vm89_vm0, %v80_v21 }
  0x8e   :  { %v1406_v62 = vpop.f32.mrf.mxu0  ;;  %v1408_v63 = vpop.f32.mrf.mxu1 }
  0x96   :  { %v1418_v2 = vpop.f32.mrf.mxu0  ;;  %v1426_v5 = vpop.f32.mrf.mxu1 }
  0x97   :  { %v1452_v14 = vpop.f32.mrf.mxu2  ;;  %v1486_v28 = vpop.f32.mrf.mxu3  ;;  %v491_v40 = vadd.f32 %v1418_v2, %v1406_v62 }
  0x98   :  { %2455 = vst [vmem:[#allocation2_spill] sm:$0xff] %v1452_v14 }
  0x9e   :  { %v1430_v6 = vpop.f32.mrf.mxu0  ;;  %v1438_v9 = vpop.f32.mrf.mxu1 }
  0x9f   :  { %v1465_v19 = vpop.f32.mrf.mxu2  ;;  %v1494_v32 = vpop.f32.mrf.mxu3  ;;  %v492_v42 = vadd.f32 %v491_v40, %v1430_v6 }
  0xa6   :  { %v1442_v10 = vpop.f32.mrf.mxu0  ;;  %v1448_v12 = vpop.f32.mrf.mxu1 }
  0xa7   :  { %v1475_v23 = vpop.f32.mrf.mxu2  ;;  %v1502_v36 = vpop.f32.mrf.mxu3  ;;  %v493_v44 = vadd.f32 %v492_v42, %v1442_v10 }
  0xae   :  { %v1450_v13 = vpop.f32.mrf.mxu0  ;;  %v1460_v17 = vpop.f32.mrf.mxu1 }
  0xaf   :  { %v1482_v26 = vpop.f32.mrf.mxu2  ;;  %v1512_v41 = vpop.f32.mrf.mxu3  ;;  %v494_v45 = vadd.f32 %v493_v44, %v1450_v13 }
  0xb0   :  { %2458 = vst [vmem:[#allocation5_spill] sm:$0xff] %v1512_v41 }
  0xb6   :  { %v1458_v16 = vpop.f32.mrf.mxu0  ;;  %v1473_v22 = vpop.f32.mrf.mxu1 }
  0xb7   :  { %v1492_v31 = vpop.f32.mrf.mxu2  ;;  %v495_v47 = vadd.f32 %v494_v45, %v1458_v16  ;;  %v1527_v51 = vpop.f32.mrf.mxu3 }
  0xb8   :  { %2456 = vst [vmem:[#allocation3_spill] sm:$0xff] %v1492_v31 }
  0xb9   :  { %2459 = vst [vmem:[#allocation6_spill] sm:$0xff] %v1527_v51 }
  0xbe   :  { %v1468_v20 = vpop.f32.mrf.mxu0  ;;  %v1480_v25 = vpop.f32.mrf.mxu1 }
  0xbf   :  { %v1500_v35 = vpop.f32.mrf.mxu2  ;;  %v496_v49 = vadd.f32 %v495_v47, %v1468_v20  ;;  %v1540_v60 = vpop.f32.mrf.mxu3 }
  0xc0   :  { %2457 = vst [vmem:[#allocation4_spill] sm:$0xff] %v1500_v35 }
  0xc1   :  { %2461 = vst [vmem:[#allocation8_spill] sm:$0xff] %v1540_v60 }
  0xc6   :  { %v1478_v24 = vpop.f32.mrf.mxu0  ;;  %v1488_v29 = vpop.f32.mrf.mxu1 }
  0xc7   :  { %v1508_v39 = vpop.f32.mrf.mxu2  ;;  %v497_v52 = vadd.f32 %v496_v49, %v1478_v24  ;;  %v1553_v15 = vpop.f32.mrf.mxu3 }
  0xc8   :  { %2463 = vst [vmem:[#allocation10_spill] sm:$0xff] %v1553_v15 }
  0xce   :  { %v1484_v27 = vpop.f32.mrf.mxu0  ;;  %v1498_v34 = vpop.f32.mrf.mxu1 }
  0xcf   :  { %v1522_v48 = vpop.f32.mrf.mxu2  ;;  %v498_v53 = vadd.f32 %v497_v52, %v1484_v27  ;;  %v1564_v49 = vpop.f32.mrf.mxu3 }
  0xd0   :  { %2466 = vst [vmem:[#allocation13_spill] sm:$0xff] %v1564_v49 }
  0xd6   :  { %v1490_v30 = vpop.f32.mrf.mxu0  ;;  %v1506_v38 = vpop.f32.mrf.mxu1 }
  0xd7   :  { %v499_v54 = vadd.f32 %v498_v53, %v1490_v30  ;;  %v1537_v58 = vpop.f32.mrf.mxu2 }
  0xd8   :  { %2460 = vst [vmem:[#allocation7_spill] sm:$0xff] %v1537_v58 }
  0xde   :  { %v1496_v33 = vpop.f32.mrf.mxu0  ;;  %v1519_v46 = vpop.f32.mrf.mxu1 }
  0xdf   :  { %v500_v56 = vadd.f32 %v499_v54, %v1496_v33  ;;  %v1550_v8 = vpop.f32.mrf.mxu2 }
  0xe0   :  { %2462 = vst [vmem:[#allocation9_spill] sm:$0xff] %v1550_v8 }
  0xe6   :  { %v1504_v37 = vpop.f32.mrf.mxu0  ;;  %v1532_v55 = vpop.f32.mrf.mxu1 }
  0xe7   :  { %v501_v59 = vadd.f32 %v500_v56, %v1504_v37  ;;  %v1561_v45 = vpop.f32.mrf.mxu2 }
  0xe8   :  { %2465 = vst [vmem:[#allocation12_spill] sm:$0xff] %v1561_v45 }
  0xee   :  { %v1515_v43 = vpop.f32.mrf.mxu0  ;;  %v1547_v4 = vpop.f32.mrf.mxu1 }
  0xef   :  { %v502_v61 = vadd.f32 %v501_v59, %v1515_v43 }
  0xf6   :  { %v1525_v50 = vpop.f32.mrf.mxu0  ;;  %v1558_v42 = vpop.f32.mrf.mxu1 }
  0xf7   :  { %v503_v0 = vadd.f32 %v502_v61, %v1525_v50  ;;  %2464 = vst [vmem:[#allocation11_spill] sm:$0xff] %v1558_v42  ;;  %v1572_v61 = vpop.f32.mrf.mxu2 }
  0xfe   :  { %v1535_v57 = vpop.f32.mrf.mxu0  ;;  %v1569_v56 = vpop.f32.mrf.mxu1 }
  0xff   :  { %v504_v1 = vadd.f32 %v503_v0, %v1535_v57 }
 0x106   :  { %v1545_v3 = vpop.f32.mrf.mxu0 }
 0x107   :  { %v505_v7 = vadd.f32 %v504_v1, %v1545_v3  ;;  %v1575_v1 = vpop.f32.mrf.mxu3 }
 0x108   :  { %2467 = vst [vmem:[#allocation14_spill] sm:$0xff] %v1575_v1 }
 0x109   :  { %v506_v11 = vadd.f32 %v505_v7, %v1408_v63 }
 0x10b   :  { %v507_v18 = vadd.f32 %v506_v11, %v1426_v5 }
 0x10d   :  { %v508_v21 = vadd.f32 %v507_v18, %v1438_v9 }
 0x10f   :  { %v509_v40 = vadd.f32 %v508_v21, %v1448_v12  ;;  %v1580_v21 = vpop.f32.mrf.mxu1 }
 0x110   :  { %2468 = vst [vmem:[#allocation15_spill] sm:$0xff] %v1580_v21 }
 0x111   :  { %v510_v44 = vadd.f32 %v509_v40, %v1460_v17 }
 0x113   :  { %v511_v47 = vadd.f32 %v510_v44, %v1473_v22  ;;  %v1583_v44 = vpop.f32.mrf.mxu2 }
 0x115   :  { %v512_v52 = vadd.f32 %v511_v47, %v1480_v25 }
 0x117   :  { %v513_v53 = vadd.f32 %v512_v52, %v1488_v29  ;;  %v1586_v52 = vpop.f32.mrf.mxu3 }
 0x118   :  { %2469 = vst [vmem:[#allocation16_spill] sm:$0xff] %v1586_v52 }
 0x119   :  { %v514_v54 = vadd.f32 %v513_v53, %v1498_v34 }
 0x11b   :  { %v515_v59 = vadd.f32 %v514_v54, %v1506_v38 }
 0x11d   :  { %v516_v0 = vadd.f32 %v515_v59, %v1519_v46 }
 0x11f   :  { %v517_v7 = vadd.f32 %v516_v0, %v1532_v55 }
 0x121   :  { %v518_v11 = vadd.f32 %v517_v7, %v1547_v4  ;;  %v1592_v7 = vpop.f32.mrf.mxu2 }
 0x123   :  { %v519_v18 = vadd.f32 %v518_v11, %v1558_v42  ;;  %v1595_v42 = vpop.f32.mrf.mxu3 }
 0x124   :  { %2470 = vst [vmem:[#allocation17_spill] sm:$0xff] %v1595_v42 }
 0x125   :  { %v520_v40 = vadd.f32 %v519_v18, %v1569_v56 }
 0x127   :  { %v521_v47 = vadd.f32 %v520_v40, %v1580_v21 }
 0x129   :  { %v522_v53 = vadd.f32 %v521_v47, %v1452_v14  ;;  %v1601_v14 = vpop.f32.mrf.mxu2 }
 0x12a   :  { %2471 = vst [vmem:[#allocation18_spill] sm:$0xff] %v1601_v14 }
 0x12b   :  { %v523_v54 = vadd.f32 %v522_v53, %v1465_v19 }
 0x12d   :  { %v524_v59 = vadd.f32 %v523_v54, %v1475_v23  ;;  %v1604_v54 = vpop.f32.mrf.mxu3 }
 0x12f   :  { %v525_v0 = vadd.f32 %v524_v59, %v1482_v26 }
 0x131   :  { %v526_v11 = vadd.f32 %v525_v0, %v1492_v31 }
 0x133   :  { %v527_v18 = vadd.f32 %v526_v11, %v1500_v35  ;;  %v440_v35 = vpop.f32.mrf.mxu2 }
 0x135   :  { %v528_v40 = vadd.f32 %v527_v18, %v1508_v39 }
 0x137   :  { %v529_v21 = vadd.f32 %v528_v40, %v1522_v48  ;;  %v1611_v40 = vpop.f32.mrf.mxu3 }
 0x139   :  { %v530_v47 = vadd.f32 %v529_v21, %v1537_v58 }
 0x13b   :  { %v531_v53 = vadd.f32 %v530_v47, %v1550_v8 }
 0x13d   :  { %v532_v59 = vadd.f32 %v531_v53, %v1561_v45 }
 0x13f   :  { %v533_v0 = vadd.f32 %v532_v59, %v1572_v61  ;;  %v1617_v45 = vpop.f32.mrf.mxu3 }
 0x141   :  { %v534_v31 = vadd.f32 %v533_v0, %v1583_v44 }
 0x143   :  { %v535_v11 = vadd.f32 %v534_v31, %v1592_v7 }
 0x145   :  { %v536_v18 = vadd.f32 %v535_v11, %v1601_v14 }
 0x147   :  { %v537_v21 = vadd.f32 %v536_v18, %v440_v35  ;;  %v485_v14 = vpop.f32.mrf.mxu3 }
 0x149   :  { %v538_v58 = vadd.f32 %v537_v21, %v1486_v28 }
 0x14b   :  { %v539_v47 = vadd.f32 %v538_v58, %v1494_v32 }
 0x14d   :  { %v540_v8 = vadd.f32 %v539_v47, %v1502_v36 }
 0x14f   :  { %v541_v53 = vadd.f32 %v540_v8, %v1512_v41  ;;  %v1140_v41 = vmov 512.0  }
 0x150   :  { %1136 = vrcp.f32 %v1140_v41 }
 0x151   :  { %v542_v59 = vadd.f32 %v541_v53, %v1527_v51 }
 0x153   :  { %v543_v31 = vadd.f32 %v542_v59, %v1540_v60  ;;  %v488_v59 = vpop.f32.mrf.mxu3 }
 0x155   :  { %v544_v0 = vadd.f32 %v543_v31, %v1553_v15 }
 0x156   :  { %v1137_v15 = vpop.eup %1136 }
 0x157   :  { %v545_v11 = vadd.f32 %v544_v0, %v1564_v49  ;;  %vm565_vm1 = vweird.f32 %v1137_v15 }
 0x159   :  { %v546_v18 = vadd.f32 %v545_v11, %v1575_v1  ;;  %v561_v11 = vmul.f32 512.0, %v1137_v15 }
 0x15b   :  { %v547_v21 = vadd.f32 %v546_v18, %v1586_v52  ;;  %v562_v51 = vsub.f32 1.0, %v561_v11 }
 0x15d   :  { %v548_v58 = vadd.f32 %v547_v21, %v1595_v42  ;;  %v563_v52 = vmul.f32 %v1137_v15, %v562_v51 }
 0x15f   :  { %v549_v47 = vadd.f32 %v548_v58, %v1604_v54  ;;  %v564_v42 = vadd.f32 %v1137_v15, %v563_v52 }
 0x161   :  { %v550_v8 = vadd.f32 %v549_v47, %v1611_v40  ;;  %v1629_v47 = vsel %vm565_vm1, %v1137_v15, %v564_v42 }
 0x163   :  { %v551_v53 = vadd.f32 %v550_v8, %v1617_v45 }
 0x165   :  { %v552_v60 = vadd.f32 %v551_v53, %v485_v14 }
 0x167   :  { %v553_v31 = vadd.f32 %v552_v60, %v488_v59 }
 0x169   :  { %v554_v0 = vrot.slane %v553_v31, 4 }
 0x16b   :  { %v555_v49 = vadd.f32 %v554_v0, %v553_v31 }
 0x16d   :  { %v556_v1 = vrot.slane %v555_v49, 2 }
 0x16f   :  { %v557_v18 = vadd.f32 %v556_v1, %v555_v49 }
 0x171   :  { %v558_v21 = vrot.slane %v557_v18, 1 }
 0x173   :  { %v559_v58 = vadd.f32 %v558_v21, %v557_v18 }
 0x175   :  { %v1632_v41 = vmul.f32 %v1629_v47, %v559_v58 }
 0x177   :  { %v1635_v8 = vsub.f32 %v440_v35, %v1632_v41  ;;  %v1638_v60 = vsub.f32 %v485_v14, %v1632_v41  ;;  %v1641_v53 = vsub.f32 %v488_v59, %v1632_v41  ;;  %v1645_v51 = vsub.f32 %v1406_v62, %v1632_v41 }
 0x178   :  { %v1649_v15 = vsub.f32 %v1418_v2, %v1632_v41  ;;  %v1653_v42 = vsub.f32 %v1430_v6, %v1632_v41  ;;  %v1661_v49 = vsub.f32 %v1442_v10, %v1632_v41  ;;  %v1665_v62 = vsub.f32 %v1450_v13, %v1632_v41 }
 0x179   :  { %2472 = vst [vmem:[#allocation19_spill] sm:$0xff] %v1635_v8  ;;  %v632_v35 = vmul.f32 %v1645_v51, %v1645_v51  ;;  %v1671_v6 = vsub.f32 %v1458_v16, %v1632_v41  ;;  %v1677_v10 = vsub.f32 %v1468_v20, %v1632_v41  ;;  %v1683_v0 = vsub.f32 %v1478_v24, %v1632_v41 }
 0x17a   :  { %2473 = vst [vmem:[#allocation20_spill] sm:$0xff] %v1638_v60  ;;  %v633_v14 = vmul.f32 %v1649_v15, %v1649_v15  ;;  %v634_v2 = vmul.f32 %v1653_v42, %v1653_v42  ;;  %v635_v52 = vmul.f32 %v1661_v49, %v1661_v49  ;;  %v636_v13 = vmul.f32 %v1665_v62, %v1665_v62 }
 0x17b   :  { %v637_v16 = vmul.f32 %v1671_v6, %v1671_v6  ;;  %v1689_v18 = vsub.f32 %v1484_v27, %v1632_v41  ;;  %v638_v20 = vmul.f32 %v1677_v10, %v1677_v10  ;;  %v1695_v58 = vsub.f32 %v1490_v30, %v1632_v41 }
 0x17c   :  { %v696_v1 = vadd.f32 %v633_v14, %v632_v35  ;;  %v639_v24 = vmul.f32 %v1683_v0, %v1683_v0  ;;  %v1701_v14 = vsub.f32 %v1496_v33, %v1632_v41 }
 0x17d   :  { %v640_v27 = vmul.f32 %v1689_v18, %v1689_v18  ;;  %v641_v30 = vmul.f32 %v1695_v58, %v1695_v58 }
 0x17e   :  { %v697_v59 = vadd.f32 %v696_v1, %v634_v2  ;;  %v1707_v1 = vsub.f32 %v1504_v37, %v1632_v41  ;;  %v642_v33 = vmul.f32 %v1701_v14, %v1701_v14 }
 0x180   :  { %v698_v31 = vadd.f32 %v697_v59, %v635_v52  ;;  %v1713_v59 = vsub.f32 %v1515_v43, %v1632_v41  ;;  %v643_v37 = vmul.f32 %v1707_v1, %v1707_v1 }
 0x182   :  { %v699_v11 = vadd.f32 %v698_v31, %v636_v13  ;;  %v1719_v31 = vsub.f32 %v1525_v50, %v1632_v41  ;;  %v644_v43 = vmul.f32 %v1713_v59, %v1713_v59 }
 0x184   :  { %v700_v21 = vadd.f32 %v699_v11, %v637_v16  ;;  %v1725_v11 = vsub.f32 %v1535_v57, %v1632_v41  ;;  %v645_v50 = vmul.f32 %v1719_v31, %v1719_v31 }
 0x186   :  { %v701_v35 = vadd.f32 %v700_v21, %v638_v20  ;;  %v1731_v21 = vsub.f32 %v1545_v3, %v1632_v41  ;;  %v646_v57 = vmul.f32 %v1725_v11, %v1725_v11 }
 0x188   :  { %v702_v2 = vadd.f32 %v701_v35, %v639_v24  ;;  %v1737_v35 = vsub.f32 %v1408_v63, %v1632_v41  ;;  %v647_v3 = vmul.f32 %v1731_v21, %v1731_v21 }
 0x18a   :  { %v703_v52 = vadd.f32 %v702_v2, %v640_v27  ;;  %v1743_v2 = vsub.f32 %v1426_v5, %v1632_v41  ;;  %v648_v63 = vmul.f32 %v1737_v35, %v1737_v35 }
 0x18c   :  { %v704_v13 = vadd.f32 %v703_v52, %v641_v30  ;;  %v1749_v52 = vsub.f32 %v1438_v9, %v1632_v41  ;;  %v649_v5 = vmul.f32 %v1743_v2, %v1743_v2 }
 0x18e   :  { %v705_v16 = vadd.f32 %v704_v13, %v642_v33  ;;  %v1755_v13 = vsub.f32 %v1448_v12, %v1632_v41  ;;  %v650_v9 = vmul.f32 %v1749_v52, %v1749_v52 }
 0x190   :  { %v706_v20 = vadd.f32 %v705_v16, %v643_v37  ;;  %v1761_v16 = vsub.f32 %v1460_v17, %v1632_v41  ;;  %v651_v12 = vmul.f32 %v1755_v13, %v1755_v13 }
 0x192   :  { %v707_v24 = vadd.f32 %v706_v20, %v644_v43  ;;  %v1767_v20 = vsub.f32 %v1473_v22, %v1632_v41  ;;  %v652_v17 = vmul.f32 %v1761_v16, %v1761_v16 }
 0x194   :  { %v708_v27 = vadd.f32 %v707_v24, %v645_v50  ;;  %v1773_v24 = vsub.f32 %v1480_v25, %v1632_v41  ;;  %v653_v22 = vmul.f32 %v1767_v20, %v1767_v20 }
 0x196   :  { %v709_v30 = vadd.f32 %v708_v27, %v646_v57  ;;  %v1779_v27 = vsub.f32 %v1488_v29, %v1632_v41  ;;  %v654_v25 = vmul.f32 %v1773_v24, %v1773_v24 }
 0x198   :  { %v710_v33 = vadd.f32 %v709_v30, %v647_v3  ;;  %v1785_v30 = vsub.f32 %v1498_v34, %v1632_v41  ;;  %v655_v29 = vmul.f32 %v1779_v27, %v1779_v27 }
 0x19a   :  { %v711_v37 = vadd.f32 %v710_v33, %v648_v63  ;;  %v1791_v33 = vsub.f32 %v1506_v38, %v1632_v41  ;;  %v656_v34 = vmul.f32 %v1785_v30, %v1785_v30 }
 0x19c   :  { %v712_v43 = vadd.f32 %v711_v37, %v649_v5  ;;  %v1797_v37 = vsub.f32 %v1519_v46, %v1632_v41  ;;  %v657_v38 = vmul.f32 %v1791_v33, %v1791_v33 }
 0x19e   :  { %v713_v50 = vadd.f32 %v712_v43, %v650_v9  ;;  %v1803_v43 = vsub.f32 %v1532_v55, %v1632_v41  ;;  %v658_v46 = vmul.f32 %v1797_v37, %v1797_v37 }
 0x1a0   :  { %v714_v57 = vadd.f32 %v713_v50, %v651_v12  ;;  %v1809_v50 = vsub.f32 %v1547_v4, %v1632_v41  ;;  %v659_v55 = vmul.f32 %v1803_v43, %v1803_v43 }
 0x1a2   :  { %v715_v3 = vadd.f32 %v714_v57, %v652_v17  ;;  %v2474_v57 = vld [vmem:[#allocation11_spill] sm:$0xff]  ;;  %v660_v4 = vmul.f32 %v1809_v50, %v1809_v50 }
 0x1a4   :  { %v716_v63 = vadd.f32 %v715_v3, %v653_v22  ;;  %v1815_v22 = vsub.f32 %v2474_v57, %v1632_v41 }
 0x1a6   :  { %v717_v5 = vadd.f32 %v716_v63, %v654_v25  ;;  %v1821_v25 = vsub.f32 %v1569_v56, %v1632_v41 }
 0x1a8   :  { %v718_v9 = vadd.f32 %v717_v5, %v655_v29  ;;  %v2475_v29 = vld [vmem:[#allocation15_spill] sm:$0xff]  ;;  %v662_v56 = vmul.f32 %v1821_v25, %v1821_v25 }
 0x1a9   :  { %v1827_v5 = vsub.f32 %v2475_v29, %v1632_v41  ;;  %v1851_v29 = vsub.f32 %v1482_v26, %v1632_v41 }
 0x1aa   :  { %v719_v12 = vadd.f32 %v718_v9, %v656_v34  ;;  %v661_v34 = vmul.f32 %v1815_v22, %v1815_v22 }
 0x1ab   :  { %v663_v57 = vmul.f32 %v1827_v5, %v1827_v5  ;;  %2478 = vst [vmem:[#allocation15_spill] sm:$0xff] %v1851_v29  ;;  %v667_v26 = vmul.f32 %v1851_v29, %v1851_v29 }
 0x1ac   :  { %v720_v17 = vadd.f32 %v719_v12, %v657_v38  ;;  %v2476_v38 = vld [vmem:[#allocation2_spill] sm:$0xff] }
 0x1ad   :  { %v1833_v12 = vsub.f32 %v2476_v38, %v1632_v41 }
 0x1ae   :  { %v721_v3 = vadd.f32 %v720_v17, %v658_v46  ;;  %v1839_v17 = vsub.f32 %v1465_v19, %v1632_v41 }
 0x1af   :  { %2477 = vst [vmem:[#allocation11_spill] sm:$0xff] %v1833_v12 }
 0x1b0   :  { %v722_v63 = vadd.f32 %v721_v3, %v659_v55  ;;  %v1845_v3 = vsub.f32 %v1475_v23, %v1632_v41  ;;  %v665_v19 = vmul.f32 %v1839_v17, %v1839_v17 }
 0x1b2   :  { %v723_v9 = vadd.f32 %v722_v63, %v660_v4  ;;  %v664_v4 = vmul.f32 %v1833_v12, %v1833_v12  ;;  %v666_v23 = vmul.f32 %v1845_v3, %v1845_v3 }
 0x1b4   :  { %v724_v46 = vadd.f32 %v723_v9, %v661_v34  ;;  %v2479_v9 = vld [vmem:[#allocation3_spill] sm:$0xff] }
 0x1b5   :  { %v1857_v38 = vsub.f32 %v2479_v9, %v1632_v41  ;;  %v1875_v9 = vsub.f32 %v1522_v48, %v1632_v41 }
 0x1b6   :  { %v725_v55 = vadd.f32 %v724_v46, %v662_v56  ;;  %v2481_v46 = vld [vmem:[#allocation4_spill] sm:$0xff] }
 0x1b7   :  { %2480 = vst [vmem:[#allocation2_spill] sm:$0xff] %v1857_v38  ;;  %v1863_v12 = vsub.f32 %v2481_v46, %v1632_v41  ;;  %v2483_v46 = vld [vmem:[#allocation7_spill] sm:$0xff]  ;;  %v671_v48 = vmul.f32 %v1875_v9, %v1875_v9 }
 0x1b8   :  { %v726_v63 = vadd.f32 %v725_v55, %v663_v57  ;;  %v1869_v55 = vsub.f32 %v1508_v39, %v1632_v41  ;;  %v1881_v29 = vsub.f32 %v2483_v46, %v1632_v41  ;;  %v1899_v46 = vsub.f32 %v1572_v61, %v1632_v41 }
 0x1b9   :  { %2482 = vst [vmem:[#allocation3_spill] sm:$0xff] %v1863_v12 }
 0x1ba   :  { %v727_v34 = vadd.f32 %v726_v63, %v664_v4  ;;  %v668_v4 = vmul.f32 %v1857_v38, %v1857_v38  ;;  %v670_v39 = vmul.f32 %v1869_v55, %v1869_v55  ;;  %v675_v61 = vmul.f32 %v1899_v46, %v1899_v46 }
 0x1bc   :  { %v728_v56 = vadd.f32 %v727_v34, %v665_v19  ;;  %v669_v19 = vmul.f32 %v1863_v12, %v1863_v12 }
 0x1be   :  { %v729_v57 = vadd.f32 %v728_v56, %v666_v23  ;;  %v2484_v56 = vld [vmem:[#allocation9_spill] sm:$0xff] }
 0x1bf   :  { %v1887_v38 = vsub.f32 %v2484_v56, %v1632_v41  ;;  %v1905_v56 = vsub.f32 %v1583_v44, %v1632_v41 }
 0x1c0   :  { %v730_v63 = vadd.f32 %v729_v57, %v667_v26  ;;  %v2486_v57 = vld [vmem:[#allocation12_spill] sm:$0xff] }
 0x1c1   :  { %2485 = vst [vmem:[#allocation4_spill] sm:$0xff] %v1887_v38  ;;  %v1893_v12 = vsub.f32 %v2486_v57, %v1632_v41  ;;  %v1911_v57 = vsub.f32 %v1592_v7, %v1632_v41  ;;  %v676_v44 = vmul.f32 %v1905_v56, %v1905_v56  ;;  %v1925_v7 = vsub.f32 %v1486_v28, %v1632_v41 }
 0x1c2   :  { %v731_v34 = vadd.f32 %v730_v63, %v668_v4  ;;  %v672_v4 = vmul.f32 %v1881_v29, %v1881_v29 }
 0x1c3   :  { %2489 = vst [vmem:[#allocation9_spill] sm:$0xff] %v1925_v7  ;;  %v680_v28 = vmul.f32 %v1925_v7, %v1925_v7 }
 0x1c4   :  { %v732_v23 = vadd.f32 %v731_v34, %v669_v19  ;;  %v673_v19 = vmul.f32 %v1887_v38, %v1887_v38 }
 0x1c6   :  { %v733_v26 = vadd.f32 %v732_v23, %v670_v39  ;;  %v674_v39 = vmul.f32 %v1893_v12, %v1893_v12 }
 0x1c8   :  { %v734_v63 = vadd.f32 %v733_v26, %v671_v48  ;;  %v2487_v26 = vld [vmem:[#allocation18_spill] sm:$0xff] }
 0x1c9   :  { %v1917_v38 = vsub.f32 %v2487_v26, %v1632_v41  ;;  %v679_v26 = vmul.f32 %v1635_v8, %v1635_v8 }
 0x1ca   :  { %v735_v34 = vadd.f32 %v734_v63, %v672_v4  ;;  %v677_v63 = vmul.f32 %v1911_v57, %v1911_v57 }
 0x1cb   :  { %2488 = vst [vmem:[#allocation7_spill] sm:$0xff] %v1917_v38 }
 0x1cc   :  { %v736_v23 = vadd.f32 %v735_v34, %v673_v19  ;;  %v678_v34 = vmul.f32 %v1917_v38, %v1917_v38 }
 0x1ce   :  { %v737_v48 = vadd.f32 %v736_v23, %v674_v39  ;;  %v1931_v23 = vsub.f32 %v1494_v32, %v1632_v41 }
 0x1d0   :  { %v738_v4 = vadd.f32 %v737_v48, %v675_v61  ;;  %2490 = vst [vmem:[#allocation12_spill] sm:$0xff] %v1931_v23  ;;  %v1937_v48 = vsub.f32 %v1502_v36, %v1632_v41  ;;  %v681_v32 = vmul.f32 %v1931_v23, %v1931_v23 }
 0x1d2   :  { %v739_v19 = vadd.f32 %v738_v4, %v676_v44  ;;  %2491 = vst [vmem:[#allocation18_spill] sm:$0xff] %v1937_v48  ;;  %v2492_v4 = vld [vmem:[#allocation5_spill] sm:$0xff]  ;;  %v682_v36 = vmul.f32 %v1937_v48, %v1937_v48 }
 0x1d3   :  { %v1943_v38 = vsub.f32 %v2492_v4, %v1632_v41  ;;  %v2498_v4 = vld [vmem:[#allocation10_spill] sm:$0xff] }
 0x1d4   :  { %v740_v39 = vadd.f32 %v739_v19, %v677_v63  ;;  %v2494_v19 = vld [vmem:[#allocation6_spill] sm:$0xff]  ;;  %v1961_v23 = vsub.f32 %v2498_v4, %v1632_v41  ;;  %v2502_v4 = vld [vmem:[#allocation16_spill] sm:$0xff] }
 0x1d5   :  { %2493 = vst [vmem:[#allocation5_spill] sm:$0xff] %v1943_v38  ;;  %v1949_v8 = vsub.f32 %v2494_v19, %v1632_v41  ;;  %v2499_v19 = vld [vmem:[#allocation13_spill] sm:$0xff] }
 0x1d6   :  { %v741_v61 = vadd.f32 %v740_v39, %v678_v34  ;;  %v2496_v39 = vld [vmem:[#allocation8_spill] sm:$0xff]  ;;  %v1967_v48 = vsub.f32 %v2499_v19, %v1632_v41  ;;  %v2504_v19 = vld [vmem:[#allocation17_spill] sm:$0xff] }
 0x1d7   :  { %2495 = vst [vmem:[#allocation6_spill] sm:$0xff] %v1949_v8  ;;  %v1955_v7 = vsub.f32 %v2496_v39, %v1632_v41  ;;  %v2500_v39 = vld [vmem:[#allocation14_spill] sm:$0xff] }
 0x1d8   :  { %v742_v44 = vadd.f32 %v741_v61, %v679_v26  ;;  %v683_v26 = vmul.f32 %v1943_v38, %v1943_v38  ;;  %v1973_v38 = vsub.f32 %v2500_v39, %v1632_v41  ;;  %v1991_v39 = vsub.f32 %v1604_v54, %v1632_v41 }
 0x1d9   :  { %2497 = vst [vmem:[#allocation8_spill] sm:$0xff] %v1955_v7 }
 0x1da   :  { %v743_v63 = vadd.f32 %v742_v44, %v680_v28  ;;  %v684_v28 = vmul.f32 %v1949_v8, %v1949_v8  ;;  %2501 = vst [vmem:[#allocation10_spill] sm:$0xff] %v1973_v38  ;;  %v1979_v8 = vsub.f32 %v2502_v4, %v1632_v41  ;;  %v1997_v4 = vsub.f32 %v1611_v40, %v1632_v41 }
 0x1db   :  { %2506 = vst [vmem:[#allocation16_spill] sm:$0xff] %v1991_v39  ;;  %v691_v54 = vmul.f32 %v1991_v39, %v1991_v39 }
 0x1dc   :  { %v744_v34 = vadd.f32 %v743_v63, %v681_v32  ;;  %v685_v32 = vmul.f32 %v1955_v7, %v1955_v7  ;;  %2503 = vst [vmem:[#allocation13_spill] sm:$0xff] %v1979_v8  ;;  %v1985_v7 = vsub.f32 %v2504_v19, %v1632_v41  ;;  %v2003_v19 = vsub.f32 %v1617_v45, %v1632_v41 }
 0x1dd   :  { %2507 = vst [vmem:[#allocation17_spill] sm:$0xff] %v1997_v4  ;;  %v695_v45 = vmul.f32 %v1641_v53, %v1641_v53 }
 0x1de   :  { %v745_v61 = vadd.f32 %v744_v34, %v682_v36  ;;  %v686_v36 = vmul.f32 %v1961_v23, %v1961_v23  ;;  %2505 = vst [vmem:[#allocation14_spill] sm:$0xff] %v1985_v7  ;;  %v693_v40 = vmul.f32 %v2003_v19, %v2003_v19 }
 0x1df   :  { %2508 = vst [vmem:[#allocation21_spill] sm:$0xff] %v2003_v19 }
 0x1e0   :  { %v746_v44 = vadd.f32 %v745_v61, %v683_v26  ;;  %v687_v26 = vmul.f32 %v1967_v48, %v1967_v48 }
 0x1e2   :  { %v747_v63 = vadd.f32 %v746_v44, %v684_v28  ;;  %v688_v28 = vmul.f32 %v1973_v38, %v1973_v38 }
 0x1e4   :  { %v748_v34 = vadd.f32 %v747_v63, %v685_v32  ;;  %v689_v32 = vmul.f32 %v1979_v8, %v1979_v8 }
 0x1e6   :  { %v749_v61 = vadd.f32 %v748_v34, %v686_v36  ;;  %v690_v36 = vmul.f32 %v1985_v7, %v1985_v7  ;;  %v694_v7 = vmul.f32 %v1638_v60, %v1638_v60 }
 0x1e8   :  { %v750_v44 = vadd.f32 %v749_v61, %v687_v26  ;;  %v692_v61 = vmul.f32 %v1997_v4, %v1997_v4 }
 0x1ea   :  { %v751_v63 = vadd.f32 %v750_v44, %v688_v28 }
 0x1ec   :  { %v752_v34 = vadd.f32 %v751_v63, %v689_v32 }
 0x1ee   :  { %v753_v26 = vadd.f32 %v752_v34, %v690_v36 }
 0x1f0   :  { %v754_v28 = vadd.f32 %v753_v26, %v691_v54 }
 0x1f2   :  { %v755_v44 = vadd.f32 %v754_v28, %v692_v61 }
 0x1f4   :  { %v756_v32 = vadd.f32 %v755_v44, %v693_v40 }
 0x1f6   :  { %v757_v41 = vadd.f32 %v756_v32, %v694_v7 }
 0x1f8   :  { %v758_v63 = vadd.f32 %v757_v41, %v695_v45 }
 0x1fa   :  { %v759_v8 = vrot.slane %v758_v63, 4 }
 0x1fc   :  { %v760_v39 = vadd.f32 %v759_v8, %v758_v63  ;;  %v766_v8 = vld [vmem:[%s2416_s2] sm:$0x1] }
 0x1fe   :  { %v761_v36 = vrot.slane %v760_v39, 2 }
 0x200   :  { %v762_v34 = vadd.f32 %v761_v36, %v760_v39 }
 0x202   :  { %v763_v38 = vrot.slane %v762_v34, 1 }
 0x204   :  { %v764_v4 = vadd.f32 %v763_v38, %v762_v34 }
 0x206   :  { %v765_v54 = vmul.f32 %v764_v4, %v1629_v47 }
 0x208   :  { %v767_v26 = vadd.f32 1e-05, %v765_v54 }
 0x20a   :  { %1138 = vrsqrt.f32 %v767_v26  ;;  %vm774_vm3 = vweird.f32 %v767_v26 }
 0x210   :  { %v1139_v61 = vpop.eup %1138 }
 0x211   :  { %v769_v28 = vmul.f32 %v1139_v61, %v767_v26  ;;  %vm775_vm2 = vweird.f32 %v1139_v61 }
 0x212   :  { %vm776_vm4 = vmor %vm774_vm3, %vm775_vm2 }
 0x213   :  { %v770_v19 = vmul.f32 %v1139_v61, %v769_v28 }
 0x215   :  { %v771_v60 = vmul.f32 0.5, %v770_v19  ;;  %v2030_v19 = vld [vmem:[%s2415_s3] ss:$0 sm:$0xff] }
 0x217   :  { %v772_v40 = vsub.f32 1.5, %v771_v60 }
 0x219   :  { %v773_v44 = vmul.f32 %v1139_v61, %v772_v40 }
 0x21b   :  { %v777_v7 = vsel %vm776_vm4, %v1139_v61, %v773_v44 }
 0x21c   :  { %v778_v39 = vmul.f32 %v777_v7, %v766_v8 }
 0x21e   :  { %v2019_v38 = vperm.slane %v778_v39, 0 }
 0x220   :  { %v782_v47 = vmul.f32 %v2019_v38, %v1645_v51  ;;  %v783_v4 = vmul.f32 %v2019_v38, %v1649_v15  ;;  %v784_v60 = vmul.f32 %v2019_v38, %v1653_v42  ;;  %v785_v32 = vmul.f32 %v2019_v38, %v1661_v49 }
 0x221   :  { %v786_v45 = vmul.f32 %v2019_v38, %v1665_v62  ;;  %v787_v51 = vmul.f32 %v2019_v38, %v1671_v6  ;;  %v845_v15 = vmul.f32 %v2019_v38, %v1641_v53  ;;  %v788_v42 = vmul.f32 %v2019_v38, %v1677_v10 }
 0x222   :  { %v850_v41 = vadd.f32 %v2030_v19, %v782_v47  ;;  %v851_v63 = vadd.f32 %v2030_v19, %v783_v4  ;;  %v852_v36 = vadd.f32 %v2030_v19, %v784_v60  ;;  %v789_v49 = vmul.f32 %v2019_v38, %v1683_v0 }
 0x223   :  { %v853_v62 = vadd.f32 %v2030_v19, %v785_v32  ;;  %v790_v6 = vmul.f32 %v2019_v38, %v1689_v18  ;;  %v854_v34 = vadd.f32 %v2030_v19, %v786_v45  ;;  %v791_v53 = vmul.f32 %v2019_v38, %v1695_v58 }
 0x224   :  { %v792_v10 = vmul.f32 %v2019_v38, %v1701_v14  ;;  %v855_v54 = vadd.f32 %v2030_v19, %v787_v51  ;;  %v2057_v26 = vadd.f32 %v2030_v19, %v845_v15  ;;  %v856_v0 = vadd.f32 %v2030_v19, %v788_v42 }
 0x225   :  { %v914_v61 = vmax.f32 %v850_v41, 0.0  ;;  %v915_v28 = vmax.f32 %v851_v63, 0.0  ;;  %v916_v40 = vmax.f32 %v852_v36, 0.0  ;;  %v793_v18 = vmul.f32 %v2019_v38, %v1707_v1 }
 0x226   :  { %v857_v44 = vadd.f32 %v2030_v19, %v789_v49  ;;  %v917_v8 = vmax.f32 %v853_v62, 0.0  ;;  %v794_v58 = vmul.f32 %v2019_v38, %v1713_v59  ;;  %v858_v14 = vadd.f32 %v2030_v19, %v790_v6 }
 0x227   :  { %v918_v7 = vmax.f32 %v854_v34, 0.0  ;;  %978 = vst [vmem:[%s2417_s4] sm:$0xff] %v914_v61  ;;  %v795_v39 = vmul.f32 %v2019_v38, %v1719_v31  ;;  %v859_v47 = vadd.f32 %v2030_v19, %v791_v53  ;;  %v919_v4 = vmax.f32 %v855_v54, 0.0 }
 0x228   :  { %979 = vst [vmem:[%s2417_s4 + $0x8] sm:$0xff] %v915_v28  ;;  %v796_v1 = vmul.f32 %v2019_v38, %v1725_v11  ;;  %v860_v59 = vadd.f32 %v2030_v19, %v792_v10  ;;  %v920_v60 = vmax.f32 %v856_v0, 0.0  ;;  %v797_v31 = vmul.f32 %v2019_v38, %v1731_v21 }
 0x229   :  { %980 = vst [vmem:[%s2417_s4 + $0x10] sm:$0xff] %v916_v40  ;;  %v861_v32 = vadd.f32 %v2030_v19, %v793_v18  ;;  %v921_v45 = vmax.f32 %v857_v44, 0.0  ;;  %v798_v11 = vmul.f32 %v2019_v38, %v1737_v35  ;;  %v862_v51 = vadd.f32 %v2030_v19, %v794_v58 }
 0x22a   :  { %981 = vst [vmem:[%s2417_s4 + $0x18] sm:$0xff] %v917_v8  ;;  %v922_v15 = vmax.f32 %v858_v14, 0.0  ;;  %v799_v21 = vmul.f32 %v2019_v38, %v1743_v2  ;;  %v863_v42 = vadd.f32 %v2030_v19, %v795_v39  ;;  %v923_v41 = vmax.f32 %v859_v47, 0.0 }
 0x22b   :  { %982 = vst [vmem:[%s2417_s4 + $0x20] sm:$0xff] %v918_v7  ;;  %v800_v35 = vmul.f32 %v2019_v38, %v1749_v52  ;;  %v864_v63 = vadd.f32 %v2030_v19, %v796_v1  ;;  %v924_v36 = vmax.f32 %v860_v59, 0.0  ;;  %v801_v2 = vmul.f32 %v2019_v38, %v1755_v13 }
 0x22c   :  { %983 = vst [vmem:[%s2417_s4 + $0x28] sm:$0xff] %v919_v4  ;;  %v865_v49 = vadd.f32 %v2030_v19, %v797_v31  ;;  %v925_v62 = vmax.f32 %v861_v32, 0.0  ;;  %v802_v52 = vmul.f32 %v2019_v38, %v1761_v16  ;;  %v866_v6 = vadd.f32 %v2030_v19, %v798_v11  ;;  %v2509_v11 = vld [vmem:[#allocation11_spill] sm:$0xff] }
 0x22d   :  { %984 = vst [vmem:[%s2417_s4 + $0x30] sm:$0xff] %v920_v60  ;;  %v926_v34 = vmax.f32 %v862_v51, 0.0  ;;  %v803_v13 = vmul.f32 %v2019_v38, %v1767_v20  ;;  %v867_v53 = vadd.f32 %v2030_v19, %v799_v21  ;;  %v927_v10 = vmax.f32 %v863_v42, 0.0 }
 0x22e   :  { %985 = vst [vmem:[%s2417_s4 + $0x38] sm:$0xff] %v921_v45  ;;  %v804_v16 = vmul.f32 %v2019_v38, %v1773_v24  ;;  %v868_v54 = vadd.f32 %v2030_v19, %v800_v35  ;;  %v928_v0 = vmax.f32 %v864_v63, 0.0  ;;  %v805_v20 = vmul.f32 %v2019_v38, %v1779_v27 }
 0x22f   :  { %986 = vst [vmem:[%s2417_s4 + $0x40] sm:$0xff] %v922_v15  ;;  %v869_v61 = vadd.f32 %v2030_v19, %v801_v2  ;;  %v929_v28 = vmax.f32 %v865_v49, 0.0  ;;  %v806_v24 = vmul.f32 %v2019_v38, %v1785_v30  ;;  %v870_v40 = vadd.f32 %v2030_v19, %v802_v52 }
 0x230   :  { %987 = vst [vmem:[%s2417_s4 + $0x48] sm:$0xff] %v923_v41  ;;  %v930_v18 = vmax.f32 %v866_v6, 0.0  ;;  %v807_v27 = vmul.f32 %v2019_v38, %v1791_v33  ;;  %v871_v44 = vadd.f32 %v2030_v19, %v803_v13  ;;  %v931_v8 = vmax.f32 %v867_v53, 0.0 }
 0x231   :  { %988 = vst [vmem:[%s2417_s4 + $0x50] sm:$0xff] %v924_v36  ;;  %v808_v30 = vmul.f32 %v2019_v38, %v1797_v37  ;;  %v872_v58 = vadd.f32 %v2030_v19, %v804_v16  ;;  %v932_v14 = vmax.f32 %v868_v54, 0.0  ;;  %v809_v33 = vmul.f32 %v2019_v38, %v1803_v43  ;;  %v2510_v36 = vld [vmem:[#allocation15_spill] sm:$0xff] }
 0x232   :  { %989 = vst [vmem:[%s2417_s4 + $0x58] sm:$0xff] %v925_v62  ;;  %v873_v7 = vadd.f32 %v2030_v19, %v805_v20  ;;  %v933_v39 = vmax.f32 %v869_v61, 0.0  ;;  %v810_v37 = vmul.f32 %v2019_v38, %v1809_v50  ;;  %v874_v47 = vadd.f32 %v2030_v19, %v806_v24  ;;  %v2511_v62 = vld [vmem:[#allocation2_spill] sm:$0xff] }
 0x233   :  { %990 = vst [vmem:[%s2417_s4 + $0x60] sm:$0xff] %v926_v34  ;;  %v934_v4 = vmax.f32 %v870_v40, 0.0  ;;  %v811_v43 = vmul.f32 %v2019_v38, %v1815_v22  ;;  %v875_v1 = vadd.f32 %v2030_v19, %v807_v27  ;;  %v935_v59 = vmax.f32 %v871_v44, 0.0  ;;  %v2512_v34 = vld [vmem:[#allocation3_spill] sm:$0xff] }
 0x234   :  { %991 = vst [vmem:[%s2417_s4 + $0x68] sm:$0xff] %v927_v10  ;;  %v812_v50 = vmul.f32 %v2019_v38, %v1821_v25  ;;  %v876_v60 = vadd.f32 %v2030_v19, %v808_v30  ;;  %v936_v31 = vmax.f32 %v872_v58, 0.0  ;;  %v813_v22 = vmul.f32 %v2019_v38, %v1827_v5 }
 0x235   :  { %992 = vst [vmem:[%s2417_s4 + $0x70] sm:$0xff] %v928_v0  ;;  %v877_v32 = vadd.f32 %v2030_v19, %v809_v33  ;;  %v937_v45 = vmax.f32 %v873_v7, 0.0  ;;  %v814_v25 = vmul.f32 %v2019_v38, %v2509_v11  ;;  %v878_v51 = vadd.f32 %v2030_v19, %v810_v37  ;;  %v2517_v11 = vld [vmem:[#allocation12_spill] sm:$0xff] }
 0x236   :  { %993 = vst [vmem:[%s2417_s4 + $0x78] sm:$0xff] %v929_v28  ;;  %v938_v15 = vmax.f32 %v874_v47, 0.0  ;;  %v815_v5 = vmul.f32 %v2019_v38, %v1839_v17  ;;  %v879_v21 = vadd.f32 %v2030_v19, %v811_v43  ;;  %v939_v42 = vmax.f32 %v875_v1, 0.0 }
 0x237   :  { %994 = vst [vmem:[%s2417_s4 + $0x80] sm:$0xff] %v930_v18  ;;  %v816_v41 = vmul.f32 %v2019_v38, %v1845_v3  ;;  %v880_v35 = vadd.f32 %v2030_v19, %v812_v50  ;;  %v940_v63 = vmax.f32 %v876_v60, 0.0  ;;  %v817_v17 = vmul.f32 %v2019_v38, %v2510_v36  ;;  %v2513_v18 = vld [vmem:[#allocation4_spill] sm:$0xff] }
 0x238   :  { %995 = vst [vmem:[%s2417_s4 + $0x88] sm:$0xff] %v931_v8  ;;  %v881_v2 = vadd.f32 %v2030_v19, %v813_v22  ;;  %v941_v49 = vmax.f32 %v877_v32, 0.0  ;;  %v818_v3 = vmul.f32 %v2019_v38, %v2511_v62  ;;  %v882_v52 = vadd.f32 %v2030_v19, %v814_v25 }
 0x239   :  { %996 = vst [vmem:[%s2417_s4 + $0x90] sm:$0xff] %v932_v14  ;;  %v942_v6 = vmax.f32 %v878_v51, 0.0  ;;  %v819_v13 = vmul.f32 %v2019_v38, %v2512_v34  ;;  %v883_v53 = vadd.f32 %v2030_v19, %v815_v5  ;;  %v943_v10 = vmax.f32 %v879_v21, 0.0  ;;  %v2518_v5 = vld [vmem:[#allocation18_spill] sm:$0xff] }
 0x23a   :  { %997 = vst [vmem:[%s2417_s4 + $0x98] sm:$0xff] %v933_v39  ;;  %v820_v16 = vmul.f32 %v2019_v38, %v1869_v55  ;;  %v884_v54 = vadd.f32 %v2030_v19, %v816_v41  ;;  %v944_v0 = vmax.f32 %v880_v35, 0.0  ;;  %v821_v20 = vmul.f32 %v2019_v38, %v1875_v9  ;;  %v2519_v35 = vld [vmem:[#allocation5_spill] sm:$0xff] }
 0x23b   :  { %998 = vst [vmem:[%s2417_s4 + $0xa0] sm:$0xff] %v934_v4  ;;  %v885_v61 = vadd.f32 %v2030_v19, %v817_v17  ;;  %v945_v28 = vmax.f32 %v881_v2, 0.0  ;;  %v822_v55 = vmul.f32 %v2019_v38, %v1881_v29  ;;  %v886_v24 = vadd.f32 %v2030_v19, %v818_v3  ;;  %v2514_v4 = vld [vmem:[#allocation7_spill] sm:$0xff]  ;;  %v2520_v2 = vld [vmem:[#allocation6_spill] sm:$0xff] }
 0x23c   :  { %999 = vst [vmem:[%s2417_s4 + $0xa8] sm:$0xff] %v935_v59  ;;  %v946_v40 = vmax.f32 %v882_v52, 0.0  ;;  %v823_v9 = vmul.f32 %v2019_v38, %v2513_v18  ;;  %v887_v27 = vadd.f32 %v2030_v19, %v819_v13  ;;  %v947_v44 = vmax.f32 %v883_v53, 0.0  ;;  %v2515_v59 = vld [vmem:[#allocation19_spill] sm:$0xff]  ;;  %v2521_v52 = vld [vmem:[#allocation8_spill] sm:$0xff] }
 0x23d   :  { %1000 = vst [vmem:[%s2417_s4 + $0xb0] sm:$0xff] %v936_v31  ;;  %v824_v29 = vmul.f32 %v2019_v38, %v1893_v12  ;;  %v888_v8 = vadd.f32 %v2030_v19, %v820_v16  ;;  %v948_v30 = vmax.f32 %v884_v54, 0.0  ;;  %v825_v58 = vmul.f32 %v2019_v38, %v1899_v46  ;;  %v2516_v31 = vld [vmem:[#allocation9_spill] sm:$0xff] }
 0x23e   :  { %1001 = vst [vmem:[%s2417_s4 + $0xb8] sm:$0xff] %v937_v45  ;;  %v889_v14 = vadd.f32 %v2030_v19, %v821_v20  ;;  %v949_v33 = vmax.f32 %v885_v61, 0.0  ;;  %v826_v12 = vmul.f32 %v2019_v38, %v1905_v56  ;;  %v890_v7 = vadd.f32 %v2030_v19, %v822_v55  ;;  %v2522_v61 = vld [vmem:[#allocation10_spill] sm:$0xff] }
 0x23f   :  { %1002 = vst [vmem:[%s2417_s4 + $0xc0] sm:$0xff] %v938_v15  ;;  %v950_v39 = vmax.f32 %v886_v24, 0.0  ;;  %v827_v46 = vmul.f32 %v2019_v38, %v1911_v57  ;;  %v891_v37 = vadd.f32 %v2030_v19, %v823_v9  ;;  %v951_v47 = vmax.f32 %v887_v27, 0.0  ;;  %v2523_v24 = vld [vmem:[#allocation13_spill] sm:$0xff]  ;;  %v2524_v9 = vld [vmem:[#allocation14_spill] sm:$0xff] }
 0x240   :  { %1003 = vst [vmem:[%s2417_s4 + $0xc8] sm:$0xff] %v939_v42  ;;  %v828_v56 = vmul.f32 %v2019_v38, %v2514_v4  ;;  %v892_v43 = vadd.f32 %v2030_v19, %v824_v29  ;;  %v952_v1 = vmax.f32 %v888_v8, 0.0  ;;  %v829_v57 = vmul.f32 %v2019_v38, %v2515_v59  ;;  %v2525_v8 = vld [vmem:[#allocation16_spill] sm:$0xff] }
 0x241   :  { %1004 = vst [vmem:[%s2417_s4 + $0xd0] sm:$0xff] %v940_v63  ;;  %v893_v50 = vadd.f32 %v2030_v19, %v825_v58  ;;  %v953_v60 = vmax.f32 %v889_v14, 0.0  ;;  %v830_v22 = vmul.f32 %v2019_v38, %v2516_v31  ;;  %v894_v32 = vadd.f32 %v2030_v19, %v826_v12 }
 0x242   :  { %1005 = vst [vmem:[%s2417_s4 + $0xd8] sm:$0xff] %v941_v49  ;;  %v954_v45 = vmax.f32 %v890_v7, 0.0  ;;  %v831_v25 = vmul.f32 %v2019_v38, %v2517_v11  ;;  %v895_v51 = vadd.f32 %v2030_v19, %v827_v46  ;;  %v955_v15 = vmax.f32 %v891_v37, 0.0  ;;  %v2527_v46 = vld [vmem:[#allocation21_spill] sm:$0xff] }
 0x243   :  { %1006 = vst [vmem:[%s2417_s4 + $0xe0] sm:$0xff] %v942_v6  ;;  %v832_v21 = vmul.f32 %v2019_v38, %v2518_v5  ;;  %v896_v42 = vadd.f32 %v2030_v19, %v828_v56  ;;  %v956_v41 = vmax.f32 %v892_v43, 0.0  ;;  %v833_v63 = vmul.f32 %v2019_v38, %v2519_v35  ;;  %v2528_v56 = vld [vmem:[#allocation20_spill] sm:$0xff] }
 0x244   :  { %1007 = vst [vmem:[%s2417_s4 + $0xe8] sm:$0xff] %v943_v10  ;;  %v897_v36 = vadd.f32 %v2030_v19, %v829_v57  ;;  %v957_v17 = vmax.f32 %v893_v50, 0.0  ;;  %v834_v49 = vmul.f32 %v2019_v38, %v2520_v2  ;;  %v898_v62 = vadd.f32 %v2030_v19, %v830_v22 }
 0x245   :  { %1008 = vst [vmem:[%s2417_s4 + $0xf0] sm:$0xff] %v944_v0  ;;  %v958_v3 = vmax.f32 %v894_v32, 0.0  ;;  %v835_v6 = vmul.f32 %v2019_v38, %v2521_v52  ;;  %v899_v34 = vadd.f32 %v2030_v19, %v831_v25  ;;  %v959_v13 = vmax.f32 %v895_v51, 0.0 }
 0x246   :  { %1009 = vst [vmem:[%s2417_s4 + $0xf8] sm:$0xff] %v945_v28  ;;  %v836_v53 = vmul.f32 %v2019_v38, %v1961_v23  ;;  %v900_v10 = vadd.f32 %v2030_v19, %v832_v21  ;;  %v960_v16 = vmax.f32 %v896_v42, 0.0  ;;  %v837_v54 = vmul.f32 %v2019_v38, %v1967_v48 }
 0x247   :  { %1010 = vst [vmem:[%s2417_s4 + $0x100] sm:$0xff] %v946_v40  ;;  %v901_v0 = vadd.f32 %v2030_v19, %v833_v63  ;;  %v961_v20 = vmax.f32 %v897_v36, 0.0  ;;  %v838_v23 = vmul.f32 %v2019_v38, %v2522_v61  ;;  %v902_v28 = vadd.f32 %v2030_v19, %v834_v49 }
 0x248   :  { %1011 = vst [vmem:[%s2417_s4 + $0x108] sm:$0xff] %v947_v44  ;;  %v962_v55 = vmax.f32 %v898_v62, 0.0  ;;  %v839_v48 = vmul.f32 %v2019_v38, %v2523_v24  ;;  %v903_v40 = vadd.f32 %v2030_v19, %v835_v6  ;;  %v963_v18 = vmax.f32 %v899_v34, 0.0 }
 0x249   :  { %1012 = vst [vmem:[%s2417_s4 + $0x110] sm:$0xff] %v948_v30  ;;  %v840_v27 = vmul.f32 %v2019_v38, %v2524_v9  ;;  %v904_v44 = vadd.f32 %v2030_v19, %v836_v53  ;;  %v964_v29 = vmax.f32 %v900_v10, 0.0  ;;  %v841_v30 = vmul.f32 %v2019_v38, %v2525_v8 }
 0x24a   :  { %1013 = vst [vmem:[%s2417_s4 + $0x118] sm:$0xff] %v949_v33  ;;  %v905_v58 = vadd.f32 %v2030_v19, %v837_v54  ;;  %v965_v14 = vmax.f32 %v901_v0, 0.0  ;;  %v2526_v33 = vld [vmem:[#allocation17_spill] sm:$0xff]  ;;  %v906_v7 = vadd.f32 %v2030_v19, %v838_v23  ;;  %v843_v37 = vmul.f32 %v2019_v38, %v2527_v46 }
 0x24b   :  { %1014 = vst [vmem:[%s2417_s4 + $0x120] sm:$0xff] %v950_v39  ;;  %v842_v12 = vmul.f32 %v2019_v38, %v2526_v33  ;;  %v966_v39 = vmax.f32 %v902_v28, 0.0  ;;  %v967_v4 = vmax.f32 %v903_v40, 0.0  ;;  %v844_v43 = vmul.f32 %v2019_v38, %v2528_v56 }
 0x24c   :  { %1015 = vst [vmem:[%s2417_s4 + $0x128] sm:$0xff] %v951_v47  ;;  %v907_v47 = vadd.f32 %v2030_v19, %v839_v48  ;;  %v968_v59 = vmax.f32 %v904_v44, 0.0  ;;  %v909_v57 = vadd.f32 %v2030_v19, %v841_v30  ;;  %v969_v50 = vmax.f32 %v905_v58, 0.0 }
 0x24d   :  { %1016 = vst [vmem:[%s2417_s4 + $0x130] sm:$0xff] %v952_v1  ;;  %v908_v1 = vadd.f32 %v2030_v19, %v840_v27  ;;  %v970_v31 = vmax.f32 %v906_v7, 0.0  ;;  %v911_v38 = vadd.f32 %v2030_v19, %v843_v37  ;;  %v912_v32 = vadd.f32 %v2030_v19, %v844_v43 }
 0x24e   :  { %1017 = vst [vmem:[%s2417_s4 + $0x138] sm:$0xff] %v953_v60  ;;  %v910_v60 = vadd.f32 %v2030_v19, %v842_v12  ;;  %v971_v22 = vmax.f32 %v907_v47, 0.0  ;;  %v973_v11 = vmax.f32 %v909_v57, 0.0 }
 0x24f   :  { %1018 = vst [vmem:[%s2417_s4 + $0x140] sm:$0xff] %v954_v45  ;;  %v972_v45 = vmax.f32 %v908_v1, 0.0  ;;  %v975_v51 = vmax.f32 %v911_v38, 0.0  ;;  %v976_v19 = vmax.f32 %v912_v32, 0.0 }
 0x250   :  { %1019 = vst [vmem:[%s2417_s4 + $0x148] sm:$0xff] %v955_v15  ;;  %v974_v25 = vmax.f32 %v910_v60, 0.0  ;;  %v977_v15 = vmax.f32 %v2057_v26, 0.0 }
 0x251   :  { %1020 = vst [vmem:[%s2417_s4 + $0x150] sm:$0xff] %v956_v41 }
 0x252   :  { %1021 = vst [vmem:[%s2417_s4 + $0x158] sm:$0xff] %v957_v17 }
 0x253   :  { %1022 = vst [vmem:[%s2417_s4 + $0x160] sm:$0xff] %v958_v3 }
 0x254   :  { %1023 = vst [vmem:[%s2417_s4 + $0x168] sm:$0xff] %v959_v13 }
 0x255   :  { %1024 = vst [vmem:[%s2417_s4 + $0x170] sm:$0xff] %v960_v16 }
 0x256   :  { %1025 = vst [vmem:[%s2417_s4 + $0x178] sm:$0xff] %v961_v20 }
 0x257   :  { %1026 = vst [vmem:[%s2417_s4 + $0x180] sm:$0xff] %v962_v55 }
 0x258   :  { %1027 = vst [vmem:[%s2417_s4 + $0x188] sm:$0xff] %v963_v18 }
 0x259   :  { %1028 = vst [vmem:[%s2417_s4 + $0x190] sm:$0xff] %v964_v29 }
 0x25a   :  { %1029 = vst [vmem:[%s2417_s4 + $0x198] sm:$0xff] %v965_v14 }
 0x25b   :  { %1030 = vst [vmem:[%s2417_s4 + $0x1a0] sm:$0xff] %v966_v39 }
 0x25c   :  { %1031 = vst [vmem:[%s2417_s4 + $0x1a8] sm:$0xff] %v967_v4 }
 0x25d   :  { %1032 = vst [vmem:[%s2417_s4 + $0x1b0] sm:$0xff] %v968_v59 }
 0x25e   :  { %1033 = vst [vmem:[%s2417_s4 + $0x1b8] sm:$0xff] %v969_v50 }
 0x25f   :  { %1034 = vst [vmem:[%s2417_s4 + $0x1c0] sm:$0xff] %v970_v31 }
 0x260   :  { %1035 = vst [vmem:[%s2417_s4 + $0x1c8] sm:$0xff] %v971_v22 }
 0x261   :  { %1036 = vst [vmem:[%s2417_s4 + $0x1d0] sm:$0xff] %v972_v45 }
 0x262   :  { %1037 = vst [vmem:[%s2417_s4 + $0x1d8] sm:$0xff] %v973_v11 }
 0x263   :  { %1038 = vst [vmem:[%s2417_s4 + $0x1e0] sm:$0xff] %v974_v25 }
 0x264   :  { %1039 = vst [vmem:[%s2417_s4 + $0x1e8] sm:$0xff] %v975_v51 }
 0x265   :  { %1040 = vst [vmem:[%s2417_s4 + $0x1f0] sm:$0xff] %v976_v19 }
 0x266   :  { %1041 = vst [vmem:[%s2417_s4 + $0x1f8] sm:$0xff] %v977_v15 }

// kernel: _lambda_.7
= control target key start
LH: loop header
LB: loop body
LE: loop exit
PB: predicated region body
PF: predicated region fallthrough
CT: control target
= control target key end

     0   :  { %s414_s0 = inlined_call_operand.vmem [shape: f32[128,128], index: 0, kind: input, shape index: {}]   ;;  %s415_s1 = inlined_call_operand.vmem [shape: f32[128,128], index: 1, kind: input, shape index: {}]   ;;  %s416_s2 = inlined_call_operand.vmem [shape: f32[128,128], index: 2, kind: input, shape index: {}]   ;;  %s417_s3 = inlined_call_operand.vmem [shape: f32[128,128], index: 3, kind: input, shape index: {}]   ;;  %s418_s4 = inlined_call_operand.vmem [shape: f32[128,128], index: 4, kind: output, shape index: {}]  }
   0x1   :  { %v17_v0 = vld [vmem:[%s414_s0] sm:$0xff]  ;;  %v18_v5 = vld [vmem:[%s414_s0 + $0x8] sm:$0xff]  ;;  %v19_v11 = vld [vmem:[%s414_s0 + $0x10] sm:$0xff] }
   0x2   :  { %v33_v1 = vld [vmem:[%s415_s1] sm:$0xff]  ;;  %v34_v6 = vld [vmem:[%s415_s1 + $0x8] sm:$0xff]  ;;  %v35_v13 = vld [vmem:[%s415_s1 + $0x10] sm:$0xff] }
   0x3   :  { %v65_v2 = vld [vmem:[%s416_s2] sm:$0xff]  ;;  %v49_v3 = vmax.f32 %v17_v0, %v33_v1  ;;  %v50_v8 = vmax.f32 %v18_v5, %v34_v6  ;;  %v66_v9 = vld [vmem:[%s416_s2 + $0x8] sm:$0xff]  ;;  %v67_v14 = vld [vmem:[%s416_s2 + $0x10] sm:$0xff]  ;;  %v51_v17 = vmax.f32 %v19_v11, %v35_v13 }
   0x4   :  { %v81_v4 = vld [vmem:[%s417_s3] sm:$0xff]  ;;  %v82_v10 = vld [vmem:[%s417_s3 + $0x8] sm:$0xff]  ;;  %v83_v15 = vld [vmem:[%s417_s3 + $0x10] sm:$0xff] }
   0x5   :  { %v97_v7 = vmax.f32 %v65_v2, %v81_v4  ;;  %v98_v12 = vmax.f32 %v66_v9, %v82_v10  ;;  %v99_v18 = vmax.f32 %v67_v14, %v83_v15  ;;  %v20_v19 = vld [vmem:[%s414_s0 + $0x18] sm:$0xff]  ;;  %v21_v25 = vld [vmem:[%s414_s0 + $0x20] sm:$0xff]  ;;  %v22_v32 = vld [vmem:[%s414_s0 + $0x28] sm:$0xff] }
   0x6   :  { %v36_v20 = vld [vmem:[%s415_s1 + $0x18] sm:$0xff]  ;;  %v37_v26 = vld [vmem:[%s415_s1 + $0x20] sm:$0xff]  ;;  %v38_v34 = vld [vmem:[%s415_s1 + $0x28] sm:$0xff] }
   0x7   :  { %v113_v16 = vmax.f32 %v49_v3, %v97_v7  ;;  %v68_v21 = vld [vmem:[%s416_s2 + $0x18] sm:$0xff]  ;;  %v114_v22 = vmax.f32 %v50_v8, %v98_v12  ;;  %v52_v23 = vmax.f32 %v20_v19, %v36_v20  ;;  %v115_v27 = vmax.f32 %v51_v17, %v99_v18  ;;  %v69_v30 = vld [vmem:[%s416_s2 + $0x20] sm:$0xff]  ;;  %v70_v35 = vld [vmem:[%s416_s2 + $0x28] sm:$0xff] }
   0x8   :  { %v84_v24 = vld [vmem:[%s417_s3 + $0x18] sm:$0xff]  ;;  %v53_v29 = vmax.f32 %v21_v25, %v37_v26  ;;  %v85_v31 = vld [vmem:[%s417_s3 + $0x20] sm:$0xff]  ;;  %v86_v36 = vld [vmem:[%s417_s3 + $0x28] sm:$0xff]  ;;  %v54_v38 = vmax.f32 %v22_v32, %v38_v34 }
   0x9   :  { %129 = vst [vmem:[%s418_s4] sm:$0xff] %v113_v16  ;;  %v100_v28 = vmax.f32 %v68_v21, %v84_v24  ;;  %v101_v33 = vmax.f32 %v69_v30, %v85_v31  ;;  %v102_v39 = vmax.f32 %v70_v35, %v86_v36  ;;  %v23_v40 = vld [vmem:[%s414_s0 + $0x30] sm:$0xff]  ;;  %v24_v46 = vld [vmem:[%s414_s0 + $0x38] sm:$0xff]  ;;  %v25_v53 = vld [vmem:[%s414_s0 + $0x40] sm:$0xff] }
   0xa   :  { %130 = vst [vmem:[%s418_s4 + $0x8] sm:$0xff] %v114_v22  ;;  %v39_v41 = vld [vmem:[%s415_s1 + $0x30] sm:$0xff]  ;;  %v40_v47 = vld [vmem:[%s415_s1 + $0x38] sm:$0xff]  ;;  %v41_v55 = vld [vmem:[%s415_s1 + $0x40] sm:$0xff] }
   0xb   :  { %131 = vst [vmem:[%s418_s4 + $0x10] sm:$0xff] %v115_v27  ;;  %v116_v37 = vmax.f32 %v52_v23, %v100_v28  ;;  %v71_v42 = vld [vmem:[%s416_s2 + $0x30] sm:$0xff]  ;;  %v117_v43 = vmax.f32 %v53_v29, %v101_v33  ;;  %v55_v44 = vmax.f32 %v23_v40, %v39_v41  ;;  %v118_v48 = vmax.f32 %v54_v38, %v102_v39  ;;  %v72_v51 = vld [vmem:[%s416_s2 + $0x38] sm:$0xff]  ;;  %v73_v56 = vld [vmem:[%s416_s2 + $0x40] sm:$0xff] }
   0xc   :  { %v87_v45 = vld [vmem:[%s417_s3 + $0x30] sm:$0xff]  ;;  %v56_v50 = vmax.f32 %v24_v46, %v40_v47  ;;  %v88_v52 = vld [vmem:[%s417_s3 + $0x38] sm:$0xff]  ;;  %v89_v57 = vld [vmem:[%s417_s3 + $0x40] sm:$0xff]  ;;  %v57_v59 = vmax.f32 %v25_v53, %v41_v55 }
   0xd   :  { %132 = vst [vmem:[%s418_s4 + $0x18] sm:$0xff] %v116_v37  ;;  %v103_v49 = vmax.f32 %v71_v42, %v87_v45  ;;  %v104_v54 = vmax.f32 %v72_v51, %v88_v52  ;;  %v105_v60 = vmax.f32 %v73_v56, %v89_v57  ;;  %v26_v61 = vld [vmem:[%s414_s0 + $0x48] sm:$0xff]  ;;  %v27_v3 = vld [vmem:[%s414_s0 + $0x50] sm:$0xff]  ;;  %v28_v10 = vld [vmem:[%s414_s0 + $0x58] sm:$0xff] }
   0xe   :  { %133 = vst [vmem:[%s418_s4 + $0x20] sm:$0xff] %v117_v43  ;;  %v42_v62 = vld [vmem:[%s415_s1 + $0x48] sm:$0xff]  ;;  %v43_v4 = vld [vmem:[%s415_s1 + $0x50] sm:$0xff]  ;;  %v44_v12 = vld [vmem:[%s415_s1 + $0x58] sm:$0xff] }
   0xf   :  { %134 = vst [vmem:[%s418_s4 + $0x28] sm:$0xff] %v118_v48  ;;  %v119_v58 = vmax.f32 %v55_v44, %v103_v49  ;;  %v74_v63 = vld [vmem:[%s416_s2 + $0x48] sm:$0xff]  ;;  %v120_v0 = vmax.f32 %v56_v50, %v104_v54  ;;  %v58_v1 = vmax.f32 %v26_v61, %v42_v62  ;;  %v121_v5 = vmax.f32 %v57_v59, %v105_v60  ;;  %v75_v8 = vld [vmem:[%s416_s2 + $0x50] sm:$0xff]  ;;  %v76_v13 = vld [vmem:[%s416_s2 + $0x58] sm:$0xff] }
  0x10   :  { %v90_v2 = vld [vmem:[%s417_s3 + $0x48] sm:$0xff]  ;;  %v59_v7 = vmax.f32 %v27_v3, %v43_v4  ;;  %v91_v9 = vld [vmem:[%s417_s3 + $0x50] sm:$0xff]  ;;  %v92_v14 = vld [vmem:[%s417_s3 + $0x58] sm:$0xff]  ;;  %v60_v16 = vmax.f32 %v28_v10, %v44_v12 }
  0x11   :  { %135 = vst [vmem:[%s418_s4 + $0x30] sm:$0xff] %v119_v58  ;;  %v106_v6 = vmax.f32 %v74_v63, %v90_v2  ;;  %v107_v11 = vmax.f32 %v75_v8, %v91_v9  ;;  %v108_v17 = vmax.f32 %v76_v13, %v92_v14  ;;  %v29_v18 = vld [vmem:[%s414_s0 + $0x60] sm:$0xff]  ;;  %v30_v24 = vld [vmem:[%s414_s0 + $0x68] sm:$0xff]  ;;  %v31_v31 = vld [vmem:[%s414_s0 + $0x70] sm:$0xff] }
  0x12   :  { %136 = vst [vmem:[%s418_s4 + $0x38] sm:$0xff] %v120_v0  ;;  %v45_v19 = vld [vmem:[%s415_s1 + $0x60] sm:$0xff]  ;;  %v46_v25 = vld [vmem:[%s415_s1 + $0x68] sm:$0xff]  ;;  %v47_v33 = vld [vmem:[%s415_s1 + $0x70] sm:$0xff] }
  0x13   :  { %137 = vst [vmem:[%s418_s4 + $0x40] sm:$0xff] %v121_v5  ;;  %v122_v15 = vmax.f32 %v58_v1, %v106_v6  ;;  %v77_v20 = vld [vmem:[%s416_s2 + $0x60] sm:$0xff]  ;;  %v123_v21 = vmax.f32 %v59_v7, %v107_v11  ;;  %v61_v22 = vmax.f32 %v29_v18, %v45_v19  ;;  %v124_v26 = vmax.f32 %v60_v16, %v108_v17  ;;  %v78_v29 = vld [vmem:[%s416_s2 + $0x68] sm:$0xff]  ;;  %v79_v34 = vld [vmem:[%s416_s2 + $0x70] sm:$0xff] }
  0x14   :  { %v93_v23 = vld [vmem:[%s417_s3 + $0x60] sm:$0xff]  ;;  %v62_v28 = vmax.f32 %v30_v24, %v46_v25  ;;  %v94_v30 = vld [vmem:[%s417_s3 + $0x68] sm:$0xff]  ;;  %v95_v35 = vld [vmem:[%s417_s3 + $0x70] sm:$0xff]  ;;  %v63_v37 = vmax.f32 %v31_v31, %v47_v33 }
  0x15   :  { %138 = vst [vmem:[%s418_s4 + $0x48] sm:$0xff] %v122_v15  ;;  %v109_v27 = vmax.f32 %v77_v20, %v93_v23  ;;  %v110_v32 = vmax.f32 %v78_v29, %v94_v30  ;;  %v111_v38 = vmax.f32 %v79_v34, %v95_v35  ;;  %v32_v39 = vld [vmem:[%s414_s0 + $0x78] sm:$0xff] }
  0x16   :  { %139 = vst [vmem:[%s418_s4 + $0x50] sm:$0xff] %v123_v21  ;;  %v48_v40 = vld [vmem:[%s415_s1 + $0x78] sm:$0xff] }
  0x17   :  { %140 = vst [vmem:[%s418_s4 + $0x58] sm:$0xff] %v124_v26  ;;  %v125_v36 = vmax.f32 %v61_v22, %v109_v27  ;;  %v80_v41 = vld [vmem:[%s416_s2 + $0x78] sm:$0xff]  ;;  %v126_v42 = vmax.f32 %v62_v28, %v110_v32  ;;  %v64_v43 = vmax.f32 %v32_v39, %v48_v40  ;;  %v127_v45 = vmax.f32 %v63_v37, %v111_v38 }
  0x18   :  { %v96_v44 = vld [vmem:[%s417_s3 + $0x78] sm:$0xff] }
  0x19   :  { %141 = vst [vmem:[%s418_s4 + $0x60] sm:$0xff] %v125_v36  ;;  %v112_v46 = vmax.f32 %v80_v41, %v96_v44 }
  0x1a   :  { %142 = vst [vmem:[%s418_s4 + $0x68] sm:$0xff] %v126_v42 }
  0x1b   :  { %143 = vst [vmem:[%s418_s4 + $0x70] sm:$0xff] %v127_v45  ;;  %v128_v47 = vmax.f32 %v64_v43, %v112_v46 }
  0x1d   :  { %144 = vst [vmem:[%s418_s4 + $0x78] sm:$0xff] %v128_v47 }

// kernel: _lambda_.8
= control target key start
LH: loop header
LB: loop body
LE: loop exit
PB: predicated region body
PF: predicated region fallthrough
CT: control target
= control target key end

     0   :  { %vm67_vm0 = vcmask 523264   ;;  %s3000_s1 = inlined_call_operand.vmem [shape: f32[9,64,128], index: 1, kind: input, shape index: {}]   ;;  %s3001_s0 = inlined_call_operand.vmem [shape: f32[9,128,64], index: 0, kind: input, shape index: {}]   ;;  %s3002_s3 = inlined_call_operand.vmem [shape: f32[1,128], index: 3, kind: input, shape index: {}]   ;;  %s3003_s2 = inlined_call_operand.vmem [shape: f32[1,128], index: 2, kind: input, shape index: {}]   ;;  %s3004_s4 = inlined_call_operand.vmem [shape: f32[128,128], index: 4, kind: output, shape index: {}]  }
   0x1   :  { %v1573_v0 = vld [vmem:[%s3000_s1 + $0x78] sm:$0xff]  ;;  %v1572_v1 = vld [vmem:[%s3000_s1 + $0x70] sm:$0xff]  ;;  %v1571_v2 = vld [vmem:[%s3000_s1 + $0x68] sm:$0xff] }
   0x2   :  { %1886 = vmatpush.msra.mxu1 %v1573_v0  ;;  %1887 = vmatpush.msra.mxu2 %v1573_v0  ;;  %v1570_v3 = vld [vmem:[%s3000_s1 + $0x60] sm:$0xff]  ;;  %v1569_v4 = vld [vmem:[%s3000_s1 + $0x58] sm:$0xff]  ;;  %v1568_v5 = vld [vmem:[%s3000_s1 + $0x50] sm:$0xff] }
   0x3   :  { %1888 = vmatpush.msra.mxu3 %v1573_v0  ;;  %124 = vmatpush.msra.mxu0 %v1573_v0  ;;  %v1567_v6 = vld [vmem:[%s3000_s1 + $0x48] sm:$0xff]  ;;  %v1566_v7 = vld [vmem:[%s3000_s1 + $0x40] sm:$0xff]  ;;  %v1629_v10 = vld [vmem:[%s3000_s1 + $0xb8] sm:$0xff] }
   0x4   :  { %1889 = vmatpush.msra.mxu1 %v1572_v1  ;;  %1890 = vmatpush.msra.mxu2 %v1572_v1  ;;  %v1554_v8 = vld [vmem:[%s3001_s0 + $0xa0] sm:$0xff]  ;;  %v40_v12 = vld [vmem:[%s3000_s1 + $0x38] sm:$0xff]  ;;  %v1628_v14 = vld [vmem:[%s3000_s1 + $0xb0] sm:$0xff] }
   0x5   :  { %1891 = vmatpush.msra.mxu3 %v1572_v1  ;;  %125 = vmatpush.msra.mxu0 %v1572_v1  ;;  %v1558_v9 = vld [vmem:[%s3001_s0 + $0xc0] sm:$0xff]  ;;  %v1669_v13 = vld [vmem:[%s3000_s1 + $0xf8] sm:$0xff]  ;;  %v39_v15 = vld [vmem:[%s3000_s1 + $0x30] sm:$0xff] }
   0x6   :  { %1892 = vmatpush.msra.mxu1 %v1571_v2  ;;  %1893 = vmatpush.msra.mxu2 %v1571_v2  ;;  %v1562_v11 = vld [vmem:[%s3001_s0 + $0xe0] sm:$0xff]  ;;  %v1668_v16 = vld [vmem:[%s3000_s1 + $0xf0] sm:$0xff]  ;;  %v1627_v17 = vld [vmem:[%s3000_s1 + $0xa8] sm:$0xff] }
   0x7   :  { %1894 = vmatpush.msra.mxu3 %v1571_v2  ;;  %126 = vmatpush.msra.mxu0 %v1571_v2  ;;  %v1550_v18 = vld [vmem:[%s3001_s0 + $0x80] sm:$0xff]  ;;  %v38_v19 = vld [vmem:[%s3000_s1 + $0x28] sm:$0xff]  ;;  %v1709_v21 = vld [vmem:[%s3000_s1 + $0x138] sm:$0xff] }
   0x8   :  { %1895 = vmatpush.msra.mxu1 %v1570_v3  ;;  %1896 = vmatpush.msra.mxu2 %v1570_v3  ;;  %v1667_v20 = vld [vmem:[%s3000_s1 + $0xe8] sm:$0xff]  ;;  %v1626_v24 = vld [vmem:[%s3000_s1 + $0xa0] sm:$0xff]  ;;  %v1708_v27 = vld [vmem:[%s3000_s1 + $0x130] sm:$0xff] }
   0x9   :  { %1897 = vmatpush.msra.mxu3 %v1570_v3  ;;  %127 = vmatpush.msra.mxu0 %v1570_v3  ;;  %v1555_v22 = vld [vmem:[%s3001_s0 + $0xa8] sm:$0xff]  ;;  %v1666_v25 = vld [vmem:[%s3000_s1 + $0xe0] sm:$0xff]  ;;  %v1625_v29 = vld [vmem:[%s3000_s1 + $0x98] sm:$0xff] }
   0xa   :  { %1898 = vmatpush.msra.mxu1 %v1569_v4  ;;  %1899 = vmatpush.msra.mxu2 %v1569_v4  ;;  %v1559_v23 = vld [vmem:[%s3001_s0 + $0xc8] sm:$0xff]  ;;  %v37_v28 = vld [vmem:[%s3000_s1 + $0x20] sm:$0xff]  ;;  %v1665_v30 = vld [vmem:[%s3000_s1 + $0xd8] sm:$0xff] }
   0xb   :  { %1900 = vmatpush.msra.mxu3 %v1569_v4  ;;  %128 = vmatpush.msra.mxu0 %v1569_v4  ;;  %v1563_v26 = vld [vmem:[%s3001_s0 + $0xe8] sm:$0xff]  ;;  %v36_v32 = vld [vmem:[%s3000_s1 + $0x18] sm:$0xff]  ;;  %v1624_v33 = vld [vmem:[%s3000_s1 + $0x90] sm:$0xff] }
   0xc   :  { %1901 = vmatpush.msra.mxu1 %v1568_v5  ;;  %1902 = vmatpush.msra.mxu2 %v1568_v5  ;;  %v1707_v31 = vld [vmem:[%s3000_s1 + $0x128] sm:$0xff]  ;;  %v1664_v35 = vld [vmem:[%s3000_s1 + $0xd0] sm:$0xff]  ;;  %v1706_v36 = vld [vmem:[%s3000_s1 + $0x120] sm:$0xff] }
   0xd   :  { %1903 = vmatpush.msra.mxu3 %v1568_v5  ;;  %129 = vmatpush.msra.mxu0 %v1568_v5  ;;  %v1551_v34 = vld [vmem:[%s3001_s0 + $0x88] sm:$0xff]  ;;  %v35_v37 = vld [vmem:[%s3000_s1 + $0x10] sm:$0xff]  ;;  %v1705_v43 = vld [vmem:[%s3000_s1 + $0x118] sm:$0xff] }
   0xe   :  { %1904 = vmatpush.msra.mxu1 %v1567_v6  ;;  %1905 = vmatpush.msra.mxu2 %v1567_v6  ;;  %v1556_v38 = vld [vmem:[%s3001_s0 + $0xb0] sm:$0xff]  ;;  %v1623_v40 = vld [vmem:[%s3000_s1 + $0x88] sm:$0xff]  ;;  %v1622_v45 = vld [vmem:[%s3000_s1 + $0x80] sm:$0xff] }
   0xf   :  { %1906 = vmatpush.msra.mxu3 %v1567_v6  ;;  %130 = vmatpush.msra.mxu0 %v1567_v6  ;;  %v1560_v39 = vld [vmem:[%s3001_s0 + $0xd0] sm:$0xff]  ;;  %v1663_v41 = vld [vmem:[%s3000_s1 + $0xc8] sm:$0xff]  ;;  %v1662_v46 = vld [vmem:[%s3000_s1 + $0xc0] sm:$0xff] }
  0x10   :  { %1907 = vmatpush.msra.mxu1 %v1566_v7  ;;  %1908 = vmatpush.msra.mxu2 %v1566_v7  ;;  %v1564_v42 = vld [vmem:[%s3001_s0 + $0xf0] sm:$0xff]  ;;  %v34_v44 = vld [vmem:[%s3000_s1 + $0x8] sm:$0xff]  ;;  %v33_v48 = vld [vmem:[%s3000_s1] sm:$0xff] }
  0x11   :  { %1578 = vmatmul.msk.f32.vlgmr.msra.gmra.mxu1 %vm67_vm0, %v1554_v8  ;;  %1582 = vmatmul.msk.f32.vlgmr.msra.gmra.mxu2 %vm67_vm0, %v1558_v9  ;;  %v1704_v47 = vld [vmem:[%s3000_s1 + $0x110] sm:$0xff]  ;;  %v1789_v49 = vld [vmem:[%s3000_s1 + $0x1b8] sm:$0xff]  ;;  %v1703_v52 = vld [vmem:[%s3000_s1 + $0x108] sm:$0xff] }
  0x12   :  { %376 = vmatpush.msrb.mxu2 %v1629_v10  ;;  %1909 = vmatpush.msra.mxu3 %v1566_v7  ;;  %v1552_v50 = vld [vmem:[%s3001_s0 + $0x90] sm:$0xff]  ;;  %v1829_v51 = vld [vmem:[%s3000_s1 + $0x1f8] sm:$0xff]  ;;  %v1702_v56 = vld [vmem:[%s3000_s1 + $0x100] sm:$0xff] }
  0x13   :  { %1586 = vmatmul.msk.f32.vlgmr.msra.gmra.mxu3 %vm67_vm0, %v1562_v11  ;;  %237 = vmatpush.msrb.mxu1 %v40_v12  ;;  %v1749_v53 = vld [vmem:[%s3000_s1 + $0x178] sm:$0xff]  ;;  %v1788_v57 = vld [vmem:[%s3000_s1 + $0x1b0] sm:$0xff]  ;;  %v17_v0 = vld [vmem:[%s3001_s0] sm:$0xff] }
  0x14   :  { %531 = vmatpush.msrb.mxu3 %v1669_v13  ;;  %377 = vmatpush.msrb.mxu2 %v1628_v14  ;;  %v1557_v54 = vld [vmem:[%s3001_s0 + $0xb8] sm:$0xff]  ;;  %v1828_v60 = vld [vmem:[%s3000_s1 + $0x1f0] sm:$0xff]  ;;  %v1606_v1 = vld [vmem:[%s3001_s0 + $0x100] sm:$0xff] }
  0x15   :  { %238 = vmatpush.msrb.mxu1 %v39_v15  ;;  %131 = vmatpush.msra.mxu0 %v1566_v7  ;;  %v1561_v55 = vld [vmem:[%s3001_s0 + $0xd8] sm:$0xff]  ;;  %v1748_v61 = vld [vmem:[%s3000_s1 + $0x170] sm:$0xff]  ;;  %v1646_v2 = vld [vmem:[%s3001_s0 + $0x180] sm:$0xff] }
  0x16   :  { %532 = vmatpush.msrb.mxu3 %v1668_v16  ;;  %378 = vmatpush.msrb.mxu2 %v1627_v17  ;;  %v1565_v58 = vld [vmem:[%s3001_s0 + $0xf8] sm:$0xff]  ;;  %v1868_v62 = vld [vmem:[%s3000_s1 + $0x230] sm:$0xff]  ;;  %v1787_v3 = vld [vmem:[%s3000_s1 + $0x1a8] sm:$0xff] }
  0x17   :  { %1574 = vmatmul.msk.f32.vlgmr.msra.gmra.mxu0 %vm67_vm0, %v1550_v18  ;;  %239 = vmatpush.msrb.mxu1 %v38_v19  ;;  %v1869_v59 = vld [vmem:[%s3000_s1 + $0x238] sm:$0xff]  ;;  %v1827_v4 = vld [vmem:[%s3000_s1 + $0x1e8] sm:$0xff]  ;;  %v1686_v6 = vld [vmem:[%s3001_s0 + $0x200] sm:$0xff] }
  0x18   :  { %533 = vmatpush.msrb.mxu3 %v1667_v20  ;;  %686 = vmatpush.msrb.mxu0 %v1709_v21  ;;  %v1553_v63 = vld [vmem:[%s3001_s0 + $0x98] sm:$0xff]  ;;  %v1747_v5 = vld [vmem:[%s3000_s1 + $0x168] sm:$0xff]  ;;  %v19_v12 = vld [vmem:[%s3001_s0 + $0x10] sm:$0xff] }
  0x19   :  { %1579 = vmatmul.msk.f32.gmra.mxu1 %vm67_vm0, %v1555_v22  ;;  %1583 = vmatmul.msk.f32.gmra.mxu2 %vm67_vm0, %v1559_v23  ;;  %v18_v7 = vld [vmem:[%s3001_s0 + $0x8] sm:$0xff]  ;;  %v1608_v13 = vld [vmem:[%s3001_s0 + $0x110] sm:$0xff]  ;;  %v1786_v15 = vld [vmem:[%s3000_s1 + $0x1a0] sm:$0xff] }
  0x1a   :  { %379 = vmatpush.msrb.mxu2 %v1626_v24  ;;  %534 = vmatpush.msrb.mxu3 %v1666_v25  ;;  %v1607_v8 = vld [vmem:[%s3001_s0 + $0x108] sm:$0xff]  ;;  %v1648_v14 = vld [vmem:[%s3001_s0 + $0x190] sm:$0xff]  ;;  %v1826_v16 = vld [vmem:[%s3000_s1 + $0x1e0] sm:$0xff] }
  0x1b   :  { %1587 = vmatmul.msk.f32.gmra.mxu3 %vm67_vm0, %v1563_v26  ;;  %687 = vmatpush.msrb.mxu0 %v1708_v27  ;;  %v1647_v9 = vld [vmem:[%s3001_s0 + $0x188] sm:$0xff]  ;;  %v1746_v17 = vld [vmem:[%s3000_s1 + $0x160] sm:$0xff]  ;;  %v1688_v18 = vld [vmem:[%s3001_s0 + $0x210] sm:$0xff] }
  0x1c   :  { %240 = vmatpush.msrb.mxu1 %v37_v28  ;;  %380 = vmatpush.msrb.mxu2 %v1625_v29  ;;  %v1867_v10 = vld [vmem:[%s3000_s1 + $0x228] sm:$0xff]  ;;  %v20_v19 = vld [vmem:[%s3001_s0 + $0x18] sm:$0xff]  ;;  %v1866_v22 = vld [vmem:[%s3000_s1 + $0x220] sm:$0xff] }
  0x1d   :  { %535 = vmatpush.msrb.mxu3 %v1665_v30  ;;  %688 = vmatpush.msrb.mxu0 %v1707_v31  ;;  %v1687_v11 = vld [vmem:[%s3001_s0 + $0x208] sm:$0xff]  ;;  %v1609_v20 = vld [vmem:[%s3001_s0 + $0x118] sm:$0xff]  ;;  %v21_v24 = vld [vmem:[%s3001_s0 + $0x20] sm:$0xff] }
  0x1e   :  { %241 = vmatpush.msrb.mxu1 %v36_v32  ;;  %381 = vmatpush.msrb.mxu2 %v1624_v33  ;;  %v1649_v21 = vld [vmem:[%s3001_s0 + $0x198] sm:$0xff]  ;;  %v1610_v25 = vld [vmem:[%s3001_s0 + $0x120] sm:$0xff]  ;;  %v22_v31 = vld [vmem:[%s3001_s0 + $0x28] sm:$0xff] }
  0x1f   :  { %1575 = vmatmul.msk.f32.gmra.mxu0 %vm67_vm0, %v1551_v34  ;;  %536 = vmatpush.msrb.mxu3 %v1664_v35  ;;  %v1689_v23 = vld [vmem:[%s3001_s0 + $0x218] sm:$0xff]  ;;  %v1650_v26 = vld [vmem:[%s3001_s0 + $0x1a0] sm:$0xff]  ;;  %v1611_v32 = vld [vmem:[%s3001_s0 + $0x128] sm:$0xff] }
  0x20   :  { %689 = vmatpush.msrb.mxu0 %v1706_v36  ;;  %242 = vmatpush.msrb.mxu1 %v35_v37  ;;  %v1785_v27 = vld [vmem:[%s3000_s1 + $0x198] sm:$0xff]  ;;  %v1690_v30 = vld [vmem:[%s3001_s0 + $0x220] sm:$0xff]  ;;  %v1651_v33 = vld [vmem:[%s3001_s0 + $0x1a8] sm:$0xff] }
  0x21   :  { %1580 = vmatmul.msk.f32.gmra.mxu1 %vm67_vm0, %v1556_v38  ;;  %1584 = vmatmul.msk.f32.gmra.mxu2 %vm67_vm0, %v1560_v39  ;;  %v1825_v28 = vld [vmem:[%s3000_s1 + $0x1d8] sm:$0xff]  ;;  %v1691_v35 = vld [vmem:[%s3001_s0 + $0x228] sm:$0xff]  ;;  %v23_v36 = vld [vmem:[%s3001_s0 + $0x30] sm:$0xff] }
  0x22   :  { %382 = vmatpush.msrb.mxu2 %v1623_v40  ;;  %537 = vmatpush.msrb.mxu3 %v1663_v41  ;;  %v1745_v29 = vld [vmem:[%s3000_s1 + $0x158] sm:$0xff]  ;;  %v1612_v37 = vld [vmem:[%s3001_s0 + $0x130] sm:$0xff] }
  0x23   :  { %1588 = vmatmul.msk.f32.gmra.mxu3 %vm67_vm0, %v1564_v42  ;;  %690 = vmatpush.msrb.mxu0 %v1705_v43  ;;  %v1865_v34 = vld [vmem:[%s3000_s1 + $0x218] sm:$0xff]  ;;  %v1652_v38 = vld [vmem:[%s3001_s0 + $0x1b0] sm:$0xff] }
  0x24   :  { %243 = vmatpush.msrb.mxu1 %v34_v44  ;;  %383 = vmatpush.msrb.mxu2 %v1622_v45  ;;  %v1784_v39 = vld [vmem:[%s3000_s1 + $0x190] sm:$0xff]  ;;  %v24_v43 = vld [vmem:[%s3001_s0 + $0x38] sm:$0xff] }
  0x25   :  { %538 = vmatpush.msrb.mxu3 %v1662_v46  ;;  %691 = vmatpush.msrb.mxu0 %v1704_v47  ;;  %v1824_v40 = vld [vmem:[%s3000_s1 + $0x1d0] sm:$0xff]  ;;  %v1613_v44 = vld [vmem:[%s3001_s0 + $0x138] sm:$0xff] }
  0x26   :  { %244 = vmatpush.msrb.mxu1 %v33_v48  ;;  %996 = vmatpush.msra.mxu2 %v1789_v49  ;;  %v1744_v41 = vld [vmem:[%s3000_s1 + $0x150] sm:$0xff]  ;;  %v1653_v45 = vld [vmem:[%s3001_s0 + $0x1b8] sm:$0xff]  ;;  %v25_v48 = vld [vmem:[%s3001_s0 + $0x40] sm:$0xff] }
  0x27   :  { %1576 = vmatmul.msk.f32.gmra.mxu0 %vm67_vm0, %v1552_v50  ;;  %1151 = vmatpush.msra.mxu3 %v1829_v51  ;;  %v1692_v42 = vld [vmem:[%s3001_s0 + $0x230] sm:$0xff]  ;;  %v1693_v47 = vld [vmem:[%s3001_s0 + $0x238] sm:$0xff]  ;;  %v1614_v49 = vld [vmem:[%s3001_s0 + $0x140] sm:$0xff] }
  0x28   :  { %692 = vmatpush.msrb.mxu0 %v1703_v52  ;;  %841 = vmatpush.msra.mxu1 %v1749_v53  ;;  %v1864_v46 = vld [vmem:[%s3000_s1 + $0x210] sm:$0xff]  ;;  %v1654_v50 = vld [vmem:[%s3001_s0 + $0x1c0] sm:$0xff]  ;;  %v1783_v51 = vld [vmem:[%s3000_s1 + $0x188] sm:$0xff] }
  0x29   :  { %1581 = vmatmul.msk.f32.gmra.mxu1 %vm67_vm0, %v1557_v54  ;;  %1585 = vmatmul.msk.f32.gmra.mxu2 %vm67_vm0, %v1561_v55  ;;  %v1823_v52 = vld [vmem:[%s3000_s1 + $0x1c8] sm:$0xff]  ;;  %v1694_v53 = vld [vmem:[%s3001_s0 + $0x240] sm:$0xff] }
  0x2a   :  { %693 = vmatpush.msrb.mxu0 %v1702_v56  ;;  %997 = vmatpush.msra.mxu2 %v1788_v57  ;;  %v1743_v54 = vld [vmem:[%s3000_s1 + $0x148] sm:$0xff] }
  0x2b   :  { %1589 = vmatmul.msk.f32.gmra.mxu3 %vm67_vm0, %v1565_v58  ;;  %842 = vmatpush.msra.mxu1 %v1748_v61  ;;  %v26_v55 = vld [vmem:[%s3001_s0 + $0x48] sm:$0xff]  ;;  %v1616_v61 = vld [vmem:[%s3001_s0 + $0x150] sm:$0xff] }
  0x2c   :  { %1306 = vmatpush.msra.mxu0 %v1869_v59  ;;  %1152 = vmatpush.msra.mxu3 %v1828_v60  ;;  %v1615_v56 = vld [vmem:[%s3001_s0 + $0x148] sm:$0xff]  ;;  %v27_v60 = vld [vmem:[%s3001_s0 + $0x50] sm:$0xff] }
  0x2d   :  { %998 = vmatpush.msra.mxu2 %v1787_v3  ;;  %843 = vmatpush.msra.mxu1 %v1747_v5  ;;  %v1655_v57 = vld [vmem:[%s3001_s0 + $0x1c8] sm:$0xff]  ;;  %v28_v3 = vld [vmem:[%s3001_s0 + $0x58] sm:$0xff] }
  0x2e   :  { %1307 = vmatpush.msra.mxu0 %v1868_v62  ;;  %1153 = vmatpush.msra.mxu3 %v1827_v4  ;;  %v1863_v58 = vld [vmem:[%s3000_s1 + $0x208] sm:$0xff]  ;;  %v1656_v62 = vld [vmem:[%s3001_s0 + $0x1d0] sm:$0xff]  ;;  %v1617_v4 = vld [vmem:[%s3001_s0 + $0x158] sm:$0xff] }
  0x2f   :  { %1577 = vmatmul.msk.f32.gmra.mxu0 %vm67_vm0, %v1553_v63  ;;  %999 = vmatpush.msra.mxu2 %v1786_v15  ;;  %v1695_v59 = vld [vmem:[%s3001_s0 + $0x248] sm:$0xff]  ;;  %v1782_v63 = vld [vmem:[%s3000_s1 + $0x180] sm:$0xff]  ;;  %v1657_v5 = vld [vmem:[%s3001_s0 + $0x1d8] sm:$0xff] }
  0x30   :  { %1308 = vmatpush.msra.mxu0 %v1867_v10  ;;  %1154 = vmatpush.msra.mxu3 %v1826_v16  ;;  %v1618_v10 = vld [vmem:[%s3001_s0 + $0x160] sm:$0xff] }
  0x31   :  { %1590 = vmatmul.msk.f32.vlgmr.msrb.gmra.mxu1 %vm67_vm0, %v17_v0  ;;  %1630 = vmatmul.msk.f32.vlgmr.msrb.gmra.mxu2 %vm67_vm0, %v1606_v1  ;;  %v1822_v0 = vld [vmem:[%s3000_s1 + $0x1c0] sm:$0xff]  ;;  %v1696_v1 = vld [vmem:[%s3001_s0 + $0x250] sm:$0xff] }
  0x32   :  { %844 = vmatpush.msra.mxu1 %v1746_v17  ;;  %1309 = vmatpush.msra.mxu0 %v1866_v22  ;;  %v30_v17 = vld [vmem:[%s3001_s0 + $0x68] sm:$0xff] }
  0x33   :  { %1670 = vmatmul.msk.f32.vlgmr.msrb.gmra.mxu3 %vm67_vm0, %v1646_v2  ;;  %1000 = vmatpush.msra.mxu2 %v1785_v27  ;;  %v1742_v2 = vld [vmem:[%s3000_s1 + $0x140] sm:$0xff]  ;;  %v1699_v22 = vld [vmem:[%s3001_s0 + $0x268] sm:$0xff]  ;;  %v1660_v27 = vld [vmem:[%s3001_s0 + $0x1f0] sm:$0xff] }
  0x34   :  { %1155 = vmatpush.msra.mxu3 %v1825_v28  ;;  %845 = vmatpush.msra.mxu1 %v1745_v29 }
  0x35   :  { %1310 = vmatpush.msra.mxu0 %v1865_v34  ;;  %1001 = vmatpush.msra.mxu2 %v1784_v39  ;;  %v1621_v34 = vld [vmem:[%s3001_s0 + $0x178] sm:$0xff] }
  0x36   :  { %1156 = vmatpush.msra.mxu3 %v1824_v40  ;;  %846 = vmatpush.msra.mxu1 %v1744_v41  ;;  %v1726_v41 = vld [vmem:[%s3001_s0 + $0x280] sm:$0xff] }
  0x37   :  { %1710 = vmatmul.msk.f32.vlgmr.msrb.gmra.mxu0 %vm67_vm0, %v1686_v6  ;;  %1002 = vmatpush.msra.mxu2 %v1783_v51  ;;  %v1862_v6 = vld [vmem:[%s3000_s1 + $0x200] sm:$0xff]  ;;  %v1727_v51 = vld [vmem:[%s3001_s0 + $0x288] sm:$0xff] }
  0x38   :  { %1311 = vmatpush.msra.mxu0 %v1864_v46  ;;  %1157 = vmatpush.msra.mxu3 %v1823_v52  ;;  %v1767_v52 = vld [vmem:[%s3001_s0 + $0x308] sm:$0xff] }
  0x39   :  { %1591 = vmatmul.msk.f32.gmra.mxu1 %vm67_vm0, %v18_v7  ;;  %1631 = vmatmul.msk.f32.gmra.mxu2 %vm67_vm0, %v1607_v8  ;;  %v1697_v7 = vld [vmem:[%s3001_s0 + $0x258] sm:$0xff] }
  0x3a   :  { %847 = vmatpush.msra.mxu1 %v1743_v54  ;;  %1312 = vmatpush.msra.mxu0 %v1863_v58  ;;  %v1807_v54 = vld [vmem:[%s3001_s0 + $0x388] sm:$0xff] }
  0x3b   :  { %1671 = vmatmul.msk.f32.gmra.mxu3 %vm67_vm0, %v1647_v9  ;;  %1003 = vmatpush.msra.mxu2 %v1782_v63  ;;  %v29_v9 = vld [vmem:[%s3001_s0 + $0x60] sm:$0xff]  ;;  %v1728_v63 = vld [vmem:[%s3001_s0 + $0x290] sm:$0xff] }
  0x3c   :  { %1158 = vmatpush.msra.mxu3 %v1822_v0  ;;  %848 = vmatpush.msra.mxu1 %v1742_v2  ;;  %v1768_v0 = vld [vmem:[%s3001_s0 + $0x310] sm:$0xff] }
  0x3d   :  { %1313 = vmatpush.msra.mxu0 %v1862_v6  ;;  %v1808_v2 = vld [vmem:[%s3001_s0 + $0x390] sm:$0xff] }
  0x3f   :  { %1711 = vmatmul.msk.f32.gmra.mxu0 %vm67_vm0, %v1687_v11  ;;  %v1658_v11 = vld [vmem:[%s3001_s0 + $0x1e0] sm:$0xff] }
  0x41   :  { %1592 = vmatmul.msk.f32.gmra.mxu1 %vm67_vm0, %v19_v12  ;;  %1632 = vmatmul.msk.f32.gmra.mxu2 %vm67_vm0, %v1608_v13 }
  0x43   :  { %1672 = vmatmul.msk.f32.gmra.mxu3 %vm67_vm0, %v1648_v14  ;;  %v1698_v14 = vld [vmem:[%s3001_s0 + $0x260] sm:$0xff] }
  0x47   :  { %1712 = vmatmul.msk.f32.gmra.mxu0 %vm67_vm0, %v1688_v18  ;;  %v1619_v18 = vld [vmem:[%s3001_s0 + $0x168] sm:$0xff] }
  0x49   :  { %1593 = vmatmul.msk.f32.gmra.mxu1 %vm67_vm0, %v20_v19  ;;  %1633 = vmatmul.msk.f32.gmra.mxu2 %vm67_vm0, %v1609_v20  ;;  %v1659_v19 = vld [vmem:[%s3001_s0 + $0x1e8] sm:$0xff] }
  0x4b   :  { %1673 = vmatmul.msk.f32.gmra.mxu3 %vm67_vm0, %v1649_v21 }
  0x4f   :  { %1713 = vmatmul.msk.f32.gmra.mxu0 %vm67_vm0, %v1689_v23 }
  0x51   :  { %1594 = vmatmul.msk.f32.gmra.mxu1 %vm67_vm0, %v21_v24  ;;  %1634 = vmatmul.msk.f32.gmra.mxu2 %vm67_vm0, %v1610_v25  ;;  %v31_v25 = vld [vmem:[%s3001_s0 + $0x70] sm:$0xff] }
  0x53   :  { %1674 = vmatmul.msk.f32.gmra.mxu3 %vm67_vm0, %v1650_v26  ;;  %v1620_v26 = vld [vmem:[%s3001_s0 + $0x170] sm:$0xff] }
  0x57   :  { %1714 = vmatmul.msk.f32.gmra.mxu0 %vm67_vm0, %v1690_v30  ;;  %v1700_v30 = vld [vmem:[%s3001_s0 + $0x270] sm:$0xff] }
  0x59   :  { %1595 = vmatmul.msk.f32.gmra.mxu1 %vm67_vm0, %v22_v31  ;;  %1635 = vmatmul.msk.f32.gmra.mxu2 %vm67_vm0, %v1611_v32 }
  0x5b   :  { %1675 = vmatmul.msk.f32.gmra.mxu3 %vm67_vm0, %v1651_v33  ;;  %v32_v33 = vld [vmem:[%s3001_s0 + $0x78] sm:$0xff] }
  0x5f   :  { %1715 = vmatmul.msk.f32.gmra.mxu0 %vm67_vm0, %v1691_v35  ;;  %v1661_v35 = vld [vmem:[%s3001_s0 + $0x1f8] sm:$0xff] }
  0x61   :  { %1596 = vmatmul.msk.f32.gmra.mxu1 %vm67_vm0, %v23_v36  ;;  %1636 = vmatmul.msk.f32.gmra.mxu2 %vm67_vm0, %v1612_v37 }
  0x63   :  { %1676 = vmatmul.msk.f32.gmra.mxu3 %vm67_vm0, %v1652_v38  ;;  %v1701_v38 = vld [vmem:[%s3001_s0 + $0x278] sm:$0xff] }
  0x67   :  { %1716 = vmatmul.msk.f32.gmra.mxu0 %vm67_vm0, %v1692_v42  ;;  %v1766_v42 = vld [vmem:[%s3001_s0 + $0x300] sm:$0xff] }
  0x69   :  { %1597 = vmatmul.msk.f32.gmra.mxu1 %vm67_vm0, %v24_v43  ;;  %1637 = vmatmul.msk.f32.gmra.mxu2 %vm67_vm0, %v1613_v44  ;;  %v1806_v43 = vld [vmem:[%s3001_s0 + $0x380] sm:$0xff] }
  0x6b   :  { %1677 = vmatmul.msk.f32.gmra.mxu3 %vm67_vm0, %v1653_v45 }
  0x6f   :  { %1717 = vmatmul.msk.f32.gmra.mxu0 %vm67_vm0, %v1693_v47  ;;  %v1846_v47 = vld [vmem:[%s3001_s0 + $0x400] sm:$0xff] }
  0x71   :  { %1598 = vmatmul.msk.f32.gmra.mxu1 %vm67_vm0, %v25_v48  ;;  %1638 = vmatmul.msk.f32.gmra.mxu2 %vm67_vm0, %v1614_v49 }
  0x73   :  { %1678 = vmatmul.msk.f32.gmra.mxu3 %vm67_vm0, %v1654_v50 }
  0x77   :  { %1718 = vmatmul.msk.f32.gmra.mxu0 %vm67_vm0, %v1694_v53 }
  0x79   :  { %1599 = vmatmul.msk.f32.gmra.mxu1 %vm67_vm0, %v26_v55  ;;  %1639 = vmatmul.msk.f32.gmra.mxu2 %vm67_vm0, %v1615_v56 }
  0x7b   :  { %1679 = vmatmul.msk.f32.gmra.mxu3 %vm67_vm0, %v1655_v57 }
  0x7f   :  { %1719 = vmatmul.msk.f32.gmra.mxu0 %vm67_vm0, %v1695_v59  ;;  %v1847_v59 = vld [vmem:[%s3001_s0 + $0x408] sm:$0xff] }
  0x81   :  { %1600 = vmatmul.msk.f32.gmra.mxu1 %vm67_vm0, %v27_v60  ;;  %1640 = vmatmul.msk.f32.gmra.mxu2 %vm67_vm0, %v1616_v61 }
  0x83   :  { %1680 = vmatmul.msk.f32.gmra.mxu3 %vm67_vm0, %v1656_v62 }
  0x87   :  { %1720 = vmatmul.msk.f32.gmra.mxu0 %vm67_vm0, %v1696_v1 }
  0x89   :  { %1601 = vmatmul.msk.f32.gmra.mxu1 %vm67_vm0, %v28_v3  ;;  %1641 = vmatmul.msk.f32.gmra.mxu2 %vm67_vm0, %v1617_v4 }
  0x8b   :  { %1681 = vmatmul.msk.f32.gmra.mxu3 %vm67_vm0, %v1657_v5 }
  0x8e   :  { %v2413_v8 = vpop.f32.mrf.mxu1 }
  0x8f   :  { %1721 = vmatmul.msk.f32.gmra.mxu0 %vm67_vm0, %v1697_v7  ;;  %v1848_v7 = vld [vmem:[%s3001_s0 + $0x410] sm:$0xff] }
  0x91   :  { %1602 = vmatmul.msk.f32.gmra.mxu1 %vm67_vm0, %v29_v9  ;;  %1642 = vmatmul.msk.f32.gmra.mxu2 %vm67_vm0, %v1618_v10 }
  0x93   :  { %1682 = vmatmul.msk.f32.gmra.mxu3 %vm67_vm0, %v1658_v11 }
  0x94   :  { %v2428_v12 = vpop.f32.mrf.mxu2  ;;  %v133_v13 = vpop.f32.mrf.mxu0 }
  0x96   :  { %v2433_v15 = vpop.f32.mrf.mxu1  ;;  %v2435_v16 = vpop.f32.mrf.mxu3 }
  0x97   :  { %1722 = vmatmul.msk.f32.gmra.mxu0 %vm67_vm0, %v1698_v14  ;;  %v1769_v14 = vld [vmem:[%s3001_s0 + $0x318] sm:$0xff] }
  0x99   :  { %1603 = vmatmul.msk.f32.gmra.mxu1 %vm67_vm0, %v30_v17  ;;  %1643 = vmatmul.msk.f32.gmra.mxu2 %vm67_vm0, %v1619_v18  ;;  %v1809_v18 = vld [vmem:[%s3001_s0 + $0x398] sm:$0xff] }
  0x9b   :  { %1683 = vmatmul.msk.f32.gmra.mxu3 %vm67_vm0, %v1659_v19 }
  0x9c   :  { %v2450_v20 = vpop.f32.mrf.mxu2  ;;  %v136_v21 = vpop.f32.mrf.mxu0 }
  0x9e   :  { %v2455_v23 = vpop.f32.mrf.mxu1  ;;  %v2457_v24 = vpop.f32.mrf.mxu3 }
  0x9f   :  { %1723 = vmatmul.msk.f32.gmra.mxu0 %vm67_vm0, %v1699_v22 }
  0xa1   :  { %1604 = vmatmul.msk.f32.gmra.mxu1 %vm67_vm0, %v31_v25  ;;  %1644 = vmatmul.msk.f32.gmra.mxu2 %vm67_vm0, %v1620_v26  ;;  %v1849_v26 = vld [vmem:[%s3001_s0 + $0x418] sm:$0xff] }
  0xa3   :  { %1684 = vmatmul.msk.f32.gmra.mxu3 %vm67_vm0, %v1660_v27 }
  0xa4   :  { %v2472_v28 = vpop.f32.mrf.mxu2  ;;  %v139_v29 = vpop.f32.mrf.mxu0 }
  0xa6   :  { %v2477_v31 = vpop.f32.mrf.mxu1  ;;  %v2479_v32 = vpop.f32.mrf.mxu3 }
  0xa7   :  { %1724 = vmatmul.msk.f32.gmra.mxu0 %vm67_vm0, %v1700_v30 }
  0xa9   :  { %1605 = vmatmul.msk.f32.gmra.mxu1 %vm67_vm0, %v32_v33  ;;  %1645 = vmatmul.msk.f32.gmra.mxu2 %vm67_vm0, %v1621_v34  ;;  %v1730_v33 = vld [vmem:[%s3001_s0 + $0x2a0] sm:$0xff] }
  0xaa   :  { %v1770_v34 = vld [vmem:[%s3001_s0 + $0x320] sm:$0xff] }
  0xab   :  { %1685 = vmatmul.msk.f32.gmra.mxu3 %vm67_vm0, %v1661_v35 }
  0xac   :  { %v2494_v36 = vpop.f32.mrf.mxu2  ;;  %v142_v37 = vpop.f32.mrf.mxu0 }
  0xae   :  { %v2499_v39 = vpop.f32.mrf.mxu3  ;;  %v246_v40 = vpop.f32.mrf.mxu1 }
  0xaf   :  { %1725 = vmatmul.msk.f32.gmra.mxu0 %vm67_vm0, %v1701_v38  ;;  %v247_v44 = vadd.f32 %v246_v40, %v133_v13  ;;  %v1729_v13 = vld [vmem:[%s3001_s0 + $0x298] sm:$0xff] }
  0xb1   :  { %1750 = vmatmul.msk.f32.vlgmr.msra.gmra.mxu1 %vm67_vm0, %v1726_v41  ;;  %1790 = vmatmul.msk.f32.vlgmr.msra.gmra.mxu2 %vm67_vm0, %v1766_v42 }
  0xb3   :  { %1830 = vmatmul.msk.f32.vlgmr.msra.gmra.mxu3 %vm67_vm0, %v1806_v43  ;;  %v1850_v43 = vld [vmem:[%s3001_s0 + $0x420] sm:$0xff] }
  0xb4   :  { %v385_v45 = vpop.f32.mrf.mxu2  ;;  %v695_v46 = vpop.f32.mrf.mxu0 }
  0xb5   :  { %v433_v48 = vadd.f32 %v385_v45, %v247_v44 }
  0xb6   :  { %v249_v49 = vpop.f32.mrf.mxu1  ;;  %v540_v50 = vpop.f32.mrf.mxu3 }
  0xb7   :  { %v588_v53 = vadd.f32 %v540_v50, %v433_v48  ;;  %1870 = vmatmul.msk.f32.vlgmr.msra.gmra.mxu0 %vm67_vm0, %v1846_v47  ;;  %v250_v56 = vadd.f32 %v249_v49, %v136_v21  ;;  %v1731_v47 = vld [vmem:[%s3001_s0 + $0x2a8] sm:$0xff] }
  0xb8   :  { %v1771_v48 = vld [vmem:[%s3001_s0 + $0x328] sm:$0xff] }
  0xb9   :  { %v2527_v55 = vadd.f32 %v695_v46, %v588_v53  ;;  %1751 = vmatmul.msk.f32.gmra.mxu1 %vm67_vm0, %v1727_v51  ;;  %1791 = vmatmul.msk.f32.gmra.mxu2 %vm67_vm0, %v1767_v52  ;;  %v1811_v49 = vld [vmem:[%s3001_s0 + $0x3a8] sm:$0xff] }
  0xbb   :  { %1831 = vmatmul.msk.f32.gmra.mxu3 %vm67_vm0, %v1807_v54  ;;  %v1851_v54 = vld [vmem:[%s3001_s0 + $0x428] sm:$0xff] }
  0xbc   :  { %v388_v57 = vpop.f32.mrf.mxu2  ;;  %v698_v58 = vpop.f32.mrf.mxu0 }
  0xbd   :  { %v434_v60 = vadd.f32 %v388_v57, %v250_v56 }
  0xbe   :  { %v252_v61 = vpop.f32.mrf.mxu1  ;;  %v543_v62 = vpop.f32.mrf.mxu3 }
  0xbf   :  { %v589_v1 = vadd.f32 %v543_v62, %v434_v60  ;;  %1871 = vmatmul.msk.f32.gmra.mxu0 %vm67_vm0, %v1847_v59  ;;  %v253_v4 = vadd.f32 %v252_v61, %v139_v29  ;;  %v1732_v59 = vld [vmem:[%s3001_s0 + $0x2b0] sm:$0xff] }
  0xc0   :  { %v1772_v60 = vld [vmem:[%s3001_s0 + $0x330] sm:$0xff] }
  0xc1   :  { %v2545_v3 = vadd.f32 %v698_v58, %v589_v1  ;;  %1752 = vmatmul.msk.f32.gmra.mxu1 %vm67_vm0, %v1728_v63  ;;  %1792 = vmatmul.msk.f32.gmra.mxu2 %vm67_vm0, %v1768_v0  ;;  %v1812_v61 = vld [vmem:[%s3001_s0 + $0x3b0] sm:$0xff] }
  0xc3   :  { %1832 = vmatmul.msk.f32.gmra.mxu3 %vm67_vm0, %v1808_v2  ;;  %v1852_v2 = vld [vmem:[%s3001_s0 + $0x430] sm:$0xff] }
  0xc4   :  { %v391_v5 = vpop.f32.mrf.mxu2  ;;  %v701_v6 = vpop.f32.mrf.mxu0 }
  0xc5   :  { %v435_v9 = vadd.f32 %v391_v5, %v253_v4 }
  0xc6   :  { %v255_v10 = vpop.f32.mrf.mxu1  ;;  %v546_v11 = vpop.f32.mrf.mxu3 }
  0xc7   :  { %v590_v17 = vadd.f32 %v546_v11, %v435_v9  ;;  %1872 = vmatmul.msk.f32.gmra.mxu0 %vm67_vm0, %v1848_v7  ;;  %v256_v21 = vadd.f32 %v255_v10, %v142_v37  ;;  %v1810_v37 = vld [vmem:[%s3001_s0 + $0x3a0] sm:$0xff]  ;;  %v1733_v7 = vld [vmem:[%s3001_s0 + $0x2b8] sm:$0xff] }
  0xc8   :  { %v1773_v9 = vld [vmem:[%s3001_s0 + $0x338] sm:$0xff] }
  0xc9   :  { %v2563_v19 = vadd.f32 %v701_v6, %v590_v17  ;;  %1753 = vmatmul.msk.f32.gmra.mxu1 %vm67_vm0, %v1729_v13  ;;  %1793 = vmatmul.msk.f32.gmra.mxu2 %vm67_vm0, %v1769_v14  ;;  %v1813_v10 = vld [vmem:[%s3001_s0 + $0x3b8] sm:$0xff] }
  0xcb   :  { %1833 = vmatmul.msk.f32.gmra.mxu3 %vm67_vm0, %v1809_v18  ;;  %v1853_v18 = vld [vmem:[%s3001_s0 + $0x438] sm:$0xff] }
  0xcc   :  { %v394_v22 = vpop.f32.mrf.mxu2  ;;  %v704_v25 = vpop.f32.mrf.mxu0 }
  0xcd   :  { %v436_v27 = vadd.f32 %v394_v22, %v256_v21 }
  0xce   :  { %v258_v29 = vpop.f32.mrf.mxu1  ;;  %v549_v30 = vpop.f32.mrf.mxu3 }
  0xcf   :  { %v591_v35 = vadd.f32 %v549_v30, %v436_v27  ;;  %1873 = vmatmul.msk.f32.gmra.mxu0 %vm67_vm0, %v1849_v26  ;;  %v259_v40 = vadd.f32 %v258_v29, %v2413_v8  ;;  %v1734_v26 = vld [vmem:[%s3001_s0 + $0x2c0] sm:$0xff] }
  0xd0   :  { %v1774_v27 = vld [vmem:[%s3001_s0 + $0x340] sm:$0xff] }
  0xd1   :  { %v2581_v38 = vadd.f32 %v704_v25, %v591_v35  ;;  %1754 = vmatmul.msk.f32.gmra.mxu1 %vm67_vm0, %v1730_v33  ;;  %1794 = vmatmul.msk.f32.gmra.mxu2 %vm67_vm0, %v1770_v34  ;;  %v1814_v29 = vld [vmem:[%s3001_s0 + $0x3c0] sm:$0xff] }
  0xd3   :  { %1834 = vmatmul.msk.f32.gmra.mxu3 %vm67_vm0, %v1810_v37  ;;  %v1854_v37 = vld [vmem:[%s3001_s0 + $0x440] sm:$0xff] }
  0xd4   :  { %v397_v41 = vpop.f32.mrf.mxu2  ;;  %v707_v42 = vpop.f32.mrf.mxu0 }
  0xd5   :  { %v437_v44 = vadd.f32 %v397_v41, %v259_v40 }
  0xd6   :  { %v261_v45 = vpop.f32.mrf.mxu1  ;;  %v552_v46 = vpop.f32.mrf.mxu3 }
  0xd7   :  { %v592_v8 = vadd.f32 %v552_v46, %v437_v44  ;;  %1874 = vmatmul.msk.f32.gmra.mxu0 %vm67_vm0, %v1850_v43  ;;  %v262_v51 = vadd.f32 %v261_v45, %v2433_v15  ;;  %v1735_v43 = vld [vmem:[%s3001_s0 + $0x2c8] sm:$0xff] }
  0xd8   :  { %v1775_v44 = vld [vmem:[%s3001_s0 + $0x348] sm:$0xff] }
  0xd9   :  { %v2600_v50 = vadd.f32 %v707_v42, %v592_v8  ;;  %1755 = vmatmul.msk.f32.gmra.mxu1 %vm67_vm0, %v1731_v47  ;;  %1795 = vmatmul.msk.f32.gmra.mxu2 %vm67_vm0, %v1771_v48  ;;  %v1815_v45 = vld [vmem:[%s3001_s0 + $0x3c8] sm:$0xff] }
  0xdb   :  { %1835 = vmatmul.msk.f32.gmra.mxu3 %vm67_vm0, %v1811_v49  ;;  %v1855_v49 = vld [vmem:[%s3001_s0 + $0x448] sm:$0xff] }
  0xdc   :  { %v400_v52 = vpop.f32.mrf.mxu2  ;;  %v710_v53 = vpop.f32.mrf.mxu0 }
  0xdd   :  { %v438_v56 = vadd.f32 %v400_v52, %v262_v51 }
  0xde   :  { %v264_v57 = vpop.f32.mrf.mxu1  ;;  %v555_v58 = vpop.f32.mrf.mxu3 }
  0xdf   :  { %v593_v15 = vadd.f32 %v555_v58, %v438_v56  ;;  %1875 = vmatmul.msk.f32.gmra.mxu0 %vm67_vm0, %v1851_v54  ;;  %v265_v63 = vadd.f32 %v264_v57, %v2455_v23  ;;  %v1736_v54 = vld [vmem:[%s3001_s0 + $0x2d0] sm:$0xff] }
  0xe0   :  { %v1776_v56 = vld [vmem:[%s3001_s0 + $0x350] sm:$0xff] }
  0xe1   :  { %v2619_v62 = vadd.f32 %v710_v53, %v593_v15  ;;  %1756 = vmatmul.msk.f32.gmra.mxu1 %vm67_vm0, %v1732_v59  ;;  %1796 = vmatmul.msk.f32.gmra.mxu2 %vm67_vm0, %v1772_v60  ;;  %v1816_v57 = vld [vmem:[%s3001_s0 + $0x3d0] sm:$0xff] }
  0xe3   :  { %1836 = vmatmul.msk.f32.gmra.mxu3 %vm67_vm0, %v1812_v61  ;;  %v1856_v61 = vld [vmem:[%s3001_s0 + $0x450] sm:$0xff] }
  0xe4   :  { %v403_v0 = vpop.f32.mrf.mxu2  ;;  %v713_v1 = vpop.f32.mrf.mxu0 }
  0xe5   :  { %v439_v4 = vadd.f32 %v403_v0, %v265_v63 }
  0xe6   :  { %v267_v5 = vpop.f32.mrf.mxu1  ;;  %v558_v6 = vpop.f32.mrf.mxu3 }
  0xe7   :  { %v594_v23 = vadd.f32 %v558_v6, %v439_v4  ;;  %1876 = vmatmul.msk.f32.gmra.mxu0 %vm67_vm0, %v1852_v2  ;;  %v268_v13 = vadd.f32 %v267_v5, %v2477_v31  ;;  %v1737_v2 = vld [vmem:[%s3001_s0 + $0x2d8] sm:$0xff] }
  0xe8   :  { %v1777_v4 = vld [vmem:[%s3001_s0 + $0x358] sm:$0xff] }
  0xe9   :  { %v2638_v11 = vadd.f32 %v713_v1, %v594_v23  ;;  %1757 = vmatmul.msk.f32.gmra.mxu1 %vm67_vm0, %v1733_v7  ;;  %1797 = vmatmul.msk.f32.gmra.mxu2 %vm67_vm0, %v1773_v9  ;;  %v1817_v5 = vld [vmem:[%s3001_s0 + $0x3d8] sm:$0xff] }
  0xeb   :  { %1837 = vmatmul.msk.f32.gmra.mxu3 %vm67_vm0, %v1813_v10  ;;  %v1857_v10 = vld [vmem:[%s3001_s0 + $0x458] sm:$0xff] }
  0xec   :  { %v406_v14 = vpop.f32.mrf.mxu2  ;;  %v716_v17 = vpop.f32.mrf.mxu0 }
  0xed   :  { %v440_v21 = vadd.f32 %v406_v14, %v268_v13 }
  0xee   :  { %v270_v22 = vpop.f32.mrf.mxu1  ;;  %v561_v25 = vpop.f32.mrf.mxu3 }
  0xef   :  { %v595_v31 = vadd.f32 %v561_v25, %v440_v21  ;;  %1877 = vmatmul.msk.f32.gmra.mxu0 %vm67_vm0, %v1853_v18  ;;  %v271_v33 = vadd.f32 %v270_v22, %v2428_v12  ;;  %v1738_v18 = vld [vmem:[%s3001_s0 + $0x2e0] sm:$0xff] }
  0xf0   :  { %v1778_v21 = vld [vmem:[%s3001_s0 + $0x360] sm:$0xff] }
  0xf1   :  { %v2657_v30 = vadd.f32 %v716_v17, %v595_v31  ;;  %1758 = vmatmul.msk.f32.gmra.mxu1 %vm67_vm0, %v1734_v26  ;;  %1798 = vmatmul.msk.f32.gmra.mxu2 %vm67_vm0, %v1774_v27  ;;  %v1818_v22 = vld [vmem:[%s3001_s0 + $0x3e0] sm:$0xff] }
  0xf3   :  { %1838 = vmatmul.msk.f32.gmra.mxu3 %vm67_vm0, %v1814_v29  ;;  %v1858_v29 = vld [vmem:[%s3001_s0 + $0x460] sm:$0xff] }
  0xf4   :  { %v409_v34 = vpop.f32.mrf.mxu2  ;;  %v719_v35 = vpop.f32.mrf.mxu0 }
  0xf5   :  { %v441_v40 = vadd.f32 %v409_v34, %v271_v33 }
  0xf6   :  { %v273_v41 = vpop.f32.mrf.mxu1  ;;  %v564_v42 = vpop.f32.mrf.mxu3 }
  0xf7   :  { %v596_v12 = vadd.f32 %v564_v42, %v441_v40  ;;  %1878 = vmatmul.msk.f32.gmra.mxu0 %vm67_vm0, %v1854_v37  ;;  %v274_v47 = vadd.f32 %v273_v41, %v2450_v20  ;;  %v1739_v37 = vld [vmem:[%s3001_s0 + $0x2e8] sm:$0xff] }
  0xf8   :  { %v1779_v40 = vld [vmem:[%s3001_s0 + $0x368] sm:$0xff] }
  0xf9   :  { %v2676_v46 = vadd.f32 %v719_v35, %v596_v12  ;;  %1759 = vmatmul.msk.f32.gmra.mxu1 %vm67_vm0, %v1735_v43  ;;  %1799 = vmatmul.msk.f32.gmra.mxu2 %vm67_vm0, %v1775_v44  ;;  %v1819_v41 = vld [vmem:[%s3001_s0 + $0x3e8] sm:$0xff] }
  0xfb   :  { %1839 = vmatmul.msk.f32.gmra.mxu3 %vm67_vm0, %v1815_v45  ;;  %v1859_v45 = vld [vmem:[%s3001_s0 + $0x468] sm:$0xff] }
  0xfc   :  { %v412_v48 = vpop.f32.mrf.mxu2  ;;  %v722_v8 = vpop.f32.mrf.mxu0 }
  0xfd   :  { %v442_v51 = vadd.f32 %v412_v48, %v274_v47 }
  0xfe   :  { %v276_v52 = vpop.f32.mrf.mxu1  ;;  %v567_v53 = vpop.f32.mrf.mxu3 }
  0xff   :  { %v597_v20 = vadd.f32 %v567_v53, %v442_v51  ;;  %1879 = vmatmul.msk.f32.gmra.mxu0 %vm67_vm0, %v1855_v49  ;;  %v277_v59 = vadd.f32 %v276_v52, %v2472_v28  ;;  %v1740_v49 = vld [vmem:[%s3001_s0 + $0x2f0] sm:$0xff] }
 0x100   :  { %v1780_v51 = vld [vmem:[%s3001_s0 + $0x370] sm:$0xff] }
 0x101   :  { %v2695_v58 = vadd.f32 %v722_v8, %v597_v20  ;;  %1760 = vmatmul.msk.f32.gmra.mxu1 %vm67_vm0, %v1736_v54  ;;  %1800 = vmatmul.msk.f32.gmra.mxu2 %vm67_vm0, %v1776_v56  ;;  %v1820_v52 = vld [vmem:[%s3001_s0 + $0x3f0] sm:$0xff] }
 0x103   :  { %1840 = vmatmul.msk.f32.gmra.mxu3 %vm67_vm0, %v1816_v57  ;;  %v1860_v57 = vld [vmem:[%s3001_s0 + $0x470] sm:$0xff] }
 0x104   :  { %v415_v60 = vpop.f32.mrf.mxu2  ;;  %v725_v15 = vpop.f32.mrf.mxu0 }
 0x105   :  { %v443_v63 = vadd.f32 %v415_v60, %v277_v59 }
 0x106   :  { %v279_v0 = vpop.f32.mrf.mxu1  ;;  %v570_v1 = vpop.f32.mrf.mxu3 }
 0x107   :  { %v598_v28 = vadd.f32 %v570_v1, %v443_v63  ;;  %1880 = vmatmul.msk.f32.gmra.mxu0 %vm67_vm0, %v1856_v61  ;;  %v280_v7 = vadd.f32 %v279_v0, %v2494_v36  ;;  %v1741_v61 = vld [vmem:[%s3001_s0 + $0x2f8] sm:$0xff] }
 0x108   :  { %v1781_v63 = vld [vmem:[%s3001_s0 + $0x378] sm:$0xff] }
 0x109   :  { %v2714_v6 = vadd.f32 %v725_v15, %v598_v28  ;;  %1761 = vmatmul.msk.f32.gmra.mxu1 %vm67_vm0, %v1737_v2  ;;  %1801 = vmatmul.msk.f32.gmra.mxu2 %vm67_vm0, %v1777_v4  ;;  %v1821_v0 = vld [vmem:[%s3001_s0 + $0x3f8] sm:$0xff] }
 0x10b   :  { %1841 = vmatmul.msk.f32.gmra.mxu3 %vm67_vm0, %v1817_v5  ;;  %v1861_v5 = vld [vmem:[%s3001_s0 + $0x478] sm:$0xff] }
 0x10c   :  { %v418_v9 = vpop.f32.mrf.mxu2  ;;  %v728_v23 = vpop.f32.mrf.mxu0 }
 0x10d   :  { %v444_v13 = vadd.f32 %v418_v9, %v280_v7 }
 0x10e   :  { %v282_v14 = vpop.f32.mrf.mxu1  ;;  %v573_v17 = vpop.f32.mrf.mxu3 }
 0x10f   :  { %v599_v36 = vadd.f32 %v573_v17, %v444_v13  ;;  %1881 = vmatmul.msk.f32.gmra.mxu0 %vm67_vm0, %v1857_v10  ;;  %v283_v26 = vadd.f32 %v282_v14, %v2435_v16 }
 0x111   :  { %v2733_v25 = vadd.f32 %v728_v23, %v599_v36  ;;  %1762 = vmatmul.msk.f32.gmra.mxu1 %vm67_vm0, %v1738_v18  ;;  %1802 = vmatmul.msk.f32.gmra.mxu2 %vm67_vm0, %v1778_v21 }
 0x113   :  { %1842 = vmatmul.msk.f32.gmra.mxu3 %vm67_vm0, %v1818_v22 }
 0x114   :  { %v421_v27 = vpop.f32.mrf.mxu2  ;;  %v731_v31 = vpop.f32.mrf.mxu0 }
 0x115   :  { %v445_v33 = vadd.f32 %v421_v27, %v283_v26 }
 0x116   :  { %v285_v34 = vpop.f32.mrf.mxu1  ;;  %v576_v35 = vpop.f32.mrf.mxu3 }
 0x117   :  { %v600_v16 = vadd.f32 %v576_v35, %v445_v33  ;;  %1882 = vmatmul.msk.f32.gmra.mxu0 %vm67_vm0, %v1858_v29  ;;  %v286_v43 = vadd.f32 %v285_v34, %v2457_v24 }
 0x119   :  { %v2752_v42 = vadd.f32 %v731_v31, %v600_v16  ;;  %1763 = vmatmul.msk.f32.gmra.mxu1 %vm67_vm0, %v1739_v37  ;;  %1803 = vmatmul.msk.f32.gmra.mxu2 %vm67_vm0, %v1779_v40 }
 0x11b   :  { %1843 = vmatmul.msk.f32.gmra.mxu3 %vm67_vm0, %v1819_v41 }
 0x11c   :  { %v424_v44 = vpop.f32.mrf.mxu2  ;;  %v734_v12 = vpop.f32.mrf.mxu0 }
 0x11d   :  { %v446_v47 = vadd.f32 %v424_v44, %v286_v43 }
 0x11e   :  { %v288_v48 = vpop.f32.mrf.mxu1  ;;  %v579_v8 = vpop.f32.mrf.mxu3 }
 0x11f   :  { %v601_v24 = vadd.f32 %v579_v8, %v446_v47  ;;  %1883 = vmatmul.msk.f32.gmra.mxu0 %vm67_vm0, %v1859_v45  ;;  %v289_v54 = vadd.f32 %v288_v48, %v2479_v32 }
 0x121   :  { %v2771_v53 = vadd.f32 %v734_v12, %v601_v24  ;;  %1764 = vmatmul.msk.f32.gmra.mxu1 %vm67_vm0, %v1740_v49  ;;  %1804 = vmatmul.msk.f32.gmra.mxu2 %vm67_vm0, %v1780_v51 }
 0x123   :  { %1844 = vmatmul.msk.f32.gmra.mxu3 %vm67_vm0, %v1820_v52 }
 0x124   :  { %v427_v56 = vpop.f32.mrf.mxu2  ;;  %v737_v20 = vpop.f32.mrf.mxu0 }
 0x125   :  { %v447_v59 = vadd.f32 %v427_v56, %v289_v54 }
 0x126   :  { %v291_v60 = vpop.f32.mrf.mxu1  ;;  %v582_v15 = vpop.f32.mrf.mxu3 }
 0x127   :  { %v602_v32 = vadd.f32 %v582_v15, %v447_v59  ;;  %1884 = vmatmul.msk.f32.gmra.mxu0 %vm67_vm0, %v1860_v57  ;;  %v292_v2 = vadd.f32 %v291_v60, %v2499_v39 }
 0x129   :  { %v2790_v1 = vadd.f32 %v737_v20, %v602_v32  ;;  %1765 = vmatmul.msk.f32.gmra.mxu1 %vm67_vm0, %v1741_v61  ;;  %1805 = vmatmul.msk.f32.gmra.mxu2 %vm67_vm0, %v1781_v63 }
 0x12b   :  { %1845 = vmatmul.msk.f32.gmra.mxu3 %vm67_vm0, %v1821_v0 }
 0x12c   :  { %v430_v4 = vpop.f32.mrf.mxu2  ;;  %v740_v28 = vpop.f32.mrf.mxu0 }
 0x12d   :  { %v448_v7 = vadd.f32 %v430_v4, %v292_v2 }
 0x12e   :  { %v585_v9 = vpop.f32.mrf.mxu3  ;;  %v850_v23 = vpop.f32.mrf.mxu1 }
 0x12f   :  { %v603_v10 = vadd.f32 %v585_v9, %v448_v7  ;;  %v898_v13 = vadd.f32 %v850_v23, %v2527_v55  ;;  %1885 = vmatmul.msk.f32.gmra.mxu0 %vm67_vm0, %v1861_v5 }
 0x131   :  { %v2801_v14 = vadd.f32 %v740_v28, %v603_v10 }
 0x134   :  { %v1005_v17 = vpop.f32.mrf.mxu2  ;;  %v1315_v39 = vpop.f32.mrf.mxu0 }
 0x135   :  { %v1053_v18 = vadd.f32 %v1005_v17, %v898_v13 }
 0x136   :  { %v853_v21 = vpop.f32.mrf.mxu1  ;;  %v1160_v36 = vpop.f32.mrf.mxu3 }
 0x137   :  { %v899_v22 = vadd.f32 %v853_v21, %v2545_v3  ;;  %v1208_v26 = vadd.f32 %v1160_v36, %v1053_v18 }
 0x139   :  { %v2804_v27 = vadd.f32 %v1315_v39, %v1208_v26 }
 0x13c   :  { %v1008_v31 = vpop.f32.mrf.mxu2  ;;  %v1318_v29 = vpop.f32.mrf.mxu0 }
 0x13d   :  { %v1054_v33 = vadd.f32 %v1008_v31, %v899_v22 }
 0x13e   :  { %v856_v34 = vpop.f32.mrf.mxu1  ;;  %v1163_v35 = vpop.f32.mrf.mxu3 }
 0x13f   :  { %v900_v55 = vadd.f32 %v856_v34, %v2563_v19  ;;  %v1209_v37 = vadd.f32 %v1163_v35, %v1054_v33 }
 0x141   :  { %v2807_v40 = vadd.f32 %v1318_v29, %v1209_v37 }
 0x143   :  { %v1379_v16 = vadd.f32 %v2807_v40, %v2804_v27 }
 0x144   :  { %v1011_v41 = vpop.f32.mrf.mxu2  ;;  %v1321_v43 = vpop.f32.mrf.mxu0 }
 0x145   :  { %v1055_v44 = vadd.f32 %v1011_v41, %v900_v55 }
 0x146   :  { %v859_v3 = vpop.f32.mrf.mxu1  ;;  %v1166_v12 = vpop.f32.mrf.mxu3 }
 0x147   :  { %v901_v45 = vadd.f32 %v859_v3, %v2581_v38  ;;  %v1210_v47 = vadd.f32 %v1166_v12, %v1055_v44 }
 0x149   :  { %v2812_v48 = vadd.f32 %v1321_v43, %v1210_v47 }
 0x14b   :  { %v1380_v8 = vadd.f32 %v1379_v16, %v2812_v48 }
 0x14c   :  { %v1014_v49 = vpop.f32.mrf.mxu2  ;;  %v1324_v19 = vpop.f32.mrf.mxu0 }
 0x14d   :  { %v1056_v51 = vadd.f32 %v1014_v49, %v901_v45 }
 0x14e   :  { %v862_v24 = vpop.f32.mrf.mxu1  ;;  %v1169_v52 = vpop.f32.mrf.mxu3 }
 0x14f   :  { %v902_v54 = vadd.f32 %v862_v24, %v2600_v50  ;;  %v1211_v56 = vadd.f32 %v1169_v52, %v1056_v51 }
 0x151   :  { %v2816_v20 = vadd.f32 %v1324_v19, %v1211_v56 }
 0x153   :  { %v1381_v57 = vadd.f32 %v1380_v8, %v2816_v20 }
 0x154   :  { %v1017_v59 = vpop.f32.mrf.mxu2  ;;  %v1327_v60 = vpop.f32.mrf.mxu0 }
 0x155   :  { %v1057_v38 = vadd.f32 %v1017_v59, %v902_v54 }
 0x156   :  { %v865_v15 = vpop.f32.mrf.mxu1  ;;  %v1172_v61 = vpop.f32.mrf.mxu3 }
 0x157   :  { %v1212_v63 = vadd.f32 %v1172_v61, %v1057_v38  ;;  %v903_v0 = vadd.f32 %v865_v15, %v2619_v62 }
 0x159   :  { %v2819_v32 = vadd.f32 %v1327_v60, %v1212_v63 }
 0x15b   :  { %v1382_v2 = vadd.f32 %v1381_v57, %v2819_v32 }
 0x15c   :  { %v1020_v4 = vpop.f32.mrf.mxu2  ;;  %v1330_v28 = vpop.f32.mrf.mxu0 }
 0x15d   :  { %v1058_v50 = vadd.f32 %v1020_v4, %v903_v0 }
 0x15e   :  { %v868_v5 = vpop.f32.mrf.mxu1  ;;  %v1175_v7 = vpop.f32.mrf.mxu3 }
 0x15f   :  { %v1213_v9 = vadd.f32 %v1175_v7, %v1058_v50  ;;  %v904_v10 = vadd.f32 %v868_v5, %v2638_v11 }
 0x161   :  { %v2823_v23 = vadd.f32 %v1330_v28, %v1213_v9 }
 0x163   :  { %v1383_v13 = vadd.f32 %v1382_v2, %v2823_v23 }
 0x164   :  { %v1023_v17 = vpop.f32.mrf.mxu2  ;;  %v1333_v39 = vpop.f32.mrf.mxu0 }
 0x165   :  { %v1059_v18 = vadd.f32 %v1023_v17, %v904_v10 }
 0x166   :  { %v871_v21 = vpop.f32.mrf.mxu1  ;;  %v1178_v36 = vpop.f32.mrf.mxu3 }
 0x167   :  { %v1214_v62 = vadd.f32 %v1178_v36, %v1059_v18  ;;  %v905_v26 = vadd.f32 %v871_v21, %v2657_v30 }
 0x169   :  { %v2827_v22 = vadd.f32 %v1333_v39, %v1214_v62 }
 0x16b   :  { %v1384_v31 = vadd.f32 %v1383_v13, %v2827_v22 }
 0x16c   :  { %v1026_v29 = vpop.f32.mrf.mxu2  ;;  %v1336_v33 = vpop.f32.mrf.mxu0 }
 0x16d   :  { %v1060_v34 = vadd.f32 %v1026_v29, %v905_v26 }
 0x16e   :  { %v874_v35 = vpop.f32.mrf.mxu1  ;;  %v1181_v55 = vpop.f32.mrf.mxu3 }
 0x16f   :  { %v1215_v11 = vadd.f32 %v1181_v55, %v1060_v34  ;;  %v906_v16 = vadd.f32 %v874_v35, %v2676_v46 }
 0x171   :  { %v2831_v37 = vadd.f32 %v1336_v33, %v1215_v11 }
 0x173   :  { %v1385_v41 = vadd.f32 %v1384_v31, %v2831_v37 }
 0x174   :  { %v1029_v43 = vpop.f32.mrf.mxu2  ;;  %v1339_v44 = vpop.f32.mrf.mxu0 }
 0x175   :  { %v1061_v3 = vadd.f32 %v1029_v43, %v906_v16 }
 0x176   :  { %v877_v12 = vpop.f32.mrf.mxu1  ;;  %v1184_v45 = vpop.f32.mrf.mxu3 }
 0x177   :  { %v1216_v30 = vadd.f32 %v1184_v45, %v1061_v3  ;;  %v907_v8 = vadd.f32 %v877_v12, %v2695_v58  ;;  %v1916_v45 = vmov 128.0  }
 0x178   :  { %1912 = vrcp.f32 %v1916_v45 }
 0x179   :  { %v2835_v47 = vadd.f32 %v1339_v44, %v1216_v30 }
 0x17b   :  { %v1386_v49 = vadd.f32 %v1385_v41, %v2835_v47 }
 0x17c   :  { %v1032_v19 = vpop.f32.mrf.mxu2  ;;  %v1342_v51 = vpop.f32.mrf.mxu0 }
 0x17d   :  { %v1062_v24 = vadd.f32 %v1032_v19, %v907_v8 }
 0x17e   :  { %v880_v52 = vpop.f32.mrf.mxu1  ;;  %v1187_v54 = vpop.f32.mrf.mxu3 }
 0x17f   :  { %v1217_v46 = vadd.f32 %v1187_v54, %v1062_v24  ;;  %v908_v57 = vadd.f32 %v880_v52, %v2714_v6  ;;  %v1913_v19 = vpop.eup %1912 }
 0x180   :  { %vm1405_vm1 = vweird.f32 %v1913_v19 }
 0x181   :  { %v2839_v56 = vadd.f32 %v1342_v51, %v1217_v46 }
 0x183   :  { %v1387_v59 = vadd.f32 %v1386_v49, %v2839_v56 }
 0x184   :  { %v1035_v60 = vpop.f32.mrf.mxu2  ;;  %v1345_v38 = vpop.f32.mrf.mxu0 }
 0x185   :  { %v1063_v15 = vadd.f32 %v1035_v60, %v908_v57 }
 0x186   :  { %v883_v61 = vpop.f32.mrf.mxu1  ;;  %v1190_v63 = vpop.f32.mrf.mxu3 }
 0x187   :  { %v1218_v58 = vadd.f32 %v1190_v63, %v1063_v15  ;;  %v909_v2 = vadd.f32 %v883_v61, %v2733_v25 }
 0x189   :  { %v2843_v0 = vadd.f32 %v1345_v38, %v1218_v58 }
 0x18b   :  { %v1388_v4 = vadd.f32 %v1387_v59, %v2843_v0  ;;  %v1401_v59 = vmul.f32 128.0, %v1913_v19 }
 0x18c   :  { %v1038_v28 = vpop.f32.mrf.mxu2  ;;  %v1348_v50 = vpop.f32.mrf.mxu0 }
 0x18d   :  { %v1064_v5 = vadd.f32 %v1038_v28, %v909_v2  ;;  %v1402_v38 = vsub.f32 1.0, %v1401_v59 }
 0x18e   :  { %v886_v7 = vpop.f32.mrf.mxu1  ;;  %v1193_v9 = vpop.f32.mrf.mxu3 }
 0x18f   :  { %v1219_v6 = vadd.f32 %v1193_v9, %v1064_v5  ;;  %v910_v13 = vadd.f32 %v886_v7, %v2752_v42  ;;  %v1403_v63 = vmul.f32 %v1913_v19, %v1402_v38 }
 0x191   :  { %v2847_v10 = vadd.f32 %v1348_v50, %v1219_v6 }
 0x193   :  { %v1389_v17 = vadd.f32 %v1388_v4, %v2847_v10  ;;  %v1404_v4 = vadd.f32 %v1913_v19, %v1403_v63 }
 0x194   :  { %v1041_v39 = vpop.f32.mrf.mxu2  ;;  %v1351_v18 = vpop.f32.mrf.mxu0 }
 0x195   :  { %v1065_v21 = vadd.f32 %v1041_v39, %v910_v13  ;;  %v1406_v5 = vsel %vm1405_vm1, %v1913_v19, %v1404_v4 }
 0x196   :  { %v889_v36 = vpop.f32.mrf.mxu1  ;;  %v1196_v62 = vpop.f32.mrf.mxu3 }
 0x197   :  { %v1220_v25 = vadd.f32 %v1196_v62, %v1065_v21  ;;  %v911_v31 = vadd.f32 %v889_v36, %v2771_v53 }
 0x199   :  { %v1375_v26 = vadd.f32 %v1351_v18, %v1220_v25 }
 0x19b   :  { %v1390_v29 = vadd.f32 %v1389_v17, %v1375_v26 }
 0x19c   :  { %v1044_v33 = vpop.f32.mrf.mxu2  ;;  %v1354_v34 = vpop.f32.mrf.mxu0 }
 0x19d   :  { %v1066_v35 = vadd.f32 %v1044_v33, %v911_v31 }
 0x19e   :  { %v892_v55 = vpop.f32.mrf.mxu1  ;;  %v1199_v11 = vpop.f32.mrf.mxu3 }
 0x19f   :  { %v1221_v16 = vadd.f32 %v1199_v11, %v1066_v35  ;;  %v912_v42 = vadd.f32 %v892_v55, %v2790_v1 }
 0x1a1   :  { %v1376_v41 = vadd.f32 %v1354_v34, %v1221_v16 }
 0x1a3   :  { %v1391_v43 = vadd.f32 %v1390_v29, %v1376_v41 }
 0x1a4   :  { %v1047_v44 = vpop.f32.mrf.mxu2  ;;  %v1357_v3 = vpop.f32.mrf.mxu0 }
 0x1a5   :  { %v1067_v12 = vadd.f32 %v1047_v44, %v912_v42 }
 0x1a6   :  { %v1202_v30 = vpop.f32.mrf.mxu3  ;;  %v895_v49 = vpop.f32.mrf.mxu1 }
 0x1a7   :  { %v1222_v8 = vadd.f32 %v1202_v30, %v1067_v12  ;;  %v913_v51 = vadd.f32 %v895_v49, %v2801_v14 }
 0x1a9   :  { %v1377_v53 = vadd.f32 %v1357_v3, %v1222_v8 }
 0x1ab   :  { %v1392_v24 = vadd.f32 %v1391_v43, %v1377_v53 }
 0x1ac   :  { %v1050_v52 = vpop.f32.mrf.mxu2  ;;  %v1360_v57 = vpop.f32.mrf.mxu0 }
 0x1ad   :  { %v1068_v54 = vadd.f32 %v1050_v52, %v913_v51 }
 0x1ae   :  { %v1205_v46 = vpop.f32.mrf.mxu3 }
 0x1af   :  { %v1223_v1 = vadd.f32 %v1205_v46, %v1068_v54 }
 0x1b1   :  { %v1378_v60 = vadd.f32 %v1360_v57, %v1223_v1 }
 0x1b3   :  { %v1393_v15 = vadd.f32 %v1392_v24, %v1378_v60 }
 0x1b5   :  { %v1394_v61 = vrot.slane %v1393_v15, 4 }
 0x1b7   :  { %v1395_v58 = vadd.f32 %v1394_v61, %v1393_v15 }
 0x1b9   :  { %v1396_v2 = vrot.slane %v1395_v58, 2 }
 0x1bb   :  { %v1397_v28 = vadd.f32 %v1396_v2, %v1395_v58 }
 0x1bd   :  { %v1398_v50 = vrot.slane %v1397_v28, 1 }
 0x1bf   :  { %v1399_v14 = vadd.f32 %v1398_v50, %v1397_v28  ;;  %v1462_v50 = vld [vmem:[%s3003_s2] sm:$0x1] }
 0x1c1   :  { %v1407_v7 = vmul.f32 %v1406_v5, %v1399_v14 }
 0x1c3   :  { %v2855_v9 = vsub.f32 %v2804_v27, %v1407_v7  ;;  %v2858_v6 = vsub.f32 %v2807_v40, %v1407_v7  ;;  %v2861_v13 = vsub.f32 %v2812_v48, %v1407_v7  ;;  %v2864_v17 = vsub.f32 %v2816_v20, %v1407_v7 }
 0x1c4   :  { %v2867_v39 = vsub.f32 %v2819_v32, %v1407_v7  ;;  %v2870_v18 = vsub.f32 %v2823_v23, %v1407_v7  ;;  %v2873_v21 = vsub.f32 %v2827_v22, %v1407_v7  ;;  %v2876_v27 = vsub.f32 %v2831_v37, %v1407_v7 }
 0x1c5   :  { %v2879_v40 = vsub.f32 %v2835_v47, %v1407_v7  ;;  %v2882_v48 = vsub.f32 %v2839_v56, %v1407_v7  ;;  %v2885_v20 = vsub.f32 %v2843_v0, %v1407_v7  ;;  %v2888_v32 = vsub.f32 %v2847_v10, %v1407_v7 }
 0x1c6   :  { %v2890_v23 = vsub.f32 %v1375_v26, %v1407_v7  ;;  %v2892_v36 = vsub.f32 %v1376_v41, %v1407_v7  ;;  %v2894_v22 = vsub.f32 %v1377_v53, %v1407_v7  ;;  %v2896_v37 = vsub.f32 %v1378_v60, %v1407_v7 }
 0x1c7   :  { %v1424_v47 = vmul.f32 %v2855_v9, %v2855_v9  ;;  %v1425_v56 = vmul.f32 %v2858_v6, %v2858_v6  ;;  %v1426_v0 = vmul.f32 %v2861_v13, %v2861_v13  ;;  %v1427_v10 = vmul.f32 %v2864_v17, %v2864_v17 }
 0x1c8   :  { %v1428_v26 = vmul.f32 %v2867_v39, %v2867_v39  ;;  %v1429_v29 = vmul.f32 %v2870_v18, %v2870_v18  ;;  %v1430_v34 = vmul.f32 %v2873_v21, %v2873_v21  ;;  %v1431_v55 = vmul.f32 %v2876_v27, %v2876_v27 }
 0x1c9   :  { %v1440_v62 = vadd.f32 %v1425_v56, %v1424_v47  ;;  %v1432_v16 = vmul.f32 %v2879_v40, %v2879_v40  ;;  %v1433_v42 = vmul.f32 %v2882_v48, %v2882_v48  ;;  %v1434_v44 = vmul.f32 %v2885_v20, %v2885_v20 }
 0x1ca   :  { %v1435_v12 = vmul.f32 %v2888_v32, %v2888_v32  ;;  %v1436_v30 = vmul.f32 %v2890_v23, %v2890_v23  ;;  %v1437_v49 = vmul.f32 %v2892_v36, %v2892_v36  ;;  %v1438_v19 = vmul.f32 %v2894_v22, %v2894_v22 }
 0x1cb   :  { %v1441_v25 = vadd.f32 %v1440_v62, %v1426_v0  ;;  %v1439_v24 = vmul.f32 %v2896_v37, %v2896_v37 }
 0x1cd   :  { %v1442_v31 = vadd.f32 %v1441_v25, %v1427_v10  ;;  %v1911_v10 = vld [vmem:[%s3002_s3] ss:$0 sm:$0xff] }
 0x1cf   :  { %v1443_v33 = vadd.f32 %v1442_v31, %v1428_v26 }
 0x1d1   :  { %v1444_v35 = vadd.f32 %v1443_v33, %v1429_v29 }
 0x1d3   :  { %v1445_v11 = vadd.f32 %v1444_v35, %v1430_v34 }
 0x1d5   :  { %v1446_v41 = vadd.f32 %v1445_v11, %v1431_v55 }
 0x1d7   :  { %v1447_v43 = vadd.f32 %v1446_v41, %v1432_v16 }
 0x1d9   :  { %v1448_v3 = vadd.f32 %v1447_v43, %v1433_v42 }
 0x1db   :  { %v1449_v45 = vadd.f32 %v1448_v3, %v1434_v44 }
 0x1dd   :  { %v1450_v8 = vadd.f32 %v1449_v45, %v1435_v12 }
 0x1df   :  { %v1451_v53 = vadd.f32 %v1450_v8, %v1436_v30 }
 0x1e1   :  { %v1452_v51 = vadd.f32 %v1451_v53, %v1437_v49 }
 0x1e3   :  { %v1453_v52 = vadd.f32 %v1452_v51, %v1438_v19 }
 0x1e5   :  { %v1454_v54 = vadd.f32 %v1453_v52, %v1439_v24 }
 0x1e7   :  { %v1455_v46 = vrot.slane %v1454_v54, 4 }
 0x1e9   :  { %v1456_v57 = vadd.f32 %v1455_v46, %v1454_v54 }
 0x1eb   :  { %v1457_v59 = vrot.slane %v1456_v57, 2 }
 0x1ed   :  { %v1458_v1 = vadd.f32 %v1457_v59, %v1456_v57 }
 0x1ef   :  { %v1459_v60 = vrot.slane %v1458_v1, 1 }
 0x1f1   :  { %v1460_v38 = vadd.f32 %v1459_v60, %v1458_v1 }
 0x1f3   :  { %v1461_v15 = vmul.f32 %v1460_v38, %v1406_v5 }
 0x1f5   :  { %v1463_v61 = vadd.f32 1e-05, %v1461_v15 }
 0x1f7   :  { %1914 = vrsqrt.f32 %v1463_v61  ;;  %vm1470_vm3 = vweird.f32 %v1463_v61 }
 0x1fd   :  { %v1915_v63 = vpop.eup %1914 }
 0x1fe   :  { %v1465_v58 = vmul.f32 %v1915_v63, %v1463_v61  ;;  %vm1471_vm2 = vweird.f32 %v1915_v63 }
 0x1ff   :  { %vm1472_vm4 = vmor %vm1470_vm3, %vm1471_vm2 }
 0x200   :  { %v1466_v2 = vmul.f32 %v1915_v63, %v1465_v58 }
 0x202   :  { %v1467_v4 = vmul.f32 0.5, %v1466_v2 }
 0x204   :  { %v1468_v28 = vsub.f32 1.5, %v1467_v4 }
 0x206   :  { %v1469_v14 = vmul.f32 %v1915_v63, %v1468_v28 }
 0x208   :  { %v1473_v7 = vsel %vm1472_vm4, %v1915_v63, %v1469_v14 }
 0x209   :  { %v1474_v47 = vmul.f32 %v1473_v7, %v1462_v50 }
 0x20b   :  { %v1476_v56 = vperm.slane %v1474_v47, 0 }
 0x20d   :  { %v1478_v5 = vmul.f32 %v1476_v56, %v2855_v9  ;;  %v1479_v0 = vmul.f32 %v1476_v56, %v2858_v6  ;;  %v1480_v62 = vmul.f32 %v1476_v56, %v2861_v13  ;;  %v1481_v25 = vmul.f32 %v1476_v56, %v2864_v17 }
 0x20e   :  { %v1482_v26 = vmul.f32 %v1476_v56, %v2867_v39  ;;  %v1483_v31 = vmul.f32 %v1476_v56, %v2870_v18  ;;  %v1486_v29 = vmul.f32 %v1476_v56, %v2879_v40  ;;  %v1487_v33 = vmul.f32 %v1476_v56, %v2882_v48 }
 0x20f   :  { %v1488_v9 = vmul.f32 %v1476_v56, %v2885_v20  ;;  %v1489_v6 = vmul.f32 %v1476_v56, %v2888_v32  ;;  %v1490_v13 = vmul.f32 %v1476_v56, %v2890_v23  ;;  %v1491_v34 = vmul.f32 %v1476_v56, %v2892_v36 }
 0x210   :  { %v1492_v35 = vmul.f32 %v1476_v56, %v2894_v22  ;;  %v1493_v17 = vmul.f32 %v1476_v56, %v2896_v37  ;;  %v1484_v39 = vmul.f32 %v1476_v56, %v2873_v21  ;;  %v1498_v55 = vadd.f32 %v1911_v10, %v1478_v5 }
 0x211   :  { %v1499_v18 = vadd.f32 %v1911_v10, %v1479_v0  ;;  %v1500_v11 = vadd.f32 %v1911_v10, %v1480_v62  ;;  %v1485_v40 = vmul.f32 %v1476_v56, %v2876_v27  ;;  %v1501_v48 = vadd.f32 %v1911_v10, %v1481_v25 }
 0x212   :  { %v1502_v16 = vadd.f32 %v1911_v10, %v1482_v26  ;;  %v1503_v20 = vadd.f32 %v1911_v10, %v1483_v31  ;;  %v1504_v41 = vadd.f32 %v1911_v10, %v1484_v39  ;;  %v1514_v32 = vmax.f32 %v1498_v55, 0.0 }
 0x213   :  { %v1515_v42 = vmax.f32 %v1499_v18, 0.0  ;;  %v1516_v23 = vmax.f32 %v1500_v11, 0.0  ;;  %v1505_v43 = vadd.f32 %v1911_v10, %v1485_v40  ;;  %v1517_v36 = vmax.f32 %v1501_v48, 0.0 }
 0x214   :  { %v1506_v44 = vadd.f32 %v1911_v10, %v1486_v29  ;;  %v1518_v22 = vmax.f32 %v1502_v16, 0.0  ;;  %1530 = vst [vmem:[%s3004_s4] sm:$0xff] %v1514_v32  ;;  %v1507_v21 = vadd.f32 %v1911_v10, %v1487_v33  ;;  %v1519_v37 = vmax.f32 %v1503_v20, 0.0 }
 0x215   :  { %1531 = vst [vmem:[%s3004_s4 + $0x8] sm:$0xff] %v1515_v42  ;;  %v1508_v27 = vadd.f32 %v1911_v10, %v1488_v9  ;;  %v1520_v3 = vmax.f32 %v1504_v41, 0.0  ;;  %v1509_v12 = vadd.f32 %v1911_v10, %v1489_v6  ;;  %v1521_v45 = vmax.f32 %v1505_v43, 0.0 }
 0x216   :  { %1532 = vst [vmem:[%s3004_s4 + $0x10] sm:$0xff] %v1516_v23  ;;  %v1510_v30 = vadd.f32 %v1911_v10, %v1490_v13  ;;  %v1522_v8 = vmax.f32 %v1506_v44, 0.0  ;;  %v1511_v49 = vadd.f32 %v1911_v10, %v1491_v34  ;;  %v1523_v53 = vmax.f32 %v1507_v21, 0.0 }
 0x217   :  { %1533 = vst [vmem:[%s3004_s4 + $0x18] sm:$0xff] %v1517_v36  ;;  %v1512_v19 = vadd.f32 %v1911_v10, %v1492_v35  ;;  %v1524_v51 = vmax.f32 %v1508_v27, 0.0  ;;  %v1513_v24 = vadd.f32 %v1911_v10, %v1493_v17  ;;  %v1525_v52 = vmax.f32 %v1509_v12, 0.0 }
 0x218   :  { %1534 = vst [vmem:[%s3004_s4 + $0x20] sm:$0xff] %v1518_v22  ;;  %v1526_v54 = vmax.f32 %v1510_v30, 0.0  ;;  %v1527_v46 = vmax.f32 %v1511_v49, 0.0 }
 0x219   :  { %1535 = vst [vmem:[%s3004_s4 + $0x28] sm:$0xff] %v1519_v37  ;;  %v1528_v57 = vmax.f32 %v1512_v19, 0.0  ;;  %v1529_v59 = vmax.f32 %v1513_v24, 0.0 }
 0x21a   :  { %1536 = vst [vmem:[%s3004_s4 + $0x30] sm:$0xff] %v1520_v3 }
 0x21b   :  { %1537 = vst [vmem:[%s3004_s4 + $0x38] sm:$0xff] %v1521_v45 }
 0x21c   :  { %1538 = vst [vmem:[%s3004_s4 + $0x40] sm:$0xff] %v1522_v8 }
 0x21d   :  { %1539 = vst [vmem:[%s3004_s4 + $0x48] sm:$0xff] %v1523_v53 }
 0x21e   :  { %1540 = vst [vmem:[%s3004_s4 + $0x50] sm:$0xff] %v1524_v51 }
 0x21f   :  { %1541 = vst [vmem:[%s3004_s4 + $0x58] sm:$0xff] %v1525_v52 }
 0x220   :  { %1542 = vst [vmem:[%s3004_s4 + $0x60] sm:$0xff] %v1526_v54 }
 0x221   :  { %1543 = vst [vmem:[%s3004_s4 + $0x68] sm:$0xff] %v1527_v46 }
 0x222   :  { %1544 = vst [vmem:[%s3004_s4 + $0x70] sm:$0xff] %v1528_v57 }
 0x223   :  { %1545 = vst [vmem:[%s3004_s4 + $0x78] sm:$0xff] %v1529_v59 }

// kernel: _lambda_.9
= control target key start
LH: loop header
LB: loop body
LE: loop exit
PB: predicated region body
PF: predicated region fallthrough
CT: control target
= control target key end

     0   :  { %s2697_s1 = inlined_call_operand.vmem [shape: f32[9,128,128], index: 1, kind: input, shape index: {}]   ;;  %s2698_s0 = inlined_call_operand.vmem [shape: f32[2,10,10,128], index: 0, kind: input, shape index: {}]   ;;  %s2699_s3 = inlined_call_operand.vmem [shape: f32[1,128], index: 3, kind: input, shape index: {}]   ;;  %s2700_s2 = inlined_call_operand.vmem [shape: f32[1,128], index: 2, kind: input, shape index: {}]   ;;  %s2701_s4 = inlined_call_operand.vmem [shape: f32[128,128], index: 4, kind: input, shape index: {}]   ;;  %s2702_s5 = inlined_call_operand.vmem [shape: f32[128,128], index: 5, kind: output, shape index: {}]  }
   0x1   :  { %v1233_v0 = vld [vmem:[%s2697_s1 + $0xf8] sm:$0xff]  ;;  %v1232_v1 = vld [vmem:[%s2697_s1 + $0xf0] sm:$0xff]  ;;  %v1231_v2 = vld [vmem:[%s2697_s1 + $0xe8] sm:$0xff] }
   0x2   :  { %1442 = vmatpush.msra.mxu1 %v1233_v0  ;;  %1443 = vmatpush.msra.mxu2 %v1233_v0  ;;  %v1230_v3 = vld [vmem:[%s2697_s1 + $0xe0] sm:$0xff]  ;;  %v1229_v4 = vld [vmem:[%s2697_s1 + $0xd8] sm:$0xff]  ;;  %v1228_v5 = vld [vmem:[%s2697_s1 + $0xd0] sm:$0xff] }
   0x3   :  { %1444 = vmatpush.msra.mxu3 %v1233_v0  ;;  %85 = vmatpush.msra.mxu0 %v1233_v0  ;;  %v1227_v6 = vld [vmem:[%s2697_s1 + $0xc8] sm:$0xff]  ;;  %v1226_v7 = vld [vmem:[%s2697_s1 + $0xc0] sm:$0xff]  ;;  %v1225_v8 = vld [vmem:[%s2697_s1 + $0xb8] sm:$0xff] }
   0x4   :  { %1445 = vmatpush.msra.mxu1 %v1232_v1  ;;  %1446 = vmatpush.msra.mxu2 %v1232_v1  ;;  %v1224_v9 = vld [vmem:[%s2697_s1 + $0xb0] sm:$0xff]  ;;  %v1223_v10 = vld [vmem:[%s2697_s1 + $0xa8] sm:$0xff]  ;;  %v1222_v11 = vld [vmem:[%s2697_s1 + $0xa0] sm:$0xff] }
   0x5   :  { %1447 = vmatpush.msra.mxu3 %v1232_v1  ;;  %86 = vmatpush.msra.mxu0 %v1232_v1  ;;  %v1221_v12 = vld [vmem:[%s2697_s1 + $0x98] sm:$0xff]  ;;  %v1220_v13 = vld [vmem:[%s2697_s1 + $0x90] sm:$0xff]  ;;  %v1219_v14 = vld [vmem:[%s2697_s1 + $0x88] sm:$0xff] }
   0x6   :  { %1448 = vmatpush.msra.mxu1 %v1231_v2  ;;  %1449 = vmatpush.msra.mxu2 %v1231_v2  ;;  %v1218_v15 = vld [vmem:[%s2697_s1 + $0x80] sm:$0xff]  ;;  %v1249_v18 = vld [vmem:[%s2697_s1 + $0x178] sm:$0xff]  ;;  %v1248_v21 = vld [vmem:[%s2697_s1 + $0x170] sm:$0xff] }
   0x7   :  { %1450 = vmatpush.msra.mxu3 %v1231_v2  ;;  %87 = vmatpush.msra.mxu0 %v1231_v2  ;;  %v1578_v16 = vld [vmem:[%s2698_s0 + $0x41] sm:$0xff]  ;;  %v51_v19 = vld [vmem:[%s2697_s1 + $0x78] sm:$0xff]  ;;  %v50_v23 = vld [vmem:[%s2697_s1 + $0x70] sm:$0xff] }
   0x8   :  { %1451 = vmatpush.msra.mxu1 %v1230_v3  ;;  %1452 = vmatpush.msra.mxu2 %v1230_v3  ;;  %v60_v17 = vld [vmem:[%s2698_s0 + $0xa1] sm:$0xff]  ;;  %v1281_v22 = vld [vmem:[%s2697_s1 + $0x1f8] sm:$0xff]  ;;  %v1280_v25 = vld [vmem:[%s2697_s1 + $0x1f0] sm:$0xff] }
   0x9   :  { %1453 = vmatpush.msra.mxu3 %v1230_v3  ;;  %88 = vmatpush.msra.mxu0 %v1230_v3  ;;  %v1592_v20 = vld [vmem:[%s2698_s0 + $0xe1] sm:$0xff]  ;;  %v1629_v31 = vld [vmem:[%s2698_s0 + $0xb1] sm:$0xff] }
   0xa   :  { %1454 = vmatpush.msra.mxu1 %v1229_v4  ;;  %1455 = vmatpush.msra.mxu2 %v1229_v4  ;;  %v1247_v24 = vld [vmem:[%s2697_s1 + $0x168] sm:$0xff]  ;;  %v1246_v28 = vld [vmem:[%s2697_s1 + $0x160] sm:$0xff]  ;;  %v1634_v32 = vld [vmem:[%s2698_s0 + $0x51] sm:$0xff] }
   0xb   :  { %1456 = vmatpush.msra.mxu3 %v1229_v4  ;;  %89 = vmatpush.msra.mxu0 %v1229_v4  ;;  %v49_v26 = vld [vmem:[%s2697_s1 + $0x68] sm:$0xff]  ;;  %v48_v30 = vld [vmem:[%s2697_s1 + $0x60] sm:$0xff]  ;;  %v1245_v33 = vld [vmem:[%s2697_s1 + $0x158] sm:$0xff] }
   0xc   :  { %1457 = vmatpush.msra.mxu1 %v1228_v5  ;;  %1458 = vmatpush.msra.mxu2 %v1228_v5  ;;  %v52_v27 = vld [vmem:[%s2698_s0 + $0x1] sm:$0xff]  ;;  %v47_v35 = vld [vmem:[%s2697_s1 + $0x58] sm:$0xff]  ;;  %v1244_v37 = vld [vmem:[%s2697_s1 + $0x150] sm:$0xff] }
   0xd   :  { %1459 = vmatpush.msra.mxu3 %v1228_v5  ;;  %90 = vmatpush.msra.mxu0 %v1228_v5  ;;  %v1279_v29 = vld [vmem:[%s2697_s1 + $0x1e8] sm:$0xff]  ;;  %v1278_v34 = vld [vmem:[%s2697_s1 + $0x1e0] sm:$0xff]  ;;  %v1649_v36 = vld [vmem:[%s2698_s0 + $0xf1] sm:$0xff] }
   0xe   :  { %1460 = vmatpush.msra.mxu1 %v1227_v6  ;;  %1461 = vmatpush.msra.mxu2 %v1227_v6  ;;  %v1277_v38 = vld [vmem:[%s2697_s1 + $0x1d8] sm:$0xff]  ;;  %v46_v40 = vld [vmem:[%s2697_s1 + $0x50] sm:$0xff]  ;;  %v1243_v41 = vld [vmem:[%s2697_s1 + $0x148] sm:$0xff] }
   0xf   :  { %1462 = vmatpush.msra.mxu3 %v1227_v6  ;;  %91 = vmatpush.msra.mxu0 %v1227_v6  ;;  %v1313_v39 = vld [vmem:[%s2697_s1 + $0x278] sm:$0xff]  ;;  %v1276_v42 = vld [vmem:[%s2697_s1 + $0x1d0] sm:$0xff]  ;;  %v45_v44 = vld [vmem:[%s2697_s1 + $0x48] sm:$0xff] }
  0x10   :  { %1463 = vmatpush.msra.mxu1 %v1226_v7  ;;  %1464 = vmatpush.msra.mxu2 %v1226_v7  ;;  %v1312_v43 = vld [vmem:[%s2697_s1 + $0x270] sm:$0xff]  ;;  %v1242_v45 = vld [vmem:[%s2697_s1 + $0x140] sm:$0xff]  ;;  %v1275_v46 = vld [vmem:[%s2697_s1 + $0x1c8] sm:$0xff] }
  0x11   :  { %1465 = vmatpush.msra.mxu3 %v1226_v7  ;;  %92 = vmatpush.msra.mxu0 %v1226_v7  ;;  %v1311_v47 = vld [vmem:[%s2697_s1 + $0x268] sm:$0xff]  ;;  %v44_v48 = vld [vmem:[%s2697_s1 + $0x40] sm:$0xff]  ;;  %v1241_v51 = vld [vmem:[%s2697_s1 + $0x138] sm:$0xff] }
  0x12   :  { %1466 = vmatpush.msra.mxu1 %v1225_v8  ;;  %1467 = vmatpush.msra.mxu2 %v1225_v8  ;;  %v1692_v49 = vld [vmem:[%s2698_s0 + $0xc1] sm:$0xff]  ;;  %v43_v54 = vld [vmem:[%s2697_s1 + $0x38] sm:$0xff]  ;;  %v1240_v57 = vld [vmem:[%s2697_s1 + $0x130] sm:$0xff] }
  0x13   :  { %1468 = vmatpush.msra.mxu3 %v1225_v8  ;;  %93 = vmatpush.msra.mxu0 %v1225_v8  ;;  %v1697_v50 = vld [vmem:[%s2698_s0 + $0x61] sm:$0xff]  ;;  %v1715_v55 = vld [vmem:[%s2698_s0 + $0x11] sm:$0xff] }
  0x14   :  { %1469 = vmatpush.msra.mxu1 %v1224_v9  ;;  %1470 = vmatpush.msra.mxu2 %v1224_v9  ;;  %v1274_v52 = vld [vmem:[%s2697_s1 + $0x1c0] sm:$0xff]  ;;  %v1273_v58 = vld [vmem:[%s2697_s1 + $0x1b8] sm:$0xff]  ;;  %v42_v60 = vld [vmem:[%s2697_s1 + $0x30] sm:$0xff] }
  0x15   :  { %1471 = vmatpush.msra.mxu3 %v1224_v9  ;;  %94 = vmatpush.msra.mxu0 %v1224_v9  ;;  %v1310_v53 = vld [vmem:[%s2697_s1 + $0x260] sm:$0xff]  ;;  %v1309_v59 = vld [vmem:[%s2697_s1 + $0x258] sm:$0xff]  ;;  %v1239_v61 = vld [vmem:[%s2697_s1 + $0x128] sm:$0xff] }
  0x16   :  { %1472 = vmatpush.msra.mxu1 %v1223_v10  ;;  %1473 = vmatpush.msra.mxu2 %v1223_v10  ;;  %v1721_v56 = vld [vmem:[%s2698_s0 + $0x101] sm:$0xff]  ;;  %v1272_v62 = vld [vmem:[%s2697_s1 + $0x1b0] sm:$0xff]  ;;  %v1237_v7 = vld [vmem:[%s2697_s1 + $0x118] sm:$0xff] }
  0x17   :  { %1474 = vmatpush.msra.mxu3 %v1223_v10  ;;  %95 = vmatpush.msra.mxu0 %v1223_v10  ;;  %v1308_v63 = vld [vmem:[%s2697_s1 + $0x250] sm:$0xff]  ;;  %v41_v0 = vld [vmem:[%s2697_s1 + $0x28] sm:$0xff]  ;;  %v1238_v1 = vld [vmem:[%s2697_s1 + $0x120] sm:$0xff] }
  0x18   :  { %1475 = vmatpush.msra.mxu1 %v1222_v11  ;;  %1476 = vmatpush.msra.mxu2 %v1222_v11  ;;  %v1271_v2 = vld [vmem:[%s2697_s1 + $0x1a8] sm:$0xff]  ;;  %v40_v4 = vld [vmem:[%s2697_s1 + $0x20] sm:$0xff]  ;;  %v1764_v5 = vld [vmem:[%s2698_s0 + $0xd1] sm:$0xff] }
  0x19   :  { %1477 = vmatpush.msra.mxu3 %v1222_v11  ;;  %96 = vmatpush.msra.mxu0 %v1222_v11  ;;  %v1307_v3 = vld [vmem:[%s2697_s1 + $0x248] sm:$0xff]  ;;  %v1769_v6 = vld [vmem:[%s2698_s0 + $0x71] sm:$0xff]  ;;  %v1270_v8 = vld [vmem:[%s2697_s1 + $0x1a0] sm:$0xff] }
  0x1a   :  { %1478 = vmatpush.msra.mxu1 %v1221_v12  ;;  %1479 = vmatpush.msra.mxu2 %v1221_v12  ;;  %v1306_v9 = vld [vmem:[%s2697_s1 + $0x240] sm:$0xff]  ;;  %v39_v10 = vld [vmem:[%s2697_s1 + $0x18] sm:$0xff] }
  0x1b   :  { %1480 = vmatpush.msra.mxu3 %v1221_v12  ;;  %97 = vmatpush.msra.mxu0 %v1221_v12  ;;  %v1787_v11 = vld [vmem:[%s2698_s0 + $0x21] sm:$0xff]  ;;  %v1793_v12 = vld [vmem:[%s2698_s0 + $0x111] sm:$0xff] }
  0x1c   :  { %1481 = vmatpush.msra.mxu1 %v1220_v13  ;;  %1482 = vmatpush.msra.mxu2 %v1220_v13 }
  0x1d   :  { %1483 = vmatpush.msra.mxu3 %v1220_v13  ;;  %98 = vmatpush.msra.mxu0 %v1220_v13  ;;  %v1236_v13 = vld [vmem:[%s2697_s1 + $0x110] sm:$0xff] }
  0x1e   :  { %1484 = vmatpush.msra.mxu1 %v1219_v14  ;;  %1485 = vmatpush.msra.mxu2 %v1219_v14 }
  0x1f   :  { %1486 = vmatpush.msra.mxu3 %v1219_v14  ;;  %99 = vmatpush.msra.mxu0 %v1219_v14  ;;  %v1269_v14 = vld [vmem:[%s2697_s1 + $0x198] sm:$0xff] }
  0x20   :  { %1487 = vmatpush.msra.mxu1 %v1218_v15  ;;  %1488 = vmatpush.msra.mxu2 %v1218_v15 }
  0x21   :  { %113 = vmatmul.f32.vlgmr.msra.gmra.mxu1 %v1578_v16  ;;  %125 = vmatmul.f32.vlgmr.msra.gmra.mxu2 %v60_v17  ;;  %v38_v17 = vld [vmem:[%s2697_s1 + $0x10] sm:$0xff] }
  0x22   :  { %248 = vmatpush.msrb.mxu2 %v1249_v18  ;;  %1489 = vmatpush.msra.mxu3 %v1218_v15  ;;  %v1235_v18 = vld [vmem:[%s2697_s1 + $0x108] sm:$0xff] }
  0x23   :  { %150 = vmatpush.msrb.mxu1 %v51_v19  ;;  %137 = vmatmul.f32.vlgmr.msra.gmra.mxu3 %v1592_v20  ;;  %v1268_v19 = vld [vmem:[%s2697_s1 + $0x190] sm:$0xff] }
  0x24   :  { %249 = vmatpush.msrb.mxu2 %v1248_v21  ;;  %363 = vmatpush.msrb.mxu3 %v1281_v22  ;;  %v1304_v21 = vld [vmem:[%s2697_s1 + $0x230] sm:$0xff]  ;;  %v37_v22 = vld [vmem:[%s2697_s1 + $0x8] sm:$0xff] }
  0x25   :  { %151 = vmatpush.msrb.mxu1 %v50_v23  ;;  %100 = vmatpush.msra.mxu0 %v1218_v15  ;;  %v1305_v15 = vld [vmem:[%s2697_s1 + $0x238] sm:$0xff]  ;;  %v1234_v23 = vld [vmem:[%s2697_s1 + $0x100] sm:$0xff] }
  0x26   :  { %250 = vmatpush.msrb.mxu2 %v1247_v24  ;;  %364 = vmatpush.msrb.mxu3 %v1280_v25  ;;  %v1267_v24 = vld [vmem:[%s2697_s1 + $0x188] sm:$0xff] }
  0x27   :  { %152 = vmatpush.msrb.mxu1 %v49_v26  ;;  %101 = vmatmul.f32.vlgmr.msra.gmra.mxu0 %v52_v27  ;;  %v1303_v25 = vld [vmem:[%s2697_s1 + $0x228] sm:$0xff]  ;;  %v36_v26 = vld [vmem:[%s2697_s1] sm:$0xff] }
  0x28   :  { %251 = vmatpush.msrb.mxu2 %v1246_v28  ;;  %365 = vmatpush.msrb.mxu3 %v1279_v29  ;;  %v215_v27 = vld [vmem:[%s2698_s0 + $0x2] sm:$0xff] }
  0x29   :  { %153 = vmatpush.msrb.mxu1 %v48_v30  ;;  %128 = vmatmul.f32.gmra.mxu2 %v1629_v31  ;;  %v20_v28 = vld [vmem:[%s2698_s0] sm:$0xff] }
  0x2a   :  { %116 = vmatmul.f32.gmra.mxu1 %v1634_v32  ;;  %252 = vmatpush.msrb.mxu2 %v1245_v33  ;;  %v1266_v29 = vld [vmem:[%s2697_s1 + $0x180] sm:$0xff]  ;;  %v1377_v33 = vld [vmem:[%s2697_s1 + $0x378] sm:$0xff] }
  0x2b   :  { %366 = vmatpush.msrb.mxu3 %v1278_v34  ;;  %154 = vmatpush.msrb.mxu1 %v47_v35  ;;  %v1302_v30 = vld [vmem:[%s2697_s1 + $0x220] sm:$0xff]  ;;  %v1851_v34 = vld [vmem:[%s2698_s0 + $0x31] sm:$0xff] }
  0x2c   :  { %140 = vmatmul.f32.gmra.mxu3 %v1649_v36  ;;  %253 = vmatpush.msrb.mxu2 %v1244_v37  ;;  %v1250_v35 = vld [vmem:[%s2698_s0 + $0x10] sm:$0xff]  ;;  %v1301_v37 = vld [vmem:[%s2697_s1 + $0x218] sm:$0xff] }
  0x2d   :  { %367 = vmatpush.msrb.mxu3 %v1277_v38  ;;  %477 = vmatpush.msrb.mxu0 %v1313_v39  ;;  %v1409_v38 = vld [vmem:[%s2697_s1 + $0x3f8] sm:$0xff] }
  0x2e   :  { %155 = vmatpush.msrb.mxu1 %v46_v40  ;;  %254 = vmatpush.msrb.mxu2 %v1243_v41  ;;  %v1345_v39 = vld [vmem:[%s2697_s1 + $0x2f8] sm:$0xff]  ;;  %v1376_v40 = vld [vmem:[%s2697_s1 + $0x370] sm:$0xff] }
  0x2f   :  { %368 = vmatpush.msrb.mxu3 %v1276_v42  ;;  %478 = vmatpush.msrb.mxu0 %v1312_v43  ;;  %v1300_v41 = vld [vmem:[%s2697_s1 + $0x210] sm:$0xff] }
  0x30   :  { %156 = vmatpush.msrb.mxu1 %v45_v44  ;;  %255 = vmatpush.msrb.mxu2 %v1242_v45  ;;  %v1408_v42 = vld [vmem:[%s2697_s1 + $0x3f0] sm:$0xff]  ;;  %v1375_v44 = vld [vmem:[%s2697_s1 + $0x368] sm:$0xff] }
  0x31   :  { %369 = vmatpush.msrb.mxu3 %v1275_v46  ;;  %479 = vmatpush.msrb.mxu0 %v1311_v47  ;;  %v1344_v43 = vld [vmem:[%s2697_s1 + $0x2f0] sm:$0xff]  ;;  %v1299_v45 = vld [vmem:[%s2697_s1 + $0x208] sm:$0xff] }
  0x32   :  { %157 = vmatpush.msrb.mxu1 %v44_v48  ;;  %131 = vmatmul.f32.gmra.mxu2 %v1692_v49  ;;  %v1887_v46 = vld [vmem:[%s2698_s0 + $0x12] sm:$0xff]  ;;  %v1407_v47 = vld [vmem:[%s2697_s1 + $0x3e8] sm:$0xff]  ;;  %v1298_v48 = vld [vmem:[%s2697_s1 + $0x200] sm:$0xff] }
  0x33   :  { %119 = vmatmul.f32.gmra.mxu1 %v1697_v50  ;;  %256 = vmatpush.msrb.mxu2 %v1241_v51  ;;  %v1343_v51 = vld [vmem:[%s2697_s1 + $0x2e8] sm:$0xff] }
  0x34   :  { %370 = vmatpush.msrb.mxu3 %v1274_v52  ;;  %480 = vmatpush.msrb.mxu0 %v1310_v53  ;;  %v1902_v52 = vld [vmem:[%s2698_s0 + $0x20] sm:$0xff]  ;;  %v1441_v53 = vld [vmem:[%s2697_s1 + $0x478] sm:$0xff] }
  0x35   :  { %158 = vmatpush.msrb.mxu1 %v43_v54  ;;  %104 = vmatmul.f32.gmra.mxu0 %v1715_v55  ;;  %v1374_v54 = vld [vmem:[%s2697_s1 + $0x360] sm:$0xff] }
  0x36   :  { %143 = vmatmul.f32.gmra.mxu3 %v1721_v56  ;;  %257 = vmatpush.msrb.mxu2 %v1240_v57  ;;  %v1406_v57 = vld [vmem:[%s2697_s1 + $0x3e0] sm:$0xff] }
  0x37   :  { %371 = vmatpush.msrb.mxu3 %v1273_v58  ;;  %481 = vmatpush.msrb.mxu0 %v1309_v59  ;;  %v1342_v58 = vld [vmem:[%s2697_s1 + $0x2e0] sm:$0xff]  ;;  %v1440_v59 = vld [vmem:[%s2697_s1 + $0x470] sm:$0xff] }
  0x38   :  { %159 = vmatpush.msrb.mxu1 %v42_v60  ;;  %258 = vmatpush.msrb.mxu2 %v1239_v61  ;;  %v1373_v60 = vld [vmem:[%s2697_s1 + $0x358] sm:$0xff] }
  0x39   :  { %372 = vmatpush.msrb.mxu3 %v1272_v62  ;;  %482 = vmatpush.msrb.mxu0 %v1308_v63  ;;  %v1405_v61 = vld [vmem:[%s2697_s1 + $0x3d8] sm:$0xff]  ;;  %v1439_v63 = vld [vmem:[%s2697_s1 + $0x468] sm:$0xff] }
  0x3a   :  { %160 = vmatpush.msrb.mxu1 %v41_v0  ;;  %259 = vmatpush.msrb.mxu2 %v1238_v1  ;;  %v1341_v62 = vld [vmem:[%s2697_s1 + $0x2d8] sm:$0xff]  ;;  %v1372_v0 = vld [vmem:[%s2697_s1 + $0x350] sm:$0xff]  ;;  %v1438_v1 = vld [vmem:[%s2697_s1 + $0x460] sm:$0xff] }
  0x3b   :  { %373 = vmatpush.msrb.mxu3 %v1271_v2  ;;  %483 = vmatpush.msrb.mxu0 %v1307_v3  ;;  %v1404_v2 = vld [vmem:[%s2697_s1 + $0x3d0] sm:$0xff] }
  0x3c   :  { %161 = vmatpush.msrb.mxu1 %v40_v4  ;;  %134 = vmatmul.f32.gmra.mxu2 %v1764_v5  ;;  %v1951_v3 = vld [vmem:[%s2698_s0 + $0x30] sm:$0xff]  ;;  %v1437_v4 = vld [vmem:[%s2697_s1 + $0x458] sm:$0xff] }
  0x3d   :  { %122 = vmatmul.f32.gmra.mxu1 %v1769_v6  ;;  %260 = vmatpush.msrb.mxu2 %v1237_v7  ;;  %v1340_v7 = vld [vmem:[%s2697_s1 + $0x2d0] sm:$0xff] }
  0x3e   :  { %374 = vmatpush.msrb.mxu3 %v1270_v8  ;;  %484 = vmatpush.msrb.mxu0 %v1306_v9  ;;  %v1371_v8 = vld [vmem:[%s2697_s1 + $0x348] sm:$0xff] }
  0x3f   :  { %162 = vmatpush.msrb.mxu1 %v39_v10  ;;  %107 = vmatmul.f32.gmra.mxu0 %v1787_v11  ;;  %v1403_v9 = vld [vmem:[%s2697_s1 + $0x3c8] sm:$0xff]  ;;  %v1436_v10 = vld [vmem:[%s2697_s1 + $0x450] sm:$0xff] }
  0x40   :  { %146 = vmatmul.f32.gmra.mxu3 %v1793_v12  ;;  %261 = vmatpush.msrb.mxu2 %v1236_v13  ;;  %v1339_v13 = vld [vmem:[%s2697_s1 + $0x2c8] sm:$0xff] }
  0x41   :  { %375 = vmatpush.msrb.mxu3 %v1269_v14  ;;  %485 = vmatpush.msrb.mxu0 %v1305_v15  ;;  %v1977_v14 = vld [vmem:[%s2698_s0 + $0x32] sm:$0xff]  ;;  %v1983_v15 = vld [vmem:[%s2698_s0 + $0x40] sm:$0xff] }
  0x42   :  { %163 = vmatpush.msrb.mxu1 %v38_v17  ;;  %262 = vmatpush.msrb.mxu2 %v1235_v18  ;;  %v1370_v17 = vld [vmem:[%s2697_s1 + $0x340] sm:$0xff] }
  0x43   :  { %376 = vmatpush.msrb.mxu3 %v1268_v19  ;;  %486 = vmatpush.msrb.mxu0 %v1304_v21  ;;  %v1402_v18 = vld [vmem:[%s2697_s1 + $0x3c0] sm:$0xff]  ;;  %v1435_v19 = vld [vmem:[%s2697_s1 + $0x448] sm:$0xff] }
  0x44   :  { %164 = vmatpush.msrb.mxu1 %v37_v22  ;;  %263 = vmatpush.msrb.mxu2 %v1234_v23  ;;  %v1338_v21 = vld [vmem:[%s2697_s1 + $0x2c0] sm:$0xff]  ;;  %v2009_v23 = vld [vmem:[%s2698_s0 + $0x50] sm:$0xff] }
  0x45   :  { %377 = vmatpush.msrb.mxu3 %v1267_v24  ;;  %487 = vmatpush.msrb.mxu0 %v1303_v25  ;;  %v2003_v22 = vld [vmem:[%s2698_s0 + $0x42] sm:$0xff]  ;;  %v1369_v24 = vld [vmem:[%s2697_s1 + $0x338] sm:$0xff] }
  0x46   :  { %165 = vmatpush.msrb.mxu1 %v36_v26  ;;  %264 = vmatmul.f32.vlgmr.msrb.gmra.mxu2 %v215_v27  ;;  %v1401_v25 = vld [vmem:[%s2697_s1 + $0x3b8] sm:$0xff]  ;;  %v1434_v26 = vld [vmem:[%s2697_s1 + $0x440] sm:$0xff] }
  0x47   :  { %166 = vmatmul.f32.vlgmr.msrb.gmra.mxu1 %v20_v28  ;;  %378 = vmatpush.msrb.mxu3 %v1266_v29  ;;  %v1337_v27 = vld [vmem:[%s2697_s1 + $0x2b8] sm:$0xff]  ;;  %v2035_v29 = vld [vmem:[%s2698_s0 + $0x60] sm:$0xff] }
  0x48   :  { %488 = vmatpush.msrb.mxu0 %v1302_v30  ;;  %706 = vmatpush.msra.mxu2 %v1377_v33  ;;  %v2029_v28 = vld [vmem:[%s2698_s0 + $0x52] sm:$0xff] }
  0x49   :  { %110 = vmatmul.f32.gmra.mxu0 %v1851_v34  ;;  %379 = vmatmul.f32.vlgmr.msrb.gmra.mxu3 %v1250_v35  ;;  %v1368_v30 = vld [vmem:[%s2697_s1 + $0x330] sm:$0xff] }
  0x4a   :  { %489 = vmatpush.msrb.mxu0 %v1301_v37  ;;  %820 = vmatpush.msra.mxu3 %v1409_v38  ;;  %v1400_v33 = vld [vmem:[%s2697_s1 + $0x3b0] sm:$0xff]  ;;  %v2055_v38 = vld [vmem:[%s2698_s0 + $0x62] sm:$0xff] }
  0x4b   :  { %591 = vmatpush.msra.mxu1 %v1345_v39  ;;  %707 = vmatpush.msra.mxu2 %v1376_v40  ;;  %v1336_v37 = vld [vmem:[%s2697_s1 + $0x2b0] sm:$0xff]  ;;  %v1367_v40 = vld [vmem:[%s2697_s1 + $0x328] sm:$0xff] }
  0x4c   :  { %490 = vmatpush.msrb.mxu0 %v1300_v41  ;;  %821 = vmatpush.msra.mxu3 %v1408_v42  ;;  %v2061_v39 = vld [vmem:[%s2698_s0 + $0x70] sm:$0xff]  ;;  %v1399_v41 = vld [vmem:[%s2697_s1 + $0x3a8] sm:$0xff] }
  0x4d   :  { %592 = vmatpush.msra.mxu1 %v1344_v43  ;;  %708 = vmatpush.msra.mxu2 %v1375_v44  ;;  %v1432_v42 = vld [vmem:[%s2697_s1 + $0x430] sm:$0xff]  ;;  %v1335_v43 = vld [vmem:[%s2697_s1 + $0x2a8] sm:$0xff] }
  0x4e   :  { %491 = vmatpush.msrb.mxu0 %v1299_v45  ;;  %267 = vmatmul.f32.gmra.mxu2 %v1887_v46  ;;  %v2081_v44 = vld [vmem:[%s2698_s0 + $0x72] sm:$0xff]  ;;  %v2087_v45 = vld [vmem:[%s2698_s0 + $0x80] sm:$0xff] }
  0x4f   :  { %169 = vmatmul.f32.gmra.mxu1 %v1250_v35  ;;  %822 = vmatpush.msra.mxu3 %v1407_v47  ;;  %v1433_v35 = vld [vmem:[%s2697_s1 + $0x438] sm:$0xff]  ;;  %v1366_v47 = vld [vmem:[%s2697_s1 + $0x320] sm:$0xff] }
  0x50   :  { %492 = vmatpush.msrb.mxu0 %v1298_v48  ;;  %593 = vmatpush.msra.mxu1 %v1343_v51  ;;  %v1398_v48 = vld [vmem:[%s2697_s1 + $0x3a0] sm:$0xff]  ;;  %v1431_v51 = vld [vmem:[%s2697_s1 + $0x428] sm:$0xff] }
  0x51   :  { %382 = vmatmul.f32.gmra.mxu3 %v1902_v52  ;;  %493 = vmatmul.f32.vlgmr.msrb.gmra.mxu0 %v1715_v55  ;;  %v1933_v55 = vld [vmem:[%s2698_s0 + $0x22] sm:$0xff] }
  0x52   :  { %934 = vmatpush.msra.mxu0 %v1441_v53  ;;  %709 = vmatpush.msra.mxu2 %v1374_v54  ;;  %v1334_v53 = vld [vmem:[%s2697_s1 + $0x2a0] sm:$0xff] }
  0x53   :  { %823 = vmatpush.msra.mxu3 %v1406_v57  ;;  %594 = vmatpush.msra.mxu1 %v1342_v58  ;;  %v223_v54 = vld [vmem:[%s2698_s0 + $0xa2] sm:$0xff]  ;;  %v1258_v58 = vld [vmem:[%s2698_s0 + $0xb0] sm:$0xff] }
  0x54   :  { %935 = vmatpush.msra.mxu0 %v1440_v59  ;;  %710 = vmatpush.msra.mxu2 %v1373_v60  ;;  %v28_v57 = vld [vmem:[%s2698_s0 + $0xa0] sm:$0xff]  ;;  %v1365_v60 = vld [vmem:[%s2697_s1 + $0x318] sm:$0xff] }
  0x55   :  { %824 = vmatpush.msra.mxu3 %v1405_v61  ;;  %595 = vmatpush.msra.mxu1 %v1341_v62  ;;  %v2116_v59 = vld [vmem:[%s2698_s0 + $0x81] sm:$0xff]  ;;  %v1397_v61 = vld [vmem:[%s2697_s1 + $0x398] sm:$0xff] }
  0x56   :  { %270 = vmatmul.f32.gmra.mxu2 %v1933_v55  ;;  %936 = vmatpush.msra.mxu0 %v1439_v63  ;;  %v1430_v62 = vld [vmem:[%s2697_s1 + $0x420] sm:$0xff]  ;;  %v1333_v63 = vld [vmem:[%s2697_s1 + $0x298] sm:$0xff] }
  0x57   :  { %172 = vmatmul.f32.gmra.mxu1 %v1902_v52  ;;  %711 = vmatpush.msra.mxu2 %v1372_v0  ;;  %v2134_v0 = vld [vmem:[%s2698_s0 + $0xb2] sm:$0xff] }
  0x58   :  { %937 = vmatpush.msra.mxu0 %v1438_v1  ;;  %825 = vmatpush.msra.mxu3 %v1404_v2  ;;  %v2140_v1 = vld [vmem:[%s2698_s0 + $0xc0] sm:$0xff]  ;;  %v1364_v2 = vld [vmem:[%s2697_s1 + $0x310] sm:$0xff] }
  0x59   :  { %385 = vmatmul.f32.gmra.mxu3 %v1951_v3  ;;  %496 = vmatmul.f32.gmra.mxu0 %v1787_v11 }
  0x5a   :  { %938 = vmatpush.msra.mxu0 %v1437_v4  ;;  %596 = vmatpush.msra.mxu1 %v1340_v7  ;;  %v1396_v4 = vld [vmem:[%s2697_s1 + $0x390] sm:$0xff]  ;;  %v1429_v7 = vld [vmem:[%s2697_s1 + $0x418] sm:$0xff] }
  0x5b   :  { %712 = vmatpush.msra.mxu2 %v1371_v8  ;;  %826 = vmatpush.msra.mxu3 %v1403_v9  ;;  %v1332_v8 = vld [vmem:[%s2697_s1 + $0x290] sm:$0xff]  ;;  %v2159_v9 = vld [vmem:[%s2698_s0 + $0xc2] sm:$0xff] }
  0x5c   :  { %939 = vmatpush.msra.mxu0 %v1436_v10  ;;  %597 = vmatpush.msra.mxu1 %v1339_v13  ;;  %v1363_v10 = vld [vmem:[%s2697_s1 + $0x308] sm:$0xff] }
  0x5d   :  { %713 = vmatpush.msra.mxu2 %v1370_v17  ;;  %827 = vmatpush.msra.mxu3 %v1402_v18  ;;  %v1395_v13 = vld [vmem:[%s2697_s1 + $0x388] sm:$0xff]  ;;  %v1428_v17 = vld [vmem:[%s2697_s1 + $0x410] sm:$0xff] }
  0x5e   :  { %273 = vmatmul.f32.gmra.mxu2 %v1977_v14  ;;  %940 = vmatpush.msra.mxu0 %v1435_v19  ;;  %v1331_v18 = vld [vmem:[%s2697_s1 + $0x288] sm:$0xff]  ;;  %v2185_v19 = vld [vmem:[%s2698_s0 + $0xd2] sm:$0xff] }
  0x5f   :  { %175 = vmatmul.f32.gmra.mxu1 %v1951_v3  ;;  %714 = vmatpush.msra.mxu2 %v1369_v24 }
  0x60   :  { %598 = vmatpush.msra.mxu1 %v1338_v21  ;;  %828 = vmatpush.msra.mxu3 %v1401_v25  ;;  %v2191_v21 = vld [vmem:[%s2698_s0 + $0xe0] sm:$0xff] }
  0x61   :  { %388 = vmatmul.f32.gmra.mxu3 %v1983_v15  ;;  %499 = vmatmul.f32.gmra.mxu0 %v1851_v34  ;;  %v1362_v25 = vld [vmem:[%s2697_s1 + $0x300] sm:$0xff] }
  0x62   :  { %941 = vmatpush.msra.mxu0 %v1434_v26  ;;  %599 = vmatpush.msra.mxu1 %v1337_v27  ;;  %v1394_v26 = vld [vmem:[%s2697_s1 + $0x380] sm:$0xff]  ;;  %v1427_v27 = vld [vmem:[%s2697_s1 + $0x408] sm:$0xff] }
  0x63   :  { %715 = vmatpush.msra.mxu2 %v1368_v30  ;;  %829 = vmatpush.msra.mxu3 %v1400_v33  ;;  %v1330_v30 = vld [vmem:[%s2697_s1 + $0x280] sm:$0xff] }
  0x64   :  { %942 = vmatpush.msra.mxu0 %v1433_v35  ;;  %600 = vmatpush.msra.mxu1 %v1336_v37  ;;  %v2213_v33 = vld [vmem:[%s2698_s0 + $0xe2] sm:$0xff]  ;;  %v2221_v37 = vld [vmem:[%s2698_s0 + $0xf0] sm:$0xff] }
  0x65   :  { %716 = vmatpush.msra.mxu2 %v1367_v40  ;;  %830 = vmatpush.msra.mxu3 %v1399_v41 }
  0x66   :  { %276 = vmatmul.f32.gmra.mxu2 %v2003_v22  ;;  %943 = vmatpush.msra.mxu0 %v1432_v42 }
  0x67   :  { %178 = vmatmul.f32.gmra.mxu1 %v1983_v15  ;;  %717 = vmatpush.msra.mxu2 %v1366_v47  ;;  %v2236_v47 = vld [vmem:[%s2698_s0 + $0xf2] sm:$0xff] }
  0x68   :  { %601 = vmatpush.msra.mxu1 %v1335_v43  ;;  %831 = vmatpush.msra.mxu3 %v1398_v48  ;;  %v1426_v43 = vld [vmem:[%s2697_s1 + $0x400] sm:$0xff] }
  0x69   :  { %391 = vmatmul.f32.gmra.mxu3 %v2009_v23  ;;  %502 = vmatmul.f32.gmra.mxu0 %v1578_v16 }
  0x6a   :  { %944 = vmatpush.msra.mxu0 %v1431_v51  ;;  %602 = vmatpush.msra.mxu1 %v1334_v53  ;;  %v2244_v51 = vld [vmem:[%s2698_s0 + $0x100] sm:$0xff] }
  0x6b   :  { %718 = vmatpush.msra.mxu2 %v1365_v60  ;;  %832 = vmatpush.msra.mxu3 %v1397_v61  ;;  %v2264_v60 = vld [vmem:[%s2698_s0 + $0x110] sm:$0xff] }
  0x6c   :  { %945 = vmatpush.msra.mxu0 %v1430_v62  ;;  %603 = vmatpush.msra.mxu1 %v1333_v63  ;;  %v2276_v62 = vld [vmem:[%s2698_s0 + $0x112] sm:$0xff] }
  0x6d   :  { %719 = vmatpush.msra.mxu2 %v1364_v2  ;;  %833 = vmatpush.msra.mxu3 %v1396_v4  ;;  %v2282_v2 = vld [vmem:[%s2698_s0 + $0x120] sm:$0xff] }
  0x6e   :  { %279 = vmatmul.f32.gmra.mxu2 %v2029_v28  ;;  %946 = vmatpush.msra.mxu0 %v1429_v7 }
  0x6f   :  { %181 = vmatmul.f32.gmra.mxu1 %v2009_v23  ;;  %720 = vmatpush.msra.mxu2 %v1363_v10  ;;  %v2295_v10 = vld [vmem:[%s2698_s0 + $0x121] sm:$0xff] }
  0x70   :  { %604 = vmatpush.msra.mxu1 %v1332_v8  ;;  %834 = vmatpush.msra.mxu3 %v1395_v13 }
  0x71   :  { %394 = vmatmul.f32.gmra.mxu3 %v2035_v29  ;;  %505 = vmatmul.f32.gmra.mxu0 %v1634_v32 }
  0x72   :  { %947 = vmatpush.msra.mxu0 %v1428_v17  ;;  %605 = vmatpush.msra.mxu1 %v1331_v18 }
  0x73   :  { %721 = vmatpush.msra.mxu2 %v1362_v25  ;;  %835 = vmatpush.msra.mxu3 %v1394_v26 }
  0x74   :  { %948 = vmatpush.msra.mxu0 %v1427_v27  ;;  %606 = vmatpush.msra.mxu1 %v1330_v30 }
  0x76   :  { %282 = vmatmul.f32.gmra.mxu2 %v2055_v38  ;;  %949 = vmatpush.msra.mxu0 %v1426_v43 }
  0x77   :  { %184 = vmatmul.f32.gmra.mxu1 %v2035_v29 }
  0x79   :  { %397 = vmatmul.f32.gmra.mxu3 %v2061_v39  ;;  %508 = vmatmul.f32.gmra.mxu0 %v1697_v50 }
  0x7e   :  { %285 = vmatmul.f32.gmra.mxu2 %v2081_v44 }
  0x7f   :  { %187 = vmatmul.f32.gmra.mxu1 %v2061_v39 }
  0x81   :  { %400 = vmatmul.f32.gmra.mxu3 %v2087_v45  ;;  %511 = vmatmul.f32.gmra.mxu0 %v1769_v6 }
  0x86   :  { %288 = vmatmul.f32.gmra.mxu2 %v223_v54 }
  0x87   :  { %190 = vmatmul.f32.gmra.mxu1 %v28_v57  ;;  %v2256_v57 = vld [vmem:[%s2698_s0 + $0x102] sm:$0xff] }
  0x89   :  { %403 = vmatmul.f32.gmra.mxu3 %v1258_v58  ;;  %514 = vmatmul.f32.gmra.mxu0 %v2116_v59 }
  0x8e   :  { %291 = vmatmul.f32.gmra.mxu2 %v2134_v0 }
  0x8f   :  { %193 = vmatmul.f32.gmra.mxu1 %v1258_v58 }
  0x91   :  { %406 = vmatmul.f32.gmra.mxu3 %v2140_v1  ;;  %517 = vmatmul.f32.gmra.mxu0 %v1629_v31  ;;  %v2165_v31 = vld [vmem:[%s2698_s0 + $0xd0] sm:$0xff] }
  0x96   :  { %294 = vmatmul.f32.gmra.mxu2 %v2159_v9 }
  0x97   :  { %196 = vmatmul.f32.gmra.mxu1 %v2140_v1 }
  0x99   :  { %409 = vmatmul.f32.gmra.mxu3 %v2165_v31  ;;  %520 = vmatmul.f32.gmra.mxu0 %v1692_v49 }
  0x9e   :  { %297 = vmatmul.f32.gmra.mxu2 %v2185_v19  ;;  %v2193_v24 = vpop.f32.mrf.mxu1 }
  0x9f   :  { %199 = vmatmul.f32.gmra.mxu1 %v2165_v31 }
  0xa1   :  { %412 = vmatmul.f32.gmra.mxu3 %v2191_v21  ;;  %523 = vmatmul.f32.gmra.mxu0 %v1764_v5 }
  0xa4   :  { %v2215_v35 = vpop.f32.mrf.mxu2  ;;  %v102_v42 = vpop.f32.mrf.mxu0 }
  0xa6   :  { %300 = vmatmul.f32.gmra.mxu2 %v2213_v33  ;;  %v2223_v40 = vpop.f32.mrf.mxu3 }
  0xa7   :  { %202 = vmatmul.f32.gmra.mxu1 %v2191_v21  ;;  %v2226_v41 = vpop.f32.mrf.mxu1 }
  0xa9   :  { %415 = vmatmul.f32.gmra.mxu3 %v2221_v37  ;;  %526 = vmatmul.f32.gmra.mxu0 %v1592_v20 }
  0xac   :  { %v2238_v48 = vpop.f32.mrf.mxu2 }
  0xae   :  { %303 = vmatmul.f32.gmra.mxu2 %v2236_v47 }
  0xaf   :  { %205 = vmatmul.f32.gmra.mxu1 %v2221_v37  ;;  %v2247_v20 = vpop.f32.mrf.mxu3 }
  0xb0   :  { %v2249_v53 = vpop.f32.mrf.mxu1 }
  0xb1   :  { %418 = vmatmul.f32.gmra.mxu3 %v2244_v51  ;;  %529 = vmatmul.f32.gmra.mxu0 %v1649_v36 }
  0xb2   :  { %v105_v54 = vpop.f32.mrf.mxu0 }
  0xb5   :  { %v2258_v58 = vpop.f32.mrf.mxu2 }
  0xb6   :  { %306 = vmatmul.f32.gmra.mxu2 %v2256_v57 }
  0xb7   :  { %208 = vmatmul.f32.gmra.mxu1 %v2244_v51 }
  0xb9   :  { %421 = vmatmul.f32.gmra.mxu3 %v2264_v60  ;;  %532 = vmatmul.f32.gmra.mxu0 %v1721_v56  ;;  %v2269_v36 = vpop.f32.mrf.mxu3 }
  0xba   :  { %v2271_v61 = vpop.f32.mrf.mxu1 }
  0xbc   :  { %v108_v63 = vpop.f32.mrf.mxu0 }
  0xbe   :  { %309 = vmatmul.f32.gmra.mxu2 %v2276_v62 }
  0xbf   :  { %211 = vmatmul.f32.gmra.mxu1 %v2264_v60  ;;  %v2285_v56 = vpop.f32.mrf.mxu2 }
  0xc1   :  { %424 = vmatmul.f32.gmra.mxu3 %v2282_v2  ;;  %535 = vmatmul.f32.gmra.mxu0 %v1793_v12 }
  0xc3   :  { %v2289_v4 = vpop.f32.mrf.mxu3 }
  0xc4   :  { %v167_v7 = vpop.f32.mrf.mxu1 }
  0xc5   :  { %v168_v13 = vadd.f32 %v167_v7, %v102_v42 }
  0xc6   :  { %v111_v8 = vpop.f32.mrf.mxu0  ;;  %722 = vmatmul.f32.vlgmr.msra.gmra.mxu2 %v1902_v52 }
  0xc7   :  { %607 = vmatmul.f32.vlgmr.msra.gmra.mxu1 %v1887_v46 }
  0xc9   :  { %538 = vmatmul.f32.gmra.mxu0 %v2295_v10  ;;  %836 = vmatmul.f32.vlgmr.msra.gmra.mxu3 %v1787_v11  ;;  %v265_v17 = vpop.f32.mrf.mxu2 }
  0xca   :  { %v313_v12 = vadd.f32 %v265_v17, %v168_v13 }
  0xcc   :  { %v170_v18 = vpop.f32.mrf.mxu1  ;;  %v380_v25 = vpop.f32.mrf.mxu3 }
  0xcd   :  { %v2300_v26 = vadd.f32 %v380_v25, %v313_v12  ;;  %v171_v52 = vadd.f32 %v170_v18, %v105_v54 }
  0xce   :  { %v2302_v27 = vpop.f32.mrf.mxu0  ;;  %725 = vmatmul.f32.gmra.mxu2 %v1951_v3 }
  0xcf   :  { %610 = vmatmul.f32.gmra.mxu1 %v1933_v55 }
  0xd1   :  { %839 = vmatmul.f32.gmra.mxu3 %v1851_v34  ;;  %950 = vmatmul.f32.vlgmr.msra.gmra.mxu0 %v1933_v55  ;;  %v268_v46 = vpop.f32.mrf.mxu2 }
  0xd2   :  { %v314_v30 = vadd.f32 %v268_v46, %v171_v52 }
  0xd4   :  { %v173_v11 = vpop.f32.mrf.mxu1  ;;  %v383_v42 = vpop.f32.mrf.mxu3 }
  0xd5   :  { %v2308_v43 = vadd.f32 %v383_v42, %v314_v30  ;;  %v174_v3 = vadd.f32 %v173_v11, %v108_v63 }
  0xd6   :  { %v2310_v7 = vpop.f32.mrf.mxu0  ;;  %728 = vmatmul.f32.gmra.mxu2 %v1983_v15 }
  0xd7   :  { %613 = vmatmul.f32.gmra.mxu1 %v1977_v14 }
  0xd9   :  { %842 = vmatmul.f32.gmra.mxu3 %v1578_v16  ;;  %953 = vmatmul.f32.gmra.mxu0 %v1977_v14  ;;  %v271_v34 = vpop.f32.mrf.mxu2 }
  0xda   :  { %v315_v54 = vadd.f32 %v271_v34, %v174_v3 }
  0xdc   :  { %v176_v55 = vpop.f32.mrf.mxu1  ;;  %v386_v13 = vpop.f32.mrf.mxu3 }
  0xdd   :  { %v2316_v17 = vadd.f32 %v386_v13, %v315_v54  ;;  %v177_v15 = vadd.f32 %v176_v55, %v111_v8 }
  0xde   :  { %v2318_v12 = vpop.f32.mrf.mxu0  ;;  %731 = vmatmul.f32.gmra.mxu2 %v2009_v23 }
  0xdf   :  { %616 = vmatmul.f32.gmra.mxu1 %v2003_v22 }
  0xe1   :  { %845 = vmatmul.f32.gmra.mxu3 %v1634_v32  ;;  %956 = vmatmul.f32.gmra.mxu0 %v2003_v22  ;;  %v274_v16 = vpop.f32.mrf.mxu2 }
  0xe2   :  { %v316_v63 = vadd.f32 %v274_v16, %v177_v15 }
  0xe4   :  { %v179_v14 = vpop.f32.mrf.mxu1  ;;  %v389_v18 = vpop.f32.mrf.mxu3 }
  0xe5   :  { %v2324_v25 = vadd.f32 %v389_v18, %v316_v63  ;;  %v180_v23 = vadd.f32 %v179_v14, %v2193_v24 }
  0xe6   :  { %v2326_v52 = vpop.f32.mrf.mxu0  ;;  %734 = vmatmul.f32.gmra.mxu2 %v2035_v29 }
  0xe7   :  { %619 = vmatmul.f32.gmra.mxu1 %v2029_v28 }
  0xe9   :  { %848 = vmatmul.f32.gmra.mxu3 %v1697_v50  ;;  %959 = vmatmul.f32.gmra.mxu0 %v2029_v28  ;;  %v277_v32 = vpop.f32.mrf.mxu2 }
  0xea   :  { %v317_v22 = vadd.f32 %v277_v32, %v180_v23  ;;  %v1417_v32 = vld [vmem:[%s2698_s0 + $0x92] sm:$0xff] }
  0xec   :  { %v182_v8 = vpop.f32.mrf.mxu1  ;;  %v392_v46 = vpop.f32.mrf.mxu3 }
  0xed   :  { %v2333_v30 = vadd.f32 %v392_v46, %v317_v22  ;;  %v183_v29 = vadd.f32 %v182_v8, %v2226_v41  ;;  %v1353_v41 = vld [vmem:[%s2698_s0 + $0x90] sm:$0xff] }
  0xee   :  { %v2335_v11 = vpop.f32.mrf.mxu0  ;;  %737 = vmatmul.f32.gmra.mxu2 %v2061_v39 }
  0xef   :  { %622 = vmatmul.f32.gmra.mxu1 %v2055_v38 }
  0xf1   :  { %851 = vmatmul.f32.gmra.mxu3 %v1769_v6  ;;  %962 = vmatmul.f32.gmra.mxu0 %v2055_v38  ;;  %v280_v50 = vpop.f32.mrf.mxu2 }
  0xf2   :  { %v318_v28 = vadd.f32 %v280_v50, %v183_v29 }
  0xf4   :  { %v185_v24 = vpop.f32.mrf.mxu1  ;;  %v395_v42 = vpop.f32.mrf.mxu3 }
  0xf5   :  { %v2342_v3 = vadd.f32 %v395_v42, %v318_v28  ;;  %v186_v39 = vadd.f32 %v185_v24, %v2249_v53 }
  0xf6   :  { %v2344_v34 = vpop.f32.mrf.mxu0  ;;  %740 = vmatmul.f32.gmra.mxu2 %v2087_v45  ;;  %v1321_v45 = vld [vmem:[%s2698_s0 + $0x82] sm:$0xff] }
  0xf7   :  { %625 = vmatmul.f32.gmra.mxu1 %v2081_v44 }
  0xf9   :  { %854 = vmatmul.f32.gmra.mxu3 %v2116_v59  ;;  %965 = vmatmul.f32.gmra.mxu0 %v2081_v44  ;;  %v283_v6 = vpop.f32.mrf.mxu2  ;;  %v1385_v44 = vld [vmem:[%s2698_s0 + $0x91] sm:$0xff] }
  0xfa   :  { %v319_v38 = vadd.f32 %v283_v6, %v186_v39 }
  0xfc   :  { %v188_v54 = vpop.f32.mrf.mxu1  ;;  %v398_v55 = vpop.f32.mrf.mxu3 }
  0xfd   :  { %v2357_v13 = vadd.f32 %v398_v55, %v319_v38  ;;  %v189_v59 = vadd.f32 %v188_v54, %v2271_v61 }
  0xfe   :  { %v2359_v15 = vpop.f32.mrf.mxu0  ;;  %743 = vmatmul.f32.gmra.mxu2 %v1353_v41 }
  0xff   :  { %628 = vmatmul.f32.gmra.mxu1 %v1321_v45 }
 0x101   :  { %857 = vmatmul.f32.gmra.mxu3 %v1385_v44  ;;  %968 = vmatmul.f32.gmra.mxu0 %v1321_v45  ;;  %v286_v53 = vpop.f32.mrf.mxu2 }
 0x102   :  { %v320_v16 = vadd.f32 %v286_v53, %v189_v59 }
 0x104   :  { %v191_v63 = vpop.f32.mrf.mxu1  ;;  %v401_v14 = vpop.f32.mrf.mxu3 }
 0x105   :  { %v2365_v18 = vadd.f32 %v401_v14, %v320_v16  ;;  %v192_v61 = vadd.f32 %v191_v63, %v2215_v35 }
 0x106   :  { %v2367_v23 = vpop.f32.mrf.mxu0  ;;  %746 = vmatmul.f32.gmra.mxu2 %v2140_v1 }
 0x107   :  { %631 = vmatmul.f32.gmra.mxu1 %v2134_v0 }
 0x109   :  { %860 = vmatmul.f32.gmra.mxu3 %v1692_v49  ;;  %971 = vmatmul.f32.gmra.mxu0 %v1417_v32  ;;  %v289_v22 = vpop.f32.mrf.mxu2 }
 0x10a   :  { %v321_v8 = vadd.f32 %v289_v22, %v192_v61 }
 0x10c   :  { %v194_v46 = vpop.f32.mrf.mxu1  ;;  %v404_v29 = vpop.f32.mrf.mxu3 }
 0x10d   :  { %v436_v50 = vadd.f32 %v404_v29, %v321_v8  ;;  %v195_v24 = vadd.f32 %v194_v46, %v2238_v48 }
 0x10e   :  { %v518_v28 = vpop.f32.mrf.mxu0  ;;  %749 = vmatmul.f32.gmra.mxu2 %v2165_v31  ;;  %v1388_v31 = vld [vmem:[%s2698_s0 + $0xe1] sm:$0xff] }
 0x10f   :  { %v2377_v1 = vadd.f32 %v518_v28, %v436_v50  ;;  %634 = vmatmul.f32.gmra.mxu1 %v2159_v9 }
 0x111   :  { %863 = vmatmul.f32.gmra.mxu3 %v1764_v5  ;;  %974 = vmatmul.f32.gmra.mxu0 %v2159_v9  ;;  %v292_v49 = vpop.f32.mrf.mxu2 }
 0x112   :  { %v322_v0 = vadd.f32 %v292_v49, %v195_v24 }
 0x114   :  { %v197_v35 = vpop.f32.mrf.mxu1  ;;  %v407_v42 = vpop.f32.mrf.mxu3 }
 0x115   :  { %v437_v39 = vadd.f32 %v407_v42, %v322_v0  ;;  %v198_v5 = vadd.f32 %v197_v35, %v2258_v58 }
 0x116   :  { %v521_v6 = vpop.f32.mrf.mxu0  ;;  %752 = vmatmul.f32.gmra.mxu2 %v2191_v21  ;;  %v1389_v21 = vld [vmem:[%s2698_s0 + $0xf1] sm:$0xff] }
 0x117   :  { %v2387_v38 = vadd.f32 %v521_v6, %v437_v39  ;;  %637 = vmatmul.f32.gmra.mxu1 %v2185_v19  ;;  %v1361_v39 = vld [vmem:[%s2698_s0 + $0x130] sm:$0xff] }
 0x119   :  { %866 = vmatmul.f32.gmra.mxu3 %v1388_v31  ;;  %977 = vmatmul.f32.gmra.mxu0 %v2185_v19  ;;  %v295_v9 = vpop.f32.mrf.mxu2 }
 0x11a   :  { %v323_v48 = vadd.f32 %v295_v9, %v198_v5 }
 0x11c   :  { %v200_v41 = vpop.f32.mrf.mxu1  ;;  %v410_v54 = vpop.f32.mrf.mxu3 }
 0x11d   :  { %v438_v55 = vadd.f32 %v410_v54, %v323_v48  ;;  %v201_v58 = vadd.f32 %v200_v41, %v2285_v56  ;;  %v542_v54 = vadd.f32 %v2302_v27, %v2300_v26 }
 0x11e   :  { %v524_v45 = vpop.f32.mrf.mxu0  ;;  %755 = vmatmul.f32.gmra.mxu2 %v2221_v37  ;;  %v1390_v37 = vld [vmem:[%s2698_s0 + $0x101] sm:$0xff] }
 0x11f   :  { %v2396_v44 = vadd.f32 %v524_v45, %v438_v55  ;;  %640 = vmatmul.f32.gmra.mxu1 %v2213_v33 }
 0x121   :  { %869 = vmatmul.f32.gmra.mxu3 %v1389_v21  ;;  %980 = vmatmul.f32.gmra.mxu0 %v2213_v33  ;;  %v298_v19 = vpop.f32.mrf.mxu2 }
 0x122   :  { %v324_v59 = vadd.f32 %v298_v19, %v201_v58 }
 0x124   :  { %v203_v53 = vpop.f32.mrf.mxu1  ;;  %v413_v16 = vpop.f32.mrf.mxu3 }
 0x125   :  { %v439_v63 = vadd.f32 %v413_v16, %v324_v59  ;;  %v204_v56 = vadd.f32 %v203_v53, %v2223_v40  ;;  %v1425_v59 = vld [vmem:[%s2698_s0 + $0x132] sm:$0xff] }
 0x126   :  { %v527_v14 = vpop.f32.mrf.mxu0  ;;  %758 = vmatmul.f32.gmra.mxu2 %v2244_v51  ;;  %v1391_v51 = vld [vmem:[%s2698_s0 + $0x111] sm:$0xff] }
 0x127   :  { %v2405_v32 = vadd.f32 %v527_v14, %v439_v63  ;;  %643 = vmatmul.f32.gmra.mxu1 %v2236_v47  ;;  %v543_v63 = vadd.f32 %v2310_v7, %v2308_v43 }
 0x129   :  { %872 = vmatmul.f32.gmra.mxu3 %v1390_v37  ;;  %983 = vmatmul.f32.gmra.mxu0 %v2236_v47  ;;  %v301_v33 = vpop.f32.mrf.mxu2 }
 0x12a   :  { %v325_v61 = vadd.f32 %v301_v33, %v204_v56 }
 0x12c   :  { %v206_v22 = vpop.f32.mrf.mxu1  ;;  %v416_v8 = vpop.f32.mrf.mxu3 }
 0x12d   :  { %v440_v46 = vadd.f32 %v416_v8, %v325_v61  ;;  %v207_v40 = vadd.f32 %v206_v22, %v2247_v20  ;;  %v544_v8 = vadd.f32 %v2318_v12, %v2316_v17 }
 0x12e   :  { %v530_v29 = vpop.f32.mrf.mxu0  ;;  %761 = vmatmul.f32.gmra.mxu2 %v2264_v60 }
 0x12f   :  { %v2414_v50 = vadd.f32 %v530_v29, %v440_v46  ;;  %646 = vmatmul.f32.gmra.mxu1 %v2256_v57 }
 0x131   :  { %875 = vmatmul.f32.gmra.mxu3 %v1391_v51  ;;  %986 = vmatmul.f32.gmra.mxu0 %v2256_v57  ;;  %v304_v47 = vpop.f32.mrf.mxu2 }
 0x132   :  { %v326_v28 = vadd.f32 %v304_v47, %v207_v40 }
 0x134   :  { %v209_v24 = vpop.f32.mrf.mxu1  ;;  %v419_v49 = vpop.f32.mrf.mxu3 }
 0x135   :  { %v441_v0 = vadd.f32 %v419_v49, %v326_v28  ;;  %v210_v42 = vadd.f32 %v209_v24, %v2269_v36  ;;  %v1393_v36 = vld [vmem:[%s2698_s0 + $0x131] sm:$0xff]  ;;  %v545_v49 = vadd.f32 %v2326_v52, %v2324_v25 }
 0x136   :  { %v533_v35 = vpop.f32.mrf.mxu0  ;;  %764 = vmatmul.f32.gmra.mxu2 %v2282_v2  ;;  %v1329_v2 = vld [vmem:[%s2698_s0 + $0x122] sm:$0xff] }
 0x137   :  { %v2420_v60 = vadd.f32 %v533_v35, %v441_v0  ;;  %649 = vmatmul.f32.gmra.mxu1 %v2276_v62 }
 0x139   :  { %878 = vmatmul.f32.gmra.mxu3 %v2295_v10  ;;  %989 = vmatmul.f32.gmra.mxu0 %v2276_v62  ;;  %v307_v20 = vpop.f32.mrf.mxu2 }
 0x13a   :  { %v327_v57 = vadd.f32 %v307_v20, %v210_v42 }
 0x13c   :  { %v212_v6 = vpop.f32.mrf.mxu1  ;;  %v422_v31 = vpop.f32.mrf.mxu3 }
 0x13d   :  { %v442_v5 = vadd.f32 %v422_v31, %v327_v57  ;;  %v213_v10 = vadd.f32 %v212_v6, %v2289_v4  ;;  %v546_v31 = vadd.f32 %v2335_v11, %v2333_v30 }
 0x13e   :  { %v536_v9 = vpop.f32.mrf.mxu0  ;;  %767 = vmatmul.f32.gmra.mxu2 %v1361_v39 }
 0x13f   :  { %v2435_v62 = vadd.f32 %v536_v9, %v442_v5  ;;  %652 = vmatmul.f32.gmra.mxu1 %v1329_v2 }
 0x141   :  { %881 = vmatmul.f32.gmra.mxu3 %v1393_v36  ;;  %992 = vmatmul.f32.gmra.mxu0 %v1329_v2  ;;  %v310_v48 = vpop.f32.mrf.mxu2 }
 0x142   :  { %v328_v41 = vadd.f32 %v310_v48, %v213_v10 }
 0x144   :  { %v425_v55 = vpop.f32.mrf.mxu3  ;;  %v608_v45 = vpop.f32.mrf.mxu1 }
 0x145   :  { %v443_v21 = vadd.f32 %v425_v55, %v328_v41  ;;  %v656_v58 = vadd.f32 %v608_v45, %v542_v54 }
 0x146   :  { %v539_v19 = vpop.f32.mrf.mxu0 }
 0x147   :  { %v2443_v53 = vadd.f32 %v539_v19, %v443_v21  ;;  %v547_v21 = vadd.f32 %v2344_v34, %v2342_v3 }
 0x149   :  { %995 = vmatmul.f32.gmra.mxu0 %v1425_v59  ;;  %v723_v4 = vpop.f32.mrf.mxu2 }
 0x14a   :  { %v771_v16 = vadd.f32 %v723_v4, %v656_v58 }
 0x14c   :  { %v611_v14 = vpop.f32.mrf.mxu1  ;;  %v837_v37 = vpop.f32.mrf.mxu3 }
 0x14d   :  { %v657_v26 = vadd.f32 %v611_v14, %v543_v63  ;;  %v885_v27 = vadd.f32 %v837_v37, %v771_v16  ;;  %v548_v37 = vadd.f32 %v2359_v15, %v2357_v13 }
 0x14e   :  { %v951_v56 = vpop.f32.mrf.mxu0 }
 0x14f   :  { %v2447_v33 = vadd.f32 %v951_v56, %v885_v27 }
 0x151   :  { %v726_v61 = vpop.f32.mrf.mxu2 }
 0x152   :  { %v772_v22 = vadd.f32 %v726_v61, %v657_v26 }
 0x154   :  { %v614_v46 = vpop.f32.mrf.mxu1  ;;  %v840_v29 = vpop.f32.mrf.mxu3 }
 0x155   :  { %v658_v51 = vadd.f32 %v614_v46, %v544_v8  ;;  %v886_v40 = vadd.f32 %v840_v29, %v772_v22  ;;  %v549_v29 = vadd.f32 %v2367_v23, %v2365_v18 }
 0x156   :  { %v954_v47 = vpop.f32.mrf.mxu0 }
 0x157   :  { %v2451_v28 = vadd.f32 %v954_v47, %v886_v40 }
 0x159   :  { %v1015_v43 = vadd.f32 %v2451_v28, %v2447_v33  ;;  %v729_v7 = vpop.f32.mrf.mxu2 }
 0x15a   :  { %v773_v24 = vadd.f32 %v729_v7, %v658_v51 }
 0x15c   :  { %v617_v0 = vpop.f32.mrf.mxu1  ;;  %v843_v35 = vpop.f32.mrf.mxu3 }
 0x15d   :  { %v659_v42 = vadd.f32 %v617_v0, %v545_v49  ;;  %v887_v20 = vadd.f32 %v843_v35, %v773_v24 }
 0x15e   :  { %v957_v17 = vpop.f32.mrf.mxu0 }
 0x15f   :  { %v2457_v12 = vadd.f32 %v957_v17, %v887_v20 }
 0x161   :  { %v1016_v57 = vadd.f32 %v1015_v43, %v2457_v12  ;;  %v732_v39 = vpop.f32.mrf.mxu2 }
 0x162   :  { %v774_v6 = vadd.f32 %v732_v39, %v659_v42 }
 0x164   :  { %v620_v2 = vpop.f32.mrf.mxu1  ;;  %v846_v5 = vpop.f32.mrf.mxu3 }
 0x165   :  { %v660_v9 = vadd.f32 %v620_v2, %v546_v31  ;;  %v888_v36 = vadd.f32 %v846_v5, %v774_v6 }
 0x166   :  { %v960_v10 = vpop.f32.mrf.mxu0 }
 0x167   :  { %v2462_v25 = vadd.f32 %v960_v10, %v888_v36 }
 0x169   :  { %v1017_v52 = vadd.f32 %v1016_v57, %v2462_v25  ;;  %v735_v48 = vpop.f32.mrf.mxu2 }
 0x16a   :  { %v775_v41 = vadd.f32 %v735_v48, %v660_v9 }
 0x16c   :  { %v623_v54 = vpop.f32.mrf.mxu1  ;;  %v849_v55 = vpop.f32.mrf.mxu3 }
 0x16d   :  { %v889_v45 = vadd.f32 %v849_v55, %v775_v41  ;;  %v661_v30 = vadd.f32 %v623_v54, %v547_v21 }
 0x16e   :  { %v963_v58 = vpop.f32.mrf.mxu0 }
 0x16f   :  { %v2467_v19 = vadd.f32 %v963_v58, %v889_v45 }
 0x171   :  { %v1018_v11 = vadd.f32 %v1017_v52, %v2467_v19  ;;  %v738_v59 = vpop.f32.mrf.mxu2 }
 0x172   :  { %v776_v4 = vadd.f32 %v738_v59, %v661_v30 }
 0x174   :  { %v626_v16 = vpop.f32.mrf.mxu1  ;;  %v852_v63 = vpop.f32.mrf.mxu3 }
 0x175   :  { %v890_v14 = vadd.f32 %v852_v63, %v776_v4  ;;  %v662_v56 = vadd.f32 %v626_v16, %v548_v37 }
 0x176   :  { %v966_v26 = vpop.f32.mrf.mxu0 }
 0x177   :  { %v2472_v27 = vadd.f32 %v966_v26, %v890_v14 }
 0x179   :  { %v1019_v3 = vadd.f32 %v1018_v11, %v2472_v27  ;;  %v741_v34 = vpop.f32.mrf.mxu2 }
 0x17a   :  { %v777_v61 = vadd.f32 %v741_v34, %v662_v56 }
 0x17c   :  { %v629_v22 = vpop.f32.mrf.mxu1  ;;  %v855_v8 = vpop.f32.mrf.mxu3 }
 0x17d   :  { %v891_v46 = vadd.f32 %v855_v8, %v777_v61  ;;  %v663_v47 = vadd.f32 %v629_v22, %v549_v29 }
 0x17e   :  { %v969_v51 = vpop.f32.mrf.mxu0 }
 0x17f   :  { %v2477_v40 = vadd.f32 %v969_v51, %v891_v46 }
 0x181   :  { %v1020_v13 = vadd.f32 %v1019_v3, %v2477_v40  ;;  %v744_v15 = vpop.f32.mrf.mxu2 }
 0x182   :  { %v778_v43 = vadd.f32 %v744_v15, %v663_v47 }
 0x184   :  { %v632_v7 = vpop.f32.mrf.mxu1  ;;  %v858_v24 = vpop.f32.mrf.mxu3 }
 0x185   :  { %v892_v49 = vadd.f32 %v858_v24, %v778_v43  ;;  %v664_v42 = vadd.f32 %v632_v7, %v2377_v1 }
 0x186   :  { %v972_v0 = vpop.f32.mrf.mxu0 }
 0x187   :  { %v2480_v35 = vadd.f32 %v972_v0, %v892_v49 }
 0x189   :  { %v1021_v20 = vadd.f32 %v1020_v13, %v2480_v35  ;;  %v747_v17 = vpop.f32.mrf.mxu2 }
 0x18a   :  { %v779_v18 = vadd.f32 %v747_v17, %v664_v42 }
 0x18c   :  { %v635_v23 = vpop.f32.mrf.mxu1  ;;  %v861_v57 = vpop.f32.mrf.mxu3 }
 0x18d   :  { %v893_v39 = vadd.f32 %v861_v57, %v779_v18  ;;  %v665_v2 = vadd.f32 %v635_v23, %v2387_v38  ;;  %v1496_v57 = vmov 128.0  }
 0x18e   :  { %v975_v6 = vpop.f32.mrf.mxu0  ;;  %1492 = vrcp.f32 %v1496_v57 }
 0x18f   :  { %v2484_v31 = vadd.f32 %v975_v6, %v893_v39 }
 0x191   :  { %v1022_v5 = vadd.f32 %v1021_v20, %v2484_v31  ;;  %v750_v9 = vpop.f32.mrf.mxu2 }
 0x192   :  { %v780_v36 = vadd.f32 %v750_v9, %v665_v2 }
 0x194   :  { %v638_v10 = vpop.f32.mrf.mxu1  ;;  %v864_v52 = vpop.f32.mrf.mxu3 }
 0x195   :  { %v894_v48 = vadd.f32 %v864_v52, %v780_v36  ;;  %v666_v54 = vadd.f32 %v638_v10, %v2396_v44  ;;  %v1493_v36 = vpop.eup %1492 }
 0x196   :  { %v978_v1 = vpop.f32.mrf.mxu0  ;;  %vm1041_vm0 = vweird.f32 %v1493_v36 }
 0x197   :  { %v2488_v41 = vadd.f32 %v978_v1, %v894_v48 }
 0x199   :  { %v1023_v55 = vadd.f32 %v1022_v5, %v2488_v41  ;;  %v753_v45 = vpop.f32.mrf.mxu2 }
 0x19a   :  { %v781_v21 = vadd.f32 %v753_v45, %v666_v54  ;;  %v1037_v54 = vmul.f32 128.0, %v1493_v36 }
 0x19c   :  { %v641_v58 = vpop.f32.mrf.mxu1  ;;  %v867_v30 = vpop.f32.mrf.mxu3 }
 0x19d   :  { %v895_v11 = vadd.f32 %v867_v30, %v781_v21  ;;  %v667_v4 = vadd.f32 %v641_v58, %v2405_v32  ;;  %v1038_v21 = vsub.f32 1.0, %v1037_v54 }
 0x19e   :  { %v981_v38 = vpop.f32.mrf.mxu0 }
 0x19f   :  { %v2492_v59 = vadd.f32 %v981_v38, %v895_v11  ;;  %v1039_v11 = vmul.f32 %v1493_v36, %v1038_v21 }
 0x1a1   :  { %v1024_v16 = vadd.f32 %v1023_v55, %v2492_v59  ;;  %v756_v63 = vpop.f32.mrf.mxu2 }
 0x1a2   :  { %v782_v14 = vadd.f32 %v756_v63, %v667_v4 }
 0x1a4   :  { %v644_v37 = vpop.f32.mrf.mxu1  ;;  %v870_v26 = vpop.f32.mrf.mxu3 }
 0x1a5   :  { %v896_v56 = vadd.f32 %v870_v26, %v782_v14  ;;  %v668_v34 = vadd.f32 %v644_v37, %v2414_v50 }
 0x1a6   :  { %v984_v44 = vpop.f32.mrf.mxu0 }
 0x1a7   :  { %v2496_v3 = vadd.f32 %v984_v44, %v896_v56 }
 0x1a9   :  { %v1025_v61 = vadd.f32 %v1024_v16, %v2496_v3  ;;  %v759_v22 = vpop.f32.mrf.mxu2  ;;  %v1040_v16 = vadd.f32 %v1493_v36, %v1039_v11 }
 0x1aa   :  { %v783_v8 = vadd.f32 %v759_v22, %v668_v34 }
 0x1ac   :  { %v647_v46 = vpop.f32.mrf.mxu1  ;;  %v873_v29 = vpop.f32.mrf.mxu3 }
 0x1ad   :  { %v897_v51 = vadd.f32 %v873_v29, %v783_v8  ;;  %v669_v13 = vadd.f32 %v647_v46, %v2420_v60 }
 0x1ae   :  { %v987_v32 = vpop.f32.mrf.mxu0 }
 0x1af   :  { %v1011_v47 = vadd.f32 %v987_v32, %v897_v51 }
 0x1b1   :  { %v1026_v15 = vadd.f32 %v1025_v61, %v1011_v47  ;;  %v762_v43 = vpop.f32.mrf.mxu2 }
 0x1b2   :  { %v784_v7 = vadd.f32 %v762_v43, %v669_v13 }
 0x1b4   :  { %v650_v24 = vpop.f32.mrf.mxu1  ;;  %v876_v49 = vpop.f32.mrf.mxu3 }
 0x1b5   :  { %v898_v0 = vadd.f32 %v876_v49, %v784_v7  ;;  %v670_v50 = vadd.f32 %v650_v24, %v2435_v62 }
 0x1b6   :  { %v990_v42 = vpop.f32.mrf.mxu0 }
 0x1b7   :  { %v1012_v20 = vadd.f32 %v990_v42, %v898_v0 }
 0x1b9   :  { %v1027_v17 = vadd.f32 %v1026_v15, %v1012_v20  ;;  %v765_v18 = vpop.f32.mrf.mxu2 }
 0x1ba   :  { %v785_v23 = vadd.f32 %v765_v18, %v670_v50 }
 0x1bc   :  { %v879_v39 = vpop.f32.mrf.mxu3  ;;  %v653_v6 = vpop.f32.mrf.mxu1 }
 0x1bd   :  { %v899_v2 = vadd.f32 %v879_v39, %v785_v23  ;;  %v671_v9 = vadd.f32 %v653_v6, %v2443_v53  ;;  %v1042_v53 = vsel %vm1041_vm0, %v1493_v36, %v1040_v16 }
 0x1be   :  { %v993_v5 = vpop.f32.mrf.mxu0 }
 0x1bf   :  { %v1013_v60 = vadd.f32 %v993_v5, %v899_v2 }
 0x1c1   :  { %v1028_v10 = vadd.f32 %v1027_v17, %v1013_v60  ;;  %v768_v52 = vpop.f32.mrf.mxu2 }
 0x1c2   :  { %v786_v48 = vadd.f32 %v768_v52, %v671_v9 }
 0x1c4   :  { %v882_v1 = vpop.f32.mrf.mxu3 }
 0x1c5   :  { %v900_v55 = vadd.f32 %v882_v1, %v786_v48 }
 0x1c6   :  { %v996_v62 = vpop.f32.mrf.mxu0 }
 0x1c7   :  { %v1014_v45 = vadd.f32 %v996_v62, %v900_v55 }
 0x1c9   :  { %v1029_v58 = vadd.f32 %v1028_v10, %v1014_v45 }
 0x1cb   :  { %v1030_v30 = vrot.slane %v1029_v58, 4 }
 0x1cd   :  { %v1031_v38 = vadd.f32 %v1030_v30, %v1029_v58 }
 0x1cf   :  { %v1032_v4 = vrot.slane %v1031_v38, 2 }
 0x1d1   :  { %v1033_v63 = vadd.f32 %v1032_v4, %v1031_v38 }
 0x1d3   :  { %v1034_v14 = vrot.slane %v1033_v63, 1 }
 0x1d5   :  { %v1035_v37 = vadd.f32 %v1034_v14, %v1033_v63  ;;  %v1098_v14 = vld [vmem:[%s2700_s2] sm:$0x1] }
 0x1d7   :  { %v1043_v26 = vmul.f32 %v1042_v53, %v1035_v37 }
 0x1d9   :  { %v2504_v56 = vsub.f32 %v2447_v33, %v1043_v26  ;;  %v2507_v44 = vsub.f32 %v2451_v28, %v1043_v26  ;;  %v2510_v34 = vsub.f32 %v2457_v12, %v1043_v26  ;;  %v2513_v61 = vsub.f32 %v2462_v25, %v1043_v26 }
 0x1da   :  { %v2516_v22 = vsub.f32 %v2467_v19, %v1043_v26  ;;  %v2519_v8 = vsub.f32 %v2472_v27, %v1043_v26  ;;  %v2522_v46 = vsub.f32 %v2477_v40, %v1043_v26  ;;  %v2525_v33 = vsub.f32 %v2480_v35, %v1043_v26 }
 0x1db   :  { %v2528_v28 = vsub.f32 %v2484_v31, %v1043_v26  ;;  %v2531_v12 = vsub.f32 %v2488_v41, %v1043_v26  ;;  %v2534_v25 = vsub.f32 %v2492_v59, %v1043_v26  ;;  %v2537_v19 = vsub.f32 %v2496_v3, %v1043_v26 }
 0x1dc   :  { %v2539_v27 = vsub.f32 %v1011_v47, %v1043_v26  ;;  %v2541_v29 = vsub.f32 %v1012_v20, %v1043_v26  ;;  %v2543_v40 = vsub.f32 %v1013_v60, %v1043_v26  ;;  %v2545_v35 = vsub.f32 %v1014_v45, %v1043_v26 }
 0x1dd   :  { %v1060_v31 = vmul.f32 %v2504_v56, %v2504_v56  ;;  %v1061_v41 = vmul.f32 %v2507_v44, %v2507_v44  ;;  %v1062_v59 = vmul.f32 %v2510_v34, %v2510_v34  ;;  %v1063_v3 = vmul.f32 %v2513_v61, %v2513_v61 }
 0x1de   :  { %v1064_v47 = vmul.f32 %v2516_v22, %v2516_v22  ;;  %v1065_v15 = vmul.f32 %v2519_v8, %v2519_v8  ;;  %v1066_v7 = vmul.f32 %v2522_v46, %v2522_v46  ;;  %v1067_v49 = vmul.f32 %v2525_v33, %v2525_v33 }
 0x1df   :  { %v1076_v51 = vadd.f32 %v1061_v41, %v1060_v31  ;;  %v1068_v42 = vmul.f32 %v2528_v28, %v2528_v28  ;;  %v1069_v50 = vmul.f32 %v2531_v12, %v2531_v12  ;;  %v1070_v18 = vmul.f32 %v2534_v25, %v2534_v25 }
 0x1e0   :  { %v1071_v57 = vmul.f32 %v2537_v19, %v2537_v19  ;;  %v1072_v6 = vmul.f32 %v2539_v27, %v2539_v27  ;;  %v1073_v5 = vmul.f32 %v2541_v29, %v2541_v29  ;;  %v1074_v9 = vmul.f32 %v2543_v40, %v2543_v40 }
 0x1e1   :  { %v1077_v32 = vadd.f32 %v1076_v51, %v1062_v59  ;;  %v1075_v10 = vmul.f32 %v2545_v35, %v2545_v35 }
 0x1e3   :  { %v1078_v13 = vadd.f32 %v1077_v32, %v1063_v3  ;;  %v1491_v3 = vld [vmem:[%s2699_s3] ss:$0 sm:$0xff] }
 0x1e5   :  { %v1079_v43 = vadd.f32 %v1078_v13, %v1064_v47 }
 0x1e7   :  { %v1080_v24 = vadd.f32 %v1079_v43, %v1065_v15 }
 0x1e9   :  { %v1081_v0 = vadd.f32 %v1080_v24, %v1066_v7 }
 0x1eb   :  { %v1082_v20 = vadd.f32 %v1081_v0, %v1067_v49 }
 0x1ed   :  { %v1083_v17 = vadd.f32 %v1082_v20, %v1068_v42 }
 0x1ef   :  { %v1084_v23 = vadd.f32 %v1083_v17, %v1069_v50 }
 0x1f1   :  { %v1085_v39 = vadd.f32 %v1084_v23, %v1070_v18  ;;  %v1169_v23 = vld [vmem:[%s2701_s4 + $0x18] sm:$0xff] }
 0x1f3   :  { %v1086_v2 = vadd.f32 %v1085_v39, %v1071_v57 }
 0x1f5   :  { %v1087_v60 = vadd.f32 %v1086_v2, %v1072_v6  ;;  %v1170_v2 = vld [vmem:[%s2701_s4 + $0x20] sm:$0xff] }
 0x1f7   :  { %v1088_v36 = vadd.f32 %v1087_v60, %v1073_v5  ;;  %v1171_v60 = vld [vmem:[%s2701_s4 + $0x28] sm:$0xff] }
 0x1f9   :  { %v1089_v52 = vadd.f32 %v1088_v36, %v1074_v9 }
 0x1fb   :  { %v1090_v48 = vadd.f32 %v1089_v52, %v1075_v10 }
 0x1fd   :  { %v1091_v1 = vrot.slane %v1090_v48, 4 }
 0x1ff   :  { %v1092_v54 = vadd.f32 %v1091_v1, %v1090_v48  ;;  %v1172_v1 = vld [vmem:[%s2701_s4 + $0x30] sm:$0xff] }
 0x201   :  { %v1093_v55 = vrot.slane %v1092_v54, 2 }
 0x203   :  { %v1094_v62 = vadd.f32 %v1093_v55, %v1092_v54 }
 0x205   :  { %v1095_v45 = vrot.slane %v1094_v62, 1 }
 0x207   :  { %v1096_v21 = vadd.f32 %v1095_v45, %v1094_v62  ;;  %v1173_v45 = vld [vmem:[%s2701_s4 + $0x38] sm:$0xff] }
 0x209   :  { %v1097_v58 = vmul.f32 %v1096_v21, %v1042_v53 }
 0x20b   :  { %v1099_v30 = vadd.f32 1e-05, %v1097_v58 }
 0x20d   :  { %1494 = vrsqrt.f32 %v1099_v30  ;;  %vm1106_vm2 = vweird.f32 %v1099_v30 }
 0x213   :  { %v1495_v11 = vpop.eup %1494 }
 0x214   :  { %v1101_v38 = vmul.f32 %v1495_v11, %v1099_v30  ;;  %vm1107_vm1 = vweird.f32 %v1495_v11 }
 0x215   :  { %vm1108_vm3 = vmor %vm1106_vm2, %vm1107_vm1 }
 0x216   :  { %v1102_v4 = vmul.f32 %v1495_v11, %v1101_v38 }
 0x218   :  { %v1103_v16 = vmul.f32 0.5, %v1102_v4 }
 0x21a   :  { %v1104_v63 = vsub.f32 1.5, %v1103_v16 }
 0x21c   :  { %v1105_v37 = vmul.f32 %v1495_v11, %v1104_v63  ;;  %v1175_v63 = vld [vmem:[%s2701_s4 + $0x48] sm:$0xff] }
 0x21e   :  { %v1109_v26 = vsel %vm1108_vm3, %v1495_v11, %v1105_v37  ;;  %v1174_v11 = vld [vmem:[%s2701_s4 + $0x40] sm:$0xff] }
 0x21f   :  { %v1110_v31 = vmul.f32 %v1109_v26, %v1098_v14 }
 0x221   :  { %v1112_v41 = vperm.slane %v1110_v31, 0  ;;  %v1176_v31 = vld [vmem:[%s2701_s4 + $0x50] sm:$0xff] }
 0x223   :  { %v1114_v53 = vmul.f32 %v1112_v41, %v2504_v56  ;;  %v1115_v59 = vmul.f32 %v1112_v41, %v2507_v44  ;;  %v1116_v51 = vmul.f32 %v1112_v41, %v2510_v34  ;;  %v1117_v32 = vmul.f32 %v1112_v41, %v2513_v61 }
 0x224   :  { %v1118_v47 = vmul.f32 %v1112_v41, %v2516_v22  ;;  %v1119_v13 = vmul.f32 %v1112_v41, %v2519_v8  ;;  %v1122_v15 = vmul.f32 %v1112_v41, %v2528_v28  ;;  %v1123_v43 = vmul.f32 %v1112_v41, %v2531_v12 }
 0x225   :  { %v1124_v56 = vmul.f32 %v1112_v41, %v2534_v25  ;;  %v1125_v44 = vmul.f32 %v1112_v41, %v2537_v19  ;;  %v1126_v34 = vmul.f32 %v1112_v41, %v2539_v27  ;;  %v1127_v7 = vmul.f32 %v1112_v41, %v2541_v29 }
 0x226   :  { %v1128_v24 = vmul.f32 %v1112_v41, %v2543_v40  ;;  %v1129_v61 = vmul.f32 %v1112_v41, %v2545_v35  ;;  %v1120_v22 = vmul.f32 %v1112_v41, %v2522_v46  ;;  %v1134_v49 = vadd.f32 %v1491_v3, %v1114_v53  ;;  %v1166_v40 = vld [vmem:[%s2701_s4] sm:$0xff]  ;;  %v1167_v46 = vld [vmem:[%s2701_s4 + $0x8] sm:$0xff] }
 0x227   :  { %v1135_v8 = vadd.f32 %v1491_v3, %v1115_v59  ;;  %v1136_v0 = vadd.f32 %v1491_v3, %v1116_v51  ;;  %v1121_v28 = vmul.f32 %v1112_v41, %v2525_v33  ;;  %v1137_v12 = vadd.f32 %v1491_v3, %v1117_v32  ;;  %v1168_v33 = vld [vmem:[%s2701_s4 + $0x10] sm:$0xff]  ;;  %v1177_v59 = vld [vmem:[%s2701_s4 + $0x58] sm:$0xff]  ;;  %v1178_v32 = vld [vmem:[%s2701_s4 + $0x60] sm:$0xff] }
 0x228   :  { %v1138_v42 = vadd.f32 %v1491_v3, %v1118_v47  ;;  %v1139_v25 = vadd.f32 %v1491_v3, %v1119_v13  ;;  %v1140_v20 = vadd.f32 %v1491_v3, %v1120_v22  ;;  %v1150_v19 = vmax.f32 %v1134_v49, 0.0 }
 0x229   :  { %v1151_v50 = vmax.f32 %v1135_v8, 0.0  ;;  %v1152_v27 = vmax.f32 %v1136_v0, 0.0  ;;  %v1141_v17 = vadd.f32 %v1491_v3, %v1121_v28  ;;  %v1153_v29 = vmax.f32 %v1137_v12, 0.0 }
 0x22a   :  { %v1142_v35 = vadd.f32 %v1491_v3, %v1122_v15  ;;  %v1154_v18 = vmax.f32 %v1138_v42, 0.0  ;;  %v1143_v57 = vadd.f32 %v1491_v3, %v1123_v43  ;;  %v1144_v39 = vadd.f32 %v1491_v3, %v1124_v56  ;;  %v1179_v15 = vld [vmem:[%s2701_s4 + $0x68] sm:$0xff] }
 0x22b   :  { %v1155_v6 = vmax.f32 %v1139_v25, 0.0  ;;  %v1156_v5 = vmax.f32 %v1140_v20, 0.0  ;;  %v1182_v9 = vadd.f32 %v1166_v40, %v1150_v19  ;;  %v1183_v36 = vadd.f32 %v1167_v46, %v1151_v50 }
 0x22c   :  { %v1184_v10 = vadd.f32 %v1168_v33, %v1152_v27  ;;  %v1145_v52 = vadd.f32 %v1491_v3, %v1125_v44  ;;  %v1157_v48 = vmax.f32 %v1141_v17, 0.0  ;;  %v1185_v54 = vadd.f32 %v1169_v23, %v1153_v29  ;;  %v1180_v44 = vld [vmem:[%s2701_s4 + $0x70] sm:$0xff] }
 0x22d   :  { %v1146_v55 = vadd.f32 %v1491_v3, %v1126_v34  ;;  %v1158_v62 = vmax.f32 %v1142_v35, 0.0  ;;  %v1186_v21 = vadd.f32 %v1170_v2, %v1154_v18  ;;  %1198 = vst [vmem:[%s2702_s5] sm:$0xff] %v1182_v9  ;;  %v1147_v58 = vadd.f32 %v1491_v3, %v1127_v7  ;;  %v1181_v7 = vld [vmem:[%s2701_s4 + $0x78] sm:$0xff] }
 0x22e   :  { %v1159_v30 = vmax.f32 %v1143_v57, 0.0  ;;  %v1187_v38 = vadd.f32 %v1171_v60, %v1155_v6  ;;  %1199 = vst [vmem:[%s2702_s5 + $0x8] sm:$0xff] %v1183_v36  ;;  %v1148_v4 = vadd.f32 %v1491_v3, %v1128_v24  ;;  %v1160_v16 = vmax.f32 %v1144_v39, 0.0 }
 0x22f   :  { %v1188_v14 = vadd.f32 %v1172_v1, %v1156_v5  ;;  %1200 = vst [vmem:[%s2702_s5 + $0x10] sm:$0xff] %v1184_v10  ;;  %v1149_v37 = vadd.f32 %v1491_v3, %v1129_v61  ;;  %v1161_v26 = vmax.f32 %v1145_v52, 0.0  ;;  %v1189_v41 = vadd.f32 %v1173_v45, %v1157_v48 }
 0x230   :  { %1201 = vst [vmem:[%s2702_s5 + $0x18] sm:$0xff] %v1185_v54  ;;  %v1162_v53 = vmax.f32 %v1146_v55, 0.0  ;;  %v1190_v51 = vadd.f32 %v1174_v11, %v1158_v62  ;;  %v1163_v3 = vmax.f32 %v1147_v58, 0.0  ;;  %v1191_v47 = vadd.f32 %v1175_v63, %v1159_v30 }
 0x231   :  { %1202 = vst [vmem:[%s2702_s5 + $0x20] sm:$0xff] %v1186_v21  ;;  %v1164_v13 = vmax.f32 %v1148_v4, 0.0  ;;  %v1192_v43 = vadd.f32 %v1176_v31, %v1160_v16  ;;  %v1165_v56 = vmax.f32 %v1149_v37, 0.0  ;;  %v1193_v34 = vadd.f32 %v1177_v59, %v1161_v26 }
 0x232   :  { %1203 = vst [vmem:[%s2702_s5 + $0x28] sm:$0xff] %v1187_v38  ;;  %v1194_v24 = vadd.f32 %v1178_v32, %v1162_v53  ;;  %v1195_v61 = vadd.f32 %v1179_v15, %v1163_v3 }
 0x233   :  { %1204 = vst [vmem:[%s2702_s5 + $0x30] sm:$0xff] %v1188_v14  ;;  %v1196_v22 = vadd.f32 %v1180_v44, %v1164_v13  ;;  %v1197_v49 = vadd.f32 %v1181_v7, %v1165_v56 }
 0x234   :  { %1205 = vst [vmem:[%s2702_s5 + $0x38] sm:$0xff] %v1189_v41 }
 0x235   :  { %1206 = vst [vmem:[%s2702_s5 + $0x40] sm:$0xff] %v1190_v51 }
 0x236   :  { %1207 = vst [vmem:[%s2702_s5 + $0x48] sm:$0xff] %v1191_v47 }
 0x237   :  { %1208 = vst [vmem:[%s2702_s5 + $0x50] sm:$0xff] %v1192_v43 }
 0x238   :  { %1209 = vst [vmem:[%s2702_s5 + $0x58] sm:$0xff] %v1193_v34 }
 0x239   :  { %1210 = vst [vmem:[%s2702_s5 + $0x60] sm:$0xff] %v1194_v24 }
 0x23a   :  { %1211 = vst [vmem:[%s2702_s5 + $0x68] sm:$0xff] %v1195_v61 }
 0x23b   :  { %1212 = vst [vmem:[%s2702_s5 + $0x70] sm:$0xff] %v1196_v22 }
 0x23c   :  { %1213 = vst [vmem:[%s2702_s5 + $0x78] sm:$0xff] %v1197_v49 }

// kernel: _lambda_.10
= control target key start
LH: loop header
LB: loop body
LE: loop exit
PB: predicated region body
PF: predicated region fallthrough
CT: control target
= control target key end

     0   :  { %s2609_s1 = inlined_call_operand.vmem [shape: f32[9,128,128], index: 1, kind: input, shape index: {}]   ;;  %s2610_s0 = inlined_call_operand.vmem [shape: f32[2,10,10,128], index: 0, kind: input, shape index: {}]   ;;  %s2611_s3 = inlined_call_operand.vmem [shape: f32[1,128], index: 3, kind: input, shape index: {}]   ;;  %s2612_s2 = inlined_call_operand.vmem [shape: f32[1,128], index: 2, kind: input, shape index: {}]   ;;  %s2613_s4 = inlined_call_operand.vmem [shape: f32[128,128], index: 4, kind: output, shape index: {}]  }
   0x1   :  { %v1198_v0 = vld [vmem:[%s2609_s1 + $0xf8] sm:$0xff]  ;;  %v1197_v1 = vld [vmem:[%s2609_s1 + $0xf0] sm:$0xff]  ;;  %v1196_v2 = vld [vmem:[%s2609_s1 + $0xe8] sm:$0xff] }
   0x2   :  { %1407 = vmatpush.msra.mxu1 %v1198_v0  ;;  %1408 = vmatpush.msra.mxu2 %v1198_v0  ;;  %v1195_v3 = vld [vmem:[%s2609_s1 + $0xe0] sm:$0xff]  ;;  %v1194_v4 = vld [vmem:[%s2609_s1 + $0xd8] sm:$0xff]  ;;  %v1193_v5 = vld [vmem:[%s2609_s1 + $0xd0] sm:$0xff] }
   0x3   :  { %1409 = vmatpush.msra.mxu3 %v1198_v0  ;;  %82 = vmatpush.msra.mxu0 %v1198_v0  ;;  %v1192_v6 = vld [vmem:[%s2609_s1 + $0xc8] sm:$0xff]  ;;  %v1191_v7 = vld [vmem:[%s2609_s1 + $0xc0] sm:$0xff]  ;;  %v1190_v8 = vld [vmem:[%s2609_s1 + $0xb8] sm:$0xff] }
   0x4   :  { %1410 = vmatpush.msra.mxu1 %v1197_v1  ;;  %1411 = vmatpush.msra.mxu2 %v1197_v1  ;;  %v1189_v9 = vld [vmem:[%s2609_s1 + $0xb0] sm:$0xff]  ;;  %v1188_v10 = vld [vmem:[%s2609_s1 + $0xa8] sm:$0xff]  ;;  %v1187_v11 = vld [vmem:[%s2609_s1 + $0xa0] sm:$0xff] }
   0x5   :  { %1412 = vmatpush.msra.mxu3 %v1197_v1  ;;  %83 = vmatpush.msra.mxu0 %v1197_v1  ;;  %v1186_v12 = vld [vmem:[%s2609_s1 + $0x98] sm:$0xff]  ;;  %v1185_v13 = vld [vmem:[%s2609_s1 + $0x90] sm:$0xff]  ;;  %v1184_v14 = vld [vmem:[%s2609_s1 + $0x88] sm:$0xff] }
   0x6   :  { %1413 = vmatpush.msra.mxu1 %v1196_v2  ;;  %1414 = vmatpush.msra.mxu2 %v1196_v2  ;;  %v1183_v15 = vld [vmem:[%s2609_s1 + $0x80] sm:$0xff]  ;;  %v1214_v18 = vld [vmem:[%s2609_s1 + $0x178] sm:$0xff]  ;;  %v1213_v21 = vld [vmem:[%s2609_s1 + $0x170] sm:$0xff] }
   0x7   :  { %1415 = vmatpush.msra.mxu3 %v1196_v2  ;;  %84 = vmatpush.msra.mxu0 %v1196_v2  ;;  %v1538_v16 = vld [vmem:[%s2610_s0 + $0x41] sm:$0xff]  ;;  %v48_v19 = vld [vmem:[%s2609_s1 + $0x78] sm:$0xff]  ;;  %v47_v23 = vld [vmem:[%s2609_s1 + $0x70] sm:$0xff] }
   0x8   :  { %1416 = vmatpush.msra.mxu1 %v1195_v3  ;;  %1417 = vmatpush.msra.mxu2 %v1195_v3  ;;  %v57_v17 = vld [vmem:[%s2610_s0 + $0xa1] sm:$0xff]  ;;  %v1246_v22 = vld [vmem:[%s2609_s1 + $0x1f8] sm:$0xff]  ;;  %v1245_v25 = vld [vmem:[%s2609_s1 + $0x1f0] sm:$0xff] }
   0x9   :  { %1418 = vmatpush.msra.mxu3 %v1195_v3  ;;  %85 = vmatpush.msra.mxu0 %v1195_v3  ;;  %v1552_v20 = vld [vmem:[%s2610_s0 + $0xe1] sm:$0xff]  ;;  %v1589_v31 = vld [vmem:[%s2610_s0 + $0xb1] sm:$0xff] }
   0xa   :  { %1419 = vmatpush.msra.mxu1 %v1194_v4  ;;  %1420 = vmatpush.msra.mxu2 %v1194_v4  ;;  %v1212_v24 = vld [vmem:[%s2609_s1 + $0x168] sm:$0xff]  ;;  %v1211_v28 = vld [vmem:[%s2609_s1 + $0x160] sm:$0xff]  ;;  %v1594_v32 = vld [vmem:[%s2610_s0 + $0x51] sm:$0xff] }
   0xb   :  { %1421 = vmatpush.msra.mxu3 %v1194_v4  ;;  %86 = vmatpush.msra.mxu0 %v1194_v4  ;;  %v46_v26 = vld [vmem:[%s2609_s1 + $0x68] sm:$0xff]  ;;  %v45_v30 = vld [vmem:[%s2609_s1 + $0x60] sm:$0xff]  ;;  %v1210_v33 = vld [vmem:[%s2609_s1 + $0x158] sm:$0xff] }
   0xc   :  { %1422 = vmatpush.msra.mxu1 %v1193_v5  ;;  %1423 = vmatpush.msra.mxu2 %v1193_v5  ;;  %v49_v27 = vld [vmem:[%s2610_s0 + $0x1] sm:$0xff]  ;;  %v44_v35 = vld [vmem:[%s2609_s1 + $0x58] sm:$0xff]  ;;  %v1209_v37 = vld [vmem:[%s2609_s1 + $0x150] sm:$0xff] }
   0xd   :  { %1424 = vmatpush.msra.mxu3 %v1193_v5  ;;  %87 = vmatpush.msra.mxu0 %v1193_v5  ;;  %v1244_v29 = vld [vmem:[%s2609_s1 + $0x1e8] sm:$0xff]  ;;  %v1243_v34 = vld [vmem:[%s2609_s1 + $0x1e0] sm:$0xff]  ;;  %v1609_v36 = vld [vmem:[%s2610_s0 + $0xf1] sm:$0xff] }
   0xe   :  { %1425 = vmatpush.msra.mxu1 %v1192_v6  ;;  %1426 = vmatpush.msra.mxu2 %v1192_v6  ;;  %v1242_v38 = vld [vmem:[%s2609_s1 + $0x1d8] sm:$0xff]  ;;  %v43_v40 = vld [vmem:[%s2609_s1 + $0x50] sm:$0xff]  ;;  %v1208_v41 = vld [vmem:[%s2609_s1 + $0x148] sm:$0xff] }
   0xf   :  { %1427 = vmatpush.msra.mxu3 %v1192_v6  ;;  %88 = vmatpush.msra.mxu0 %v1192_v6  ;;  %v1278_v39 = vld [vmem:[%s2609_s1 + $0x278] sm:$0xff]  ;;  %v1241_v42 = vld [vmem:[%s2609_s1 + $0x1d0] sm:$0xff]  ;;  %v42_v44 = vld [vmem:[%s2609_s1 + $0x48] sm:$0xff] }
  0x10   :  { %1428 = vmatpush.msra.mxu1 %v1191_v7  ;;  %1429 = vmatpush.msra.mxu2 %v1191_v7  ;;  %v1277_v43 = vld [vmem:[%s2609_s1 + $0x270] sm:$0xff]  ;;  %v1207_v45 = vld [vmem:[%s2609_s1 + $0x140] sm:$0xff]  ;;  %v1240_v46 = vld [vmem:[%s2609_s1 + $0x1c8] sm:$0xff] }
  0x11   :  { %1430 = vmatpush.msra.mxu3 %v1191_v7  ;;  %89 = vmatpush.msra.mxu0 %v1191_v7  ;;  %v1276_v47 = vld [vmem:[%s2609_s1 + $0x268] sm:$0xff]  ;;  %v41_v48 = vld [vmem:[%s2609_s1 + $0x40] sm:$0xff]  ;;  %v1206_v51 = vld [vmem:[%s2609_s1 + $0x138] sm:$0xff] }
  0x12   :  { %1431 = vmatpush.msra.mxu1 %v1190_v8  ;;  %1432 = vmatpush.msra.mxu2 %v1190_v8  ;;  %v1652_v49 = vld [vmem:[%s2610_s0 + $0xc1] sm:$0xff]  ;;  %v40_v54 = vld [vmem:[%s2609_s1 + $0x38] sm:$0xff]  ;;  %v1205_v57 = vld [vmem:[%s2609_s1 + $0x130] sm:$0xff] }
  0x13   :  { %1433 = vmatpush.msra.mxu3 %v1190_v8  ;;  %90 = vmatpush.msra.mxu0 %v1190_v8  ;;  %v1657_v50 = vld [vmem:[%s2610_s0 + $0x61] sm:$0xff]  ;;  %v1675_v55 = vld [vmem:[%s2610_s0 + $0x11] sm:$0xff] }
  0x14   :  { %1434 = vmatpush.msra.mxu1 %v1189_v9  ;;  %1435 = vmatpush.msra.mxu2 %v1189_v9  ;;  %v1239_v52 = vld [vmem:[%s2609_s1 + $0x1c0] sm:$0xff]  ;;  %v1238_v58 = vld [vmem:[%s2609_s1 + $0x1b8] sm:$0xff]  ;;  %v39_v60 = vld [vmem:[%s2609_s1 + $0x30] sm:$0xff] }
  0x15   :  { %1436 = vmatpush.msra.mxu3 %v1189_v9  ;;  %91 = vmatpush.msra.mxu0 %v1189_v9  ;;  %v1275_v53 = vld [vmem:[%s2609_s1 + $0x260] sm:$0xff]  ;;  %v1274_v59 = vld [vmem:[%s2609_s1 + $0x258] sm:$0xff]  ;;  %v1204_v61 = vld [vmem:[%s2609_s1 + $0x128] sm:$0xff] }
  0x16   :  { %1437 = vmatpush.msra.mxu1 %v1188_v10  ;;  %1438 = vmatpush.msra.mxu2 %v1188_v10  ;;  %v1681_v56 = vld [vmem:[%s2610_s0 + $0x101] sm:$0xff]  ;;  %v1237_v62 = vld [vmem:[%s2609_s1 + $0x1b0] sm:$0xff]  ;;  %v1202_v7 = vld [vmem:[%s2609_s1 + $0x118] sm:$0xff] }
  0x17   :  { %1439 = vmatpush.msra.mxu3 %v1188_v10  ;;  %92 = vmatpush.msra.mxu0 %v1188_v10  ;;  %v1273_v63 = vld [vmem:[%s2609_s1 + $0x250] sm:$0xff]  ;;  %v38_v0 = vld [vmem:[%s2609_s1 + $0x28] sm:$0xff]  ;;  %v1203_v1 = vld [vmem:[%s2609_s1 + $0x120] sm:$0xff] }
  0x18   :  { %1440 = vmatpush.msra.mxu1 %v1187_v11  ;;  %1441 = vmatpush.msra.mxu2 %v1187_v11  ;;  %v1236_v2 = vld [vmem:[%s2609_s1 + $0x1a8] sm:$0xff]  ;;  %v37_v4 = vld [vmem:[%s2609_s1 + $0x20] sm:$0xff]  ;;  %v1724_v5 = vld [vmem:[%s2610_s0 + $0xd1] sm:$0xff] }
  0x19   :  { %1442 = vmatpush.msra.mxu3 %v1187_v11  ;;  %93 = vmatpush.msra.mxu0 %v1187_v11  ;;  %v1272_v3 = vld [vmem:[%s2609_s1 + $0x248] sm:$0xff]  ;;  %v1729_v6 = vld [vmem:[%s2610_s0 + $0x71] sm:$0xff]  ;;  %v1235_v8 = vld [vmem:[%s2609_s1 + $0x1a0] sm:$0xff] }
  0x1a   :  { %1443 = vmatpush.msra.mxu1 %v1186_v12  ;;  %1444 = vmatpush.msra.mxu2 %v1186_v12  ;;  %v1271_v9 = vld [vmem:[%s2609_s1 + $0x240] sm:$0xff]  ;;  %v36_v10 = vld [vmem:[%s2609_s1 + $0x18] sm:$0xff] }
  0x1b   :  { %1445 = vmatpush.msra.mxu3 %v1186_v12  ;;  %94 = vmatpush.msra.mxu0 %v1186_v12  ;;  %v1747_v11 = vld [vmem:[%s2610_s0 + $0x21] sm:$0xff]  ;;  %v1753_v12 = vld [vmem:[%s2610_s0 + $0x111] sm:$0xff] }
  0x1c   :  { %1446 = vmatpush.msra.mxu1 %v1185_v13  ;;  %1447 = vmatpush.msra.mxu2 %v1185_v13 }
  0x1d   :  { %1448 = vmatpush.msra.mxu3 %v1185_v13  ;;  %95 = vmatpush.msra.mxu0 %v1185_v13  ;;  %v1201_v13 = vld [vmem:[%s2609_s1 + $0x110] sm:$0xff] }
  0x1e   :  { %1449 = vmatpush.msra.mxu1 %v1184_v14  ;;  %1450 = vmatpush.msra.mxu2 %v1184_v14 }
  0x1f   :  { %1451 = vmatpush.msra.mxu3 %v1184_v14  ;;  %96 = vmatpush.msra.mxu0 %v1184_v14  ;;  %v1234_v14 = vld [vmem:[%s2609_s1 + $0x198] sm:$0xff] }
  0x20   :  { %1452 = vmatpush.msra.mxu1 %v1183_v15  ;;  %1453 = vmatpush.msra.mxu2 %v1183_v15 }
  0x21   :  { %110 = vmatmul.f32.vlgmr.msra.gmra.mxu1 %v1538_v16  ;;  %122 = vmatmul.f32.vlgmr.msra.gmra.mxu2 %v57_v17  ;;  %v35_v17 = vld [vmem:[%s2609_s1 + $0x10] sm:$0xff] }
  0x22   :  { %245 = vmatpush.msrb.mxu2 %v1214_v18  ;;  %1454 = vmatpush.msra.mxu3 %v1183_v15  ;;  %v1200_v18 = vld [vmem:[%s2609_s1 + $0x108] sm:$0xff] }
  0x23   :  { %147 = vmatpush.msrb.mxu1 %v48_v19  ;;  %134 = vmatmul.f32.vlgmr.msra.gmra.mxu3 %v1552_v20  ;;  %v1233_v19 = vld [vmem:[%s2609_s1 + $0x190] sm:$0xff] }
  0x24   :  { %246 = vmatpush.msrb.mxu2 %v1213_v21  ;;  %360 = vmatpush.msrb.mxu3 %v1246_v22  ;;  %v1269_v21 = vld [vmem:[%s2609_s1 + $0x230] sm:$0xff]  ;;  %v34_v22 = vld [vmem:[%s2609_s1 + $0x8] sm:$0xff] }
  0x25   :  { %148 = vmatpush.msrb.mxu1 %v47_v23  ;;  %97 = vmatpush.msra.mxu0 %v1183_v15  ;;  %v1270_v15 = vld [vmem:[%s2609_s1 + $0x238] sm:$0xff]  ;;  %v1199_v23 = vld [vmem:[%s2609_s1 + $0x100] sm:$0xff] }
  0x26   :  { %247 = vmatpush.msrb.mxu2 %v1212_v24  ;;  %361 = vmatpush.msrb.mxu3 %v1245_v25  ;;  %v1232_v24 = vld [vmem:[%s2609_s1 + $0x188] sm:$0xff] }
  0x27   :  { %149 = vmatpush.msrb.mxu1 %v46_v26  ;;  %98 = vmatmul.f32.vlgmr.msra.gmra.mxu0 %v49_v27  ;;  %v1268_v25 = vld [vmem:[%s2609_s1 + $0x228] sm:$0xff]  ;;  %v33_v26 = vld [vmem:[%s2609_s1] sm:$0xff] }
  0x28   :  { %248 = vmatpush.msrb.mxu2 %v1211_v28  ;;  %362 = vmatpush.msrb.mxu3 %v1244_v29  ;;  %v212_v27 = vld [vmem:[%s2610_s0 + $0x2] sm:$0xff] }
  0x29   :  { %150 = vmatpush.msrb.mxu1 %v45_v30  ;;  %125 = vmatmul.f32.gmra.mxu2 %v1589_v31  ;;  %v17_v28 = vld [vmem:[%s2610_s0] sm:$0xff] }
  0x2a   :  { %113 = vmatmul.f32.gmra.mxu1 %v1594_v32  ;;  %249 = vmatpush.msrb.mxu2 %v1210_v33  ;;  %v1231_v29 = vld [vmem:[%s2609_s1 + $0x180] sm:$0xff]  ;;  %v1342_v33 = vld [vmem:[%s2609_s1 + $0x378] sm:$0xff] }
  0x2b   :  { %363 = vmatpush.msrb.mxu3 %v1243_v34  ;;  %151 = vmatpush.msrb.mxu1 %v44_v35  ;;  %v1267_v30 = vld [vmem:[%s2609_s1 + $0x220] sm:$0xff]  ;;  %v1811_v34 = vld [vmem:[%s2610_s0 + $0x31] sm:$0xff] }
  0x2c   :  { %137 = vmatmul.f32.gmra.mxu3 %v1609_v36  ;;  %250 = vmatpush.msrb.mxu2 %v1209_v37  ;;  %v1215_v35 = vld [vmem:[%s2610_s0 + $0x10] sm:$0xff]  ;;  %v1266_v37 = vld [vmem:[%s2609_s1 + $0x218] sm:$0xff] }
  0x2d   :  { %364 = vmatpush.msrb.mxu3 %v1242_v38  ;;  %474 = vmatpush.msrb.mxu0 %v1278_v39  ;;  %v1374_v38 = vld [vmem:[%s2609_s1 + $0x3f8] sm:$0xff] }
  0x2e   :  { %152 = vmatpush.msrb.mxu1 %v43_v40  ;;  %251 = vmatpush.msrb.mxu2 %v1208_v41  ;;  %v1310_v39 = vld [vmem:[%s2609_s1 + $0x2f8] sm:$0xff]  ;;  %v1341_v40 = vld [vmem:[%s2609_s1 + $0x370] sm:$0xff] }
  0x2f   :  { %365 = vmatpush.msrb.mxu3 %v1241_v42  ;;  %475 = vmatpush.msrb.mxu0 %v1277_v43  ;;  %v1265_v41 = vld [vmem:[%s2609_s1 + $0x210] sm:$0xff] }
  0x30   :  { %153 = vmatpush.msrb.mxu1 %v42_v44  ;;  %252 = vmatpush.msrb.mxu2 %v1207_v45  ;;  %v1373_v42 = vld [vmem:[%s2609_s1 + $0x3f0] sm:$0xff]  ;;  %v1340_v44 = vld [vmem:[%s2609_s1 + $0x368] sm:$0xff] }
  0x31   :  { %366 = vmatpush.msrb.mxu3 %v1240_v46  ;;  %476 = vmatpush.msrb.mxu0 %v1276_v47  ;;  %v1309_v43 = vld [vmem:[%s2609_s1 + $0x2f0] sm:$0xff]  ;;  %v1264_v45 = vld [vmem:[%s2609_s1 + $0x208] sm:$0xff] }
  0x32   :  { %154 = vmatpush.msrb.mxu1 %v41_v48  ;;  %128 = vmatmul.f32.gmra.mxu2 %v1652_v49  ;;  %v1847_v46 = vld [vmem:[%s2610_s0 + $0x12] sm:$0xff]  ;;  %v1372_v47 = vld [vmem:[%s2609_s1 + $0x3e8] sm:$0xff]  ;;  %v1263_v48 = vld [vmem:[%s2609_s1 + $0x200] sm:$0xff] }
  0x33   :  { %116 = vmatmul.f32.gmra.mxu1 %v1657_v50  ;;  %253 = vmatpush.msrb.mxu2 %v1206_v51  ;;  %v1308_v51 = vld [vmem:[%s2609_s1 + $0x2e8] sm:$0xff] }
  0x34   :  { %367 = vmatpush.msrb.mxu3 %v1239_v52  ;;  %477 = vmatpush.msrb.mxu0 %v1275_v53  ;;  %v1862_v52 = vld [vmem:[%s2610_s0 + $0x20] sm:$0xff]  ;;  %v1406_v53 = vld [vmem:[%s2609_s1 + $0x478] sm:$0xff] }
  0x35   :  { %155 = vmatpush.msrb.mxu1 %v40_v54  ;;  %101 = vmatmul.f32.gmra.mxu0 %v1675_v55  ;;  %v1339_v54 = vld [vmem:[%s2609_s1 + $0x360] sm:$0xff] }
  0x36   :  { %140 = vmatmul.f32.gmra.mxu3 %v1681_v56  ;;  %254 = vmatpush.msrb.mxu2 %v1205_v57  ;;  %v1371_v57 = vld [vmem:[%s2609_s1 + $0x3e0] sm:$0xff] }
  0x37   :  { %368 = vmatpush.msrb.mxu3 %v1238_v58  ;;  %478 = vmatpush.msrb.mxu0 %v1274_v59  ;;  %v1307_v58 = vld [vmem:[%s2609_s1 + $0x2e0] sm:$0xff]  ;;  %v1405_v59 = vld [vmem:[%s2609_s1 + $0x470] sm:$0xff] }
  0x38   :  { %156 = vmatpush.msrb.mxu1 %v39_v60  ;;  %255 = vmatpush.msrb.mxu2 %v1204_v61  ;;  %v1338_v60 = vld [vmem:[%s2609_s1 + $0x358] sm:$0xff] }
  0x39   :  { %369 = vmatpush.msrb.mxu3 %v1237_v62  ;;  %479 = vmatpush.msrb.mxu0 %v1273_v63  ;;  %v1370_v61 = vld [vmem:[%s2609_s1 + $0x3d8] sm:$0xff]  ;;  %v1404_v63 = vld [vmem:[%s2609_s1 + $0x468] sm:$0xff] }
  0x3a   :  { %157 = vmatpush.msrb.mxu1 %v38_v0  ;;  %256 = vmatpush.msrb.mxu2 %v1203_v1  ;;  %v1306_v62 = vld [vmem:[%s2609_s1 + $0x2d8] sm:$0xff]  ;;  %v1337_v0 = vld [vmem:[%s2609_s1 + $0x350] sm:$0xff]  ;;  %v1403_v1 = vld [vmem:[%s2609_s1 + $0x460] sm:$0xff] }
  0x3b   :  { %370 = vmatpush.msrb.mxu3 %v1236_v2  ;;  %480 = vmatpush.msrb.mxu0 %v1272_v3  ;;  %v1369_v2 = vld [vmem:[%s2609_s1 + $0x3d0] sm:$0xff] }
  0x3c   :  { %158 = vmatpush.msrb.mxu1 %v37_v4  ;;  %131 = vmatmul.f32.gmra.mxu2 %v1724_v5  ;;  %v1911_v3 = vld [vmem:[%s2610_s0 + $0x30] sm:$0xff]  ;;  %v1402_v4 = vld [vmem:[%s2609_s1 + $0x458] sm:$0xff] }
  0x3d   :  { %119 = vmatmul.f32.gmra.mxu1 %v1729_v6  ;;  %257 = vmatpush.msrb.mxu2 %v1202_v7  ;;  %v1305_v7 = vld [vmem:[%s2609_s1 + $0x2d0] sm:$0xff] }
  0x3e   :  { %371 = vmatpush.msrb.mxu3 %v1235_v8  ;;  %481 = vmatpush.msrb.mxu0 %v1271_v9  ;;  %v1336_v8 = vld [vmem:[%s2609_s1 + $0x348] sm:$0xff] }
  0x3f   :  { %159 = vmatpush.msrb.mxu1 %v36_v10  ;;  %104 = vmatmul.f32.gmra.mxu0 %v1747_v11  ;;  %v1368_v9 = vld [vmem:[%s2609_s1 + $0x3c8] sm:$0xff]  ;;  %v1401_v10 = vld [vmem:[%s2609_s1 + $0x450] sm:$0xff] }
  0x40   :  { %143 = vmatmul.f32.gmra.mxu3 %v1753_v12  ;;  %258 = vmatpush.msrb.mxu2 %v1201_v13  ;;  %v1304_v13 = vld [vmem:[%s2609_s1 + $0x2c8] sm:$0xff] }
  0x41   :  { %372 = vmatpush.msrb.mxu3 %v1234_v14  ;;  %482 = vmatpush.msrb.mxu0 %v1270_v15  ;;  %v1937_v14 = vld [vmem:[%s2610_s0 + $0x32] sm:$0xff]  ;;  %v1943_v15 = vld [vmem:[%s2610_s0 + $0x40] sm:$0xff] }
  0x42   :  { %160 = vmatpush.msrb.mxu1 %v35_v17  ;;  %259 = vmatpush.msrb.mxu2 %v1200_v18  ;;  %v1335_v17 = vld [vmem:[%s2609_s1 + $0x340] sm:$0xff] }
  0x43   :  { %373 = vmatpush.msrb.mxu3 %v1233_v19  ;;  %483 = vmatpush.msrb.mxu0 %v1269_v21  ;;  %v1367_v18 = vld [vmem:[%s2609_s1 + $0x3c0] sm:$0xff]  ;;  %v1400_v19 = vld [vmem:[%s2609_s1 + $0x448] sm:$0xff] }
  0x44   :  { %161 = vmatpush.msrb.mxu1 %v34_v22  ;;  %260 = vmatpush.msrb.mxu2 %v1199_v23  ;;  %v1303_v21 = vld [vmem:[%s2609_s1 + $0x2c0] sm:$0xff]  ;;  %v1969_v23 = vld [vmem:[%s2610_s0 + $0x50] sm:$0xff] }
  0x45   :  { %374 = vmatpush.msrb.mxu3 %v1232_v24  ;;  %484 = vmatpush.msrb.mxu0 %v1268_v25  ;;  %v1963_v22 = vld [vmem:[%s2610_s0 + $0x42] sm:$0xff]  ;;  %v1334_v24 = vld [vmem:[%s2609_s1 + $0x338] sm:$0xff] }
  0x46   :  { %162 = vmatpush.msrb.mxu1 %v33_v26  ;;  %261 = vmatmul.f32.vlgmr.msrb.gmra.mxu2 %v212_v27  ;;  %v1366_v25 = vld [vmem:[%s2609_s1 + $0x3b8] sm:$0xff]  ;;  %v1399_v26 = vld [vmem:[%s2609_s1 + $0x440] sm:$0xff] }
  0x47   :  { %163 = vmatmul.f32.vlgmr.msrb.gmra.mxu1 %v17_v28  ;;  %375 = vmatpush.msrb.mxu3 %v1231_v29  ;;  %v1302_v27 = vld [vmem:[%s2609_s1 + $0x2b8] sm:$0xff]  ;;  %v1995_v29 = vld [vmem:[%s2610_s0 + $0x60] sm:$0xff] }
  0x48   :  { %485 = vmatpush.msrb.mxu0 %v1267_v30  ;;  %703 = vmatpush.msra.mxu2 %v1342_v33  ;;  %v1989_v28 = vld [vmem:[%s2610_s0 + $0x52] sm:$0xff] }
  0x49   :  { %107 = vmatmul.f32.gmra.mxu0 %v1811_v34  ;;  %376 = vmatmul.f32.vlgmr.msrb.gmra.mxu3 %v1215_v35  ;;  %v1333_v30 = vld [vmem:[%s2609_s1 + $0x330] sm:$0xff] }
  0x4a   :  { %486 = vmatpush.msrb.mxu0 %v1266_v37  ;;  %817 = vmatpush.msra.mxu3 %v1374_v38  ;;  %v1365_v33 = vld [vmem:[%s2609_s1 + $0x3b0] sm:$0xff]  ;;  %v2015_v38 = vld [vmem:[%s2610_s0 + $0x62] sm:$0xff] }
  0x4b   :  { %588 = vmatpush.msra.mxu1 %v1310_v39  ;;  %704 = vmatpush.msra.mxu2 %v1341_v40  ;;  %v1301_v37 = vld [vmem:[%s2609_s1 + $0x2b0] sm:$0xff]  ;;  %v1332_v40 = vld [vmem:[%s2609_s1 + $0x328] sm:$0xff] }
  0x4c   :  { %487 = vmatpush.msrb.mxu0 %v1265_v41  ;;  %818 = vmatpush.msra.mxu3 %v1373_v42  ;;  %v2021_v39 = vld [vmem:[%s2610_s0 + $0x70] sm:$0xff]  ;;  %v1364_v41 = vld [vmem:[%s2609_s1 + $0x3a8] sm:$0xff] }
  0x4d   :  { %589 = vmatpush.msra.mxu1 %v1309_v43  ;;  %705 = vmatpush.msra.mxu2 %v1340_v44  ;;  %v1397_v42 = vld [vmem:[%s2609_s1 + $0x430] sm:$0xff]  ;;  %v1300_v43 = vld [vmem:[%s2609_s1 + $0x2a8] sm:$0xff] }
  0x4e   :  { %488 = vmatpush.msrb.mxu0 %v1264_v45  ;;  %264 = vmatmul.f32.gmra.mxu2 %v1847_v46  ;;  %v2041_v44 = vld [vmem:[%s2610_s0 + $0x72] sm:$0xff]  ;;  %v2047_v45 = vld [vmem:[%s2610_s0 + $0x80] sm:$0xff] }
  0x4f   :  { %166 = vmatmul.f32.gmra.mxu1 %v1215_v35  ;;  %819 = vmatpush.msra.mxu3 %v1372_v47  ;;  %v1398_v35 = vld [vmem:[%s2609_s1 + $0x438] sm:$0xff]  ;;  %v1331_v47 = vld [vmem:[%s2609_s1 + $0x320] sm:$0xff] }
  0x50   :  { %489 = vmatpush.msrb.mxu0 %v1263_v48  ;;  %590 = vmatpush.msra.mxu1 %v1308_v51  ;;  %v1363_v48 = vld [vmem:[%s2609_s1 + $0x3a0] sm:$0xff]  ;;  %v1396_v51 = vld [vmem:[%s2609_s1 + $0x428] sm:$0xff] }
  0x51   :  { %379 = vmatmul.f32.gmra.mxu3 %v1862_v52  ;;  %490 = vmatmul.f32.vlgmr.msrb.gmra.mxu0 %v1675_v55  ;;  %v1893_v55 = vld [vmem:[%s2610_s0 + $0x22] sm:$0xff] }
  0x52   :  { %931 = vmatpush.msra.mxu0 %v1406_v53  ;;  %706 = vmatpush.msra.mxu2 %v1339_v54  ;;  %v1299_v53 = vld [vmem:[%s2609_s1 + $0x2a0] sm:$0xff] }
  0x53   :  { %820 = vmatpush.msra.mxu3 %v1371_v57  ;;  %591 = vmatpush.msra.mxu1 %v1307_v58  ;;  %v220_v54 = vld [vmem:[%s2610_s0 + $0xa2] sm:$0xff]  ;;  %v1223_v58 = vld [vmem:[%s2610_s0 + $0xb0] sm:$0xff] }
  0x54   :  { %932 = vmatpush.msra.mxu0 %v1405_v59  ;;  %707 = vmatpush.msra.mxu2 %v1338_v60  ;;  %v25_v57 = vld [vmem:[%s2610_s0 + $0xa0] sm:$0xff]  ;;  %v1330_v60 = vld [vmem:[%s2609_s1 + $0x318] sm:$0xff] }
  0x55   :  { %821 = vmatpush.msra.mxu3 %v1370_v61  ;;  %592 = vmatpush.msra.mxu1 %v1306_v62  ;;  %v2076_v59 = vld [vmem:[%s2610_s0 + $0x81] sm:$0xff]  ;;  %v1362_v61 = vld [vmem:[%s2609_s1 + $0x398] sm:$0xff] }
  0x56   :  { %267 = vmatmul.f32.gmra.mxu2 %v1893_v55  ;;  %933 = vmatpush.msra.mxu0 %v1404_v63  ;;  %v1395_v62 = vld [vmem:[%s2609_s1 + $0x420] sm:$0xff]  ;;  %v1298_v63 = vld [vmem:[%s2609_s1 + $0x298] sm:$0xff] }
  0x57   :  { %169 = vmatmul.f32.gmra.mxu1 %v1862_v52  ;;  %708 = vmatpush.msra.mxu2 %v1337_v0  ;;  %v2094_v0 = vld [vmem:[%s2610_s0 + $0xb2] sm:$0xff] }
  0x58   :  { %934 = vmatpush.msra.mxu0 %v1403_v1  ;;  %822 = vmatpush.msra.mxu3 %v1369_v2  ;;  %v2100_v1 = vld [vmem:[%s2610_s0 + $0xc0] sm:$0xff]  ;;  %v1329_v2 = vld [vmem:[%s2609_s1 + $0x310] sm:$0xff] }
  0x59   :  { %382 = vmatmul.f32.gmra.mxu3 %v1911_v3  ;;  %493 = vmatmul.f32.gmra.mxu0 %v1747_v11 }
  0x5a   :  { %935 = vmatpush.msra.mxu0 %v1402_v4  ;;  %593 = vmatpush.msra.mxu1 %v1305_v7  ;;  %v1361_v4 = vld [vmem:[%s2609_s1 + $0x390] sm:$0xff]  ;;  %v1394_v7 = vld [vmem:[%s2609_s1 + $0x418] sm:$0xff] }
  0x5b   :  { %709 = vmatpush.msra.mxu2 %v1336_v8  ;;  %823 = vmatpush.msra.mxu3 %v1368_v9  ;;  %v1297_v8 = vld [vmem:[%s2609_s1 + $0x290] sm:$0xff]  ;;  %v2119_v9 = vld [vmem:[%s2610_s0 + $0xc2] sm:$0xff] }
  0x5c   :  { %936 = vmatpush.msra.mxu0 %v1401_v10  ;;  %594 = vmatpush.msra.mxu1 %v1304_v13  ;;  %v1328_v10 = vld [vmem:[%s2609_s1 + $0x308] sm:$0xff] }
  0x5d   :  { %710 = vmatpush.msra.mxu2 %v1335_v17  ;;  %824 = vmatpush.msra.mxu3 %v1367_v18  ;;  %v1360_v13 = vld [vmem:[%s2609_s1 + $0x388] sm:$0xff]  ;;  %v1393_v17 = vld [vmem:[%s2609_s1 + $0x410] sm:$0xff] }
  0x5e   :  { %270 = vmatmul.f32.gmra.mxu2 %v1937_v14  ;;  %937 = vmatpush.msra.mxu0 %v1400_v19  ;;  %v1296_v18 = vld [vmem:[%s2609_s1 + $0x288] sm:$0xff]  ;;  %v2145_v19 = vld [vmem:[%s2610_s0 + $0xd2] sm:$0xff] }
  0x5f   :  { %172 = vmatmul.f32.gmra.mxu1 %v1911_v3  ;;  %711 = vmatpush.msra.mxu2 %v1334_v24 }
  0x60   :  { %595 = vmatpush.msra.mxu1 %v1303_v21  ;;  %825 = vmatpush.msra.mxu3 %v1366_v25  ;;  %v2151_v21 = vld [vmem:[%s2610_s0 + $0xe0] sm:$0xff] }
  0x61   :  { %385 = vmatmul.f32.gmra.mxu3 %v1943_v15  ;;  %496 = vmatmul.f32.gmra.mxu0 %v1811_v34  ;;  %v1327_v25 = vld [vmem:[%s2609_s1 + $0x300] sm:$0xff] }
  0x62   :  { %938 = vmatpush.msra.mxu0 %v1399_v26  ;;  %596 = vmatpush.msra.mxu1 %v1302_v27  ;;  %v1359_v26 = vld [vmem:[%s2609_s1 + $0x380] sm:$0xff]  ;;  %v1392_v27 = vld [vmem:[%s2609_s1 + $0x408] sm:$0xff] }
  0x63   :  { %712 = vmatpush.msra.mxu2 %v1333_v30  ;;  %826 = vmatpush.msra.mxu3 %v1365_v33  ;;  %v1295_v30 = vld [vmem:[%s2609_s1 + $0x280] sm:$0xff] }
  0x64   :  { %939 = vmatpush.msra.mxu0 %v1398_v35  ;;  %597 = vmatpush.msra.mxu1 %v1301_v37  ;;  %v2173_v33 = vld [vmem:[%s2610_s0 + $0xe2] sm:$0xff]  ;;  %v2181_v37 = vld [vmem:[%s2610_s0 + $0xf0] sm:$0xff] }
  0x65   :  { %713 = vmatpush.msra.mxu2 %v1332_v40  ;;  %827 = vmatpush.msra.mxu3 %v1364_v41 }
  0x66   :  { %273 = vmatmul.f32.gmra.mxu2 %v1963_v22  ;;  %940 = vmatpush.msra.mxu0 %v1397_v42 }
  0x67   :  { %175 = vmatmul.f32.gmra.mxu1 %v1943_v15  ;;  %714 = vmatpush.msra.mxu2 %v1331_v47  ;;  %v2196_v47 = vld [vmem:[%s2610_s0 + $0xf2] sm:$0xff] }
  0x68   :  { %598 = vmatpush.msra.mxu1 %v1300_v43  ;;  %828 = vmatpush.msra.mxu3 %v1363_v48  ;;  %v1391_v43 = vld [vmem:[%s2609_s1 + $0x400] sm:$0xff] }
  0x69   :  { %388 = vmatmul.f32.gmra.mxu3 %v1969_v23  ;;  %499 = vmatmul.f32.gmra.mxu0 %v1538_v16 }
  0x6a   :  { %941 = vmatpush.msra.mxu0 %v1396_v51  ;;  %599 = vmatpush.msra.mxu1 %v1299_v53  ;;  %v2204_v51 = vld [vmem:[%s2610_s0 + $0x100] sm:$0xff] }
  0x6b   :  { %715 = vmatpush.msra.mxu2 %v1330_v60  ;;  %829 = vmatpush.msra.mxu3 %v1362_v61  ;;  %v2224_v60 = vld [vmem:[%s2610_s0 + $0x110] sm:$0xff] }
  0x6c   :  { %942 = vmatpush.msra.mxu0 %v1395_v62  ;;  %600 = vmatpush.msra.mxu1 %v1298_v63  ;;  %v2236_v62 = vld [vmem:[%s2610_s0 + $0x112] sm:$0xff] }
  0x6d   :  { %716 = vmatpush.msra.mxu2 %v1329_v2  ;;  %830 = vmatpush.msra.mxu3 %v1361_v4  ;;  %v2242_v2 = vld [vmem:[%s2610_s0 + $0x120] sm:$0xff] }
  0x6e   :  { %276 = vmatmul.f32.gmra.mxu2 %v1989_v28  ;;  %943 = vmatpush.msra.mxu0 %v1394_v7 }
  0x6f   :  { %178 = vmatmul.f32.gmra.mxu1 %v1969_v23  ;;  %717 = vmatpush.msra.mxu2 %v1328_v10  ;;  %v2255_v10 = vld [vmem:[%s2610_s0 + $0x121] sm:$0xff] }
  0x70   :  { %601 = vmatpush.msra.mxu1 %v1297_v8  ;;  %831 = vmatpush.msra.mxu3 %v1360_v13 }
  0x71   :  { %391 = vmatmul.f32.gmra.mxu3 %v1995_v29  ;;  %502 = vmatmul.f32.gmra.mxu0 %v1594_v32 }
  0x72   :  { %944 = vmatpush.msra.mxu0 %v1393_v17  ;;  %602 = vmatpush.msra.mxu1 %v1296_v18 }
  0x73   :  { %718 = vmatpush.msra.mxu2 %v1327_v25  ;;  %832 = vmatpush.msra.mxu3 %v1359_v26 }
  0x74   :  { %945 = vmatpush.msra.mxu0 %v1392_v27  ;;  %603 = vmatpush.msra.mxu1 %v1295_v30 }
  0x76   :  { %279 = vmatmul.f32.gmra.mxu2 %v2015_v38  ;;  %946 = vmatpush.msra.mxu0 %v1391_v43 }
  0x77   :  { %181 = vmatmul.f32.gmra.mxu1 %v1995_v29 }
  0x79   :  { %394 = vmatmul.f32.gmra.mxu3 %v2021_v39  ;;  %505 = vmatmul.f32.gmra.mxu0 %v1657_v50 }
  0x7e   :  { %282 = vmatmul.f32.gmra.mxu2 %v2041_v44 }
  0x7f   :  { %184 = vmatmul.f32.gmra.mxu1 %v2021_v39 }
  0x81   :  { %397 = vmatmul.f32.gmra.mxu3 %v2047_v45  ;;  %508 = vmatmul.f32.gmra.mxu0 %v1729_v6 }
  0x86   :  { %285 = vmatmul.f32.gmra.mxu2 %v220_v54 }
  0x87   :  { %187 = vmatmul.f32.gmra.mxu1 %v25_v57  ;;  %v2216_v57 = vld [vmem:[%s2610_s0 + $0x102] sm:$0xff] }
  0x89   :  { %400 = vmatmul.f32.gmra.mxu3 %v1223_v58  ;;  %511 = vmatmul.f32.gmra.mxu0 %v2076_v59 }
  0x8e   :  { %288 = vmatmul.f32.gmra.mxu2 %v2094_v0 }
  0x8f   :  { %190 = vmatmul.f32.gmra.mxu1 %v1223_v58 }
  0x91   :  { %403 = vmatmul.f32.gmra.mxu3 %v2100_v1  ;;  %514 = vmatmul.f32.gmra.mxu0 %v1589_v31  ;;  %v2125_v31 = vld [vmem:[%s2610_s0 + $0xd0] sm:$0xff] }
  0x96   :  { %291 = vmatmul.f32.gmra.mxu2 %v2119_v9 }
  0x97   :  { %193 = vmatmul.f32.gmra.mxu1 %v2100_v1 }
  0x99   :  { %406 = vmatmul.f32.gmra.mxu3 %v2125_v31  ;;  %517 = vmatmul.f32.gmra.mxu0 %v1652_v49 }
  0x9e   :  { %294 = vmatmul.f32.gmra.mxu2 %v2145_v19  ;;  %v2153_v24 = vpop.f32.mrf.mxu1 }
  0x9f   :  { %196 = vmatmul.f32.gmra.mxu1 %v2125_v31 }
  0xa1   :  { %409 = vmatmul.f32.gmra.mxu3 %v2151_v21  ;;  %520 = vmatmul.f32.gmra.mxu0 %v1724_v5 }
  0xa4   :  { %v2175_v35 = vpop.f32.mrf.mxu2  ;;  %v99_v42 = vpop.f32.mrf.mxu0 }
  0xa6   :  { %297 = vmatmul.f32.gmra.mxu2 %v2173_v33  ;;  %v2183_v40 = vpop.f32.mrf.mxu3 }
  0xa7   :  { %199 = vmatmul.f32.gmra.mxu1 %v2151_v21  ;;  %v2186_v41 = vpop.f32.mrf.mxu1 }
  0xa9   :  { %412 = vmatmul.f32.gmra.mxu3 %v2181_v37  ;;  %523 = vmatmul.f32.gmra.mxu0 %v1552_v20 }
  0xac   :  { %v2198_v48 = vpop.f32.mrf.mxu2 }
  0xae   :  { %300 = vmatmul.f32.gmra.mxu2 %v2196_v47 }
  0xaf   :  { %202 = vmatmul.f32.gmra.mxu1 %v2181_v37  ;;  %v2207_v20 = vpop.f32.mrf.mxu3 }
  0xb0   :  { %v2209_v53 = vpop.f32.mrf.mxu1 }
  0xb1   :  { %415 = vmatmul.f32.gmra.mxu3 %v2204_v51  ;;  %526 = vmatmul.f32.gmra.mxu0 %v1609_v36 }
  0xb2   :  { %v102_v54 = vpop.f32.mrf.mxu0 }
  0xb5   :  { %v2218_v58 = vpop.f32.mrf.mxu2 }
  0xb6   :  { %303 = vmatmul.f32.gmra.mxu2 %v2216_v57 }
  0xb7   :  { %205 = vmatmul.f32.gmra.mxu1 %v2204_v51 }
  0xb9   :  { %418 = vmatmul.f32.gmra.mxu3 %v2224_v60  ;;  %529 = vmatmul.f32.gmra.mxu0 %v1681_v56  ;;  %v2229_v36 = vpop.f32.mrf.mxu3 }
  0xba   :  { %v2231_v61 = vpop.f32.mrf.mxu1 }
  0xbc   :  { %v105_v63 = vpop.f32.mrf.mxu0 }
  0xbe   :  { %306 = vmatmul.f32.gmra.mxu2 %v2236_v62 }
  0xbf   :  { %208 = vmatmul.f32.gmra.mxu1 %v2224_v60  ;;  %v2245_v56 = vpop.f32.mrf.mxu2 }
  0xc1   :  { %421 = vmatmul.f32.gmra.mxu3 %v2242_v2  ;;  %532 = vmatmul.f32.gmra.mxu0 %v1753_v12 }
  0xc3   :  { %v2249_v4 = vpop.f32.mrf.mxu3 }
  0xc4   :  { %v164_v7 = vpop.f32.mrf.mxu1 }
  0xc5   :  { %v165_v13 = vadd.f32 %v164_v7, %v99_v42 }
  0xc6   :  { %v108_v8 = vpop.f32.mrf.mxu0  ;;  %719 = vmatmul.f32.vlgmr.msra.gmra.mxu2 %v1862_v52 }
  0xc7   :  { %604 = vmatmul.f32.vlgmr.msra.gmra.mxu1 %v1847_v46 }
  0xc9   :  { %535 = vmatmul.f32.gmra.mxu0 %v2255_v10  ;;  %833 = vmatmul.f32.vlgmr.msra.gmra.mxu3 %v1747_v11  ;;  %v262_v17 = vpop.f32.mrf.mxu2 }
  0xca   :  { %v310_v12 = vadd.f32 %v262_v17, %v165_v13 }
  0xcc   :  { %v167_v18 = vpop.f32.mrf.mxu1  ;;  %v377_v25 = vpop.f32.mrf.mxu3 }
  0xcd   :  { %v2260_v26 = vadd.f32 %v377_v25, %v310_v12  ;;  %v168_v52 = vadd.f32 %v167_v18, %v102_v54 }
  0xce   :  { %v2262_v27 = vpop.f32.mrf.mxu0  ;;  %722 = vmatmul.f32.gmra.mxu2 %v1911_v3 }
  0xcf   :  { %607 = vmatmul.f32.gmra.mxu1 %v1893_v55 }
  0xd1   :  { %836 = vmatmul.f32.gmra.mxu3 %v1811_v34  ;;  %947 = vmatmul.f32.vlgmr.msra.gmra.mxu0 %v1893_v55  ;;  %v265_v46 = vpop.f32.mrf.mxu2 }
  0xd2   :  { %v311_v30 = vadd.f32 %v265_v46, %v168_v52 }
  0xd4   :  { %v170_v11 = vpop.f32.mrf.mxu1  ;;  %v380_v42 = vpop.f32.mrf.mxu3 }
  0xd5   :  { %v2268_v43 = vadd.f32 %v380_v42, %v311_v30  ;;  %v171_v3 = vadd.f32 %v170_v11, %v105_v63 }
  0xd6   :  { %v2270_v7 = vpop.f32.mrf.mxu0  ;;  %725 = vmatmul.f32.gmra.mxu2 %v1943_v15 }
  0xd7   :  { %610 = vmatmul.f32.gmra.mxu1 %v1937_v14 }
  0xd9   :  { %839 = vmatmul.f32.gmra.mxu3 %v1538_v16  ;;  %950 = vmatmul.f32.gmra.mxu0 %v1937_v14  ;;  %v268_v34 = vpop.f32.mrf.mxu2 }
  0xda   :  { %v312_v54 = vadd.f32 %v268_v34, %v171_v3 }
  0xdc   :  { %v173_v55 = vpop.f32.mrf.mxu1  ;;  %v383_v13 = vpop.f32.mrf.mxu3 }
  0xdd   :  { %v2276_v17 = vadd.f32 %v383_v13, %v312_v54  ;;  %v174_v15 = vadd.f32 %v173_v55, %v108_v8 }
  0xde   :  { %v2278_v12 = vpop.f32.mrf.mxu0  ;;  %728 = vmatmul.f32.gmra.mxu2 %v1969_v23 }
  0xdf   :  { %613 = vmatmul.f32.gmra.mxu1 %v1963_v22 }
  0xe1   :  { %842 = vmatmul.f32.gmra.mxu3 %v1594_v32  ;;  %953 = vmatmul.f32.gmra.mxu0 %v1963_v22  ;;  %v271_v16 = vpop.f32.mrf.mxu2 }
  0xe2   :  { %v313_v63 = vadd.f32 %v271_v16, %v174_v15 }
  0xe4   :  { %v176_v14 = vpop.f32.mrf.mxu1  ;;  %v386_v18 = vpop.f32.mrf.mxu3 }
  0xe5   :  { %v2284_v25 = vadd.f32 %v386_v18, %v313_v63  ;;  %v177_v23 = vadd.f32 %v176_v14, %v2153_v24 }
  0xe6   :  { %v2286_v52 = vpop.f32.mrf.mxu0  ;;  %731 = vmatmul.f32.gmra.mxu2 %v1995_v29 }
  0xe7   :  { %616 = vmatmul.f32.gmra.mxu1 %v1989_v28 }
  0xe9   :  { %845 = vmatmul.f32.gmra.mxu3 %v1657_v50  ;;  %956 = vmatmul.f32.gmra.mxu0 %v1989_v28  ;;  %v274_v32 = vpop.f32.mrf.mxu2 }
  0xea   :  { %v314_v22 = vadd.f32 %v274_v32, %v177_v23  ;;  %v1382_v32 = vld [vmem:[%s2610_s0 + $0x92] sm:$0xff] }
  0xec   :  { %v179_v8 = vpop.f32.mrf.mxu1  ;;  %v389_v46 = vpop.f32.mrf.mxu3 }
  0xed   :  { %v2293_v30 = vadd.f32 %v389_v46, %v314_v22  ;;  %v180_v29 = vadd.f32 %v179_v8, %v2186_v41  ;;  %v1318_v41 = vld [vmem:[%s2610_s0 + $0x90] sm:$0xff] }
  0xee   :  { %v2295_v11 = vpop.f32.mrf.mxu0  ;;  %734 = vmatmul.f32.gmra.mxu2 %v2021_v39 }
  0xef   :  { %619 = vmatmul.f32.gmra.mxu1 %v2015_v38 }
  0xf1   :  { %848 = vmatmul.f32.gmra.mxu3 %v1729_v6  ;;  %959 = vmatmul.f32.gmra.mxu0 %v2015_v38  ;;  %v277_v50 = vpop.f32.mrf.mxu2 }
  0xf2   :  { %v315_v28 = vadd.f32 %v277_v50, %v180_v29 }
  0xf4   :  { %v182_v24 = vpop.f32.mrf.mxu1  ;;  %v392_v42 = vpop.f32.mrf.mxu3 }
  0xf5   :  { %v2302_v3 = vadd.f32 %v392_v42, %v315_v28  ;;  %v183_v39 = vadd.f32 %v182_v24, %v2209_v53 }
  0xf6   :  { %v2304_v34 = vpop.f32.mrf.mxu0  ;;  %737 = vmatmul.f32.gmra.mxu2 %v2047_v45  ;;  %v1286_v45 = vld [vmem:[%s2610_s0 + $0x82] sm:$0xff] }
  0xf7   :  { %622 = vmatmul.f32.gmra.mxu1 %v2041_v44 }
  0xf9   :  { %851 = vmatmul.f32.gmra.mxu3 %v2076_v59  ;;  %962 = vmatmul.f32.gmra.mxu0 %v2041_v44  ;;  %v280_v6 = vpop.f32.mrf.mxu2  ;;  %v1350_v44 = vld [vmem:[%s2610_s0 + $0x91] sm:$0xff] }
  0xfa   :  { %v316_v38 = vadd.f32 %v280_v6, %v183_v39 }
  0xfc   :  { %v185_v54 = vpop.f32.mrf.mxu1  ;;  %v395_v55 = vpop.f32.mrf.mxu3 }
  0xfd   :  { %v2317_v13 = vadd.f32 %v395_v55, %v316_v38  ;;  %v186_v59 = vadd.f32 %v185_v54, %v2231_v61 }
  0xfe   :  { %v2319_v15 = vpop.f32.mrf.mxu0  ;;  %740 = vmatmul.f32.gmra.mxu2 %v1318_v41 }
  0xff   :  { %625 = vmatmul.f32.gmra.mxu1 %v1286_v45 }
 0x101   :  { %854 = vmatmul.f32.gmra.mxu3 %v1350_v44  ;;  %965 = vmatmul.f32.gmra.mxu0 %v1286_v45  ;;  %v283_v53 = vpop.f32.mrf.mxu2 }
 0x102   :  { %v317_v16 = vadd.f32 %v283_v53, %v186_v59 }
 0x104   :  { %v188_v63 = vpop.f32.mrf.mxu1  ;;  %v398_v14 = vpop.f32.mrf.mxu3 }
 0x105   :  { %v2325_v18 = vadd.f32 %v398_v14, %v317_v16  ;;  %v189_v61 = vadd.f32 %v188_v63, %v2175_v35 }
 0x106   :  { %v2327_v23 = vpop.f32.mrf.mxu0  ;;  %743 = vmatmul.f32.gmra.mxu2 %v2100_v1 }
 0x107   :  { %628 = vmatmul.f32.gmra.mxu1 %v2094_v0 }
 0x109   :  { %857 = vmatmul.f32.gmra.mxu3 %v1652_v49  ;;  %968 = vmatmul.f32.gmra.mxu0 %v1382_v32  ;;  %v286_v22 = vpop.f32.mrf.mxu2 }
 0x10a   :  { %v318_v8 = vadd.f32 %v286_v22, %v189_v61 }
 0x10c   :  { %v191_v46 = vpop.f32.mrf.mxu1  ;;  %v401_v29 = vpop.f32.mrf.mxu3 }
 0x10d   :  { %v433_v50 = vadd.f32 %v401_v29, %v318_v8  ;;  %v192_v24 = vadd.f32 %v191_v46, %v2198_v48 }
 0x10e   :  { %v515_v28 = vpop.f32.mrf.mxu0  ;;  %746 = vmatmul.f32.gmra.mxu2 %v2125_v31  ;;  %v1353_v31 = vld [vmem:[%s2610_s0 + $0xe1] sm:$0xff] }
 0x10f   :  { %v2337_v1 = vadd.f32 %v515_v28, %v433_v50  ;;  %631 = vmatmul.f32.gmra.mxu1 %v2119_v9 }
 0x111   :  { %860 = vmatmul.f32.gmra.mxu3 %v1724_v5  ;;  %971 = vmatmul.f32.gmra.mxu0 %v2119_v9  ;;  %v289_v49 = vpop.f32.mrf.mxu2 }
 0x112   :  { %v319_v0 = vadd.f32 %v289_v49, %v192_v24 }
 0x114   :  { %v194_v35 = vpop.f32.mrf.mxu1  ;;  %v404_v42 = vpop.f32.mrf.mxu3 }
 0x115   :  { %v434_v39 = vadd.f32 %v404_v42, %v319_v0  ;;  %v195_v5 = vadd.f32 %v194_v35, %v2218_v58 }
 0x116   :  { %v518_v6 = vpop.f32.mrf.mxu0  ;;  %749 = vmatmul.f32.gmra.mxu2 %v2151_v21  ;;  %v1354_v21 = vld [vmem:[%s2610_s0 + $0xf1] sm:$0xff] }
 0x117   :  { %v2347_v38 = vadd.f32 %v518_v6, %v434_v39  ;;  %634 = vmatmul.f32.gmra.mxu1 %v2145_v19  ;;  %v1326_v39 = vld [vmem:[%s2610_s0 + $0x130] sm:$0xff] }
 0x119   :  { %863 = vmatmul.f32.gmra.mxu3 %v1353_v31  ;;  %974 = vmatmul.f32.gmra.mxu0 %v2145_v19  ;;  %v292_v9 = vpop.f32.mrf.mxu2 }
 0x11a   :  { %v320_v48 = vadd.f32 %v292_v9, %v195_v5 }
 0x11c   :  { %v197_v41 = vpop.f32.mrf.mxu1  ;;  %v407_v54 = vpop.f32.mrf.mxu3 }
 0x11d   :  { %v435_v55 = vadd.f32 %v407_v54, %v320_v48  ;;  %v198_v58 = vadd.f32 %v197_v41, %v2245_v56  ;;  %v539_v54 = vadd.f32 %v2262_v27, %v2260_v26 }
 0x11e   :  { %v521_v45 = vpop.f32.mrf.mxu0  ;;  %752 = vmatmul.f32.gmra.mxu2 %v2181_v37  ;;  %v1355_v37 = vld [vmem:[%s2610_s0 + $0x101] sm:$0xff] }
 0x11f   :  { %v2356_v44 = vadd.f32 %v521_v45, %v435_v55  ;;  %637 = vmatmul.f32.gmra.mxu1 %v2173_v33 }
 0x121   :  { %866 = vmatmul.f32.gmra.mxu3 %v1354_v21  ;;  %977 = vmatmul.f32.gmra.mxu0 %v2173_v33  ;;  %v295_v19 = vpop.f32.mrf.mxu2 }
 0x122   :  { %v321_v59 = vadd.f32 %v295_v19, %v198_v58 }
 0x124   :  { %v200_v53 = vpop.f32.mrf.mxu1  ;;  %v410_v16 = vpop.f32.mrf.mxu3 }
 0x125   :  { %v436_v63 = vadd.f32 %v410_v16, %v321_v59  ;;  %v201_v56 = vadd.f32 %v200_v53, %v2183_v40  ;;  %v1390_v59 = vld [vmem:[%s2610_s0 + $0x132] sm:$0xff] }
 0x126   :  { %v524_v14 = vpop.f32.mrf.mxu0  ;;  %755 = vmatmul.f32.gmra.mxu2 %v2204_v51  ;;  %v1356_v51 = vld [vmem:[%s2610_s0 + $0x111] sm:$0xff] }
 0x127   :  { %v2365_v32 = vadd.f32 %v524_v14, %v436_v63  ;;  %640 = vmatmul.f32.gmra.mxu1 %v2196_v47  ;;  %v540_v63 = vadd.f32 %v2270_v7, %v2268_v43 }
 0x129   :  { %869 = vmatmul.f32.gmra.mxu3 %v1355_v37  ;;  %980 = vmatmul.f32.gmra.mxu0 %v2196_v47  ;;  %v298_v33 = vpop.f32.mrf.mxu2 }
 0x12a   :  { %v322_v61 = vadd.f32 %v298_v33, %v201_v56 }
 0x12c   :  { %v203_v22 = vpop.f32.mrf.mxu1  ;;  %v413_v8 = vpop.f32.mrf.mxu3 }
 0x12d   :  { %v437_v46 = vadd.f32 %v413_v8, %v322_v61  ;;  %v204_v40 = vadd.f32 %v203_v22, %v2207_v20  ;;  %v541_v8 = vadd.f32 %v2278_v12, %v2276_v17 }
 0x12e   :  { %v527_v29 = vpop.f32.mrf.mxu0  ;;  %758 = vmatmul.f32.gmra.mxu2 %v2224_v60 }
 0x12f   :  { %v2374_v50 = vadd.f32 %v527_v29, %v437_v46  ;;  %643 = vmatmul.f32.gmra.mxu1 %v2216_v57 }
 0x131   :  { %872 = vmatmul.f32.gmra.mxu3 %v1356_v51  ;;  %983 = vmatmul.f32.gmra.mxu0 %v2216_v57  ;;  %v301_v47 = vpop.f32.mrf.mxu2 }
 0x132   :  { %v323_v28 = vadd.f32 %v301_v47, %v204_v40 }
 0x134   :  { %v206_v24 = vpop.f32.mrf.mxu1  ;;  %v416_v49 = vpop.f32.mrf.mxu3 }
 0x135   :  { %v438_v0 = vadd.f32 %v416_v49, %v323_v28  ;;  %v207_v42 = vadd.f32 %v206_v24, %v2229_v36  ;;  %v1358_v36 = vld [vmem:[%s2610_s0 + $0x131] sm:$0xff]  ;;  %v542_v49 = vadd.f32 %v2286_v52, %v2284_v25 }
 0x136   :  { %v530_v35 = vpop.f32.mrf.mxu0  ;;  %761 = vmatmul.f32.gmra.mxu2 %v2242_v2  ;;  %v1294_v2 = vld [vmem:[%s2610_s0 + $0x122] sm:$0xff] }
 0x137   :  { %v2380_v60 = vadd.f32 %v530_v35, %v438_v0  ;;  %646 = vmatmul.f32.gmra.mxu1 %v2236_v62 }
 0x139   :  { %875 = vmatmul.f32.gmra.mxu3 %v2255_v10  ;;  %986 = vmatmul.f32.gmra.mxu0 %v2236_v62  ;;  %v304_v20 = vpop.f32.mrf.mxu2 }
 0x13a   :  { %v324_v57 = vadd.f32 %v304_v20, %v207_v42 }
 0x13c   :  { %v209_v6 = vpop.f32.mrf.mxu1  ;;  %v419_v31 = vpop.f32.mrf.mxu3 }
 0x13d   :  { %v439_v5 = vadd.f32 %v419_v31, %v324_v57  ;;  %v210_v10 = vadd.f32 %v209_v6, %v2249_v4  ;;  %v543_v31 = vadd.f32 %v2295_v11, %v2293_v30 }
 0x13e   :  { %v533_v9 = vpop.f32.mrf.mxu0  ;;  %764 = vmatmul.f32.gmra.mxu2 %v1326_v39 }
 0x13f   :  { %v2395_v62 = vadd.f32 %v533_v9, %v439_v5  ;;  %649 = vmatmul.f32.gmra.mxu1 %v1294_v2 }
 0x141   :  { %878 = vmatmul.f32.gmra.mxu3 %v1358_v36  ;;  %989 = vmatmul.f32.gmra.mxu0 %v1294_v2  ;;  %v307_v48 = vpop.f32.mrf.mxu2 }
 0x142   :  { %v325_v41 = vadd.f32 %v307_v48, %v210_v10 }
 0x144   :  { %v422_v55 = vpop.f32.mrf.mxu3  ;;  %v605_v45 = vpop.f32.mrf.mxu1 }
 0x145   :  { %v440_v21 = vadd.f32 %v422_v55, %v325_v41  ;;  %v653_v58 = vadd.f32 %v605_v45, %v539_v54 }
 0x146   :  { %v536_v19 = vpop.f32.mrf.mxu0 }
 0x147   :  { %v2403_v53 = vadd.f32 %v536_v19, %v440_v21  ;;  %v544_v21 = vadd.f32 %v2304_v34, %v2302_v3 }
 0x149   :  { %992 = vmatmul.f32.gmra.mxu0 %v1390_v59  ;;  %v720_v4 = vpop.f32.mrf.mxu2 }
 0x14a   :  { %v768_v16 = vadd.f32 %v720_v4, %v653_v58 }
 0x14c   :  { %v608_v14 = vpop.f32.mrf.mxu1  ;;  %v834_v37 = vpop.f32.mrf.mxu3 }
 0x14d   :  { %v654_v26 = vadd.f32 %v608_v14, %v540_v63  ;;  %v882_v27 = vadd.f32 %v834_v37, %v768_v16  ;;  %v545_v37 = vadd.f32 %v2319_v15, %v2317_v13 }
 0x14e   :  { %v948_v56 = vpop.f32.mrf.mxu0 }
 0x14f   :  { %v2407_v33 = vadd.f32 %v948_v56, %v882_v27 }
 0x151   :  { %v723_v61 = vpop.f32.mrf.mxu2 }
 0x152   :  { %v769_v22 = vadd.f32 %v723_v61, %v654_v26 }
 0x154   :  { %v611_v46 = vpop.f32.mrf.mxu1  ;;  %v837_v29 = vpop.f32.mrf.mxu3 }
 0x155   :  { %v655_v51 = vadd.f32 %v611_v46, %v541_v8  ;;  %v883_v40 = vadd.f32 %v837_v29, %v769_v22  ;;  %v546_v29 = vadd.f32 %v2327_v23, %v2325_v18 }
 0x156   :  { %v951_v47 = vpop.f32.mrf.mxu0 }
 0x157   :  { %v2411_v28 = vadd.f32 %v951_v47, %v883_v40 }
 0x159   :  { %v1012_v43 = vadd.f32 %v2411_v28, %v2407_v33  ;;  %v726_v7 = vpop.f32.mrf.mxu2 }
 0x15a   :  { %v770_v24 = vadd.f32 %v726_v7, %v655_v51 }
 0x15c   :  { %v614_v0 = vpop.f32.mrf.mxu1  ;;  %v840_v35 = vpop.f32.mrf.mxu3 }
 0x15d   :  { %v656_v42 = vadd.f32 %v614_v0, %v542_v49  ;;  %v884_v20 = vadd.f32 %v840_v35, %v770_v24 }
 0x15e   :  { %v954_v17 = vpop.f32.mrf.mxu0 }
 0x15f   :  { %v2417_v12 = vadd.f32 %v954_v17, %v884_v20 }
 0x161   :  { %v1013_v57 = vadd.f32 %v1012_v43, %v2417_v12  ;;  %v729_v39 = vpop.f32.mrf.mxu2 }
 0x162   :  { %v771_v6 = vadd.f32 %v729_v39, %v656_v42 }
 0x164   :  { %v617_v2 = vpop.f32.mrf.mxu1  ;;  %v843_v5 = vpop.f32.mrf.mxu3 }
 0x165   :  { %v657_v9 = vadd.f32 %v617_v2, %v543_v31  ;;  %v885_v36 = vadd.f32 %v843_v5, %v771_v6 }
 0x166   :  { %v957_v10 = vpop.f32.mrf.mxu0 }
 0x167   :  { %v2422_v25 = vadd.f32 %v957_v10, %v885_v36 }
 0x169   :  { %v1014_v52 = vadd.f32 %v1013_v57, %v2422_v25  ;;  %v732_v48 = vpop.f32.mrf.mxu2 }
 0x16a   :  { %v772_v41 = vadd.f32 %v732_v48, %v657_v9 }
 0x16c   :  { %v620_v54 = vpop.f32.mrf.mxu1  ;;  %v846_v55 = vpop.f32.mrf.mxu3 }
 0x16d   :  { %v886_v45 = vadd.f32 %v846_v55, %v772_v41  ;;  %v658_v30 = vadd.f32 %v620_v54, %v544_v21 }
 0x16e   :  { %v960_v58 = vpop.f32.mrf.mxu0 }
 0x16f   :  { %v2427_v19 = vadd.f32 %v960_v58, %v886_v45 }
 0x171   :  { %v1015_v11 = vadd.f32 %v1014_v52, %v2427_v19  ;;  %v735_v59 = vpop.f32.mrf.mxu2 }
 0x172   :  { %v773_v4 = vadd.f32 %v735_v59, %v658_v30 }
 0x174   :  { %v623_v16 = vpop.f32.mrf.mxu1  ;;  %v849_v63 = vpop.f32.mrf.mxu3 }
 0x175   :  { %v887_v14 = vadd.f32 %v849_v63, %v773_v4  ;;  %v659_v56 = vadd.f32 %v623_v16, %v545_v37 }
 0x176   :  { %v963_v26 = vpop.f32.mrf.mxu0 }
 0x177   :  { %v2432_v27 = vadd.f32 %v963_v26, %v887_v14 }
 0x179   :  { %v1016_v3 = vadd.f32 %v1015_v11, %v2432_v27  ;;  %v738_v34 = vpop.f32.mrf.mxu2 }
 0x17a   :  { %v774_v61 = vadd.f32 %v738_v34, %v659_v56 }
 0x17c   :  { %v626_v22 = vpop.f32.mrf.mxu1  ;;  %v852_v8 = vpop.f32.mrf.mxu3 }
 0x17d   :  { %v888_v46 = vadd.f32 %v852_v8, %v774_v61  ;;  %v660_v47 = vadd.f32 %v626_v22, %v546_v29 }
 0x17e   :  { %v966_v51 = vpop.f32.mrf.mxu0 }
 0x17f   :  { %v2437_v40 = vadd.f32 %v966_v51, %v888_v46 }
 0x181   :  { %v1017_v13 = vadd.f32 %v1016_v3, %v2437_v40  ;;  %v741_v15 = vpop.f32.mrf.mxu2 }
 0x182   :  { %v775_v43 = vadd.f32 %v741_v15, %v660_v47 }
 0x184   :  { %v629_v7 = vpop.f32.mrf.mxu1  ;;  %v855_v24 = vpop.f32.mrf.mxu3 }
 0x185   :  { %v889_v49 = vadd.f32 %v855_v24, %v775_v43  ;;  %v661_v42 = vadd.f32 %v629_v7, %v2337_v1 }
 0x186   :  { %v969_v0 = vpop.f32.mrf.mxu0 }
 0x187   :  { %v2440_v35 = vadd.f32 %v969_v0, %v889_v49 }
 0x189   :  { %v1018_v20 = vadd.f32 %v1017_v13, %v2440_v35  ;;  %v744_v17 = vpop.f32.mrf.mxu2 }
 0x18a   :  { %v776_v18 = vadd.f32 %v744_v17, %v661_v42 }
 0x18c   :  { %v632_v23 = vpop.f32.mrf.mxu1  ;;  %v858_v57 = vpop.f32.mrf.mxu3 }
 0x18d   :  { %v890_v39 = vadd.f32 %v858_v57, %v776_v18  ;;  %v662_v2 = vadd.f32 %v632_v23, %v2347_v38  ;;  %v1461_v57 = vmov 128.0  }
 0x18e   :  { %v972_v6 = vpop.f32.mrf.mxu0  ;;  %1457 = vrcp.f32 %v1461_v57 }
 0x18f   :  { %v2444_v31 = vadd.f32 %v972_v6, %v890_v39 }
 0x191   :  { %v1019_v5 = vadd.f32 %v1018_v20, %v2444_v31  ;;  %v747_v9 = vpop.f32.mrf.mxu2 }
 0x192   :  { %v777_v36 = vadd.f32 %v747_v9, %v662_v2 }
 0x194   :  { %v635_v10 = vpop.f32.mrf.mxu1  ;;  %v861_v52 = vpop.f32.mrf.mxu3 }
 0x195   :  { %v891_v48 = vadd.f32 %v861_v52, %v777_v36  ;;  %v663_v54 = vadd.f32 %v635_v10, %v2356_v44  ;;  %v1458_v36 = vpop.eup %1457 }
 0x196   :  { %v975_v1 = vpop.f32.mrf.mxu0  ;;  %vm1038_vm0 = vweird.f32 %v1458_v36 }
 0x197   :  { %v2448_v41 = vadd.f32 %v975_v1, %v891_v48 }
 0x199   :  { %v1020_v55 = vadd.f32 %v1019_v5, %v2448_v41  ;;  %v750_v45 = vpop.f32.mrf.mxu2 }
 0x19a   :  { %v778_v21 = vadd.f32 %v750_v45, %v663_v54  ;;  %v1034_v54 = vmul.f32 128.0, %v1458_v36 }
 0x19c   :  { %v638_v58 = vpop.f32.mrf.mxu1  ;;  %v864_v30 = vpop.f32.mrf.mxu3 }
 0x19d   :  { %v892_v11 = vadd.f32 %v864_v30, %v778_v21  ;;  %v664_v4 = vadd.f32 %v638_v58, %v2365_v32  ;;  %v1035_v21 = vsub.f32 1.0, %v1034_v54 }
 0x19e   :  { %v978_v38 = vpop.f32.mrf.mxu0 }
 0x19f   :  { %v2452_v59 = vadd.f32 %v978_v38, %v892_v11  ;;  %v1036_v11 = vmul.f32 %v1458_v36, %v1035_v21 }
 0x1a1   :  { %v1021_v16 = vadd.f32 %v1020_v55, %v2452_v59  ;;  %v753_v63 = vpop.f32.mrf.mxu2 }
 0x1a2   :  { %v779_v14 = vadd.f32 %v753_v63, %v664_v4 }
 0x1a4   :  { %v641_v37 = vpop.f32.mrf.mxu1  ;;  %v867_v26 = vpop.f32.mrf.mxu3 }
 0x1a5   :  { %v893_v56 = vadd.f32 %v867_v26, %v779_v14  ;;  %v665_v34 = vadd.f32 %v641_v37, %v2374_v50 }
 0x1a6   :  { %v981_v44 = vpop.f32.mrf.mxu0 }
 0x1a7   :  { %v2456_v3 = vadd.f32 %v981_v44, %v893_v56 }
 0x1a9   :  { %v1022_v61 = vadd.f32 %v1021_v16, %v2456_v3  ;;  %v756_v22 = vpop.f32.mrf.mxu2  ;;  %v1037_v16 = vadd.f32 %v1458_v36, %v1036_v11 }
 0x1aa   :  { %v780_v8 = vadd.f32 %v756_v22, %v665_v34 }
 0x1ac   :  { %v644_v46 = vpop.f32.mrf.mxu1  ;;  %v870_v29 = vpop.f32.mrf.mxu3 }
 0x1ad   :  { %v894_v51 = vadd.f32 %v870_v29, %v780_v8  ;;  %v666_v13 = vadd.f32 %v644_v46, %v2380_v60 }
 0x1ae   :  { %v984_v32 = vpop.f32.mrf.mxu0 }
 0x1af   :  { %v1008_v47 = vadd.f32 %v984_v32, %v894_v51 }
 0x1b1   :  { %v1023_v15 = vadd.f32 %v1022_v61, %v1008_v47  ;;  %v759_v43 = vpop.f32.mrf.mxu2 }
 0x1b2   :  { %v781_v7 = vadd.f32 %v759_v43, %v666_v13 }
 0x1b4   :  { %v647_v24 = vpop.f32.mrf.mxu1  ;;  %v873_v49 = vpop.f32.mrf.mxu3 }
 0x1b5   :  { %v895_v0 = vadd.f32 %v873_v49, %v781_v7  ;;  %v667_v50 = vadd.f32 %v647_v24, %v2395_v62 }
 0x1b6   :  { %v987_v42 = vpop.f32.mrf.mxu0 }
 0x1b7   :  { %v1009_v20 = vadd.f32 %v987_v42, %v895_v0 }
 0x1b9   :  { %v1024_v17 = vadd.f32 %v1023_v15, %v1009_v20  ;;  %v762_v18 = vpop.f32.mrf.mxu2 }
 0x1ba   :  { %v782_v23 = vadd.f32 %v762_v18, %v667_v50 }
 0x1bc   :  { %v876_v39 = vpop.f32.mrf.mxu3  ;;  %v650_v6 = vpop.f32.mrf.mxu1 }
 0x1bd   :  { %v896_v2 = vadd.f32 %v876_v39, %v782_v23  ;;  %v668_v9 = vadd.f32 %v650_v6, %v2403_v53  ;;  %v1039_v53 = vsel %vm1038_vm0, %v1458_v36, %v1037_v16 }
 0x1be   :  { %v990_v5 = vpop.f32.mrf.mxu0 }
 0x1bf   :  { %v1010_v60 = vadd.f32 %v990_v5, %v896_v2 }
 0x1c1   :  { %v1025_v10 = vadd.f32 %v1024_v17, %v1010_v60  ;;  %v765_v52 = vpop.f32.mrf.mxu2 }
 0x1c2   :  { %v783_v48 = vadd.f32 %v765_v52, %v668_v9 }
 0x1c4   :  { %v879_v1 = vpop.f32.mrf.mxu3 }
 0x1c5   :  { %v897_v55 = vadd.f32 %v879_v1, %v783_v48 }
 0x1c6   :  { %v993_v62 = vpop.f32.mrf.mxu0 }
 0x1c7   :  { %v1011_v45 = vadd.f32 %v993_v62, %v897_v55 }
 0x1c9   :  { %v1026_v58 = vadd.f32 %v1025_v10, %v1011_v45 }
 0x1cb   :  { %v1027_v30 = vrot.slane %v1026_v58, 4 }
 0x1cd   :  { %v1028_v38 = vadd.f32 %v1027_v30, %v1026_v58 }
 0x1cf   :  { %v1029_v4 = vrot.slane %v1028_v38, 2 }
 0x1d1   :  { %v1030_v63 = vadd.f32 %v1029_v4, %v1028_v38 }
 0x1d3   :  { %v1031_v14 = vrot.slane %v1030_v63, 1 }
 0x1d5   :  { %v1032_v37 = vadd.f32 %v1031_v14, %v1030_v63  ;;  %v1095_v14 = vld [vmem:[%s2612_s2] sm:$0x1] }
 0x1d7   :  { %v1040_v26 = vmul.f32 %v1039_v53, %v1032_v37 }
 0x1d9   :  { %v2464_v56 = vsub.f32 %v2407_v33, %v1040_v26  ;;  %v2467_v44 = vsub.f32 %v2411_v28, %v1040_v26  ;;  %v2470_v34 = vsub.f32 %v2417_v12, %v1040_v26  ;;  %v2473_v61 = vsub.f32 %v2422_v25, %v1040_v26 }
 0x1da   :  { %v2476_v22 = vsub.f32 %v2427_v19, %v1040_v26  ;;  %v2479_v8 = vsub.f32 %v2432_v27, %v1040_v26  ;;  %v2482_v46 = vsub.f32 %v2437_v40, %v1040_v26  ;;  %v2485_v33 = vsub.f32 %v2440_v35, %v1040_v26 }
 0x1db   :  { %v2488_v28 = vsub.f32 %v2444_v31, %v1040_v26  ;;  %v2491_v12 = vsub.f32 %v2448_v41, %v1040_v26  ;;  %v2494_v25 = vsub.f32 %v2452_v59, %v1040_v26  ;;  %v2497_v19 = vsub.f32 %v2456_v3, %v1040_v26 }
 0x1dc   :  { %v2499_v27 = vsub.f32 %v1008_v47, %v1040_v26  ;;  %v2501_v29 = vsub.f32 %v1009_v20, %v1040_v26  ;;  %v2503_v40 = vsub.f32 %v1010_v60, %v1040_v26  ;;  %v2505_v35 = vsub.f32 %v1011_v45, %v1040_v26 }
 0x1dd   :  { %v1057_v31 = vmul.f32 %v2464_v56, %v2464_v56  ;;  %v1058_v41 = vmul.f32 %v2467_v44, %v2467_v44  ;;  %v1059_v59 = vmul.f32 %v2470_v34, %v2470_v34  ;;  %v1060_v3 = vmul.f32 %v2473_v61, %v2473_v61 }
 0x1de   :  { %v1061_v47 = vmul.f32 %v2476_v22, %v2476_v22  ;;  %v1062_v15 = vmul.f32 %v2479_v8, %v2479_v8  ;;  %v1063_v7 = vmul.f32 %v2482_v46, %v2482_v46  ;;  %v1064_v49 = vmul.f32 %v2485_v33, %v2485_v33 }
 0x1df   :  { %v1073_v51 = vadd.f32 %v1058_v41, %v1057_v31  ;;  %v1065_v42 = vmul.f32 %v2488_v28, %v2488_v28  ;;  %v1066_v50 = vmul.f32 %v2491_v12, %v2491_v12  ;;  %v1067_v18 = vmul.f32 %v2494_v25, %v2494_v25 }
 0x1e0   :  { %v1068_v57 = vmul.f32 %v2497_v19, %v2497_v19  ;;  %v1069_v6 = vmul.f32 %v2499_v27, %v2499_v27  ;;  %v1070_v5 = vmul.f32 %v2501_v29, %v2501_v29  ;;  %v1071_v9 = vmul.f32 %v2503_v40, %v2503_v40 }
 0x1e1   :  { %v1074_v32 = vadd.f32 %v1073_v51, %v1059_v59  ;;  %v1072_v10 = vmul.f32 %v2505_v35, %v2505_v35 }
 0x1e3   :  { %v1075_v13 = vadd.f32 %v1074_v32, %v1060_v3  ;;  %v1456_v3 = vld [vmem:[%s2611_s3] ss:$0 sm:$0xff] }
 0x1e5   :  { %v1076_v43 = vadd.f32 %v1075_v13, %v1061_v47 }
 0x1e7   :  { %v1077_v24 = vadd.f32 %v1076_v43, %v1062_v15 }
 0x1e9   :  { %v1078_v0 = vadd.f32 %v1077_v24, %v1063_v7 }
 0x1eb   :  { %v1079_v20 = vadd.f32 %v1078_v0, %v1064_v49 }
 0x1ed   :  { %v1080_v17 = vadd.f32 %v1079_v20, %v1065_v42 }
 0x1ef   :  { %v1081_v23 = vadd.f32 %v1080_v17, %v1066_v50 }
 0x1f1   :  { %v1082_v39 = vadd.f32 %v1081_v23, %v1067_v18 }
 0x1f3   :  { %v1083_v2 = vadd.f32 %v1082_v39, %v1068_v57 }
 0x1f5   :  { %v1084_v60 = vadd.f32 %v1083_v2, %v1069_v6 }
 0x1f7   :  { %v1085_v36 = vadd.f32 %v1084_v60, %v1070_v5 }
 0x1f9   :  { %v1086_v52 = vadd.f32 %v1085_v36, %v1071_v9 }
 0x1fb   :  { %v1087_v48 = vadd.f32 %v1086_v52, %v1072_v10 }
 0x1fd   :  { %v1088_v1 = vrot.slane %v1087_v48, 4 }
 0x1ff   :  { %v1089_v54 = vadd.f32 %v1088_v1, %v1087_v48 }
 0x201   :  { %v1090_v55 = vrot.slane %v1089_v54, 2 }
 0x203   :  { %v1091_v62 = vadd.f32 %v1090_v55, %v1089_v54 }
 0x205   :  { %v1092_v45 = vrot.slane %v1091_v62, 1 }
 0x207   :  { %v1093_v21 = vadd.f32 %v1092_v45, %v1091_v62 }
 0x209   :  { %v1094_v58 = vmul.f32 %v1093_v21, %v1039_v53 }
 0x20b   :  { %v1096_v30 = vadd.f32 1e-05, %v1094_v58 }
 0x20d   :  { %1459 = vrsqrt.f32 %v1096_v30  ;;  %vm1103_vm2 = vweird.f32 %v1096_v30 }
 0x213   :  { %v1460_v11 = vpop.eup %1459 }
 0x214   :  { %v1098_v38 = vmul.f32 %v1460_v11, %v1096_v30  ;;  %vm1104_vm1 = vweird.f32 %v1460_v11 }
 0x215   :  { %vm1105_vm3 = vmor %vm1103_vm2, %vm1104_vm1 }
 0x216   :  { %v1099_v4 = vmul.f32 %v1460_v11, %v1098_v38 }
 0x218   :  { %v1100_v16 = vmul.f32 0.5, %v1099_v4 }
 0x21a   :  { %v1101_v63 = vsub.f32 1.5, %v1100_v16 }
 0x21c   :  { %v1102_v37 = vmul.f32 %v1460_v11, %v1101_v63 }
 0x21e   :  { %v1106_v26 = vsel %vm1105_vm3, %v1460_v11, %v1102_v37 }
 0x21f   :  { %v1107_v31 = vmul.f32 %v1106_v26, %v1095_v14 }
 0x221   :  { %v1109_v41 = vperm.slane %v1107_v31, 0 }
 0x223   :  { %v1111_v53 = vmul.f32 %v1109_v41, %v2464_v56  ;;  %v1112_v59 = vmul.f32 %v1109_v41, %v2467_v44  ;;  %v1113_v51 = vmul.f32 %v1109_v41, %v2470_v34  ;;  %v1114_v32 = vmul.f32 %v1109_v41, %v2473_v61 }
 0x224   :  { %v1115_v47 = vmul.f32 %v1109_v41, %v2476_v22  ;;  %v1116_v13 = vmul.f32 %v1109_v41, %v2479_v8  ;;  %v1119_v15 = vmul.f32 %v1109_v41, %v2488_v28  ;;  %v1120_v43 = vmul.f32 %v1109_v41, %v2491_v12 }
 0x225   :  { %v1121_v56 = vmul.f32 %v1109_v41, %v2494_v25  ;;  %v1122_v44 = vmul.f32 %v1109_v41, %v2497_v19  ;;  %v1123_v34 = vmul.f32 %v1109_v41, %v2499_v27  ;;  %v1124_v7 = vmul.f32 %v1109_v41, %v2501_v29 }
 0x226   :  { %v1125_v24 = vmul.f32 %v1109_v41, %v2503_v40  ;;  %v1126_v61 = vmul.f32 %v1109_v41, %v2505_v35  ;;  %v1117_v22 = vmul.f32 %v1109_v41, %v2482_v46  ;;  %v1131_v49 = vadd.f32 %v1456_v3, %v1111_v53 }
 0x227   :  { %v1132_v8 = vadd.f32 %v1456_v3, %v1112_v59  ;;  %v1133_v0 = vadd.f32 %v1456_v3, %v1113_v51  ;;  %v1118_v28 = vmul.f32 %v1109_v41, %v2485_v33  ;;  %v1134_v12 = vadd.f32 %v1456_v3, %v1114_v32 }
 0x228   :  { %v1135_v42 = vadd.f32 %v1456_v3, %v1115_v47  ;;  %v1136_v25 = vadd.f32 %v1456_v3, %v1116_v13  ;;  %v1137_v20 = vadd.f32 %v1456_v3, %v1117_v22  ;;  %v1147_v19 = vmax.f32 %v1131_v49, 0.0 }
 0x229   :  { %v1148_v50 = vmax.f32 %v1132_v8, 0.0  ;;  %v1149_v27 = vmax.f32 %v1133_v0, 0.0  ;;  %v1138_v17 = vadd.f32 %v1456_v3, %v1118_v28  ;;  %v1150_v29 = vmax.f32 %v1134_v12, 0.0 }
 0x22a   :  { %v1139_v18 = vadd.f32 %v1456_v3, %v1119_v15  ;;  %v1151_v40 = vmax.f32 %v1135_v42, 0.0  ;;  %1163 = vst [vmem:[%s2613_s4] sm:$0xff] %v1147_v19  ;;  %v1140_v46 = vadd.f32 %v1456_v3, %v1120_v43  ;;  %v1152_v35 = vmax.f32 %v1136_v25, 0.0 }
 0x22b   :  { %1164 = vst [vmem:[%s2613_s4 + $0x8] sm:$0xff] %v1148_v50  ;;  %v1141_v33 = vadd.f32 %v1456_v3, %v1121_v56  ;;  %v1153_v23 = vmax.f32 %v1137_v20, 0.0  ;;  %v1142_v57 = vadd.f32 %v1456_v3, %v1122_v44  ;;  %v1154_v39 = vmax.f32 %v1138_v17, 0.0 }
 0x22c   :  { %1165 = vst [vmem:[%s2613_s4 + $0x10] sm:$0xff] %v1149_v27  ;;  %v1143_v6 = vadd.f32 %v1456_v3, %v1123_v34  ;;  %v1155_v2 = vmax.f32 %v1139_v18, 0.0  ;;  %v1144_v5 = vadd.f32 %v1456_v3, %v1124_v7  ;;  %v1156_v60 = vmax.f32 %v1140_v46, 0.0 }
 0x22d   :  { %1166 = vst [vmem:[%s2613_s4 + $0x18] sm:$0xff] %v1150_v29  ;;  %v1145_v9 = vadd.f32 %v1456_v3, %v1125_v24  ;;  %v1157_v36 = vmax.f32 %v1141_v33, 0.0  ;;  %v1146_v10 = vadd.f32 %v1456_v3, %v1126_v61  ;;  %v1158_v52 = vmax.f32 %v1142_v57, 0.0 }
 0x22e   :  { %1167 = vst [vmem:[%s2613_s4 + $0x20] sm:$0xff] %v1151_v40  ;;  %v1159_v48 = vmax.f32 %v1143_v6, 0.0  ;;  %v1160_v1 = vmax.f32 %v1144_v5, 0.0 }
 0x22f   :  { %1168 = vst [vmem:[%s2613_s4 + $0x28] sm:$0xff] %v1152_v35  ;;  %v1161_v54 = vmax.f32 %v1145_v9, 0.0  ;;  %v1162_v55 = vmax.f32 %v1146_v10, 0.0 }
 0x230   :  { %1169 = vst [vmem:[%s2613_s4 + $0x30] sm:$0xff] %v1153_v23 }
 0x231   :  { %1170 = vst [vmem:[%s2613_s4 + $0x38] sm:$0xff] %v1154_v39 }
 0x232   :  { %1171 = vst [vmem:[%s2613_s4 + $0x40] sm:$0xff] %v1155_v2 }
 0x233   :  { %1172 = vst [vmem:[%s2613_s4 + $0x48] sm:$0xff] %v1156_v60 }
 0x234   :  { %1173 = vst [vmem:[%s2613_s4 + $0x50] sm:$0xff] %v1157_v36 }
 0x235   :  { %1174 = vst [vmem:[%s2613_s4 + $0x58] sm:$0xff] %v1158_v52 }
 0x236   :  { %1175 = vst [vmem:[%s2613_s4 + $0x60] sm:$0xff] %v1159_v48 }
 0x237   :  { %1176 = vst [vmem:[%s2613_s4 + $0x68] sm:$0xff] %v1160_v1 }
 0x238   :  { %1177 = vst [vmem:[%s2613_s4 + $0x70] sm:$0xff] %v1161_v54 }
 0x239   :  { %1178 = vst [vmem:[%s2613_s4 + $0x78] sm:$0xff] %v1162_v55 }

// kernel: _lambda_.11
= control target key start
LH: loop header
LB: loop body
LE: loop exit
PB: predicated region body
PF: predicated region fallthrough
CT: control target
= control target key end

     0   :  { %s2699_s0 = inlined_call_operand.vmem [shape: f32[2,10,10,128], index: 0, kind: input, shape index: {}]   ;;  %s2700_s1 = inlined_call_operand.vmem [shape: f32[9,128,128], index: 1, kind: input, shape index: {}]   ;;  %s2701_s2 = inlined_call_operand.vmem [shape: f32[1,128], index: 2, kind: input, shape index: {}]   ;;  %s2702_s3 = inlined_call_operand.vmem [shape: f32[1,128], index: 3, kind: input, shape index: {}]   ;;  %s2703_s4 = inlined_call_operand.vmem [shape: f32[128,128], index: 4, kind: input, shape index: {}]   ;;  %s2704_s5 = inlined_call_operand.hbm [shape: f32[128,128], index: 5, kind: output, shape index: {}]  }
   0x1   :  { %v1248_v0 = vld [vmem:[%s2700_s1 + $0xf8] sm:$0xff]  ;;  %v1247_v1 = vld [vmem:[%s2700_s1 + $0xf0] sm:$0xff]  ;;  %v1246_v2 = vld [vmem:[%s2700_s1 + $0xe8] sm:$0xff] }
   0x2   :  { %1457 = vmatpush.msra.mxu1 %v1248_v0  ;;  %1458 = vmatpush.msra.mxu2 %v1248_v0  ;;  %v1245_v3 = vld [vmem:[%s2700_s1 + $0xe0] sm:$0xff]  ;;  %v1244_v4 = vld [vmem:[%s2700_s1 + $0xd8] sm:$0xff]  ;;  %v1243_v5 = vld [vmem:[%s2700_s1 + $0xd0] sm:$0xff] }
   0x3   :  { %1459 = vmatpush.msra.mxu3 %v1248_v0  ;;  %86 = vmatpush.msra.mxu0 %v1248_v0  ;;  %v1242_v6 = vld [vmem:[%s2700_s1 + $0xc8] sm:$0xff]  ;;  %v1241_v7 = vld [vmem:[%s2700_s1 + $0xc0] sm:$0xff]  ;;  %v1240_v8 = vld [vmem:[%s2700_s1 + $0xb8] sm:$0xff] }
   0x4   :  { %1460 = vmatpush.msra.mxu1 %v1247_v1  ;;  %1461 = vmatpush.msra.mxu2 %v1247_v1  ;;  %v1239_v9 = vld [vmem:[%s2700_s1 + $0xb0] sm:$0xff] }
   0x5   :  { %1462 = vmatpush.msra.mxu3 %v1247_v1  ;;  %87 = vmatpush.msra.mxu0 %v1247_v1 }
   0x6   :  { %1463 = vmatpush.msra.mxu1 %v1246_v2  ;;  %1464 = vmatpush.msra.mxu2 %v1246_v2 }
   0x7   :  { %1465 = vmatpush.msra.mxu3 %v1246_v2  ;;  %88 = vmatpush.msra.mxu0 %v1246_v2 }
   0x8   :  { %1466 = vmatpush.msra.mxu1 %v1245_v3  ;;  %1467 = vmatpush.msra.mxu2 %v1245_v3 }
   0x9   :  { %1468 = vmatpush.msra.mxu3 %v1245_v3  ;;  %89 = vmatpush.msra.mxu0 %v1245_v3 }
   0xa   :  { %1469 = vmatpush.msra.mxu1 %v1244_v4  ;;  %1470 = vmatpush.msra.mxu2 %v1244_v4 }
   0xb   :  { %1471 = vmatpush.msra.mxu3 %v1244_v4  ;;  %90 = vmatpush.msra.mxu0 %v1244_v4 }
   0xc   :  { %1472 = vmatpush.msra.mxu1 %v1243_v5  ;;  %1473 = vmatpush.msra.mxu2 %v1243_v5 }
   0xd   :  { %1474 = vmatpush.msra.mxu3 %v1243_v5  ;;  %91 = vmatpush.msra.mxu0 %v1243_v5 }
   0xe   :  { %1475 = vmatpush.msra.mxu1 %v1242_v6  ;;  %1476 = vmatpush.msra.mxu2 %v1242_v6 }
   0xf   :  { %1477 = vmatpush.msra.mxu3 %v1242_v6  ;;  %92 = vmatpush.msra.mxu0 %v1242_v6 }
  0x10   :  { %1478 = vmatpush.msra.mxu1 %v1241_v7  ;;  %1479 = vmatpush.msra.mxu2 %v1241_v7 }
  0x11   :  { %1480 = vmatpush.msra.mxu3 %v1241_v7  ;;  %93 = vmatpush.msra.mxu0 %v1241_v7 }
  0x12   :  { %10 = vsyncpa [#allocation3], 0  ;;  %1481 = vmatpush.msra.mxu1 %v1240_v8  ;;  %1482 = vmatpush.msra.mxu2 %v1240_v8  ;;  %v1238_v10 = vld [vmem:[%s2700_s1 + $0xa8] sm:$0xff]  ;;  %v1237_v11 = vld [vmem:[%s2700_s1 + $0xa0] sm:$0xff]  ;;  %s1541_s11 = smov [#allocation2]   ;;  %s1221_s15 = sshll.u32 %s2704_s5, 4  ;;  %s1222_s15 = int_to_ptr.hbm [resolvable:$true] %s1221_s15 }
  0x13   :  { %1483 = vmatpush.msra.mxu3 %v1240_v8  ;;  %94 = vmatpush.msra.mxu0 %v1240_v8  ;;  %v1236_v12 = vld [vmem:[%s2700_s1 + $0x98] sm:$0xff]  ;;  %v1235_v13 = vld [vmem:[%s2700_s1 + $0x90] sm:$0xff]  ;;  %v1234_v14 = vld [vmem:[%s2700_s1 + $0x88] sm:$0xff]  ;;  %s1219_s12 = sshll.u32 %s1541_s11, 4  ;;  %s1543_s16 = smov 8   ;;  %s1220_s12 = int_to_ptr.vmem [resolvable:$true] %s1219_s12 }
  0x14   :  { %1484 = vmatpush.msra.mxu1 %v1239_v9  ;;  %1485 = vmatpush.msra.mxu2 %v1239_v9  ;;  %v1233_v15 = vld [vmem:[%s2700_s1 + $0x80] sm:$0xff]  ;;  %v1264_v18 = vld [vmem:[%s2700_s1 + $0x178] sm:$0xff]  ;;  %v1263_v21 = vld [vmem:[%s2700_s1 + $0x170] sm:$0xff] }
  0x15   :  { %1486 = vmatpush.msra.mxu3 %v1239_v9  ;;  %95 = vmatpush.msra.mxu0 %v1239_v9  ;;  %v1625_v16 = vld [vmem:[%s2699_s0 + $0x41] sm:$0xff]  ;;  %v52_v19 = vld [vmem:[%s2700_s1 + $0x78] sm:$0xff]  ;;  %v51_v23 = vld [vmem:[%s2700_s1 + $0x70] sm:$0xff] }
  0x16   :  { %1487 = vmatpush.msra.mxu1 %v1238_v10  ;;  %1488 = vmatpush.msra.mxu2 %v1238_v10  ;;  %v61_v17 = vld [vmem:[%s2699_s0 + $0xa1] sm:$0xff]  ;;  %v1296_v22 = vld [vmem:[%s2700_s1 + $0x1f8] sm:$0xff]  ;;  %v1295_v25 = vld [vmem:[%s2700_s1 + $0x1f0] sm:$0xff] }
  0x17   :  { %1489 = vmatpush.msra.mxu3 %v1238_v10  ;;  %96 = vmatpush.msra.mxu0 %v1238_v10  ;;  %v1639_v20 = vld [vmem:[%s2699_s0 + $0xe1] sm:$0xff]  ;;  %v1676_v31 = vld [vmem:[%s2699_s0 + $0xb1] sm:$0xff] }
  0x18   :  { %1490 = vmatpush.msra.mxu1 %v1237_v11  ;;  %1491 = vmatpush.msra.mxu2 %v1237_v11  ;;  %v1262_v24 = vld [vmem:[%s2700_s1 + $0x168] sm:$0xff]  ;;  %v1261_v28 = vld [vmem:[%s2700_s1 + $0x160] sm:$0xff]  ;;  %v1681_v32 = vld [vmem:[%s2699_s0 + $0x51] sm:$0xff] }
  0x19   :  { %1492 = vmatpush.msra.mxu3 %v1237_v11  ;;  %97 = vmatpush.msra.mxu0 %v1237_v11  ;;  %v50_v26 = vld [vmem:[%s2700_s1 + $0x68] sm:$0xff]  ;;  %v49_v30 = vld [vmem:[%s2700_s1 + $0x60] sm:$0xff]  ;;  %v1260_v33 = vld [vmem:[%s2700_s1 + $0x158] sm:$0xff] }
  0x1a   :  { %1493 = vmatpush.msra.mxu1 %v1236_v12  ;;  %1494 = vmatpush.msra.mxu2 %v1236_v12  ;;  %v53_v27 = vld [vmem:[%s2699_s0 + $0x1] sm:$0xff]  ;;  %v48_v35 = vld [vmem:[%s2700_s1 + $0x58] sm:$0xff]  ;;  %v1259_v37 = vld [vmem:[%s2700_s1 + $0x150] sm:$0xff] }
  0x1b   :  { %1495 = vmatpush.msra.mxu3 %v1236_v12  ;;  %98 = vmatpush.msra.mxu0 %v1236_v12  ;;  %v1294_v29 = vld [vmem:[%s2700_s1 + $0x1e8] sm:$0xff]  ;;  %v1293_v34 = vld [vmem:[%s2700_s1 + $0x1e0] sm:$0xff]  ;;  %v1696_v36 = vld [vmem:[%s2699_s0 + $0xf1] sm:$0xff] }
  0x1c   :  { %1496 = vmatpush.msra.mxu1 %v1235_v13  ;;  %1497 = vmatpush.msra.mxu2 %v1235_v13  ;;  %v1292_v38 = vld [vmem:[%s2700_s1 + $0x1d8] sm:$0xff]  ;;  %v47_v40 = vld [vmem:[%s2700_s1 + $0x50] sm:$0xff]  ;;  %v1258_v41 = vld [vmem:[%s2700_s1 + $0x148] sm:$0xff] }
  0x1d   :  { %1498 = vmatpush.msra.mxu3 %v1235_v13  ;;  %99 = vmatpush.msra.mxu0 %v1235_v13  ;;  %v1328_v39 = vld [vmem:[%s2700_s1 + $0x278] sm:$0xff]  ;;  %v1291_v42 = vld [vmem:[%s2700_s1 + $0x1d0] sm:$0xff]  ;;  %v46_v44 = vld [vmem:[%s2700_s1 + $0x48] sm:$0xff] }
  0x1e   :  { %1499 = vmatpush.msra.mxu1 %v1234_v14  ;;  %1500 = vmatpush.msra.mxu2 %v1234_v14  ;;  %v1327_v43 = vld [vmem:[%s2700_s1 + $0x270] sm:$0xff]  ;;  %v1257_v45 = vld [vmem:[%s2700_s1 + $0x140] sm:$0xff]  ;;  %v1290_v46 = vld [vmem:[%s2700_s1 + $0x1c8] sm:$0xff] }
  0x1f   :  { %1501 = vmatpush.msra.mxu3 %v1234_v14  ;;  %100 = vmatpush.msra.mxu0 %v1234_v14  ;;  %v1326_v47 = vld [vmem:[%s2700_s1 + $0x268] sm:$0xff]  ;;  %v45_v48 = vld [vmem:[%s2700_s1 + $0x40] sm:$0xff]  ;;  %v1256_v51 = vld [vmem:[%s2700_s1 + $0x138] sm:$0xff] }
  0x20   :  { %1502 = vmatpush.msra.mxu1 %v1233_v15  ;;  %1503 = vmatpush.msra.mxu2 %v1233_v15  ;;  %v1739_v49 = vld [vmem:[%s2699_s0 + $0xc1] sm:$0xff]  ;;  %v44_v54 = vld [vmem:[%s2700_s1 + $0x38] sm:$0xff]  ;;  %v1255_v57 = vld [vmem:[%s2700_s1 + $0x130] sm:$0xff] }
  0x21   :  { %114 = vmatmul.f32.vlgmr.msra.gmra.mxu1 %v1625_v16  ;;  %126 = vmatmul.f32.vlgmr.msra.gmra.mxu2 %v61_v17  ;;  %v1744_v50 = vld [vmem:[%s2699_s0 + $0x61] sm:$0xff]  ;;  %v1762_v55 = vld [vmem:[%s2699_s0 + $0x11] sm:$0xff] }
  0x22   :  { %249 = vmatpush.msrb.mxu2 %v1264_v18  ;;  %1504 = vmatpush.msra.mxu3 %v1233_v15  ;;  %v1289_v52 = vld [vmem:[%s2700_s1 + $0x1c0] sm:$0xff]  ;;  %v1288_v58 = vld [vmem:[%s2700_s1 + $0x1b8] sm:$0xff]  ;;  %v43_v60 = vld [vmem:[%s2700_s1 + $0x30] sm:$0xff] }
  0x23   :  { %151 = vmatpush.msrb.mxu1 %v52_v19  ;;  %138 = vmatmul.f32.vlgmr.msra.gmra.mxu3 %v1639_v20  ;;  %v1325_v53 = vld [vmem:[%s2700_s1 + $0x260] sm:$0xff]  ;;  %v1324_v59 = vld [vmem:[%s2700_s1 + $0x258] sm:$0xff]  ;;  %v1254_v61 = vld [vmem:[%s2700_s1 + $0x128] sm:$0xff] }
  0x24   :  { %250 = vmatpush.msrb.mxu2 %v1263_v21  ;;  %364 = vmatpush.msrb.mxu3 %v1296_v22  ;;  %v1768_v56 = vld [vmem:[%s2699_s0 + $0x101] sm:$0xff]  ;;  %v1287_v62 = vld [vmem:[%s2700_s1 + $0x1b0] sm:$0xff]  ;;  %v1252_v7 = vld [vmem:[%s2700_s1 + $0x118] sm:$0xff] }
  0x25   :  { %152 = vmatpush.msrb.mxu1 %v51_v23  ;;  %101 = vmatpush.msra.mxu0 %v1233_v15  ;;  %v1323_v63 = vld [vmem:[%s2700_s1 + $0x250] sm:$0xff]  ;;  %v42_v0 = vld [vmem:[%s2700_s1 + $0x28] sm:$0xff]  ;;  %v1253_v1 = vld [vmem:[%s2700_s1 + $0x120] sm:$0xff] }
  0x26   :  { %251 = vmatpush.msrb.mxu2 %v1262_v24  ;;  %365 = vmatpush.msrb.mxu3 %v1295_v25  ;;  %v1286_v2 = vld [vmem:[%s2700_s1 + $0x1a8] sm:$0xff]  ;;  %v41_v4 = vld [vmem:[%s2700_s1 + $0x20] sm:$0xff]  ;;  %v1811_v5 = vld [vmem:[%s2699_s0 + $0xd1] sm:$0xff] }
  0x27   :  { %153 = vmatpush.msrb.mxu1 %v50_v26  ;;  %102 = vmatmul.f32.vlgmr.msra.gmra.mxu0 %v53_v27  ;;  %v1322_v3 = vld [vmem:[%s2700_s1 + $0x248] sm:$0xff]  ;;  %v1816_v6 = vld [vmem:[%s2699_s0 + $0x71] sm:$0xff]  ;;  %v1285_v8 = vld [vmem:[%s2700_s1 + $0x1a0] sm:$0xff] }
  0x28   :  { %252 = vmatpush.msrb.mxu2 %v1261_v28  ;;  %366 = vmatpush.msrb.mxu3 %v1294_v29  ;;  %v1321_v9 = vld [vmem:[%s2700_s1 + $0x240] sm:$0xff]  ;;  %v40_v10 = vld [vmem:[%s2700_s1 + $0x18] sm:$0xff]  ;;  %v1251_v13 = vld [vmem:[%s2700_s1 + $0x110] sm:$0xff] }
  0x29   :  { %154 = vmatpush.msrb.mxu1 %v49_v30  ;;  %129 = vmatmul.f32.gmra.mxu2 %v1676_v31  ;;  %v1834_v11 = vld [vmem:[%s2699_s0 + $0x21] sm:$0xff]  ;;  %v1840_v12 = vld [vmem:[%s2699_s0 + $0x111] sm:$0xff] }
  0x2a   :  { %117 = vmatmul.f32.gmra.mxu1 %v1681_v32  ;;  %253 = vmatpush.msrb.mxu2 %v1260_v33  ;;  %v1284_v14 = vld [vmem:[%s2700_s1 + $0x198] sm:$0xff]  ;;  %v39_v17 = vld [vmem:[%s2700_s1 + $0x10] sm:$0xff]  ;;  %v1250_v18 = vld [vmem:[%s2700_s1 + $0x108] sm:$0xff] }
  0x2b   :  { %367 = vmatpush.msrb.mxu3 %v1293_v34  ;;  %155 = vmatpush.msrb.mxu1 %v48_v35  ;;  %v1320_v15 = vld [vmem:[%s2700_s1 + $0x238] sm:$0xff]  ;;  %v1283_v19 = vld [vmem:[%s2700_s1 + $0x190] sm:$0xff]  ;;  %v38_v22 = vld [vmem:[%s2700_s1 + $0x8] sm:$0xff] }
  0x2c   :  { %141 = vmatmul.f32.gmra.mxu3 %v1696_v36  ;;  %254 = vmatpush.msrb.mxu2 %v1259_v37  ;;  %v1319_v21 = vld [vmem:[%s2700_s1 + $0x230] sm:$0xff]  ;;  %v1249_v23 = vld [vmem:[%s2700_s1 + $0x100] sm:$0xff]  ;;  %v1282_v24 = vld [vmem:[%s2700_s1 + $0x188] sm:$0xff] }
  0x2d   :  { %368 = vmatpush.msrb.mxu3 %v1292_v38  ;;  %478 = vmatpush.msrb.mxu0 %v1328_v39  ;;  %v1318_v25 = vld [vmem:[%s2700_s1 + $0x228] sm:$0xff]  ;;  %v37_v26 = vld [vmem:[%s2700_s1] sm:$0xff]  ;;  %v1392_v33 = vld [vmem:[%s2700_s1 + $0x378] sm:$0xff] }
  0x2e   :  { %156 = vmatpush.msrb.mxu1 %v47_v40  ;;  %255 = vmatpush.msrb.mxu2 %v1258_v41  ;;  %v216_v27 = vld [vmem:[%s2699_s0 + $0x2] sm:$0xff]  ;;  %v1898_v34 = vld [vmem:[%s2699_s0 + $0x31] sm:$0xff] }
  0x2f   :  { %369 = vmatpush.msrb.mxu3 %v1291_v42  ;;  %479 = vmatpush.msrb.mxu0 %v1327_v43  ;;  %v21_v28 = vld [vmem:[%s2699_s0] sm:$0xff]  ;;  %v1265_v35 = vld [vmem:[%s2699_s0 + $0x10] sm:$0xff]  ;;  %v1316_v37 = vld [vmem:[%s2700_s1 + $0x218] sm:$0xff] }
  0x30   :  { %157 = vmatpush.msrb.mxu1 %v46_v44  ;;  %256 = vmatpush.msrb.mxu2 %v1257_v45  ;;  %v1281_v29 = vld [vmem:[%s2700_s1 + $0x180] sm:$0xff]  ;;  %v1424_v38 = vld [vmem:[%s2700_s1 + $0x3f8] sm:$0xff]  ;;  %v1391_v40 = vld [vmem:[%s2700_s1 + $0x370] sm:$0xff] }
  0x31   :  { %370 = vmatpush.msrb.mxu3 %v1290_v46  ;;  %480 = vmatpush.msrb.mxu0 %v1326_v47  ;;  %v1317_v30 = vld [vmem:[%s2700_s1 + $0x220] sm:$0xff]  ;;  %v1360_v39 = vld [vmem:[%s2700_s1 + $0x2f8] sm:$0xff]  ;;  %v1315_v41 = vld [vmem:[%s2700_s1 + $0x210] sm:$0xff] }
  0x32   :  { %158 = vmatpush.msrb.mxu1 %v45_v48  ;;  %132 = vmatmul.f32.gmra.mxu2 %v1739_v49  ;;  %v1423_v42 = vld [vmem:[%s2700_s1 + $0x3f0] sm:$0xff]  ;;  %v1390_v44 = vld [vmem:[%s2700_s1 + $0x368] sm:$0xff]  ;;  %v1313_v48 = vld [vmem:[%s2700_s1 + $0x200] sm:$0xff] }
  0x33   :  { %120 = vmatmul.f32.gmra.mxu1 %v1744_v50  ;;  %257 = vmatpush.msrb.mxu2 %v1256_v51  ;;  %v1359_v43 = vld [vmem:[%s2700_s1 + $0x2f0] sm:$0xff]  ;;  %v1314_v45 = vld [vmem:[%s2700_s1 + $0x208] sm:$0xff] }
  0x34   :  { %371 = vmatpush.msrb.mxu3 %v1289_v52  ;;  %481 = vmatpush.msrb.mxu0 %v1325_v53  ;;  %v1934_v46 = vld [vmem:[%s2699_s0 + $0x12] sm:$0xff]  ;;  %v1422_v47 = vld [vmem:[%s2700_s1 + $0x3e8] sm:$0xff]  ;;  %v1949_v52 = vld [vmem:[%s2699_s0 + $0x20] sm:$0xff] }
  0x35   :  { %159 = vmatpush.msrb.mxu1 %v44_v54  ;;  %105 = vmatmul.f32.gmra.mxu0 %v1762_v55  ;;  %v1358_v51 = vld [vmem:[%s2700_s1 + $0x2e8] sm:$0xff]  ;;  %v1456_v53 = vld [vmem:[%s2700_s1 + $0x478] sm:$0xff]  ;;  %v1389_v54 = vld [vmem:[%s2700_s1 + $0x360] sm:$0xff] }
  0x36   :  { %144 = vmatmul.f32.gmra.mxu3 %v1768_v56  ;;  %258 = vmatpush.msrb.mxu2 %v1255_v57  ;;  %v1421_v57 = vld [vmem:[%s2700_s1 + $0x3e0] sm:$0xff] }
  0x37   :  { %372 = vmatpush.msrb.mxu3 %v1288_v58  ;;  %482 = vmatpush.msrb.mxu0 %v1324_v59  ;;  %v1357_v58 = vld [vmem:[%s2700_s1 + $0x2e0] sm:$0xff]  ;;  %v1455_v59 = vld [vmem:[%s2700_s1 + $0x470] sm:$0xff] }
  0x38   :  { %160 = vmatpush.msrb.mxu1 %v43_v60  ;;  %259 = vmatpush.msrb.mxu2 %v1254_v61  ;;  %v1388_v60 = vld [vmem:[%s2700_s1 + $0x358] sm:$0xff] }
  0x39   :  { %373 = vmatpush.msrb.mxu3 %v1287_v62  ;;  %483 = vmatpush.msrb.mxu0 %v1323_v63  ;;  %v1420_v61 = vld [vmem:[%s2700_s1 + $0x3d8] sm:$0xff]  ;;  %v1454_v63 = vld [vmem:[%s2700_s1 + $0x468] sm:$0xff] }
  0x3a   :  { %161 = vmatpush.msrb.mxu1 %v42_v0  ;;  %260 = vmatpush.msrb.mxu2 %v1253_v1  ;;  %v1356_v62 = vld [vmem:[%s2700_s1 + $0x2d8] sm:$0xff]  ;;  %v1387_v0 = vld [vmem:[%s2700_s1 + $0x350] sm:$0xff]  ;;  %v1453_v1 = vld [vmem:[%s2700_s1 + $0x460] sm:$0xff] }
  0x3b   :  { %374 = vmatpush.msrb.mxu3 %v1286_v2  ;;  %484 = vmatpush.msrb.mxu0 %v1322_v3  ;;  %v1419_v2 = vld [vmem:[%s2700_s1 + $0x3d0] sm:$0xff] }
  0x3c   :  { %162 = vmatpush.msrb.mxu1 %v41_v4  ;;  %135 = vmatmul.f32.gmra.mxu2 %v1811_v5  ;;  %v1998_v3 = vld [vmem:[%s2699_s0 + $0x30] sm:$0xff]  ;;  %v1452_v4 = vld [vmem:[%s2700_s1 + $0x458] sm:$0xff] }
  0x3d   :  { %123 = vmatmul.f32.gmra.mxu1 %v1816_v6  ;;  %261 = vmatpush.msrb.mxu2 %v1252_v7  ;;  %v1355_v7 = vld [vmem:[%s2700_s1 + $0x2d0] sm:$0xff] }
  0x3e   :  { %375 = vmatpush.msrb.mxu3 %v1285_v8  ;;  %485 = vmatpush.msrb.mxu0 %v1321_v9  ;;  %v1386_v8 = vld [vmem:[%s2700_s1 + $0x348] sm:$0xff] }
  0x3f   :  { %163 = vmatpush.msrb.mxu1 %v40_v10  ;;  %108 = vmatmul.f32.gmra.mxu0 %v1834_v11  ;;  %v1418_v9 = vld [vmem:[%s2700_s1 + $0x3c8] sm:$0xff]  ;;  %v1451_v10 = vld [vmem:[%s2700_s1 + $0x450] sm:$0xff] }
  0x40   :  { %147 = vmatmul.f32.gmra.mxu3 %v1840_v12  ;;  %262 = vmatpush.msrb.mxu2 %v1251_v13  ;;  %v1354_v13 = vld [vmem:[%s2700_s1 + $0x2c8] sm:$0xff] }
  0x41   :  { %376 = vmatpush.msrb.mxu3 %v1284_v14  ;;  %486 = vmatpush.msrb.mxu0 %v1320_v15  ;;  %v2024_v14 = vld [vmem:[%s2699_s0 + $0x32] sm:$0xff]  ;;  %v2030_v15 = vld [vmem:[%s2699_s0 + $0x40] sm:$0xff] }
  0x42   :  { %164 = vmatpush.msrb.mxu1 %v39_v17  ;;  %263 = vmatpush.msrb.mxu2 %v1250_v18  ;;  %v1385_v17 = vld [vmem:[%s2700_s1 + $0x340] sm:$0xff] }
  0x43   :  { %377 = vmatpush.msrb.mxu3 %v1283_v19  ;;  %487 = vmatpush.msrb.mxu0 %v1319_v21  ;;  %v1417_v18 = vld [vmem:[%s2700_s1 + $0x3c0] sm:$0xff]  ;;  %v1450_v19 = vld [vmem:[%s2700_s1 + $0x448] sm:$0xff] }
  0x44   :  { %165 = vmatpush.msrb.mxu1 %v38_v22  ;;  %264 = vmatpush.msrb.mxu2 %v1249_v23  ;;  %v1353_v21 = vld [vmem:[%s2700_s1 + $0x2c0] sm:$0xff]  ;;  %v2056_v23 = vld [vmem:[%s2699_s0 + $0x50] sm:$0xff] }
  0x45   :  { %378 = vmatpush.msrb.mxu3 %v1282_v24  ;;  %488 = vmatpush.msrb.mxu0 %v1318_v25  ;;  %v2050_v22 = vld [vmem:[%s2699_s0 + $0x42] sm:$0xff]  ;;  %v1384_v24 = vld [vmem:[%s2700_s1 + $0x338] sm:$0xff] }
  0x46   :  { %166 = vmatpush.msrb.mxu1 %v37_v26  ;;  %265 = vmatmul.f32.vlgmr.msrb.gmra.mxu2 %v216_v27  ;;  %v1416_v25 = vld [vmem:[%s2700_s1 + $0x3b8] sm:$0xff]  ;;  %v1449_v26 = vld [vmem:[%s2700_s1 + $0x440] sm:$0xff] }
  0x47   :  { %167 = vmatmul.f32.vlgmr.msrb.gmra.mxu1 %v21_v28  ;;  %379 = vmatpush.msrb.mxu3 %v1281_v29  ;;  %v1352_v27 = vld [vmem:[%s2700_s1 + $0x2b8] sm:$0xff]  ;;  %v2082_v29 = vld [vmem:[%s2699_s0 + $0x60] sm:$0xff] }
  0x48   :  { %489 = vmatpush.msrb.mxu0 %v1317_v30  ;;  %707 = vmatpush.msra.mxu2 %v1392_v33  ;;  %v2076_v28 = vld [vmem:[%s2699_s0 + $0x52] sm:$0xff] }
  0x49   :  { %111 = vmatmul.f32.gmra.mxu0 %v1898_v34  ;;  %380 = vmatmul.f32.vlgmr.msrb.gmra.mxu3 %v1265_v35  ;;  %v1383_v30 = vld [vmem:[%s2700_s1 + $0x330] sm:$0xff] }
  0x4a   :  { %490 = vmatpush.msrb.mxu0 %v1316_v37  ;;  %821 = vmatpush.msra.mxu3 %v1424_v38  ;;  %v1415_v33 = vld [vmem:[%s2700_s1 + $0x3b0] sm:$0xff]  ;;  %v2102_v38 = vld [vmem:[%s2699_s0 + $0x62] sm:$0xff] }
  0x4b   :  { %592 = vmatpush.msra.mxu1 %v1360_v39  ;;  %708 = vmatpush.msra.mxu2 %v1391_v40  ;;  %v1351_v37 = vld [vmem:[%s2700_s1 + $0x2b0] sm:$0xff]  ;;  %v1382_v40 = vld [vmem:[%s2700_s1 + $0x328] sm:$0xff] }
  0x4c   :  { %491 = vmatpush.msrb.mxu0 %v1315_v41  ;;  %822 = vmatpush.msra.mxu3 %v1423_v42  ;;  %v2108_v39 = vld [vmem:[%s2699_s0 + $0x70] sm:$0xff]  ;;  %v1414_v41 = vld [vmem:[%s2700_s1 + $0x3a8] sm:$0xff] }
  0x4d   :  { %593 = vmatpush.msra.mxu1 %v1359_v43  ;;  %709 = vmatpush.msra.mxu2 %v1390_v44  ;;  %v1447_v42 = vld [vmem:[%s2700_s1 + $0x430] sm:$0xff]  ;;  %v1350_v43 = vld [vmem:[%s2700_s1 + $0x2a8] sm:$0xff] }
  0x4e   :  { %492 = vmatpush.msrb.mxu0 %v1314_v45  ;;  %268 = vmatmul.f32.gmra.mxu2 %v1934_v46  ;;  %v2128_v44 = vld [vmem:[%s2699_s0 + $0x72] sm:$0xff]  ;;  %v2134_v45 = vld [vmem:[%s2699_s0 + $0x80] sm:$0xff] }
  0x4f   :  { %170 = vmatmul.f32.gmra.mxu1 %v1265_v35  ;;  %823 = vmatpush.msra.mxu3 %v1422_v47  ;;  %v1448_v35 = vld [vmem:[%s2700_s1 + $0x438] sm:$0xff]  ;;  %v1381_v47 = vld [vmem:[%s2700_s1 + $0x320] sm:$0xff] }
  0x50   :  { %493 = vmatpush.msrb.mxu0 %v1313_v48  ;;  %594 = vmatpush.msra.mxu1 %v1358_v51  ;;  %v1413_v48 = vld [vmem:[%s2700_s1 + $0x3a0] sm:$0xff]  ;;  %v1446_v51 = vld [vmem:[%s2700_s1 + $0x428] sm:$0xff] }
  0x51   :  { %383 = vmatmul.f32.gmra.mxu3 %v1949_v52  ;;  %494 = vmatmul.f32.vlgmr.msrb.gmra.mxu0 %v1762_v55  ;;  %v1980_v55 = vld [vmem:[%s2699_s0 + $0x22] sm:$0xff] }
  0x52   :  { %935 = vmatpush.msra.mxu0 %v1456_v53  ;;  %710 = vmatpush.msra.mxu2 %v1389_v54  ;;  %v1349_v53 = vld [vmem:[%s2700_s1 + $0x2a0] sm:$0xff] }
  0x53   :  { %824 = vmatpush.msra.mxu3 %v1421_v57  ;;  %595 = vmatpush.msra.mxu1 %v1357_v58  ;;  %v224_v54 = vld [vmem:[%s2699_s0 + $0xa2] sm:$0xff]  ;;  %v1273_v58 = vld [vmem:[%s2699_s0 + $0xb0] sm:$0xff] }
  0x54   :  { %936 = vmatpush.msra.mxu0 %v1455_v59  ;;  %711 = vmatpush.msra.mxu2 %v1388_v60  ;;  %v29_v57 = vld [vmem:[%s2699_s0 + $0xa0] sm:$0xff]  ;;  %v1380_v60 = vld [vmem:[%s2700_s1 + $0x318] sm:$0xff] }
  0x55   :  { %825 = vmatpush.msra.mxu3 %v1420_v61  ;;  %596 = vmatpush.msra.mxu1 %v1356_v62  ;;  %v2163_v59 = vld [vmem:[%s2699_s0 + $0x81] sm:$0xff]  ;;  %v1412_v61 = vld [vmem:[%s2700_s1 + $0x398] sm:$0xff] }
  0x56   :  { %271 = vmatmul.f32.gmra.mxu2 %v1980_v55  ;;  %937 = vmatpush.msra.mxu0 %v1454_v63  ;;  %v1445_v62 = vld [vmem:[%s2700_s1 + $0x420] sm:$0xff]  ;;  %v1348_v63 = vld [vmem:[%s2700_s1 + $0x298] sm:$0xff] }
  0x57   :  { %173 = vmatmul.f32.gmra.mxu1 %v1949_v52  ;;  %712 = vmatpush.msra.mxu2 %v1387_v0  ;;  %v2181_v0 = vld [vmem:[%s2699_s0 + $0xb2] sm:$0xff] }
  0x58   :  { %938 = vmatpush.msra.mxu0 %v1453_v1  ;;  %826 = vmatpush.msra.mxu3 %v1419_v2  ;;  %v2187_v1 = vld [vmem:[%s2699_s0 + $0xc0] sm:$0xff]  ;;  %v1379_v2 = vld [vmem:[%s2700_s1 + $0x310] sm:$0xff] }
  0x59   :  { %386 = vmatmul.f32.gmra.mxu3 %v1998_v3  ;;  %497 = vmatmul.f32.gmra.mxu0 %v1834_v11 }
  0x5a   :  { %939 = vmatpush.msra.mxu0 %v1452_v4  ;;  %597 = vmatpush.msra.mxu1 %v1355_v7  ;;  %v1411_v4 = vld [vmem:[%s2700_s1 + $0x390] sm:$0xff]  ;;  %v1444_v7 = vld [vmem:[%s2700_s1 + $0x418] sm:$0xff] }
  0x5b   :  { %713 = vmatpush.msra.mxu2 %v1386_v8  ;;  %827 = vmatpush.msra.mxu3 %v1418_v9  ;;  %v1347_v8 = vld [vmem:[%s2700_s1 + $0x290] sm:$0xff]  ;;  %v2206_v9 = vld [vmem:[%s2699_s0 + $0xc2] sm:$0xff] }
  0x5c   :  { %940 = vmatpush.msra.mxu0 %v1451_v10  ;;  %598 = vmatpush.msra.mxu1 %v1354_v13  ;;  %v1378_v10 = vld [vmem:[%s2700_s1 + $0x308] sm:$0xff] }
  0x5d   :  { %714 = vmatpush.msra.mxu2 %v1385_v17  ;;  %828 = vmatpush.msra.mxu3 %v1417_v18  ;;  %v1410_v13 = vld [vmem:[%s2700_s1 + $0x388] sm:$0xff]  ;;  %v1443_v17 = vld [vmem:[%s2700_s1 + $0x410] sm:$0xff] }
  0x5e   :  { %274 = vmatmul.f32.gmra.mxu2 %v2024_v14  ;;  %941 = vmatpush.msra.mxu0 %v1450_v19  ;;  %v1346_v18 = vld [vmem:[%s2700_s1 + $0x288] sm:$0xff]  ;;  %v2232_v19 = vld [vmem:[%s2699_s0 + $0xd2] sm:$0xff] }
  0x5f   :  { %176 = vmatmul.f32.gmra.mxu1 %v1998_v3  ;;  %715 = vmatpush.msra.mxu2 %v1384_v24 }
  0x60   :  { %599 = vmatpush.msra.mxu1 %v1353_v21  ;;  %829 = vmatpush.msra.mxu3 %v1416_v25  ;;  %v2238_v21 = vld [vmem:[%s2699_s0 + $0xe0] sm:$0xff] }
  0x61   :  { %389 = vmatmul.f32.gmra.mxu3 %v2030_v15  ;;  %500 = vmatmul.f32.gmra.mxu0 %v1898_v34  ;;  %v1377_v25 = vld [vmem:[%s2700_s1 + $0x300] sm:$0xff] }
  0x62   :  { %942 = vmatpush.msra.mxu0 %v1449_v26  ;;  %600 = vmatpush.msra.mxu1 %v1352_v27  ;;  %v1409_v26 = vld [vmem:[%s2700_s1 + $0x380] sm:$0xff]  ;;  %v1442_v27 = vld [vmem:[%s2700_s1 + $0x408] sm:$0xff] }
  0x63   :  { %716 = vmatpush.msra.mxu2 %v1383_v30  ;;  %830 = vmatpush.msra.mxu3 %v1415_v33  ;;  %v1345_v30 = vld [vmem:[%s2700_s1 + $0x280] sm:$0xff] }
  0x64   :  { %943 = vmatpush.msra.mxu0 %v1448_v35  ;;  %601 = vmatpush.msra.mxu1 %v1351_v37  ;;  %v2260_v33 = vld [vmem:[%s2699_s0 + $0xe2] sm:$0xff]  ;;  %v2268_v37 = vld [vmem:[%s2699_s0 + $0xf0] sm:$0xff] }
  0x65   :  { %717 = vmatpush.msra.mxu2 %v1382_v40  ;;  %831 = vmatpush.msra.mxu3 %v1414_v41 }
  0x66   :  { %277 = vmatmul.f32.gmra.mxu2 %v2050_v22  ;;  %944 = vmatpush.msra.mxu0 %v1447_v42 }
  0x67   :  { %179 = vmatmul.f32.gmra.mxu1 %v2030_v15  ;;  %718 = vmatpush.msra.mxu2 %v1381_v47  ;;  %v2283_v47 = vld [vmem:[%s2699_s0 + $0xf2] sm:$0xff] }
  0x68   :  { %602 = vmatpush.msra.mxu1 %v1350_v43  ;;  %832 = vmatpush.msra.mxu3 %v1413_v48  ;;  %v1441_v43 = vld [vmem:[%s2700_s1 + $0x400] sm:$0xff] }
  0x69   :  { %392 = vmatmul.f32.gmra.mxu3 %v2056_v23  ;;  %503 = vmatmul.f32.gmra.mxu0 %v1625_v16 }
  0x6a   :  { %945 = vmatpush.msra.mxu0 %v1446_v51  ;;  %603 = vmatpush.msra.mxu1 %v1349_v53  ;;  %v2291_v51 = vld [vmem:[%s2699_s0 + $0x100] sm:$0xff] }
  0x6b   :  { %719 = vmatpush.msra.mxu2 %v1380_v60  ;;  %833 = vmatpush.msra.mxu3 %v1412_v61  ;;  %v2311_v60 = vld [vmem:[%s2699_s0 + $0x110] sm:$0xff] }
  0x6c   :  { %946 = vmatpush.msra.mxu0 %v1445_v62  ;;  %604 = vmatpush.msra.mxu1 %v1348_v63  ;;  %v2323_v62 = vld [vmem:[%s2699_s0 + $0x112] sm:$0xff] }
  0x6d   :  { %720 = vmatpush.msra.mxu2 %v1379_v2  ;;  %834 = vmatpush.msra.mxu3 %v1411_v4  ;;  %v2329_v2 = vld [vmem:[%s2699_s0 + $0x120] sm:$0xff] }
  0x6e   :  { %280 = vmatmul.f32.gmra.mxu2 %v2076_v28  ;;  %947 = vmatpush.msra.mxu0 %v1444_v7 }
  0x6f   :  { %182 = vmatmul.f32.gmra.mxu1 %v2056_v23  ;;  %721 = vmatpush.msra.mxu2 %v1378_v10  ;;  %v2342_v10 = vld [vmem:[%s2699_s0 + $0x121] sm:$0xff] }
  0x70   :  { %605 = vmatpush.msra.mxu1 %v1347_v8  ;;  %835 = vmatpush.msra.mxu3 %v1410_v13 }
  0x71   :  { %395 = vmatmul.f32.gmra.mxu3 %v2082_v29  ;;  %506 = vmatmul.f32.gmra.mxu0 %v1681_v32 }
  0x72   :  { %948 = vmatpush.msra.mxu0 %v1443_v17  ;;  %606 = vmatpush.msra.mxu1 %v1346_v18 }
  0x73   :  { %722 = vmatpush.msra.mxu2 %v1377_v25  ;;  %836 = vmatpush.msra.mxu3 %v1409_v26 }
  0x74   :  { %949 = vmatpush.msra.mxu0 %v1442_v27  ;;  %607 = vmatpush.msra.mxu1 %v1345_v30 }
  0x76   :  { %283 = vmatmul.f32.gmra.mxu2 %v2102_v38  ;;  %950 = vmatpush.msra.mxu0 %v1441_v43 }
  0x77   :  { %185 = vmatmul.f32.gmra.mxu1 %v2082_v29 }
  0x79   :  { %398 = vmatmul.f32.gmra.mxu3 %v2108_v39  ;;  %509 = vmatmul.f32.gmra.mxu0 %v1744_v50 }
  0x7e   :  { %286 = vmatmul.f32.gmra.mxu2 %v2128_v44 }
  0x7f   :  { %188 = vmatmul.f32.gmra.mxu1 %v2108_v39 }
  0x81   :  { %401 = vmatmul.f32.gmra.mxu3 %v2134_v45  ;;  %512 = vmatmul.f32.gmra.mxu0 %v1816_v6 }
  0x86   :  { %289 = vmatmul.f32.gmra.mxu2 %v224_v54 }
  0x87   :  { %191 = vmatmul.f32.gmra.mxu1 %v29_v57  ;;  %v2303_v57 = vld [vmem:[%s2699_s0 + $0x102] sm:$0xff] }
  0x89   :  { %404 = vmatmul.f32.gmra.mxu3 %v1273_v58  ;;  %515 = vmatmul.f32.gmra.mxu0 %v2163_v59 }
  0x8e   :  { %292 = vmatmul.f32.gmra.mxu2 %v2181_v0 }
  0x8f   :  { %194 = vmatmul.f32.gmra.mxu1 %v1273_v58 }
  0x91   :  { %407 = vmatmul.f32.gmra.mxu3 %v2187_v1  ;;  %518 = vmatmul.f32.gmra.mxu0 %v1676_v31  ;;  %v2212_v31 = vld [vmem:[%s2699_s0 + $0xd0] sm:$0xff] }
  0x96   :  { %295 = vmatmul.f32.gmra.mxu2 %v2206_v9 }
  0x97   :  { %197 = vmatmul.f32.gmra.mxu1 %v2187_v1 }
  0x99   :  { %410 = vmatmul.f32.gmra.mxu3 %v2212_v31  ;;  %521 = vmatmul.f32.gmra.mxu0 %v1739_v49 }
  0x9e   :  { %298 = vmatmul.f32.gmra.mxu2 %v2232_v19  ;;  %v2240_v24 = vpop.f32.mrf.mxu1 }
  0x9f   :  { %200 = vmatmul.f32.gmra.mxu1 %v2212_v31 }
  0xa1   :  { %413 = vmatmul.f32.gmra.mxu3 %v2238_v21  ;;  %524 = vmatmul.f32.gmra.mxu0 %v1811_v5 }
  0xa4   :  { %v2262_v35 = vpop.f32.mrf.mxu2  ;;  %v103_v42 = vpop.f32.mrf.mxu0 }
  0xa6   :  { %301 = vmatmul.f32.gmra.mxu2 %v2260_v33  ;;  %v2270_v40 = vpop.f32.mrf.mxu3 }
  0xa7   :  { %203 = vmatmul.f32.gmra.mxu1 %v2238_v21  ;;  %v2273_v41 = vpop.f32.mrf.mxu1 }
  0xa9   :  { %416 = vmatmul.f32.gmra.mxu3 %v2268_v37  ;;  %527 = vmatmul.f32.gmra.mxu0 %v1639_v20 }
  0xac   :  { %v2285_v48 = vpop.f32.mrf.mxu2 }
  0xae   :  { %304 = vmatmul.f32.gmra.mxu2 %v2283_v47 }
  0xaf   :  { %206 = vmatmul.f32.gmra.mxu1 %v2268_v37  ;;  %v2294_v20 = vpop.f32.mrf.mxu3 }
  0xb0   :  { %v2296_v53 = vpop.f32.mrf.mxu1 }
  0xb1   :  { %419 = vmatmul.f32.gmra.mxu3 %v2291_v51  ;;  %530 = vmatmul.f32.gmra.mxu0 %v1696_v36 }
  0xb2   :  { %v106_v54 = vpop.f32.mrf.mxu0 }
  0xb5   :  { %v2305_v58 = vpop.f32.mrf.mxu2 }
  0xb6   :  { %307 = vmatmul.f32.gmra.mxu2 %v2303_v57 }
  0xb7   :  { %209 = vmatmul.f32.gmra.mxu1 %v2291_v51 }
  0xb9   :  { %422 = vmatmul.f32.gmra.mxu3 %v2311_v60  ;;  %533 = vmatmul.f32.gmra.mxu0 %v1768_v56  ;;  %v2316_v36 = vpop.f32.mrf.mxu3 }
  0xba   :  { %v2318_v61 = vpop.f32.mrf.mxu1 }
  0xbc   :  { %v109_v63 = vpop.f32.mrf.mxu0 }
  0xbe   :  { %310 = vmatmul.f32.gmra.mxu2 %v2323_v62 }
  0xbf   :  { %212 = vmatmul.f32.gmra.mxu1 %v2311_v60  ;;  %v2332_v56 = vpop.f32.mrf.mxu2 }
  0xc1   :  { %425 = vmatmul.f32.gmra.mxu3 %v2329_v2  ;;  %536 = vmatmul.f32.gmra.mxu0 %v1840_v12 }
  0xc3   :  { %v2336_v4 = vpop.f32.mrf.mxu3 }
  0xc4   :  { %v168_v7 = vpop.f32.mrf.mxu1 }
  0xc5   :  { %v169_v13 = vadd.f32 %v168_v7, %v103_v42 }
  0xc6   :  { %v112_v8 = vpop.f32.mrf.mxu0  ;;  %723 = vmatmul.f32.vlgmr.msra.gmra.mxu2 %v1949_v52 }
  0xc7   :  { %608 = vmatmul.f32.vlgmr.msra.gmra.mxu1 %v1934_v46 }
  0xc9   :  { %539 = vmatmul.f32.gmra.mxu0 %v2342_v10  ;;  %837 = vmatmul.f32.vlgmr.msra.gmra.mxu3 %v1834_v11  ;;  %v266_v17 = vpop.f32.mrf.mxu2 }
  0xca   :  { %v314_v12 = vadd.f32 %v266_v17, %v169_v13 }
  0xcc   :  { %v171_v18 = vpop.f32.mrf.mxu1  ;;  %v381_v25 = vpop.f32.mrf.mxu3 }
  0xcd   :  { %v2347_v26 = vadd.f32 %v381_v25, %v314_v12  ;;  %v172_v52 = vadd.f32 %v171_v18, %v106_v54 }
  0xce   :  { %v2349_v27 = vpop.f32.mrf.mxu0  ;;  %726 = vmatmul.f32.gmra.mxu2 %v1998_v3 }
  0xcf   :  { %611 = vmatmul.f32.gmra.mxu1 %v1980_v55 }
  0xd1   :  { %840 = vmatmul.f32.gmra.mxu3 %v1898_v34  ;;  %951 = vmatmul.f32.vlgmr.msra.gmra.mxu0 %v1980_v55  ;;  %v269_v46 = vpop.f32.mrf.mxu2 }
  0xd2   :  { %v315_v30 = vadd.f32 %v269_v46, %v172_v52 }
  0xd4   :  { %v174_v11 = vpop.f32.mrf.mxu1  ;;  %v384_v42 = vpop.f32.mrf.mxu3 }
  0xd5   :  { %v2355_v43 = vadd.f32 %v384_v42, %v315_v30  ;;  %v175_v3 = vadd.f32 %v174_v11, %v109_v63 }
  0xd6   :  { %v2357_v7 = vpop.f32.mrf.mxu0  ;;  %729 = vmatmul.f32.gmra.mxu2 %v2030_v15 }
  0xd7   :  { %614 = vmatmul.f32.gmra.mxu1 %v2024_v14 }
  0xd9   :  { %843 = vmatmul.f32.gmra.mxu3 %v1625_v16  ;;  %954 = vmatmul.f32.gmra.mxu0 %v2024_v14  ;;  %v272_v34 = vpop.f32.mrf.mxu2 }
  0xda   :  { %v316_v54 = vadd.f32 %v272_v34, %v175_v3 }
  0xdc   :  { %v177_v55 = vpop.f32.mrf.mxu1  ;;  %v387_v13 = vpop.f32.mrf.mxu3 }
  0xdd   :  { %v2363_v17 = vadd.f32 %v387_v13, %v316_v54  ;;  %v178_v15 = vadd.f32 %v177_v55, %v112_v8 }
  0xde   :  { %v2365_v12 = vpop.f32.mrf.mxu0  ;;  %732 = vmatmul.f32.gmra.mxu2 %v2056_v23 }
  0xdf   :  { %617 = vmatmul.f32.gmra.mxu1 %v2050_v22 }
  0xe1   :  { %846 = vmatmul.f32.gmra.mxu3 %v1681_v32  ;;  %957 = vmatmul.f32.gmra.mxu0 %v2050_v22  ;;  %v275_v16 = vpop.f32.mrf.mxu2 }
  0xe2   :  { %v317_v63 = vadd.f32 %v275_v16, %v178_v15 }
  0xe4   :  { %v180_v14 = vpop.f32.mrf.mxu1  ;;  %v390_v18 = vpop.f32.mrf.mxu3 }
  0xe5   :  { %v2371_v25 = vadd.f32 %v390_v18, %v317_v63  ;;  %v181_v23 = vadd.f32 %v180_v14, %v2240_v24 }
  0xe6   :  { %v2373_v52 = vpop.f32.mrf.mxu0  ;;  %735 = vmatmul.f32.gmra.mxu2 %v2082_v29 }
  0xe7   :  { %620 = vmatmul.f32.gmra.mxu1 %v2076_v28 }
  0xe9   :  { %849 = vmatmul.f32.gmra.mxu3 %v1744_v50  ;;  %960 = vmatmul.f32.gmra.mxu0 %v2076_v28  ;;  %v278_v32 = vpop.f32.mrf.mxu2 }
  0xea   :  { %v318_v22 = vadd.f32 %v278_v32, %v181_v23  ;;  %v1432_v32 = vld [vmem:[%s2699_s0 + $0x92] sm:$0xff] }
  0xec   :  { %v183_v8 = vpop.f32.mrf.mxu1  ;;  %v393_v46 = vpop.f32.mrf.mxu3 }
  0xed   :  { %v2380_v30 = vadd.f32 %v393_v46, %v318_v22  ;;  %v184_v29 = vadd.f32 %v183_v8, %v2273_v41  ;;  %v1368_v41 = vld [vmem:[%s2699_s0 + $0x90] sm:$0xff] }
  0xee   :  { %v2382_v11 = vpop.f32.mrf.mxu0  ;;  %738 = vmatmul.f32.gmra.mxu2 %v2108_v39 }
  0xef   :  { %623 = vmatmul.f32.gmra.mxu1 %v2102_v38 }
  0xf1   :  { %852 = vmatmul.f32.gmra.mxu3 %v1816_v6  ;;  %963 = vmatmul.f32.gmra.mxu0 %v2102_v38  ;;  %v281_v50 = vpop.f32.mrf.mxu2 }
  0xf2   :  { %v319_v28 = vadd.f32 %v281_v50, %v184_v29 }
  0xf4   :  { %v186_v24 = vpop.f32.mrf.mxu1  ;;  %v396_v42 = vpop.f32.mrf.mxu3 }
  0xf5   :  { %v2389_v3 = vadd.f32 %v396_v42, %v319_v28  ;;  %v187_v39 = vadd.f32 %v186_v24, %v2296_v53 }
  0xf6   :  { %v2391_v34 = vpop.f32.mrf.mxu0  ;;  %741 = vmatmul.f32.gmra.mxu2 %v2134_v45  ;;  %v1336_v45 = vld [vmem:[%s2699_s0 + $0x82] sm:$0xff] }
  0xf7   :  { %626 = vmatmul.f32.gmra.mxu1 %v2128_v44 }
  0xf9   :  { %855 = vmatmul.f32.gmra.mxu3 %v2163_v59  ;;  %966 = vmatmul.f32.gmra.mxu0 %v2128_v44  ;;  %v284_v6 = vpop.f32.mrf.mxu2  ;;  %v1400_v44 = vld [vmem:[%s2699_s0 + $0x91] sm:$0xff] }
  0xfa   :  { %v320_v38 = vadd.f32 %v284_v6, %v187_v39 }
  0xfc   :  { %v189_v54 = vpop.f32.mrf.mxu1  ;;  %v399_v55 = vpop.f32.mrf.mxu3 }
  0xfd   :  { %v2404_v13 = vadd.f32 %v399_v55, %v320_v38  ;;  %v190_v59 = vadd.f32 %v189_v54, %v2318_v61 }
  0xfe   :  { %v2406_v15 = vpop.f32.mrf.mxu0  ;;  %744 = vmatmul.f32.gmra.mxu2 %v1368_v41 }
  0xff   :  { %629 = vmatmul.f32.gmra.mxu1 %v1336_v45 }
 0x101   :  { %858 = vmatmul.f32.gmra.mxu3 %v1400_v44  ;;  %969 = vmatmul.f32.gmra.mxu0 %v1336_v45  ;;  %v287_v53 = vpop.f32.mrf.mxu2 }
 0x102   :  { %v321_v16 = vadd.f32 %v287_v53, %v190_v59 }
 0x104   :  { %v192_v63 = vpop.f32.mrf.mxu1  ;;  %v402_v14 = vpop.f32.mrf.mxu3 }
 0x105   :  { %v2412_v18 = vadd.f32 %v402_v14, %v321_v16  ;;  %v193_v61 = vadd.f32 %v192_v63, %v2262_v35 }
 0x106   :  { %v2414_v23 = vpop.f32.mrf.mxu0  ;;  %747 = vmatmul.f32.gmra.mxu2 %v2187_v1 }
 0x107   :  { %632 = vmatmul.f32.gmra.mxu1 %v2181_v0 }
 0x109   :  { %861 = vmatmul.f32.gmra.mxu3 %v1739_v49  ;;  %972 = vmatmul.f32.gmra.mxu0 %v1432_v32  ;;  %v290_v22 = vpop.f32.mrf.mxu2 }
 0x10a   :  { %v322_v8 = vadd.f32 %v290_v22, %v193_v61 }
 0x10c   :  { %v195_v46 = vpop.f32.mrf.mxu1  ;;  %v405_v29 = vpop.f32.mrf.mxu3 }
 0x10d   :  { %v437_v50 = vadd.f32 %v405_v29, %v322_v8  ;;  %v196_v24 = vadd.f32 %v195_v46, %v2285_v48 }
 0x10e   :  { %v519_v28 = vpop.f32.mrf.mxu0  ;;  %750 = vmatmul.f32.gmra.mxu2 %v2212_v31  ;;  %v1403_v31 = vld [vmem:[%s2699_s0 + $0xe1] sm:$0xff] }
 0x10f   :  { %v2424_v1 = vadd.f32 %v519_v28, %v437_v50  ;;  %635 = vmatmul.f32.gmra.mxu1 %v2206_v9 }
 0x111   :  { %864 = vmatmul.f32.gmra.mxu3 %v1811_v5  ;;  %975 = vmatmul.f32.gmra.mxu0 %v2206_v9  ;;  %v293_v49 = vpop.f32.mrf.mxu2 }
 0x112   :  { %v323_v0 = vadd.f32 %v293_v49, %v196_v24 }
 0x114   :  { %v198_v35 = vpop.f32.mrf.mxu1  ;;  %v408_v42 = vpop.f32.mrf.mxu3 }
 0x115   :  { %v438_v39 = vadd.f32 %v408_v42, %v323_v0  ;;  %v199_v5 = vadd.f32 %v198_v35, %v2305_v58 }
 0x116   :  { %v522_v6 = vpop.f32.mrf.mxu0  ;;  %753 = vmatmul.f32.gmra.mxu2 %v2238_v21  ;;  %v1404_v21 = vld [vmem:[%s2699_s0 + $0xf1] sm:$0xff] }
 0x117   :  { %v2434_v38 = vadd.f32 %v522_v6, %v438_v39  ;;  %638 = vmatmul.f32.gmra.mxu1 %v2232_v19  ;;  %v1376_v39 = vld [vmem:[%s2699_s0 + $0x130] sm:$0xff] }
 0x119   :  { %867 = vmatmul.f32.gmra.mxu3 %v1403_v31  ;;  %978 = vmatmul.f32.gmra.mxu0 %v2232_v19  ;;  %v296_v9 = vpop.f32.mrf.mxu2 }
 0x11a   :  { %v324_v48 = vadd.f32 %v296_v9, %v199_v5 }
 0x11c   :  { %v201_v41 = vpop.f32.mrf.mxu1  ;;  %v411_v54 = vpop.f32.mrf.mxu3 }
 0x11d   :  { %v439_v55 = vadd.f32 %v411_v54, %v324_v48  ;;  %v202_v58 = vadd.f32 %v201_v41, %v2332_v56  ;;  %v543_v54 = vadd.f32 %v2349_v27, %v2347_v26 }
 0x11e   :  { %v525_v45 = vpop.f32.mrf.mxu0  ;;  %756 = vmatmul.f32.gmra.mxu2 %v2268_v37  ;;  %v1405_v37 = vld [vmem:[%s2699_s0 + $0x101] sm:$0xff] }
 0x11f   :  { %v2443_v44 = vadd.f32 %v525_v45, %v439_v55  ;;  %641 = vmatmul.f32.gmra.mxu1 %v2260_v33 }
 0x121   :  { %870 = vmatmul.f32.gmra.mxu3 %v1404_v21  ;;  %981 = vmatmul.f32.gmra.mxu0 %v2260_v33  ;;  %v299_v19 = vpop.f32.mrf.mxu2 }
 0x122   :  { %v325_v59 = vadd.f32 %v299_v19, %v202_v58 }
 0x124   :  { %v204_v53 = vpop.f32.mrf.mxu1  ;;  %v414_v16 = vpop.f32.mrf.mxu3 }
 0x125   :  { %v440_v63 = vadd.f32 %v414_v16, %v325_v59  ;;  %v205_v56 = vadd.f32 %v204_v53, %v2270_v40  ;;  %v1440_v59 = vld [vmem:[%s2699_s0 + $0x132] sm:$0xff] }
 0x126   :  { %v528_v14 = vpop.f32.mrf.mxu0  ;;  %759 = vmatmul.f32.gmra.mxu2 %v2291_v51  ;;  %v1406_v51 = vld [vmem:[%s2699_s0 + $0x111] sm:$0xff] }
 0x127   :  { %v2452_v32 = vadd.f32 %v528_v14, %v440_v63  ;;  %644 = vmatmul.f32.gmra.mxu1 %v2283_v47  ;;  %v544_v63 = vadd.f32 %v2357_v7, %v2355_v43 }
 0x129   :  { %873 = vmatmul.f32.gmra.mxu3 %v1405_v37  ;;  %984 = vmatmul.f32.gmra.mxu0 %v2283_v47  ;;  %v302_v33 = vpop.f32.mrf.mxu2 }
 0x12a   :  { %v326_v61 = vadd.f32 %v302_v33, %v205_v56 }
 0x12c   :  { %v207_v22 = vpop.f32.mrf.mxu1  ;;  %v417_v8 = vpop.f32.mrf.mxu3 }
 0x12d   :  { %v441_v46 = vadd.f32 %v417_v8, %v326_v61  ;;  %v208_v40 = vadd.f32 %v207_v22, %v2294_v20  ;;  %v545_v8 = vadd.f32 %v2365_v12, %v2363_v17 }
 0x12e   :  { %v531_v29 = vpop.f32.mrf.mxu0  ;;  %762 = vmatmul.f32.gmra.mxu2 %v2311_v60 }
 0x12f   :  { %v2461_v50 = vadd.f32 %v531_v29, %v441_v46  ;;  %647 = vmatmul.f32.gmra.mxu1 %v2303_v57 }
 0x131   :  { %876 = vmatmul.f32.gmra.mxu3 %v1406_v51  ;;  %987 = vmatmul.f32.gmra.mxu0 %v2303_v57  ;;  %v305_v47 = vpop.f32.mrf.mxu2 }
 0x132   :  { %v327_v28 = vadd.f32 %v305_v47, %v208_v40 }
 0x134   :  { %v210_v24 = vpop.f32.mrf.mxu1  ;;  %v420_v49 = vpop.f32.mrf.mxu3 }
 0x135   :  { %v442_v0 = vadd.f32 %v420_v49, %v327_v28  ;;  %v211_v42 = vadd.f32 %v210_v24, %v2316_v36  ;;  %v1408_v36 = vld [vmem:[%s2699_s0 + $0x131] sm:$0xff]  ;;  %v546_v49 = vadd.f32 %v2373_v52, %v2371_v25 }
 0x136   :  { %v534_v35 = vpop.f32.mrf.mxu0  ;;  %765 = vmatmul.f32.gmra.mxu2 %v2329_v2  ;;  %v1344_v2 = vld [vmem:[%s2699_s0 + $0x122] sm:$0xff] }
 0x137   :  { %v2467_v60 = vadd.f32 %v534_v35, %v442_v0  ;;  %650 = vmatmul.f32.gmra.mxu1 %v2323_v62 }
 0x139   :  { %879 = vmatmul.f32.gmra.mxu3 %v2342_v10  ;;  %990 = vmatmul.f32.gmra.mxu0 %v2323_v62  ;;  %v308_v20 = vpop.f32.mrf.mxu2 }
 0x13a   :  { %v328_v57 = vadd.f32 %v308_v20, %v211_v42 }
 0x13c   :  { %v213_v6 = vpop.f32.mrf.mxu1  ;;  %v423_v31 = vpop.f32.mrf.mxu3 }
 0x13d   :  { %v443_v5 = vadd.f32 %v423_v31, %v328_v57  ;;  %v214_v10 = vadd.f32 %v213_v6, %v2336_v4  ;;  %v547_v31 = vadd.f32 %v2382_v11, %v2380_v30 }
 0x13e   :  { %v537_v9 = vpop.f32.mrf.mxu0  ;;  %768 = vmatmul.f32.gmra.mxu2 %v1376_v39 }
 0x13f   :  { %v2482_v62 = vadd.f32 %v537_v9, %v443_v5  ;;  %653 = vmatmul.f32.gmra.mxu1 %v1344_v2 }
 0x141   :  { %882 = vmatmul.f32.gmra.mxu3 %v1408_v36  ;;  %993 = vmatmul.f32.gmra.mxu0 %v1344_v2  ;;  %v311_v48 = vpop.f32.mrf.mxu2 }
 0x142   :  { %v329_v41 = vadd.f32 %v311_v48, %v214_v10 }
 0x144   :  { %v426_v55 = vpop.f32.mrf.mxu3  ;;  %v609_v45 = vpop.f32.mrf.mxu1 }
 0x145   :  { %v444_v21 = vadd.f32 %v426_v55, %v329_v41  ;;  %v657_v58 = vadd.f32 %v609_v45, %v543_v54 }
 0x146   :  { %v540_v19 = vpop.f32.mrf.mxu0 }
 0x147   :  { %v2490_v53 = vadd.f32 %v540_v19, %v444_v21  ;;  %v548_v21 = vadd.f32 %v2391_v34, %v2389_v3 }
 0x149   :  { %996 = vmatmul.f32.gmra.mxu0 %v1440_v59  ;;  %v724_v4 = vpop.f32.mrf.mxu2 }
 0x14a   :  { %v772_v16 = vadd.f32 %v724_v4, %v657_v58 }
 0x14c   :  { %v612_v14 = vpop.f32.mrf.mxu1  ;;  %v838_v37 = vpop.f32.mrf.mxu3 }
 0x14d   :  { %v658_v26 = vadd.f32 %v612_v14, %v544_v63  ;;  %v886_v27 = vadd.f32 %v838_v37, %v772_v16  ;;  %v549_v37 = vadd.f32 %v2406_v15, %v2404_v13 }
 0x14e   :  { %v952_v56 = vpop.f32.mrf.mxu0 }
 0x14f   :  { %v2494_v33 = vadd.f32 %v952_v56, %v886_v27 }
 0x151   :  { %v727_v61 = vpop.f32.mrf.mxu2 }
 0x152   :  { %v773_v22 = vadd.f32 %v727_v61, %v658_v26 }
 0x154   :  { %v615_v46 = vpop.f32.mrf.mxu1  ;;  %v841_v29 = vpop.f32.mrf.mxu3 }
 0x155   :  { %v659_v51 = vadd.f32 %v615_v46, %v545_v8  ;;  %v887_v40 = vadd.f32 %v841_v29, %v773_v22  ;;  %v550_v29 = vadd.f32 %v2414_v23, %v2412_v18 }
 0x156   :  { %v955_v47 = vpop.f32.mrf.mxu0 }
 0x157   :  { %v2498_v28 = vadd.f32 %v955_v47, %v887_v40 }
 0x159   :  { %v1016_v43 = vadd.f32 %v2498_v28, %v2494_v33  ;;  %v730_v7 = vpop.f32.mrf.mxu2 }
 0x15a   :  { %v774_v24 = vadd.f32 %v730_v7, %v659_v51 }
 0x15c   :  { %v618_v0 = vpop.f32.mrf.mxu1  ;;  %v844_v35 = vpop.f32.mrf.mxu3 }
 0x15d   :  { %v660_v42 = vadd.f32 %v618_v0, %v546_v49  ;;  %v888_v20 = vadd.f32 %v844_v35, %v774_v24 }
 0x15e   :  { %v958_v17 = vpop.f32.mrf.mxu0 }
 0x15f   :  { %v2504_v12 = vadd.f32 %v958_v17, %v888_v20 }
 0x161   :  { %v1017_v57 = vadd.f32 %v1016_v43, %v2504_v12  ;;  %v733_v39 = vpop.f32.mrf.mxu2 }
 0x162   :  { %v775_v6 = vadd.f32 %v733_v39, %v660_v42 }
 0x164   :  { %v621_v2 = vpop.f32.mrf.mxu1  ;;  %v847_v5 = vpop.f32.mrf.mxu3 }
 0x165   :  { %v661_v9 = vadd.f32 %v621_v2, %v547_v31  ;;  %v889_v36 = vadd.f32 %v847_v5, %v775_v6 }
 0x166   :  { %v961_v10 = vpop.f32.mrf.mxu0 }
 0x167   :  { %v2509_v25 = vadd.f32 %v961_v10, %v889_v36 }
 0x169   :  { %v1018_v52 = vadd.f32 %v1017_v57, %v2509_v25  ;;  %v736_v48 = vpop.f32.mrf.mxu2 }
 0x16a   :  { %v776_v41 = vadd.f32 %v736_v48, %v661_v9 }
 0x16c   :  { %v624_v54 = vpop.f32.mrf.mxu1  ;;  %v850_v55 = vpop.f32.mrf.mxu3 }
 0x16d   :  { %v890_v45 = vadd.f32 %v850_v55, %v776_v41  ;;  %v662_v30 = vadd.f32 %v624_v54, %v548_v21 }
 0x16e   :  { %v964_v58 = vpop.f32.mrf.mxu0 }
 0x16f   :  { %v2514_v19 = vadd.f32 %v964_v58, %v890_v45 }
 0x171   :  { %v1019_v11 = vadd.f32 %v1018_v52, %v2514_v19  ;;  %v739_v59 = vpop.f32.mrf.mxu2 }
 0x172   :  { %v777_v4 = vadd.f32 %v739_v59, %v662_v30 }
 0x174   :  { %v627_v16 = vpop.f32.mrf.mxu1  ;;  %v853_v63 = vpop.f32.mrf.mxu3 }
 0x175   :  { %v891_v14 = vadd.f32 %v853_v63, %v777_v4  ;;  %v663_v56 = vadd.f32 %v627_v16, %v549_v37 }
 0x176   :  { %v967_v26 = vpop.f32.mrf.mxu0 }
 0x177   :  { %v2519_v27 = vadd.f32 %v967_v26, %v891_v14 }
 0x179   :  { %v1020_v3 = vadd.f32 %v1019_v11, %v2519_v27  ;;  %v742_v34 = vpop.f32.mrf.mxu2 }
 0x17a   :  { %v778_v61 = vadd.f32 %v742_v34, %v663_v56 }
 0x17c   :  { %v630_v22 = vpop.f32.mrf.mxu1  ;;  %v856_v8 = vpop.f32.mrf.mxu3 }
 0x17d   :  { %v892_v46 = vadd.f32 %v856_v8, %v778_v61  ;;  %v664_v47 = vadd.f32 %v630_v22, %v550_v29 }
 0x17e   :  { %v970_v51 = vpop.f32.mrf.mxu0 }
 0x17f   :  { %v2524_v40 = vadd.f32 %v970_v51, %v892_v46 }
 0x181   :  { %v1021_v13 = vadd.f32 %v1020_v3, %v2524_v40  ;;  %v745_v15 = vpop.f32.mrf.mxu2 }
 0x182   :  { %v779_v43 = vadd.f32 %v745_v15, %v664_v47 }
 0x184   :  { %v633_v7 = vpop.f32.mrf.mxu1  ;;  %v859_v24 = vpop.f32.mrf.mxu3 }
 0x185   :  { %v893_v49 = vadd.f32 %v859_v24, %v779_v43  ;;  %v665_v42 = vadd.f32 %v633_v7, %v2424_v1 }
 0x186   :  { %v973_v0 = vpop.f32.mrf.mxu0 }
 0x187   :  { %v2527_v35 = vadd.f32 %v973_v0, %v893_v49 }
 0x189   :  { %v1022_v20 = vadd.f32 %v1021_v13, %v2527_v35  ;;  %v748_v17 = vpop.f32.mrf.mxu2 }
 0x18a   :  { %v780_v18 = vadd.f32 %v748_v17, %v665_v42 }
 0x18c   :  { %v636_v23 = vpop.f32.mrf.mxu1  ;;  %v862_v57 = vpop.f32.mrf.mxu3 }
 0x18d   :  { %v894_v39 = vadd.f32 %v862_v57, %v780_v18  ;;  %v666_v2 = vadd.f32 %v636_v23, %v2434_v38  ;;  %v1540_v57 = vmov 128.0  }
 0x18e   :  { %v976_v6 = vpop.f32.mrf.mxu0  ;;  %1510 = vrcp.f32 %v1540_v57 }
 0x18f   :  { %v2531_v31 = vadd.f32 %v976_v6, %v894_v39 }
 0x191   :  { %v1023_v5 = vadd.f32 %v1022_v20, %v2531_v31  ;;  %v751_v9 = vpop.f32.mrf.mxu2 }
 0x192   :  { %v781_v36 = vadd.f32 %v751_v9, %v666_v2 }
 0x194   :  { %v639_v10 = vpop.f32.mrf.mxu1  ;;  %v865_v52 = vpop.f32.mrf.mxu3 }
 0x195   :  { %v895_v48 = vadd.f32 %v865_v52, %v781_v36  ;;  %v667_v54 = vadd.f32 %v639_v10, %v2443_v44  ;;  %v1511_v36 = vpop.eup %1510 }
 0x196   :  { %v979_v1 = vpop.f32.mrf.mxu0  ;;  %vm1042_vm0 = vweird.f32 %v1511_v36 }
 0x197   :  { %v2535_v41 = vadd.f32 %v979_v1, %v895_v48 }
 0x199   :  { %v1024_v55 = vadd.f32 %v1023_v5, %v2535_v41  ;;  %v754_v45 = vpop.f32.mrf.mxu2 }
 0x19a   :  { %v782_v21 = vadd.f32 %v754_v45, %v667_v54  ;;  %v1038_v54 = vmul.f32 128.0, %v1511_v36 }
 0x19c   :  { %v642_v58 = vpop.f32.mrf.mxu1  ;;  %v868_v30 = vpop.f32.mrf.mxu3 }
 0x19d   :  { %v896_v11 = vadd.f32 %v868_v30, %v782_v21  ;;  %v668_v4 = vadd.f32 %v642_v58, %v2452_v32  ;;  %v1039_v21 = vsub.f32 1.0, %v1038_v54 }
 0x19e   :  { %v982_v38 = vpop.f32.mrf.mxu0 }
 0x19f   :  { %v2539_v59 = vadd.f32 %v982_v38, %v896_v11  ;;  %v1040_v11 = vmul.f32 %v1511_v36, %v1039_v21 }
 0x1a1   :  { %v1025_v16 = vadd.f32 %v1024_v55, %v2539_v59  ;;  %v757_v63 = vpop.f32.mrf.mxu2 }
 0x1a2   :  { %v783_v14 = vadd.f32 %v757_v63, %v668_v4 }
 0x1a4   :  { %v645_v37 = vpop.f32.mrf.mxu1  ;;  %v871_v26 = vpop.f32.mrf.mxu3 }
 0x1a5   :  { %v897_v56 = vadd.f32 %v871_v26, %v783_v14  ;;  %v669_v34 = vadd.f32 %v645_v37, %v2461_v50 }
 0x1a6   :  { %v985_v44 = vpop.f32.mrf.mxu0 }
 0x1a7   :  { %v2543_v3 = vadd.f32 %v985_v44, %v897_v56 }
 0x1a9   :  { %v1026_v61 = vadd.f32 %v1025_v16, %v2543_v3  ;;  %v760_v22 = vpop.f32.mrf.mxu2  ;;  %v1041_v16 = vadd.f32 %v1511_v36, %v1040_v11 }
 0x1aa   :  { %v784_v8 = vadd.f32 %v760_v22, %v669_v34 }
 0x1ac   :  { %v648_v46 = vpop.f32.mrf.mxu1  ;;  %v874_v29 = vpop.f32.mrf.mxu3 }
 0x1ad   :  { %v898_v51 = vadd.f32 %v874_v29, %v784_v8  ;;  %v670_v13 = vadd.f32 %v648_v46, %v2467_v60 }
 0x1ae   :  { %v988_v32 = vpop.f32.mrf.mxu0 }
 0x1af   :  { %v1012_v47 = vadd.f32 %v988_v32, %v898_v51 }
 0x1b1   :  { %v1027_v15 = vadd.f32 %v1026_v61, %v1012_v47  ;;  %v763_v43 = vpop.f32.mrf.mxu2 }
 0x1b2   :  { %v785_v7 = vadd.f32 %v763_v43, %v670_v13 }
 0x1b4   :  { %v651_v24 = vpop.f32.mrf.mxu1  ;;  %v877_v49 = vpop.f32.mrf.mxu3 }
 0x1b5   :  { %v899_v0 = vadd.f32 %v877_v49, %v785_v7  ;;  %v671_v50 = vadd.f32 %v651_v24, %v2482_v62 }
 0x1b6   :  { %v991_v42 = vpop.f32.mrf.mxu0 }
 0x1b7   :  { %v1013_v20 = vadd.f32 %v991_v42, %v899_v0 }
 0x1b9   :  { %v1028_v17 = vadd.f32 %v1027_v15, %v1013_v20  ;;  %v766_v18 = vpop.f32.mrf.mxu2 }
 0x1ba   :  { %v786_v23 = vadd.f32 %v766_v18, %v671_v50 }
 0x1bc   :  { %v880_v39 = vpop.f32.mrf.mxu3  ;;  %v654_v6 = vpop.f32.mrf.mxu1 }
 0x1bd   :  { %v900_v2 = vadd.f32 %v880_v39, %v786_v23  ;;  %v672_v9 = vadd.f32 %v654_v6, %v2490_v53  ;;  %v1043_v53 = vsel %vm1042_vm0, %v1511_v36, %v1041_v16 }
 0x1be   :  { %v994_v5 = vpop.f32.mrf.mxu0 }
 0x1bf   :  { %v1014_v60 = vadd.f32 %v994_v5, %v900_v2 }
 0x1c1   :  { %v1029_v10 = vadd.f32 %v1028_v17, %v1014_v60  ;;  %v769_v52 = vpop.f32.mrf.mxu2 }
 0x1c2   :  { %v787_v48 = vadd.f32 %v769_v52, %v672_v9 }
 0x1c4   :  { %v883_v1 = vpop.f32.mrf.mxu3 }
 0x1c5   :  { %v901_v55 = vadd.f32 %v883_v1, %v787_v48 }
 0x1c6   :  { %v997_v62 = vpop.f32.mrf.mxu0 }
 0x1c7   :  { %v1015_v45 = vadd.f32 %v997_v62, %v901_v55 }
 0x1c9   :  { %v1030_v58 = vadd.f32 %v1029_v10, %v1015_v45 }
 0x1cb   :  { %v1031_v30 = vrot.slane %v1030_v58, 4 }
 0x1cd   :  { %v1032_v38 = vadd.f32 %v1031_v30, %v1030_v58 }
 0x1cf   :  { %v1033_v4 = vrot.slane %v1032_v38, 2 }
 0x1d1   :  { %v1034_v63 = vadd.f32 %v1033_v4, %v1032_v38 }
 0x1d3   :  { %v1035_v14 = vrot.slane %v1034_v63, 1 }
 0x1d5   :  { %v1036_v37 = vadd.f32 %v1035_v14, %v1034_v63  ;;  %v1099_v14 = vld [vmem:[%s2701_s2] sm:$0x1] }
 0x1d7   :  { %v1044_v26 = vmul.f32 %v1043_v53, %v1036_v37 }
 0x1d9   :  { %v2551_v56 = vsub.f32 %v2494_v33, %v1044_v26  ;;  %v2554_v44 = vsub.f32 %v2498_v28, %v1044_v26  ;;  %v2557_v34 = vsub.f32 %v2504_v12, %v1044_v26  ;;  %v2560_v61 = vsub.f32 %v2509_v25, %v1044_v26 }
 0x1da   :  { %v2563_v22 = vsub.f32 %v2514_v19, %v1044_v26  ;;  %v2566_v8 = vsub.f32 %v2519_v27, %v1044_v26  ;;  %v2569_v46 = vsub.f32 %v2524_v40, %v1044_v26  ;;  %v2572_v33 = vsub.f32 %v2527_v35, %v1044_v26 }
 0x1db   :  { %v2575_v28 = vsub.f32 %v2531_v31, %v1044_v26  ;;  %v2578_v12 = vsub.f32 %v2535_v41, %v1044_v26  ;;  %v2581_v25 = vsub.f32 %v2539_v59, %v1044_v26  ;;  %v2584_v19 = vsub.f32 %v2543_v3, %v1044_v26 }
 0x1dc   :  { %v2586_v27 = vsub.f32 %v1012_v47, %v1044_v26  ;;  %v2588_v29 = vsub.f32 %v1013_v20, %v1044_v26  ;;  %v2590_v40 = vsub.f32 %v1014_v60, %v1044_v26  ;;  %v2592_v35 = vsub.f32 %v1015_v45, %v1044_v26 }
 0x1dd   :  { %v1061_v31 = vmul.f32 %v2551_v56, %v2551_v56  ;;  %v1062_v41 = vmul.f32 %v2554_v44, %v2554_v44  ;;  %v1063_v59 = vmul.f32 %v2557_v34, %v2557_v34  ;;  %v1064_v3 = vmul.f32 %v2560_v61, %v2560_v61 }
 0x1de   :  { %v1065_v47 = vmul.f32 %v2563_v22, %v2563_v22  ;;  %v1066_v15 = vmul.f32 %v2566_v8, %v2566_v8  ;;  %v1067_v7 = vmul.f32 %v2569_v46, %v2569_v46  ;;  %v1068_v49 = vmul.f32 %v2572_v33, %v2572_v33 }
 0x1df   :  { %v1077_v51 = vadd.f32 %v1062_v41, %v1061_v31  ;;  %v1069_v42 = vmul.f32 %v2575_v28, %v2575_v28  ;;  %v1070_v50 = vmul.f32 %v2578_v12, %v2578_v12  ;;  %v1071_v18 = vmul.f32 %v2581_v25, %v2581_v25 }
 0x1e0   :  { %v1072_v57 = vmul.f32 %v2584_v19, %v2584_v19  ;;  %v1073_v6 = vmul.f32 %v2586_v27, %v2586_v27  ;;  %v1074_v5 = vmul.f32 %v2588_v29, %v2588_v29  ;;  %v1075_v9 = vmul.f32 %v2590_v40, %v2590_v40 }
 0x1e1   :  { %v1078_v32 = vadd.f32 %v1077_v51, %v1063_v59  ;;  %v1076_v10 = vmul.f32 %v2592_v35, %v2592_v35 }
 0x1e3   :  { %v1079_v13 = vadd.f32 %v1078_v32, %v1064_v3  ;;  %v1509_v3 = vld [vmem:[%s2702_s3] ss:$0 sm:$0xff] }
 0x1e5   :  { %v1080_v43 = vadd.f32 %v1079_v13, %v1065_v47 }
 0x1e7   :  { %v1081_v24 = vadd.f32 %v1080_v43, %v1066_v15 }
 0x1e9   :  { %v1082_v0 = vadd.f32 %v1081_v24, %v1067_v7 }
 0x1eb   :  { %v1083_v20 = vadd.f32 %v1082_v0, %v1068_v49 }
 0x1ed   :  { %v1084_v17 = vadd.f32 %v1083_v20, %v1069_v42 }
 0x1ef   :  { %v1085_v23 = vadd.f32 %v1084_v17, %v1070_v50 }
 0x1f1   :  { %v1086_v39 = vadd.f32 %v1085_v23, %v1071_v18  ;;  %v1170_v23 = vld [vmem:[%s2703_s4 + $0x18] sm:$0xff] }
 0x1f3   :  { %v1087_v2 = vadd.f32 %v1086_v39, %v1072_v57 }
 0x1f5   :  { %v1088_v60 = vadd.f32 %v1087_v2, %v1073_v6  ;;  %v1171_v2 = vld [vmem:[%s2703_s4 + $0x20] sm:$0xff] }
 0x1f7   :  { %v1089_v36 = vadd.f32 %v1088_v60, %v1074_v5  ;;  %v1172_v60 = vld [vmem:[%s2703_s4 + $0x28] sm:$0xff] }
 0x1f9   :  { %v1090_v52 = vadd.f32 %v1089_v36, %v1075_v9 }
 0x1fb   :  { %v1091_v48 = vadd.f32 %v1090_v52, %v1076_v10 }
 0x1fd   :  { %v1092_v1 = vrot.slane %v1091_v48, 4 }
 0x1ff   :  { %v1093_v54 = vadd.f32 %v1092_v1, %v1091_v48  ;;  %v1173_v1 = vld [vmem:[%s2703_s4 + $0x30] sm:$0xff] }
 0x201   :  { %v1094_v55 = vrot.slane %v1093_v54, 2 }
 0x203   :  { %v1095_v62 = vadd.f32 %v1094_v55, %v1093_v54 }
 0x205   :  { %v1096_v45 = vrot.slane %v1095_v62, 1 }
 0x207   :  { %v1097_v21 = vadd.f32 %v1096_v45, %v1095_v62  ;;  %v1174_v45 = vld [vmem:[%s2703_s4 + $0x38] sm:$0xff] }
 0x209   :  { %v1098_v58 = vmul.f32 %v1097_v21, %v1043_v53 }
 0x20b   :  { %v1100_v30 = vadd.f32 1e-05, %v1098_v58 }
 0x20d   :  { %1512 = vrsqrt.f32 %v1100_v30  ;;  %vm1107_vm2 = vweird.f32 %v1100_v30 }
 0x213   :  { %v1513_v11 = vpop.eup %1512 }
 0x214   :  { %v1102_v38 = vmul.f32 %v1513_v11, %v1100_v30  ;;  %vm1108_vm1 = vweird.f32 %v1513_v11 }
 0x215   :  { %vm1109_vm3 = vmor %vm1107_vm2, %vm1108_vm1 }
 0x216   :  { %v1103_v4 = vmul.f32 %v1513_v11, %v1102_v38 }
 0x218   :  { %v1104_v16 = vmul.f32 0.5, %v1103_v4 }
 0x21a   :  { %v1105_v63 = vsub.f32 1.5, %v1104_v16 }
 0x21c   :  { %v1106_v37 = vmul.f32 %v1513_v11, %v1105_v63  ;;  %v1176_v63 = vld [vmem:[%s2703_s4 + $0x48] sm:$0xff] }
 0x21e   :  { %v1110_v26 = vsel %vm1109_vm3, %v1513_v11, %v1106_v37  ;;  %v1175_v11 = vld [vmem:[%s2703_s4 + $0x40] sm:$0xff] }
 0x21f   :  { %v1111_v31 = vmul.f32 %v1110_v26, %v1099_v14 }
 0x221   :  { %v1113_v41 = vperm.slane %v1111_v31, 0  ;;  %v1177_v31 = vld [vmem:[%s2703_s4 + $0x50] sm:$0xff] }
 0x223   :  { %v1115_v53 = vmul.f32 %v1113_v41, %v2551_v56  ;;  %v1116_v59 = vmul.f32 %v1113_v41, %v2554_v44  ;;  %v1117_v51 = vmul.f32 %v1113_v41, %v2557_v34  ;;  %v1118_v32 = vmul.f32 %v1113_v41, %v2560_v61 }
 0x224   :  { %v1119_v47 = vmul.f32 %v1113_v41, %v2563_v22  ;;  %v1120_v13 = vmul.f32 %v1113_v41, %v2566_v8  ;;  %v1123_v15 = vmul.f32 %v1113_v41, %v2575_v28  ;;  %v1124_v43 = vmul.f32 %v1113_v41, %v2578_v12 }
 0x225   :  { %v1125_v56 = vmul.f32 %v1113_v41, %v2581_v25  ;;  %v1126_v44 = vmul.f32 %v1113_v41, %v2584_v19  ;;  %v1127_v34 = vmul.f32 %v1113_v41, %v2586_v27  ;;  %v1128_v7 = vmul.f32 %v1113_v41, %v2588_v29 }
 0x226   :  { %v1129_v24 = vmul.f32 %v1113_v41, %v2590_v40  ;;  %v1130_v61 = vmul.f32 %v1113_v41, %v2592_v35  ;;  %v1121_v22 = vmul.f32 %v1113_v41, %v2569_v46  ;;  %v1135_v49 = vadd.f32 %v1509_v3, %v1115_v53  ;;  %v1167_v40 = vld [vmem:[%s2703_s4] sm:$0xff]  ;;  %v1168_v46 = vld [vmem:[%s2703_s4 + $0x8] sm:$0xff] }
 0x227   :  { %v1136_v8 = vadd.f32 %v1509_v3, %v1116_v59  ;;  %v1137_v0 = vadd.f32 %v1509_v3, %v1117_v51  ;;  %v1122_v28 = vmul.f32 %v1113_v41, %v2572_v33  ;;  %v1138_v12 = vadd.f32 %v1509_v3, %v1118_v32  ;;  %v1169_v33 = vld [vmem:[%s2703_s4 + $0x10] sm:$0xff]  ;;  %v1178_v59 = vld [vmem:[%s2703_s4 + $0x58] sm:$0xff] }
 0x228   :  { %v1139_v42 = vadd.f32 %v1509_v3, %v1119_v47  ;;  %v1140_v25 = vadd.f32 %v1509_v3, %v1120_v13  ;;  %v1141_v20 = vadd.f32 %v1509_v3, %v1121_v22  ;;  %v1151_v19 = vmax.f32 %v1135_v49, 0.0  ;;  %v1179_v47 = vld [vmem:[%s2703_s4 + $0x60] sm:$0xff] }
 0x229   :  { %v1152_v50 = vmax.f32 %v1136_v8, 0.0  ;;  %v1153_v27 = vmax.f32 %v1137_v0, 0.0  ;;  %v1142_v17 = vadd.f32 %v1509_v3, %v1122_v28  ;;  %v1154_v29 = vmax.f32 %v1138_v12, 0.0 }
 0x22a   :  { %v1143_v35 = vadd.f32 %v1509_v3, %v1123_v15  ;;  %v1155_v18 = vmax.f32 %v1139_v42, 0.0  ;;  %v1144_v57 = vadd.f32 %v1509_v3, %v1124_v43  ;;  %v1145_v39 = vadd.f32 %v1509_v3, %v1125_v56  ;;  %v1180_v15 = vld [vmem:[%s2703_s4 + $0x68] sm:$0xff] }
 0x22b   :  { %v1156_v6 = vmax.f32 %v1140_v25, 0.0  ;;  %v1157_v5 = vmax.f32 %v1141_v20, 0.0  ;;  %v1183_v9 = vadd.f32 %v1167_v40, %v1151_v19  ;;  %v1184_v36 = vadd.f32 %v1168_v46, %v1152_v50 }
 0x22c   :  { %v1185_v10 = vadd.f32 %v1169_v33, %v1153_v27  ;;  %v1146_v52 = vadd.f32 %v1509_v3, %v1126_v44  ;;  %v1158_v48 = vmax.f32 %v1142_v17, 0.0  ;;  %v1186_v54 = vadd.f32 %v1170_v23, %v1154_v29  ;;  %v1181_v44 = vld [vmem:[%s2703_s4 + $0x70] sm:$0xff] }
 0x22d   :  { %v1147_v55 = vadd.f32 %v1509_v3, %v1127_v34  ;;  %v1159_v62 = vmax.f32 %v1143_v35, 0.0  ;;  %v1187_v21 = vadd.f32 %v1171_v2, %v1155_v18  ;;  %1199 = vst [vmem:[#allocation2] sm:$0xff] %v1183_v9  ;;  %v1148_v58 = vadd.f32 %v1509_v3, %v1128_v7  ;;  %v1182_v7 = vld [vmem:[%s2703_s4 + $0x78] sm:$0xff]  ;;  %s1542_s4 = smov 128  }
 0x22e   :  { %v1160_v30 = vmax.f32 %v1144_v57, 0.0  ;;  %v1188_v38 = vadd.f32 %v1172_v60, %v1156_v6  ;;  %1200 = vst [vmem:[#allocation2 + $0x8] sm:$0xff] %v1184_v36  ;;  %v1149_v4 = vadd.f32 %v1509_v3, %v1129_v24  ;;  %v1161_v16 = vmax.f32 %v1145_v39, 0.0 }
 0x22f   :  { %v1189_v14 = vadd.f32 %v1173_v1, %v1157_v5  ;;  %1201 = vst [vmem:[#allocation2 + $0x10] sm:$0xff] %v1185_v10  ;;  %v1150_v37 = vadd.f32 %v1509_v3, %v1130_v61  ;;  %v1162_v26 = vmax.f32 %v1146_v52, 0.0  ;;  %v1190_v41 = vadd.f32 %v1174_v45, %v1158_v48 }
 0x230   :  { %1202 = vst [vmem:[#allocation2 + $0x18] sm:$0xff] %v1186_v54  ;;  %v1163_v53 = vmax.f32 %v1147_v55, 0.0  ;;  %v1191_v51 = vadd.f32 %v1175_v11, %v1159_v62  ;;  %v1164_v32 = vmax.f32 %v1148_v58, 0.0  ;;  %v1192_v3 = vadd.f32 %v1176_v63, %v1160_v30 }
 0x231   :  { %1203 = vst [vmem:[#allocation2 + $0x20] sm:$0xff] %v1187_v21  ;;  %v1165_v13 = vmax.f32 %v1149_v4, 0.0  ;;  %v1193_v43 = vadd.f32 %v1177_v31, %v1161_v16  ;;  %v1166_v56 = vmax.f32 %v1150_v37, 0.0  ;;  %v1194_v34 = vadd.f32 %v1178_v59, %v1162_v26 }
 0x232   :  { %1204 = vst [vmem:[#allocation2 + $0x28] sm:$0xff] %v1188_v38  ;;  %v1195_v24 = vadd.f32 %v1179_v47, %v1163_v53  ;;  %v1196_v61 = vadd.f32 %v1180_v15, %v1164_v32 }
 0x233   :  { %1205 = vst [vmem:[#allocation2 + $0x30] sm:$0xff] %v1189_v14  ;;  %v1197_v22 = vadd.f32 %v1181_v44, %v1165_v13  ;;  %v1198_v49 = vadd.f32 %v1182_v7, %v1166_v56 }
 0x234   :  { %1206 = vst [vmem:[#allocation2 + $0x38] sm:$0xff] %v1190_v41 }
 0x235   :  { %1207 = vst [vmem:[#allocation2 + $0x40] sm:$0xff] %v1191_v51 }
 0x236   :  { %1208 = vst [vmem:[#allocation2 + $0x48] sm:$0xff] %v1192_v3 }
 0x237   :  { %1209 = vst [vmem:[#allocation2 + $0x50] sm:$0xff] %v1193_v43 }
 0x238   :  { %1210 = vst [vmem:[#allocation2 + $0x58] sm:$0xff] %v1194_v34 }
 0x239   :  { %1211 = vst [vmem:[#allocation2 + $0x60] sm:$0xff] %v1195_v24 }
 0x23a   :  { %1212 = vst [vmem:[#allocation2 + $0x68] sm:$0xff] %v1196_v61 }
 0x23b   :  { %1213 = vst [vmem:[#allocation2 + $0x70] sm:$0xff] %v1197_v22 }
 0x23c   :  { %1214 = vst [vmem:[#allocation2 + $0x78] sm:$0xff] %v1198_v49 }
 0x23d   :  { %1227 = dma.vmem_to_hbm [thread:$0]  %s1220_s12, 2048, %s1222_s15, [#allocation3], %s1542_s4, %s1542_s4, %s1543_s16  }
 0x23e   :  { %1538 = dma.done.wait [#allocation3], 2048  }
 0x23f   :  { %1539 = vsyncadd [#allocation3], 4294965248 }
 0x240   :  { %1232 = vsyncpa [#allocation3], 1 }

</bundles_post_ra>
